<compile_context>
chip_gen: v5e
topology: v5e:2x2
jax: 0.10.0
libtpu: 0.0.40
codegen_flags: <defaults>
</compile_context>

<pallas_src>
import functools

import jax
import jax.numpy as jnp
from jax.experimental import pallas as pl
from jax.experimental.pallas import tpu as pltpu


# ----------------------------------------------------------------------------
# Shared math helpers (pure jnp: usable inside kernels and in the JAX reference)
# ----------------------------------------------------------------------------
def _ln(x, w, b, eps=1e-8):
    """PyTorch nn.LayerNorm over the last dim (biased variance, affine, eps=1e-8)."""
    mu = jnp.mean(x, axis=-1, keepdims=True)
    xc = x - mu
    var = jnp.mean(xc * xc, axis=-1, keepdims=True)
    return xc * jax.lax.rsqrt(var + eps) * w + b


# ----------------------------------------------------------------------------
# Pallas kernels (each processes a tile of rows; parameter blocks are full)
# ----------------------------------------------------------------------------
def enc_head_kernel(x_ref, ew_ref, eb_ref, lnw_ref, lnb_ref, c1_ref,
                    mixw_ref, h_ref):
    # Conv1d(1->N, k=16, s=8) as frames @ W^T + b, ReLU  -> mix_w
    # then masknet head: LayerNorm(N) + 1x1 Conv1d (no bias) -> h
    mw = jnp.maximum(
        jnp.dot(x_ref[...], ew_ref[...], preferred_element_type=jnp.float32)
        + eb_ref[...], 0.0)
    mixw_ref[...] = mw
    h_ref[...] = jnp.dot(_ln(mw, lnw_ref[...], lnb_ref[...]), c1_ref[...],
                         preferred_element_type=jnp.float32)


def core_kernel(x_ref, iw_ref, ib_ref, ow_ref, ob_ref, a_ref, w2_ref, b2_ref,
                o_ref, *, num_layers):
    # num_layers x Dual_Computation_Block (identity intra/inter models):
    #   x = LN_inter(LN_intra(x) + x) + x       (per position, over N)
    # then PReLU (single shared parameter), then 1x1 Conv2d (N -> N*num_spks) + bias.
    x = x_ref[...]
    for l in range(num_layers):            # static unroll; params read once per layer
        intra = _ln(x, iw_ref[l], ib_ref[l]) + x
        x = _ln(intra, ow_ref[l], ob_ref[l]) + x
    x = jnp.where(x > 0, x, x * a_ref[...])
    o_ref[...] = (jnp.dot(x, w2_ref[...], preferred_element_type=jnp.float32)
                  + b2_ref[...])


def gate_dec_kernel(x_ref, mixw_ref, wlg_ref, blg_ref, we_ref, dw_ref, o_ref,
                    *, n, off):
    # tanh(output_left(x)) + sigmoid(output_gate(x)) -> end_conv1x1 -> ReLU
    # -> mask * mix_w -> ConvTranspose1d inner per-frame projection.
    x = x_ref[...]
    z = jnp.dot(x, wlg_ref[...], preferred_element_type=jnp.float32) + blg_ref[...]
    g = jnp.tanh(z[:, :n]) + jax.nn.sigmoid(z[:, off:off + n])   # 128-aligned splits
    mask = jnp.maximum(
        jnp.dot(g, we_ref[...], preferred_element_type=jnp.float32), 0.0)
    sep = mixw_ref[...] * mask
    # TODO(synk): pack the ks=16-wide decoder frames into 128-lane rows
    # (8 frames / row) if the narrow masked store shows up in profiles; it is a
    # tiny fraction of HBM traffic at these shapes.
    o_ref[...] = jnp.dot(sep, dw_ref[...], preferred_element_type=jnp.float32)


# ----------------------------------------------------------------------------
# pallas_call wrappers
# ----------------------------------------------------------------------------
_MAX_TILE_ROWS = 512   # near HBM-roofline tile; fits VMEM on v5e/v6e/v7x


def _row_tile(m, max_tile=_MAX_TILE_ROWS):
    return min(max_tile, ((m + 7) // 8) * 8)     # multiple of 8 sublanes


def _full_spec(p):
    nd = p.ndim
    return pl.BlockSpec(p.shape, lambda *idx, nd=nd: (0,) * nd)


def encoder_head(frames, p, N):
    M, ks = frames.shape
    tm = _row_tile(M)
    params = [p['enc_w'], p['enc_b'], p['mn_ln_w'], p['mn_ln_b'], p['c1_w']]
    mixw, h = pl.pallas_call(
        enc_head_kernel,
        grid=(pl.cdiv(M, tm),),
        in_specs=[pl.BlockSpec((tm, ks), lambda i: (i, 0))]
                 + [_full_spec(q) for q in params],
        out_specs=(pl.BlockSpec((tm, N), lambda i: (i, 0)),
                   pl.BlockSpec((tm, N), lambda i: (i, 0))),
        out_shape=(jax.ShapeDtypeStruct((M, N), jnp.float32),
                   jax.ShapeDtypeStruct((M, N), jnp.float32)),
        compiler_params=pltpu.CompilerParams(dimension_semantics=("parallel",)),
    )(frames, *params)
    return mixw, h


def core(x_rows, p, num_layers, n_out):
    M, N = x_rows.shape
    tm = _row_tile(M)
    params = [p['intra_w'], p['intra_b'], p['inter_w'], p['inter_b'],
              p['prelu_a'], p['w2'], p['b2']]
    return pl.pallas_call(
        functools.partial(core_kernel, num_layers=num_layers),
        grid=(pl.cdiv(M, tm),),
        in_specs=[pl.BlockSpec((tm, N), lambda i: (i, 0))]
                 + [_full_spec(q) for q in params],
        out_specs=pl.BlockSpec((tm, n_out), lambda i: (i, 0)),
        out_shape=jax.ShapeDtypeStruct((M, n_out), jnp.float32),
        compiler_params=pltpu.CompilerParams(dimension_semantics=("parallel",)),
    )(x_rows, *params)


def gate_mask_dec(ov, mixw, p, ks, off):
    # ov: (spks, B*L, N) rows; mixw: (B*L, N) shared across spks via index_map.
    # Grid order (row_blocks, spks): mixw's block index is constant across the
    # inner spks steps, so its copy-in is elided after the first speaker.
    spks, BL, N = ov.shape
    tm = _row_tile(BL)
    nb = pl.cdiv(BL, tm)
    params = [p['wlg'], p['blg'], p['we'], p['dec_w']]
    return pl.pallas_call(
        functools.partial(gate_dec_kernel, n=N, off=off),
        grid=(nb, spks),
        in_specs=[pl.BlockSpec((None, tm, N), lambda i, s: (s, i, 0)),
                  pl.BlockSpec((tm, N), lambda i, s: (i, 0))]
                 + [_full_spec(q) for q in params],
        out_specs=pl.BlockSpec((None, tm, ks), lambda i, s: (s, i, 0)),
        out_shape=jax.ShapeDtypeStruct((spks, BL, ks), jnp.float32),
        compiler_params=pltpu.CompilerParams(
            dimension_semantics=("parallel", "parallel")),
    )(ov, mixw, *params)


# ----------------------------------------------------------------------------
# Pure-JAX stage references (same math, jnp ops) for a correctness check
# ----------------------------------------------------------------------------
def _enc_head_jnp(frames, p):
    mw = jnp.maximum(frames @ p['enc_w'] + p['enc_b'], 0.0)
    return mw, _ln(mw, p['mn_ln_w'], p['mn_ln_b']) @ p['c1_w']


def _core_jnp(x, p, num_layers):
    for l in range(num_layers):
        x = _ln(_ln(x, p['intra_w'][l], p['intra_b'][l]) + x,
                p['inter_w'][l], p['inter_b'][l]) + x
    x = jnp.where(x > 0, x, x * p['prelu_a'])
    return x @ p['w2'] + p['b2']


def _gate_dec_jnp(ov, mixw, p, n, off):
    z = ov @ p['wlg'] + p['blg']
    g = jnp.tanh(z[..., :n]) + jax.nn.sigmoid(z[..., off:off + n])
    mask = jnp.maximum(g @ p['we'], 0.0)
    return (mixw[None] * mask) @ p['dec_w']


# ----------------------------------------------------------------------------
# Parameters (deterministic, in-script)
# ----------------------------------------------------------------------------
def init_params(key, N, ks, spks, num_layers):
    keys = jax.random.split(key, 12)
    nrm = lambda k, s: 0.1 * jax.random.normal(k, s, dtype=jnp.float32)
    Np = ((N + 127) // 128) * 128          # pad each gate half to a 128-lane boundary
    wl, wg = nrm(keys[5], (N, N)), nrm(keys[7], (N, N))
    bl, bg = nrm(keys[6], (1, N)), nrm(keys[8], (1, N))
    wlg = jnp.zeros((N, 2 * Np), jnp.float32)
    wlg = wlg.at[:, :N].set(wl).at[:, Np:Np + N].set(wg)
    blg = jnp.zeros((1, 2 * Np), jnp.float32)
    blg = blg.at[:, :N].set(bl).at[:, Np:Np + N].set(bg)
    params = dict(
        enc_w=nrm(keys[0], (ks, N)),          # Conv1d weight (N,1,ks)^T
        enc_b=nrm(keys[1], (1, N)),
        mn_ln_w=jnp.ones((1, N), jnp.float32),
        mn_ln_b=jnp.zeros((1, N), jnp.float32),
        c1_w=nrm(keys[2], (N, N)),            # masknet conv1d (no bias), W^T
        intra_w=jnp.ones((num_layers, N), jnp.float32),   # LN default init
        intra_b=jnp.zeros((num_layers, N), jnp.float32),
        inter_w=jnp.ones((num_layers, N), jnp.float32),
        inter_b=jnp.zeros((num_layers, N), jnp.float32),
        prelu_a=jnp.full((1, N), 0.25, jnp.float32),       # single PReLU param, broadcast
        w2=nrm(keys[3], (N, N * spks)),       # conv2d 1x1 W^T  (out channel = spk*N + n)
        b2=nrm(keys[4], (1, N * spks)),
        wlg=wlg, blg=blg,                     # [output_left | output_gate], padded halves
        we=nrm(keys[9], (N, N)),              # end_conv1x1 (no bias), W^T
        dec_w=nrm(keys[10], (N, ks)),         # ConvTranspose1d weight (N,1,ks) squeezed
        dec_b=nrm(keys[11], (1,)),
    )
    return params, Np


# ----------------------------------------------------------------------------
# Forward pass (shared glue; Pallas or pure-jnp compute stages)
# ----------------------------------------------------------------------------
def model_forward(mix, params, *, N, ks, hop, chunk_K, spks, num_layers,
                  gate_off, use_pallas=True):
    B, _, T = mix.shape
    L = (T - ks) // hop + 1

    # --- frames for the strided Conv1d (gather glue) ---
    sig = mix[:, 0, :]
    idx = (jnp.arange(L) * hop)[:, None] + jnp.arange(ks)[None, :]
    frames = sig[:, idx].reshape(B * L, ks)

    # --- fused encoder (Conv1d+ReLU) + masknet head (LN + 1x1 conv) ---
    if use_pallas:
        mix_w, h = encoder_head(frames, params, N)        # each (B*L, N)
    else:
        mix_w, h = _enc_head_jnp(frames, params)
    h3 = h.reshape(B, L, N)

    # --- segmentation (glue; matches _Segmentation) ---
    K = chunk_K
    P = K // 2
    gap = K - (P + L % K) % K              # always in [1, K]
    hp = jnp.pad(h3, ((0, 0), (P, gap + P), (0, 0)))
    Lp = L + gap + 2 * P
    S0 = (Lp - P) // K
    x1 = hp[:, :Lp - P, :].reshape(B, S0, K, N)
    x2 = hp[:, P:, :].reshape(B, S0, K, N)
    seg = jnp.stack([x1, x2], axis=2).reshape(B, 2 * S0, K, N)   # (B, S, K, N)
    S = 2 * S0

    # --- dual blocks + PReLU + 1x1 conv2d (fused) ---
    x_rows = seg.reshape(B * S * K, N)
    if use_pallas:
        y = core(x_rows, params, num_layers, N * spks)
    else:
        y = _core_jnp(x_rows, params, num_layers)
    y = y.reshape(B, S, K, spks, N)

    # --- overlap-add (glue; matches _over_add) ---
    ye = y[:, 0::2].reshape(B, S0 * K, spks, N)
    yo = y[:, 1::2].reshape(B, S0 * K, spks, N)
    ov = (ye[:, P:] + yo[:, :S0 * K - P])[:, :L]        # (B, L, spks, N), gap dropped
    ov = jnp.transpose(ov, (2, 0, 1, 3)).reshape(spks, B * L, N)

    # --- fused gate + mask multiply + decoder frame projection ---
    if use_pallas:
        dec_frames = gate_mask_dec(ov, mix_w, params, ks, gate_off)  # (spks, B*L, ks)
    else:
        dec_frames = _gate_dec_jnp(ov, mix_w, params, N, gate_off)
    dec_frames = dec_frames.reshape(spks, B, L, ks)

    # --- ConvTranspose1d overlap-add (stride hop) + bias (glue) ---
    T_dec = (L - 1) * hop + ks
    blocks = jnp.zeros((spks, B, L + 1, hop), jnp.float32)
    blocks = blocks.at[:, :, :L, :].add(dec_frames[..., :hop])
    blocks = blocks.at[:, :, 1:, :].add(dec_frames[..., hop:])
    logits = blocks.reshape(spks, B, T_dec) + params['dec_b'][0]
    est = jnp.transpose(logits, (1, 0, 2))              # (B, num_spks, T_dec)

    if T > T_dec:
        est = jnp.pad(est, ((0, 0), (0, 0), (0, T - T_dec)))
    else:
        est = est[:, :, :T]
    return est                                          # (B, num_spks, T)


# ----------------------------------------------------------------------------
if __name__ == "__main__":
    # Small demo config.  N = 128 keeps every feature dim a multiple of the
    # 128-lane vreg (lane-dense stores).  (T - 16) % 8 == 0 -> decoder length
    # exactly matches T.
    B, T = 2, 520
    N, ks, hop = 128, 16, 8       # encoder_out_nchannels, kernel, stride
    chunk_K, spks, num_layers = 8, 2, 2

    key = jax.random.PRNGKey(0)
    kp, kx = jax.random.split(key)
    params, gate_off = init_params(kp, N, ks, spks, num_layers)
    mix = jax.random.normal(kx, (B, 1, T), dtype=jnp.float32)

    common = dict(N=N, ks=ks, hop=hop, chunk_K=chunk_K, spks=spks,
                  num_layers=num_layers, gate_off=gate_off)
    fwd = jax.jit(functools.partial(model_forward, use_pallas=True, **common))
    ref = jax.jit(functools.partial(model_forward, use_pallas=False, **common))

    out = jax.block_until_ready(fwd(mix, params))
    expected = jax.block_until_ready(ref(mix, params))

    assert out.shape == (B, spks, T), out.shape
    assert bool(jnp.all(jnp.isfinite(out)))
    # Loose tolerance: MXU vs XLA matmul precision may differ slightly in f32.
    assert bool(jnp.allclose(out, expected, atol=5e-2, rtol=5e-2))
    print("KERNEL_OK")
</pallas_src>

<mosaic_0001>
module attributes {stable_mosaic.version = 11 : i64} {
  func.func @enc_head_kernel(%arg0: i32, %arg1: memref<128x16xf32, #tpu.memory_space<vmem>>, %arg2: memref<16x128xf32, #tpu.memory_space<vmem>>, %arg3: memref<1x128xf32, #tpu.memory_space<vmem>>, %arg4: memref<1x128xf32, #tpu.memory_space<vmem>>, %arg5: memref<1x128xf32, #tpu.memory_space<vmem>>, %arg6: memref<128x128xf32, #tpu.memory_space<vmem>>, %arg7: memref<128x128xf32, #tpu.memory_space<vmem>>, %arg8: memref<128x128xf32, #tpu.memory_space<vmem>>) attributes {dimension_semantics = [#tpu.dimension_semantics<parallel>], iteration_bounds = array<i64: 1>, scalar_prefetch = 0 : i64, scratch_operands = 0 : i64, tpu.core_type = #tpu.core_type<tc>, window_params = [{transform_indices = @transform_0, window_bounds = array<i64: 128, 16>}, {pipeline_mode = #tpu.pipeline_mode<synchronous>, transform_indices = @transform_1, window_bounds = array<i64: 16, 128>}, {pipeline_mode = #tpu.pipeline_mode<synchronous>, transform_indices = @transform_2, window_bounds = array<i64: 1, 128>}, {pipeline_mode = #tpu.pipeline_mode<synchronous>, transform_indices = @transform_3, window_bounds = array<i64: 1, 128>}, {pipeline_mode = #tpu.pipeline_mode<synchronous>, transform_indices = @transform_4, window_bounds = array<i64: 1, 128>}, {pipeline_mode = #tpu.pipeline_mode<synchronous>, transform_indices = @transform_5, window_bounds = array<i64: 128, 128>}, {transform_indices = @transform_6, window_bounds = array<i64: 128, 128>}, {transform_indices = @transform_7, window_bounds = array<i64: 128, 128>}]} {
    %c0 = arith.constant 0 : index
    %c0_0 = arith.constant 0 : index
    %0 = vector.load %arg1[%c0, %c0_0] : memref<128x16xf32, #tpu.memory_space<vmem>>, vector<128x16xf32>
    %c0_1 = arith.constant 0 : index
    %c0_2 = arith.constant 0 : index
    %1 = vector.load %arg2[%c0_1, %c0_2] : memref<16x128xf32, #tpu.memory_space<vmem>>, vector<16x128xf32>
    %cst = arith.constant dense<0.000000e+00> : vector<128x128xf32>
    %2 = tpu.matmul %0, %1, %cst {dimension_numbers = #tpu.dot_dimension_numbers<[1], [0], [0], [1], [0, 0, 1, 1], [], []>} : vector<128x16xf32>, vector<16x128xf32>, vector<128x128xf32> -> vector<128x128xf32>
    %c0_3 = arith.constant 0 : index
    %c0_4 = arith.constant 0 : index
    %3 = vector.load %arg3[%c0_3, %c0_4] : memref<1x128xf32, #tpu.memory_space<vmem>>, vector<1x128xf32>
    %4 = vector.broadcast %3 : vector<1x128xf32> to vector<128x128xf32>
    %5 = arith.addf %2, %4 : vector<128x128xf32>
    %cst_5 = arith.constant 0.000000e+00 : f32
    %6 = vector.broadcast %cst_5 : f32 to vector<128x128xf32>
    %7 = arith.maximumf %5, %6 : vector<128x128xf32>
    %c0_6 = arith.constant 0 : index
    %c0_7 = arith.constant 0 : index
    %8 = vector.load %arg7[%c0_6, %c0_7] : memref<128x128xf32, #tpu.memory_space<vmem>>, vector<128x128xf32>
    tpu.vector_store %arg7[%c0_6, %c0_7], %7 {strides = array<i32>} : memref<128x128xf32, #tpu.memory_space<vmem>>, vector<128x128xf32>,
    %c0_8 = arith.constant 0 : index
    %c0_9 = arith.constant 0 : index
    %9 = vector.load %arg4[%c0_8, %c0_9] : memref<1x128xf32, #tpu.memory_space<vmem>>, vector<1x128xf32>
    %c0_10 = arith.constant 0 : index
    %c0_11 = arith.constant 0 : index
    %10 = vector.load %arg5[%c0_10, %c0_11] : memref<1x128xf32, #tpu.memory_space<vmem>>, vector<1x128xf32>
    %cst_12 = arith.constant dense<0.000000e+00> : vector<128xf32>
    %11 = vector.multi_reduction <add>, %7, %cst_12 [1] : vector<128x128xf32> to vector<128xf32>
    %12 = vector.shape_cast %11 : vector<128xf32> to vector<128x1xf32>
    %cst_13 = arith.constant 1.280000e+02 : f32
    %13 = vector.broadcast %cst_13 : f32 to vector<128x1xf32>
    %14 = arith.divf %12, %13 : vector<128x1xf32>
    %15 = vector.broadcast %14 : vector<128x1xf32> to vector<128x128xf32>
    %16 = arith.subf %7, %15 : vector<128x128xf32>
    %17 = arith.mulf %16, %16 : vector<128x128xf32>
    %cst_14 = arith.constant dense<0.000000e+00> : vector<128xf32>
    %18 = vector.multi_reduction <add>, %17, %cst_14 [1] : vector<128x128xf32> to vector<128xf32>
    %19 = vector.shape_cast %18 : vector<128xf32> to vector<128x1xf32>
    %cst_15 = arith.constant 1.280000e+02 : f32
    %20 = vector.broadcast %cst_15 : f32 to vector<128x1xf32>
    %21 = arith.divf %19, %20 : vector<128x1xf32>
    %cst_16 = arith.constant 9.99999993E-9 : f32
    %22 = vector.broadcast %cst_16 : f32 to vector<128x1xf32>
    %23 = arith.addf %21, %22 : vector<128x1xf32>
    %24 = math.rsqrt %23 : vector<128x1xf32>
    %25 = vector.broadcast %24 : vector<128x1xf32> to vector<128x128xf32>
    %26 = arith.mulf %16, %25 : vector<128x128xf32>
    %27 = vector.broadcast %9 : vector<1x128xf32> to vector<128x128xf32>
    %28 = arith.mulf %26, %27 : vector<128x128xf32>
    %29 = vector.broadcast %10 : vector<1x128xf32> to vector<128x128xf32>
    %30 = arith.addf %28, %29 : vector<128x128xf32>
    %c0_17 = arith.constant 0 : index
    %c0_18 = arith.constant 0 : index
    %31 = vector.load %arg6[%c0_17, %c0_18] : memref<128x128xf32, #tpu.memory_space<vmem>>, vector<128x128xf32>
    %cst_19 = arith.constant dense<0.000000e+00> : vector<128x128xf32>
    %32 = tpu.matmul %30, %31, %cst_19 {dimension_numbers = #tpu.dot_dimension_numbers<[1], [0], [0], [1], [0, 0, 1, 1], [], []>} : vector<128x128xf32>, vector<128x128xf32>, vector<128x128xf32> -> vector<128x128xf32>
    %c0_20 = arith.constant 0 : index
    %c0_21 = arith.constant 0 : index
    %33 = vector.load %arg8[%c0_20, %c0_21] : memref<128x128xf32, #tpu.memory_space<vmem>>, vector<128x128xf32>
    tpu.vector_store %arg8[%c0_20, %c0_21], %32 {strides = array<i32>} : memref<128x128xf32, #tpu.memory_space<vmem>>, vector<128x128xf32>,
    return
  }
  func.func @transform_0(%arg0: i32) -> (i32, i32) {
    %c0_i32 = arith.constant 0 : i32
    %c0_i32_0 = arith.constant 0 : i32
    return %arg0, %c0_i32 : i32, i32
  }
  func.func @transform_1(%arg0: i32) -> (i32, i32) {
    %c0_i32 = arith.constant 0 : i32
    %c0_i32_0 = arith.constant 0 : i32
    %c0_i32_1 = arith.constant 0 : i32
    return %c0_i32, %c0_i32_0 : i32, i32
  }
  func.func @transform_2(%arg0: i32) -> (i32, i32) {
    %c0_i32 = arith.constant 0 : i32
    %c0_i32_0 = arith.constant 0 : i32
    %c0_i32_1 = arith.constant 0 : i32
    return %c0_i32, %c0_i32_0 : i32, i32
  }
  func.func @transform_3(%arg0: i32) -> (i32, i32) {
    %c0_i32 = arith.constant 0 : i32
    %c0_i32_0 = arith.constant 0 : i32
    %c0_i32_1 = arith.constant 0 : i32
    return %c0_i32, %c0_i32_0 : i32, i32
  }
  func.func @transform_4(%arg0: i32) -> (i32, i32) {
    %c0_i32 = arith.constant 0 : i32
    %c0_i32_0 = arith.constant 0 : i32
    %c0_i32_1 = arith.constant 0 : i32
    return %c0_i32, %c0_i32_0 : i32, i32
  }
  func.func @transform_5(%arg0: i32) -> (i32, i32) {
    %c0_i32 = arith.constant 0 : i32
    %c0_i32_0 = arith.constant 0 : i32
    %c0_i32_1 = arith.constant 0 : i32
    return %c0_i32, %c0_i32_0 : i32, i32
  }
  func.func @transform_6(%arg0: i32) -> (i32, i32) {
    %c0_i32 = arith.constant 0 : i32
    %c0_i32_0 = arith.constant 0 : i32
    return %arg0, %c0_i32 : i32, i32
  }
  func.func @transform_7(%arg0: i32) -> (i32, i32) {
    %c0_i32 = arith.constant 0 : i32
    %c0_i32_0 = arith.constant 0 : i32
    return %arg0, %c0_i32 : i32, i32
  }
}

module attributes {stable_mosaic.version = 11 : i64} {
  func.func @gate_dec_kernel(%arg0: i32, %arg1: i32, %arg2: memref<1x128x128xf32, #tpu.memory_space<vmem>>, %arg3: memref<128x128xf32, #tpu.memory_space<vmem>>, %arg4: memref<128x256xf32, #tpu.memory_space<vmem>>, %arg5: memref<1x256xf32, #tpu.memory_space<vmem>>, %arg6: memref<128x128xf32, #tpu.memory_space<vmem>>, %arg7: memref<128x16xf32, #tpu.memory_space<vmem>>, %arg8: memref<1x128x16xf32, #tpu.memory_space<vmem>>) attributes {dimension_semantics = [#tpu.dimension_semantics<parallel>, #tpu.dimension_semantics<parallel>], iteration_bounds = array<i64: 1, 2>, scalar_prefetch = 0 : i64, scratch_operands = 0 : i64, tpu.core_type = #tpu.core_type<tc>, window_params = [{transform_indices = @transform_0, window_bounds = array<i64: 1, 128, 128>}, {transform_indices = @transform_1, window_bounds = array<i64: 128, 128>}, {pipeline_mode = #tpu.pipeline_mode<synchronous>, transform_indices = @transform_2, window_bounds = array<i64: 128, 256>}, {pipeline_mode = #tpu.pipeline_mode<synchronous>, transform_indices = @transform_3, window_bounds = array<i64: 1, 256>}, {pipeline_mode = #tpu.pipeline_mode<synchronous>, transform_indices = @transform_4, window_bounds = array<i64: 128, 128>}, {pipeline_mode = #tpu.pipeline_mode<synchronous>, transform_indices = @transform_5, window_bounds = array<i64: 128, 16>}, {transform_indices = @transform_6, window_bounds = array<i64: 1, 128, 16>}]} {
    %c0 = arith.constant 0 : index
    %c0_0 = arith.constant 0 : index
    %c0_1 = arith.constant 0 : index
    %0 = vector.load %arg2[%c0, %c0_0, %c0_1] : memref<1x128x128xf32, #tpu.memory_space<vmem>>, vector<1x128x128xf32>
    %1 = vector.shape_cast %0 : vector<1x128x128xf32> to vector<128x128xf32>
    %c0_2 = arith.constant 0 : index
    %c0_3 = arith.constant 0 : index
    %2 = vector.load %arg4[%c0_2, %c0_3] : memref<128x256xf32, #tpu.memory_space<vmem>>, vector<128x256xf32>
    %cst = arith.constant dense<0.000000e+00> : vector<128x256xf32>
    %3 = tpu.matmul %1, %2, %cst {dimension_numbers = #tpu.dot_dimension_numbers<[1], [0], [0], [1], [0, 0, 1, 1], [], []>} : vector<128x128xf32>, vector<128x256xf32>, vector<128x256xf32> -> vector<128x256xf32>
    %c0_4 = arith.constant 0 : index
    %c0_5 = arith.constant 0 : index
    %4 = vector.load %arg5[%c0_4, %c0_5] : memref<1x256xf32, #tpu.memory_space<vmem>>, vector<1x256xf32>
    %5 = vector.broadcast %4 : vector<1x256xf32> to vector<128x256xf32>
    %6 = arith.addf %3, %5 : vector<128x256xf32>
    %7 = vector.extract_strided_slice %6 {offsets = [0, 0], sizes = [128, 128], strides = [1, 1]} : vector<128x256xf32> to vector<128x128xf32>
    %8 = math.tanh %7 : vector<128x128xf32>
    %9 = vector.extract_strided_slice %6 {offsets = [0, 128], sizes = [128, 128], strides = [1, 1]} : vector<128x256xf32> to vector<128x128xf32>
    %10 = arith.negf %9 : vector<128x128xf32>
    %11 = math.exp %10 : vector<128x128xf32>
    %cst_6 = arith.constant 1.000000e+00 : f32
    %12 = vector.broadcast %cst_6 : f32 to vector<128x128xf32>
    %13 = arith.addf %12, %11 : vector<128x128xf32>
    %14 = arith.divf %12, %13 : vector<128x128xf32>
    %15 = arith.addf %8, %14 : vector<128x128xf32>
    %c0_7 = arith.constant 0 : index
    %c0_8 = arith.constant 0 : index
    %16 = vector.load %arg6[%c0_7, %c0_8] : memref<128x128xf32, #tpu.memory_space<vmem>>, vector<128x128xf32>
    %cst_9 = arith.constant dense<0.000000e+00> : vector<128x128xf32>
    %17 = tpu.matmul %15, %16, %cst_9 {dimension_numbers = #tpu.dot_dimension_numbers<[1], [0], [0], [1], [0, 0, 1, 1], [], []>} : vector<128x128xf32>, vector<128x128xf32>, vector<128x128xf32> -> vector<128x128xf32>
    %cst_10 = arith.constant 0.000000e+00 : f32
    %18 = vector.broadcast %cst_10 : f32 to vector<128x128xf32>
    %19 = arith.maximumf %17, %18 : vector<128x128xf32>
    %c0_11 = arith.constant 0 : index
    %c0_12 = arith.constant 0 : index
    %20 = vector.load %arg3[%c0_11, %c0_12] : memref<128x128xf32, #tpu.memory_space<vmem>>, vector<128x128xf32>
    %21 = arith.mulf %20, %19 : vector<128x128xf32>
    %c0_13 = arith.constant 0 : index
    %c0_14 = arith.constant 0 : index
    %22 = vector.load %arg7[%c0_13, %c0_14] : memref<128x16xf32, #tpu.memory_space<vmem>>, vector<128x16xf32>
    %cst_15 = arith.constant dense<0.000000e+00> : vector<128x16xf32>
    %23 = tpu.matmul %21, %22, %cst_15 {dimension_numbers = #tpu.dot_dimension_numbers<[1], [0], [0], [1], [0, 0, 1, 1], [], []>} : vector<128x128xf32>, vector<128x16xf32>, vector<128x16xf32> -> vector<128x16xf32>
    %c0_16 = arith.constant 0 : index
    %c0_17 = arith.constant 0 : index
    %c0_18 = arith.constant 0 : index
    %24 = vector.load %arg8[%c0_16, %c0_17, %c0_18] : memref<1x128x16xf32, #tpu.memory_space<vmem>>, vector<1x128x16xf32>
    %25 = vector.shape_cast %24 : vector<1x128x16xf32> to vector<128x16xf32>
    %26 = vector.shape_cast %23 : vector<128x16xf32> to vector<1x128x16xf32>
    tpu.vector_store %arg8[%c0_16, %c0_17, %c0_18], %26 {strides = array<i32>} : memref<1x128x16xf32, #tpu.memory_space<vmem>>, vector<1x128x16xf32>,
    return
  }
  func.func @transform_0(%arg0: i32, %arg1: i32) -> (i32, i32, i32) {
    %c0_i32 = arith.constant 0 : i32
    %c0_i32_0 = arith.constant 0 : i32
    return %arg1, %arg0, %c0_i32 : i32, i32, i32
  }
  func.func @transform_1(%arg0: i32, %arg1: i32) -> (i32, i32) {
    %c0_i32 = arith.constant 0 : i32
    %c0_i32_0 = arith.constant 0 : i32
    return %arg0, %c0_i32 : i32, i32
  }
  func.func @transform_2(%arg0: i32, %arg1: i32) -> (i32, i32) {
    %c0_i32 = arith.constant 0 : i32
    %c0_i32_0 = arith.constant 0 : i32
    %c0_i32_1 = arith.constant 0 : i32
    return %c0_i32, %c0_i32_0 : i32, i32
  }
  func.func @transform_3(%arg0: i32, %arg1: i32) -> (i32, i32) {
    %c0_i32 = arith.constant 0 : i32
    %c0_i32_0 = arith.constant 0 : i32
    %c0_i32_1 = arith.constant 0 : i32
    return %c0_i32, %c0_i32_0 : i32, i32
  }
  func.func @transform_4(%arg0: i32, %arg1: i32) -> (i32, i32) {
    %c0_i32 = arith.constant 0 : i32
    %c0_i32_0 = arith.constant 0 : i32
    %c0_i32_1 = arith.constant 0 : i32
    return %c0_i32, %c0_i32_0 : i32, i32
  }
  func.func @transform_5(%arg0: i32, %arg1: i32) -> (i32, i32) {
    %c0_i32 = arith.constant 0 : i32
    %c0_i32_0 = arith.constant 0 : i32
    %c0_i32_1 = arith.constant 0 : i32
    return %c0_i32, %c0_i32_0 : i32, i32
  }
  func.func @transform_6(%arg0: i32, %arg1: i32) -> (i32, i32, i32) {
    %c0_i32 = arith.constant 0 : i32
    %c0_i32_0 = arith.constant 0 : i32
    return %arg1, %arg0, %c0_i32 : i32, i32, i32
  }
}

module attributes {stable_mosaic.version = 11 : i64} {
  func.func @core_kernel(%arg0: i32, %arg1: memref<288x128xf32, #tpu.memory_space<vmem>>, %arg2: memref<2x128xf32, #tpu.memory_space<vmem>>, %arg3: memref<2x128xf32, #tpu.memory_space<vmem>>, %arg4: memref<2x128xf32, #tpu.memory_space<vmem>>, %arg5: memref<2x128xf32, #tpu.memory_space<vmem>>, %arg6: memref<1x128xf32, #tpu.memory_space<vmem>>, %arg7: memref<128x256xf32, #tpu.memory_space<vmem>>, %arg8: memref<1x256xf32, #tpu.memory_space<vmem>>, %arg9: memref<288x256xf32, #tpu.memory_space<vmem>>) attributes {dimension_semantics = [#tpu.dimension_semantics<parallel>], iteration_bounds = array<i64: 1>, scalar_prefetch = 0 : i64, scratch_operands = 0 : i64, tpu.core_type = #tpu.core_type<tc>, window_params = [{transform_indices = @transform_0, window_bounds = array<i64: 288, 128>}, {pipeline_mode = #tpu.pipeline_mode<synchronous>, transform_indices = @transform_1, window_bounds = array<i64: 2, 128>}, {pipeline_mode = #tpu.pipeline_mode<synchronous>, transform_indices = @transform_2, window_bounds = array<i64: 2, 128>}, {pipeline_mode = #tpu.pipeline_mode<synchronous>, transform_indices = @transform_3, window_bounds = array<i64: 2, 128>}, {pipeline_mode = #tpu.pipeline_mode<synchronous>, transform_indices = @transform_4, window_bounds = array<i64: 2, 128>}, {pipeline_mode = #tpu.pipeline_mode<synchronous>, transform_indices = @transform_5, window_bounds = array<i64: 1, 128>}, {pipeline_mode = #tpu.pipeline_mode<synchronous>, transform_indices = @transform_6, window_bounds = array<i64: 128, 256>}, {pipeline_mode = #tpu.pipeline_mode<synchronous>, transform_indices = @transform_7, window_bounds = array<i64: 1, 256>}, {transform_indices = @transform_8, window_bounds = array<i64: 288, 256>}]} {
    %c0 = arith.constant 0 : index
    %c0_0 = arith.constant 0 : index
    %0 = vector.load %arg1[%c0, %c0_0] : memref<288x128xf32, #tpu.memory_space<vmem>>, vector<288x128xf32>
    %c0_1 = arith.constant 0 : index
    %c0_2 = arith.constant 0 : index
    %1 = vector.load %arg2[%c0_1, %c0_2] : memref<2x128xf32, #tpu.memory_space<vmem>>, vector<1x128xf32>
    %2 = vector.shape_cast %1 : vector<1x128xf32> to vector<128xf32>
    %c0_3 = arith.constant 0 : index
    %c0_4 = arith.constant 0 : index
    %3 = vector.load %arg3[%c0_3, %c0_4] : memref<2x128xf32, #tpu.memory_space<vmem>>, vector<1x128xf32>
    %4 = vector.shape_cast %3 : vector<1x128xf32> to vector<128xf32>
    %cst = arith.constant dense<0.000000e+00> : vector<288xf32>
    %5 = vector.multi_reduction <add>, %0, %cst [1] : vector<288x128xf32> to vector<288xf32>
    %6 = vector.shape_cast %5 : vector<288xf32> to vector<288x1xf32>
    %cst_5 = arith.constant 1.280000e+02 : f32
    %7 = vector.broadcast %cst_5 : f32 to vector<288x1xf32>
    %8 = arith.divf %6, %7 : vector<288x1xf32>
    %9 = vector.broadcast %8 : vector<288x1xf32> to vector<288x128xf32>
    %10 = arith.subf %0, %9 : vector<288x128xf32>
    %11 = arith.mulf %10, %10 : vector<288x128xf32>
    %cst_6 = arith.constant dense<0.000000e+00> : vector<288xf32>
    %12 = vector.multi_reduction <add>, %11, %cst_6 [1] : vector<288x128xf32> to vector<288xf32>
    %13 = vector.shape_cast %12 : vector<288xf32> to vector<288x1xf32>
    %cst_7 = arith.constant 1.280000e+02 : f32
    %14 = vector.broadcast %cst_7 : f32 to vector<288x1xf32>
    %15 = arith.divf %13, %14 : vector<288x1xf32>
    %cst_8 = arith.constant 9.99999993E-9 : f32
    %16 = vector.broadcast %cst_8 : f32 to vector<288x1xf32>
    %17 = arith.addf %15, %16 : vector<288x1xf32>
    %18 = math.rsqrt %17 : vector<288x1xf32>
    %19 = vector.broadcast %18 : vector<288x1xf32> to vector<288x128xf32>
    %20 = arith.mulf %10, %19 : vector<288x128xf32>
    %21 = vector.shape_cast %2 : vector<128xf32> to vector<1x128xf32>
    %22 = vector.broadcast %21 : vector<1x128xf32> to vector<288x128xf32>
    %23 = arith.mulf %20, %22 : vector<288x128xf32>
    %24 = vector.shape_cast %4 : vector<128xf32> to vector<1x128xf32>
    %25 = vector.broadcast %24 : vector<1x128xf32> to vector<288x128xf32>
    %26 = arith.addf %23, %25 : vector<288x128xf32>
    %27 = arith.addf %26, %0 : vector<288x128xf32>
    %c0_9 = arith.constant 0 : index
    %c0_10 = arith.constant 0 : index
    %28 = vector.load %arg4[%c0_9, %c0_10] : memref<2x128xf32, #tpu.memory_space<vmem>>, vector<1x128xf32>
    %29 = vector.shape_cast %28 : vector<1x128xf32> to vector<128xf32>
    %c0_11 = arith.constant 0 : index
    %c0_12 = arith.constant 0 : index
    %30 = vector.load %arg5[%c0_11, %c0_12] : memref<2x128xf32, #tpu.memory_space<vmem>>, vector<1x128xf32>
    %31 = vector.shape_cast %30 : vector<1x128xf32> to vector<128xf32>
    %cst_13 = arith.constant dense<0.000000e+00> : vector<288xf32>
    %32 = vector.multi_reduction <add>, %27, %cst_13 [1] : vector<288x128xf32> to vector<288xf32>
    %33 = vector.shape_cast %32 : vector<288xf32> to vector<288x1xf32>
    %cst_14 = arith.constant 1.280000e+02 : f32
    %34 = vector.broadcast %cst_14 : f32 to vector<288x1xf32>
    %35 = arith.divf %33, %34 : vector<288x1xf32>
    %36 = vector.broadcast %35 : vector<288x1xf32> to vector<288x128xf32>
    %37 = arith.subf %27, %36 : vector<288x128xf32>
    %38 = arith.mulf %37, %37 : vector<288x128xf32>
    %cst_15 = arith.constant dense<0.000000e+00> : vector<288xf32>
    %39 = vector.multi_reduction <add>, %38, %cst_15 [1] : vector<288x128xf32> to vector<288xf32>
    %40 = vector.shape_cast %39 : vector<288xf32> to vector<288x1xf32>
    %cst_16 = arith.constant 1.280000e+02 : f32
    %41 = vector.broadcast %cst_16 : f32 to vector<288x1xf32>
    %42 = arith.divf %40, %41 : vector<288x1xf32>
    %cst_17 = arith.constant 9.99999993E-9 : f32
    %43 = vector.broadcast %cst_17 : f32 to vector<288x1xf32>
    %44 = arith.addf %42, %43 : vector<288x1xf32>
    %45 = math.rsqrt %44 : vector<288x1xf32>
    %46 = vector.broadcast %45 : vector<288x1xf32> to vector<288x128xf32>
    %47 = arith.mulf %37, %46 : vector<288x128xf32>
    %48 = vector.shape_cast %29 : vector<128xf32> to vector<1x128xf32>
    %49 = vector.broadcast %48 : vector<1x128xf32> to vector<288x128xf32>
    %50 = arith.mulf %47, %49 : vector<288x128xf32>
    %51 = vector.shape_cast %31 : vector<128xf32> to vector<1x128xf32>
    %52 = vector.broadcast %51 : vector<1x128xf32> to vector<288x128xf32>
    %53 = arith.addf %50, %52 : vector<288x128xf32>
    %54 = arith.addf %53, %0 : vector<288x128xf32>
    %c1 = arith.constant 1 : index
    %c0_18 = arith.constant 0 : index
    %55 = vector.load %arg2[%c1, %c0_18] : memref<2x128xf32, #tpu.memory_space<vmem>>, vector<1x128xf32>
    %56 = vector.shape_cast %55 : vector<1x128xf32> to vector<128xf32>
    %c1_19 = arith.constant 1 : index
    %c0_20 = arith.constant 0 : index
    %57 = vector.load %arg3[%c1_19, %c0_20] : memref<2x128xf32, #tpu.memory_space<vmem>>, vector<1x128xf32>
    %58 = vector.shape_cast %57 : vector<1x128xf32> to vector<128xf32>
    %cst_21 = arith.constant dense<0.000000e+00> : vector<288xf32>
    %59 = vector.multi_reduction <add>, %54, %cst_21 [1] : vector<288x128xf32> to vector<288xf32>
    %60 = vector.shape_cast %59 : vector<288xf32> to vector<288x1xf32>
    %cst_22 = arith.constant 1.280000e+02 : f32
    %61 = vector.broadcast %cst_22 : f32 to vector<288x1xf32>
    %62 = arith.divf %60, %61 : vector<288x1xf32>
    %63 = vector.broadcast %62 : vector<288x1xf32> to vector<288x128xf32>
    %64 = arith.subf %54, %63 : vector<288x128xf32>
    %65 = arith.mulf %64, %64 : vector<288x128xf32>
    %cst_23 = arith.constant dense<0.000000e+00> : vector<288xf32>
    %66 = vector.multi_reduction <add>, %65, %cst_23 [1] : vector<288x128xf32> to vector<288xf32>
    %67 = vector.shape_cast %66 : vector<288xf32> to vector<288x1xf32>
    %cst_24 = arith.constant 1.280000e+02 : f32
    %68 = vector.broadcast %cst_24 : f32 to vector<288x1xf32>
    %69 = arith.divf %67, %68 : vector<288x1xf32>
    %cst_25 = arith.constant 9.99999993E-9 : f32
    %70 = vector.broadcast %cst_25 : f32 to vector<288x1xf32>
    %71 = arith.addf %69, %70 : vector<288x1xf32>
    %72 = math.rsqrt %71 : vector<288x1xf32>
    %73 = vector.broadcast %72 : vector<288x1xf32> to vector<288x128xf32>
    %74 = arith.mulf %64, %73 : vector<288x128xf32>
    %75 = vector.shape_cast %56 : vector<128xf32> to vector<1x128xf32>
    %76 = vector.broadcast %75 : vector<1x128xf32> to vector<288x128xf32>
    %77 = arith.mulf %74, %76 : vector<288x128xf32>
    %78 = vector.shape_cast %58 : vector<128xf32> to vector<1x128xf32>
    %79 = vector.broadcast %78 : vector<1x128xf32> to vector<288x128xf32>
    %80 = arith.addf %77, %79 : vector<288x128xf32>
    %81 = arith.addf %80, %54 : vector<288x128xf32>
    %c1_26 = arith.constant 1 : index
    %c0_27 = arith.constant 0 : index
    %82 = vector.load %arg4[%c1_26, %c0_27] : memref<2x128xf32, #tpu.memory_space<vmem>>, vector<1x128xf32>
    %83 = vector.shape_cast %82 : vector<1x128xf32> to vector<128xf32>
    %c1_28 = arith.constant 1 : index
    %c0_29 = arith.constant 0 : index
    %84 = vector.load %arg5[%c1_28, %c0_29] : memref<2x128xf32, #tpu.memory_space<vmem>>, vector<1x128xf32>
    %85 = vector.shape_cast %84 : vector<1x128xf32> to vector<128xf32>
    %cst_30 = arith.constant dense<0.000000e+00> : vector<288xf32>
    %86 = vector.multi_reduction <add>, %81, %cst_30 [1] : vector<288x128xf32> to vector<288xf32>
    %87 = vector.shape_cast %86 : vector<288xf32> to vector<288x1xf32>
    %cst_31 = arith.constant 1.280000e+02 : f32
    %88 = vector.broadcast %cst_31 : f32 to vector<288x1xf32>
    %89 = arith.divf %87, %88 : vector<288x1xf32>
    %90 = vector.broadcast %89 : vector<288x1xf32> to vector<288x128xf32>
    %91 = arith.subf %81, %90 : vector<288x128xf32>
    %92 = arith.mulf %91, %91 : vector<288x128xf32>
    %cst_32 = arith.constant dense<0.000000e+00> : vector<288xf32>
    %93 = vector.multi_reduction <add>, %92, %cst_32 [1] : vector<288x128xf32> to vector<288xf32>
    %94 = vector.shape_cast %93 : vector<288xf32> to vector<288x1xf32>
    %cst_33 = arith.constant 1.280000e+02 : f32
    %95 = vector.broadcast %cst_33 : f32 to vector<288x1xf32>
    %96 = arith.divf %94, %95 : vector<288x1xf32>
    %cst_34 = arith.constant 9.99999993E-9 : f32
    %97 = vector.broadcast %cst_34 : f32 to vector<288x1xf32>
    %98 = arith.addf %96, %97 : vector<288x1xf32>
    %99 = math.rsqrt %98 : vector<288x1xf32>
    %100 = vector.broadcast %99 : vector<288x1xf32> to vector<288x128xf32>
    %101 = arith.mulf %91, %100 : vector<288x128xf32>
    %102 = vector.shape_cast %83 : vector<128xf32> to vector<1x128xf32>
    %103 = vector.broadcast %102 : vector<1x128xf32> to vector<288x128xf32>
    %104 = arith.mulf %101, %103 : vector<288x128xf32>
    %105 = vector.shape_cast %85 : vector<128xf32> to vector<1x128xf32>
    %106 = vector.broadcast %105 : vector<1x128xf32> to vector<288x128xf32>
    %107 = arith.addf %104, %106 : vector<288x128xf32>
    %108 = arith.addf %107, %54 : vector<288x128xf32>
    %cst_35 = arith.constant 0.000000e+00 : f32
    %109 = vector.broadcast %cst_35 : f32 to vector<288x128xf32>
    %110 = arith.cmpf ogt, %108, %109 : vector<288x128xf32>
    %c0_36 = arith.constant 0 : index
    %c0_37 = arith.constant 0 : index
    %111 = vector.load %arg6[%c0_36, %c0_37] : memref<1x128xf32, #tpu.memory_space<vmem>>, vector<1x128xf32>
    %112 = vector.broadcast %111 : vector<1x128xf32> to vector<288x128xf32>
    %113 = arith.mulf %108, %112 : vector<288x128xf32>
    %114 = arith.select %110, %108, %113 : vector<288x128xi1>, vector<288x128xf32>
    %c0_38 = arith.constant 0 : index
    %c0_39 = arith.constant 0 : index
    %115 = vector.load %arg7[%c0_38, %c0_39] : memref<128x256xf32, #tpu.memory_space<vmem>>, vector<128x256xf32>
    %cst_40 = arith.constant dense<0.000000e+00> : vector<288x256xf32>
    %116 = tpu.matmul %114, %115, %cst_40 {dimension_numbers = #tpu.dot_dimension_numbers<[1], [0], [0], [1], [0, 0, 1, 1], [], []>} : vector<288x128xf32>, vector<128x256xf32>, vector<288x256xf32> -> vector<288x256xf32>
    %c0_41 = arith.constant 0 : index
    %c0_42 = arith.constant 0 : index
    %117 = vector.load %arg8[%c0_41, %c0_42] : memref<1x256xf32, #tpu.memory_space<vmem>>, vector<1x256xf32>
    %118 = vector.broadcast %117 : vector<1x256xf32> to vector<288x256xf32>
    %119 = arith.addf %116, %118 : vector<288x256xf32>
    %c0_43 = arith.constant 0 : index
    %c0_44 = arith.constant 0 : index
    %120 = vector.load %arg9[%c0_43, %c0_44] : memref<288x256xf32, #tpu.memory_space<vmem>>, vector<288x256xf32>
    tpu.vector_store %arg9[%c0_43, %c0_44], %119 {strides = array<i32>} : memref<288x256xf32, #tpu.memory_space<vmem>>, vector<288x256xf32>,
    return
  }
  func.func @transform_0(%arg0: i32) -> (i32, i32) {
    %c0_i32 = arith.constant 0 : i32
    %c0_i32_0 = arith.constant 0 : i32
    return %arg0, %c0_i32 : i32, i32
  }
  func.func @transform_1(%arg0: i32) -> (i32, i32) {
    %c0_i32 = arith.constant 0 : i32
    %c0_i32_0 = arith.constant 0 : i32
    %c0_i32_1 = arith.constant 0 : i32
    return %c0_i32, %c0_i32_0 : i32, i32
  }
  func.func @transform_2(%arg0: i32) -> (i32, i32) {
    %c0_i32 = arith.constant 0 : i32
    %c0_i32_0 = arith.constant 0 : i32
    %c0_i32_1 = arith.constant 0 : i32
    return %c0_i32, %c0_i32_0 : i32, i32
  }
  func.func @transform_3(%arg0: i32) -> (i32, i32) {
    %c0_i32 = arith.constant 0 : i32
    %c0_i32_0 = arith.constant 0 : i32
    %c0_i32_1 = arith.constant 0 : i32
    return %c0_i32, %c0_i32_0 : i32, i32
  }
  func.func @transform_4(%arg0: i32) -> (i32, i32) {
    %c0_i32 = arith.constant 0 : i32
    %c0_i32_0 = arith.constant 0 : i32
    %c0_i32_1 = arith.constant 0 : i32
    return %c0_i32, %c0_i32_0 : i32, i32
  }
  func.func @transform_5(%arg0: i32) -> (i32, i32) {
    %c0_i32 = arith.constant 0 : i32
    %c0_i32_0 = arith.constant 0 : i32
    %c0_i32_1 = arith.constant 0 : i32
    return %c0_i32, %c0_i32_0 : i32, i32
  }
  func.func @transform_6(%arg0: i32) -> (i32, i32) {
    %c0_i32 = arith.constant 0 : i32
    %c0_i32_0 = arith.constant 0 : i32
    %c0_i32_1 = arith.constant 0 : i32
    return %c0_i32, %c0_i32_0 : i32, i32
  }
  func.func @transform_7(%arg0: i32) -> (i32, i32) {
    %c0_i32 = arith.constant 0 : i32
    %c0_i32_0 = arith.constant 0 : i32
    %c0_i32_1 = arith.constant 0 : i32
    return %c0_i32, %c0_i32_0 : i32, i32
  }
  func.func @transform_8(%arg0: i32) -> (i32, i32) {
    %c0_i32 = arith.constant 0 : i32
    %c0_i32_0 = arith.constant 0 : i32
    return %arg0, %c0_i32 : i32, i32
  }
}

</mosaic_0001>

<bundles_post_ra>
// kernel: model_forward.5
= control target key start
LH: loop header
LB: loop body
LE: loop exit
PB: predicated region body
PF: predicated region fallthrough
CT: control target
= control target key end

     0   :  { %s1371_s21 = smov 0   ;;  %s1373_s22 = smov 0   ;;  %s1776_s0 = inlined_call_operand.vmem [shape: f32[2,128,128], index: 0, kind: input, shape index: {}]   ;;  %s1777_s1 = inlined_call_operand.vmem [shape: f32[128,128], index: 1, kind: input, shape index: {}]   ;;  %s1778_s2 = inlined_call_operand.vmem [shape: f32[128,256], index: 2, kind: input, shape index: {}]   ;;  %s1779_s3 = inlined_call_operand.vmem [shape: f32[1,256], index: 3, kind: input, shape index: {}]   ;;  %s1780_s4 = inlined_call_operand.vmem [shape: f32[128,128], index: 4, kind: input, shape index: {}]   ;;  %s1781_s5 = inlined_call_operand.vmem [shape: f32[128,16], index: 5, kind: input, shape index: {}]   ;;  %s1782_s6 = inlined_call_operand.vmem [shape: f32[2,128,16], index: 6, kind: output, shape index: {}]  }
   0x1   :  { %s1375_s23 = smov 0  }
   0x2 LB: > { %s25_s24 = sadd.s32 1, %s1330_s22  ;;  %p1167_p0 = scmp.ge.s32.totalorder %s1334_s23, 1  ;;  %s1334_s23 = sphi %s1375_s23, %s16_s23   ;;  %s1330_s22 = sphi %s1373_s22, %s1784_s22   ;;  %s1326_s21 = sphi %s1371_s21, %s1783_s21  }
   0x3   : > { %p26_p1 = scmp.ge.s32.totalorder %s25_s24, 2  ;;  %p244_p2 = scmp.lt.s32.totalorder %s1334_s23, 3 }
   0x5   : > { %s1786_s24 = smov (%p26_p1, %s25_s24), 0  ;;  %p245_p3 = pnand %p1167_p0, %p244_p2 }
   0x6   : > { %p288_p4 = scmp.lt.s32.totalorder (!%p245_p3), %s1326_s21, 1 }
   0x7   : > { %248 = sbr.rel (%p245_p3) target bundleno = 591 (0x24f), region = 44 }
   0xc   : > { %v360_v0 = vld [vmem:[%s1778_s2 + $0xf8] sm:$0xff]  ;;  %v358_v1 = vld [vmem:[%s1778_s2 + $0xe8] sm:$0xff]  ;;  %v359_v3 = vld [vmem:[%s1778_s2 + $0xf0] sm:$0xff]  ;;  %s1788_s21 = smov (!%p288_p4, %s1326_s21), 1 }
   0xd   : > { %432 = vmatpush.msra.mxu1 %v360_v0  ;;  %v356_v2 = vld [vmem:[%s1778_s2 + $0xd8] sm:$0xff]  ;;  %v354_v4 = vld [vmem:[%s1778_s2 + $0xc8] sm:$0xff]  ;;  %367 = vmatpush.msra.mxu0 %v359_v3  ;;  %v357_v5 = vld [vmem:[%s1778_s2 + $0xe0] sm:$0xff]  ;;  %s1190_s9 = sshll.u32 %s1788_s21, 7 }
   0xe   : > { %v355_v6 = vld [vmem:[%s1778_s2 + $0xd0] sm:$0xff]  ;;  %v352_v7 = vld [vmem:[%s1778_s2 + $0xb8] sm:$0xff]  ;;  %v353_v8 = vld [vmem:[%s1778_s2 + $0xc0] sm:$0xff]  ;;  %s1485_s20 = scalar_lea.vmem %s1776_s0, %s1190_s9  ;;  %s1733_s16 = scalar_lea.vmem %s1782_s6, %s1190_s9 }
   0xf   : > { %433 = vmatpush.msra.mxu1 %v358_v1  ;;  %368 = vmatpush.msra.mxu0 %v357_v5  ;;  %v350_v9 = vld [vmem:[%s1778_s2 + $0xa8] sm:$0xff]  ;;  %v351_v10 = vld [vmem:[%s1778_s2 + $0xb0] sm:$0xff]  ;;  %v348_v11 = vld [vmem:[%s1778_s2 + $0x98] sm:$0xff] }
  0x10   : > { %v349_v12 = vld [vmem:[%s1778_s2 + $0xa0] sm:$0xff]  ;;  %v346_v13 = vld [vmem:[%s1778_s2 + $0x88] sm:$0xff]  ;;  %v347_v14 = vld [vmem:[%s1778_s2 + $0x90] sm:$0xff] }
  0x11   : > { %434 = vmatpush.msra.mxu1 %v356_v2  ;;  %369 = vmatpush.msra.mxu0 %v355_v6  ;;  %v344_v15 = vld [vmem:[%s1778_s2 + $0x78] sm:$0xff]  ;;  %v345_v16 = vld [vmem:[%s1778_s2 + $0x80] sm:$0xff]  ;;  %v342_v17 = vld [vmem:[%s1778_s2 + $0x68] sm:$0xff] }
  0x12   : > { %v343_v18 = vld [vmem:[%s1778_s2 + $0x70] sm:$0xff]  ;;  %v340_v19 = vld [vmem:[%s1778_s2 + $0x58] sm:$0xff]  ;;  %v341_v20 = vld [vmem:[%s1778_s2 + $0x60] sm:$0xff] }
  0x13   : > { %435 = vmatpush.msra.mxu1 %v354_v4  ;;  %370 = vmatpush.msra.mxu0 %v353_v8  ;;  %v338_v21 = vld [vmem:[%s1778_s2 + $0x48] sm:$0xff]  ;;  %v339_v22 = vld [vmem:[%s1778_s2 + $0x50] sm:$0xff]  ;;  %v336_v23 = vld [vmem:[%s1778_s2 + $0x38] sm:$0xff] }
  0x14   : > { %v337_v24 = vld [vmem:[%s1778_s2 + $0x40] sm:$0xff]  ;;  %v334_v25 = vld [vmem:[%s1778_s2 + $0x28] sm:$0xff]  ;;  %v335_v26 = vld [vmem:[%s1778_s2 + $0x30] sm:$0xff] }
  0x15   : > { %436 = vmatpush.msra.mxu1 %v352_v7  ;;  %371 = vmatpush.msra.mxu0 %v351_v10  ;;  %v332_v27 = vld [vmem:[%s1778_s2 + $0x18] sm:$0xff]  ;;  %v333_v28 = vld [vmem:[%s1778_s2 + $0x20] sm:$0xff]  ;;  %v330_v29 = vld [vmem:[%s1778_s2 + $0x8] sm:$0xff] }
  0x16   : > { %v313_v30 = vld [vmem:[%s1485_s20] sm:$0xff]  ;;  %v331_v31 = vld [vmem:[%s1778_s2 + $0x10] sm:$0xff]  ;;  %v314_v33 = vld [vmem:[%s1485_s20 + $0x8] sm:$0xff] }
  0x17   : > { %437 = vmatpush.msra.mxu1 %v350_v9  ;;  %372 = vmatpush.msra.mxu0 %v349_v12  ;;  %v329_v32 = vld [vmem:[%s1778_s2] sm:$0xff]  ;;  %v315_v34 = vld [vmem:[%s1485_s20 + $0x10] sm:$0xff]  ;;  %v316_v35 = vld [vmem:[%s1485_s20 + $0x18] sm:$0xff] }
  0x18   : > { %v317_v36 = vld [vmem:[%s1485_s20 + $0x20] sm:$0xff]  ;;  %v318_v37 = vld [vmem:[%s1485_s20 + $0x28] sm:$0xff]  ;;  %v319_v38 = vld [vmem:[%s1485_s20 + $0x30] sm:$0xff] }
  0x19   : > { %438 = vmatpush.msra.mxu1 %v348_v11  ;;  %373 = vmatpush.msra.mxu0 %v347_v14  ;;  %v320_v39 = vld [vmem:[%s1485_s20 + $0x38] sm:$0xff]  ;;  %v321_v40 = vld [vmem:[%s1485_s20 + $0x40] sm:$0xff]  ;;  %v322_v41 = vld [vmem:[%s1485_s20 + $0x48] sm:$0xff] }
  0x1a   : > { %v323_v42 = vld [vmem:[%s1485_s20 + $0x50] sm:$0xff]  ;;  %v324_v43 = vld [vmem:[%s1485_s20 + $0x58] sm:$0xff]  ;;  %v325_v44 = vld [vmem:[%s1485_s20 + $0x60] sm:$0xff] }
  0x1b   : > { %439 = vmatpush.msra.mxu1 %v346_v13  ;;  %374 = vmatpush.msra.mxu0 %v345_v16  ;;  %v848_v45 = vld [vmem:[%s1780_s4 + $0x78] sm:$0xff]  ;;  %v847_v46 = vld [vmem:[%s1780_s4 + $0x70] sm:$0xff]  ;;  %v846_v47 = vld [vmem:[%s1780_s4 + $0x68] sm:$0xff] }
  0x1c   : > { %849 = vmatpush.msra.mxu2 %v848_v45  ;;  %v845_v48 = vld [vmem:[%s1780_s4 + $0x60] sm:$0xff]  ;;  %v326_v49 = vld [vmem:[%s1485_s20 + $0x68] sm:$0xff]  ;;  %v844_v50 = vld [vmem:[%s1780_s4 + $0x58] sm:$0xff] }
  0x1d   : > { %440 = vmatpush.msra.mxu1 %v344_v15  ;;  %375 = vmatpush.msra.mxu0 %v343_v18  ;;  %v843_v51 = vld [vmem:[%s1780_s4 + $0x50] sm:$0xff]  ;;  %v842_v52 = vld [vmem:[%s1780_s4 + $0x48] sm:$0xff]  ;;  %v841_v53 = vld [vmem:[%s1780_s4 + $0x40] sm:$0xff] }
  0x1e   : > { %850 = vmatpush.msra.mxu2 %v847_v46  ;;  %v327_v54 = vld [vmem:[%s1485_s20 + $0x70] sm:$0xff]  ;;  %v840_v55 = vld [vmem:[%s1780_s4 + $0x38] sm:$0xff]  ;;  %v838_v57 = vld [vmem:[%s1780_s4 + $0x28] sm:$0xff] }
  0x1f   : > { %441 = vmatpush.msra.mxu1 %v342_v17  ;;  %376 = vmatpush.msra.mxu0 %v341_v20  ;;  %v839_v56 = vld [vmem:[%s1780_s4 + $0x30] sm:$0xff]  ;;  %v837_v58 = vld [vmem:[%s1780_s4 + $0x20] sm:$0xff]  ;;  %v328_v59 = vld [vmem:[%s1485_s20 + $0x78] sm:$0xff] }
  0x20   : > { %851 = vmatpush.msra.mxu2 %v846_v47  ;;  %v836_v60 = vld [vmem:[%s1780_s4 + $0x18] sm:$0xff]  ;;  %v361_v61 = vld [vmem:[%s1779_s3] sm:$0x3]  ;;  %v835_v62 = vld [vmem:[%s1780_s4 + $0x10] sm:$0xff] }
  0x21   : > { %442 = vmatpush.msra.mxu1 %v340_v19  ;;  %377 = vmatpush.msra.mxu0 %v339_v22  ;;  %v1560_v63 = vperm.slane %v361_v61, 1  ;;  %v834_v0 = vld [vmem:[%s1780_s4 + $0x8] sm:$0xff]  ;;  %v833_v1 = vld [vmem:[%s1780_s4] sm:$0xff]  ;;  %v1570_v12 = vperm.slane %v361_v61, 0 }
  0x22   : > { %852 = vmatpush.msra.mxu2 %v845_v48 }
  0x23   : > { %443 = vmatpush.msra.mxu1 %v338_v21  ;;  %378 = vmatpush.msra.mxu0 %v337_v24 }
  0x24   : > { %853 = vmatpush.msra.mxu2 %v844_v50 }
  0x25   : > { %444 = vmatpush.msra.mxu1 %v336_v23  ;;  %379 = vmatpush.msra.mxu0 %v335_v26 }
  0x26   : > { %854 = vmatpush.msra.mxu2 %v843_v51 }
  0x27   : > { %445 = vmatpush.msra.mxu1 %v334_v25  ;;  %380 = vmatpush.msra.mxu0 %v333_v28 }
  0x28   : > { %855 = vmatpush.msra.mxu2 %v842_v52 }
  0x29   : > { %446 = vmatpush.msra.mxu1 %v332_v27  ;;  %381 = vmatpush.msra.mxu0 %v331_v31 }
  0x2a   : > { %856 = vmatpush.msra.mxu2 %v841_v53 }
  0x2b   : > { %447 = vmatpush.msra.mxu1 %v330_v29  ;;  %382 = vmatpush.msra.mxu0 %v329_v32 }
  0x2c   : > { %448 = vmatmul.f32.vlgmr.msra.gmra.mxu1 %v313_v30  ;;  %383 = vmatmul.f32.vlgmr.msra.gmra.mxu0 %v313_v30 }
  0x2d   : > { %857 = vmatpush.msra.mxu2 %v840_v55 }
  0x2f   : > { %858 = vmatpush.msra.mxu2 %v839_v56 }
  0x31   : > { %859 = vmatpush.msra.mxu2 %v838_v57 }
  0x33   : > { %860 = vmatpush.msra.mxu2 %v837_v58 }
  0x34   : > { %451 = vmatmul.f32.gmra.mxu1 %v314_v33  ;;  %386 = vmatmul.f32.gmra.mxu0 %v314_v33 }
  0x35   : > { %861 = vmatpush.msra.mxu2 %v836_v60 }
  0x37   : > { %862 = vmatpush.msra.mxu2 %v835_v62 }
  0x39   : > { %863 = vmatpush.msra.mxu2 %v834_v0 }
  0x3b   : > { %864 = vmatpush.msra.mxu2 %v833_v1 }
  0x3c   : > { %454 = vmatmul.f32.gmra.mxu1 %v315_v34  ;;  %389 = vmatmul.f32.gmra.mxu0 %v315_v34 }
  0x44   : > { %457 = vmatmul.f32.gmra.mxu1 %v316_v35  ;;  %392 = vmatmul.f32.gmra.mxu0 %v316_v35 }
  0x4c   : > { %460 = vmatmul.f32.gmra.mxu1 %v317_v36  ;;  %395 = vmatmul.f32.gmra.mxu0 %v317_v36 }
  0x54   : > { %463 = vmatmul.f32.gmra.mxu1 %v318_v37  ;;  %398 = vmatmul.f32.gmra.mxu0 %v318_v37 }
  0x5c   : > { %466 = vmatmul.f32.gmra.mxu1 %v319_v38  ;;  %401 = vmatmul.f32.gmra.mxu0 %v319_v38 }
  0x64   : > { %469 = vmatmul.f32.gmra.mxu1 %v320_v39  ;;  %404 = vmatmul.f32.gmra.mxu0 %v320_v39 }
  0x6c   : > { %472 = vmatmul.f32.gmra.mxu1 %v321_v40  ;;  %407 = vmatmul.f32.gmra.mxu0 %v321_v40 }
  0x74   : > { %475 = vmatmul.f32.gmra.mxu1 %v322_v41  ;;  %410 = vmatmul.f32.gmra.mxu0 %v322_v41 }
  0x7c   : > { %478 = vmatmul.f32.gmra.mxu1 %v323_v42  ;;  %413 = vmatmul.f32.gmra.mxu0 %v323_v42 }
  0x84   : > { %481 = vmatmul.f32.gmra.mxu1 %v324_v43  ;;  %416 = vmatmul.f32.gmra.mxu0 %v324_v43 }
  0x8c   : > { %484 = vmatmul.f32.gmra.mxu1 %v325_v44  ;;  %419 = vmatmul.f32.gmra.mxu0 %v325_v44 }
  0x94   : > { %487 = vmatmul.f32.gmra.mxu1 %v326_v49  ;;  %422 = vmatmul.f32.gmra.mxu0 %v326_v49 }
  0x9c   : > { %490 = vmatmul.f32.gmra.mxu1 %v327_v54  ;;  %425 = vmatmul.f32.gmra.mxu0 %v327_v54 }
  0xa4   : > { %493 = vmatmul.f32.gmra.mxu1 %v328_v59  ;;  %428 = vmatmul.f32.gmra.mxu0 %v328_v59 }
  0xa9   : > { %v449_v2 = vpop.f32.mrf.mxu1  ;;  %v384_v5 = vpop.f32.mrf.mxu0 }
  0xaa   : > { %v450_v3 = vadd.f32 %v449_v2, %v1560_v63  ;;  %v385_v14 = vadd.f32 %v384_v5, %v1570_v12 }
  0xac   : > { %v1172_v4 = vmul.f32 -1.442695, %v450_v3 }
  0xae   : > { %1216 = vpow2.f32 %v1172_v4 }
  0xb1   : > { %v452_v6 = vpop.f32.mrf.mxu1  ;;  %v387_v10 = vpop.f32.mrf.mxu0 }
  0xb2   : > { %v453_v7 = vadd.f32 %v452_v6, %v1560_v63  ;;  %v388_v24 = vadd.f32 %v387_v10, %v1570_v12 }
  0xb4   : > { %v1217_v8 = vpop.eup %1216  ;;  %v1173_v9 = vmul.f32 -1.442695, %v453_v7 }
  0xb5   : > { %v561_v11 = vadd.f32 1.0, %v1217_v8 }
  0xb6   : > { %1218 = vpow2.f32 %v1173_v9 }
  0xb7   : > { %1220 = vrcp.f32 %v561_v11  ;;  %v588_v25 = vand.u32 2147483648, %v561_v11  ;;  %v586_v28 = vand.u32 2147483647, %v561_v11  ;;  %vm582_vm1 = vweird.f32 %v561_v11 }
  0xb8   : > { %1222 = vtanh.f32 %v385_v14 }
  0xb9   : > { %v455_v13 = vpop.f32.mrf.mxu1  ;;  %v390_v18 = vpop.f32.mrf.mxu0  ;;  %v589_v36 = vor.u32 1.1754944e-38, %v588_v25  ;;  %vm587_vm3 = vcmp.eq.f32.partialorder %v586_v28, 8.507059e+37 }
  0xba   : > { %v456_v15 = vadd.f32 %v455_v13, %v1560_v63  ;;  %v391_v43 = vadd.f32 %v390_v18, %v1570_v12 }
  0xbc   : > { %v1219_v16 = vpop.eup %1218  ;;  %v1174_v17 = vmul.f32 -1.442695, %v456_v15 }
  0xbd   : > { %v1221_v19 = vpop.eup %1220  ;;  %v562_v20 = vadd.f32 1.0, %v1219_v16 }
  0xbe   : > { %1224 = vpow2.f32 %v1174_v17  ;;  %v578_v21 = vmul.f32 %v1221_v19, %v561_v11  ;;  %vm583_vm0 = vweird.f32 %v1221_v19  ;;  %v1223_v29 = vpop.eup %1222 }
  0xbf   : > { %1226 = vrcp.f32 %v562_v20  ;;  %vm584_vm2 = vmor %vm582_vm1, %vm583_vm0  ;;  %v603_v44 = vand.u32 2147483648, %v562_v20  ;;  %v601_v47 = vand.u32 2147483647, %v562_v20  ;;  %vm597_vm5 = vweird.f32 %v562_v20 }
  0xc0   : > { %v579_v22 = vsub.f32 1.0, %v578_v21  ;;  %1228 = vtanh.f32 %v388_v24 }
  0xc1   : > { %v458_v23 = vpop.f32.mrf.mxu1  ;;  %v393_v33 = vpop.f32.mrf.mxu0  ;;  %v604_v55 = vor.u32 1.1754944e-38, %v603_v44  ;;  %vm602_vm7 = vcmp.eq.f32.partialorder %v601_v47, 8.507059e+37 }
  0xc2   : > { %v459_v26 = vadd.f32 %v458_v23, %v1560_v63  ;;  %v580_v27 = vmul.f32 %v1221_v19, %v579_v22  ;;  %v394_v62 = vadd.f32 %v393_v33, %v1570_v12 }
  0xc4   : > { %v1225_v30 = vpop.eup %1224  ;;  %v1175_v31 = vmul.f32 -1.442695, %v459_v26  ;;  %v581_v32 = vadd.f32 %v1221_v19, %v580_v27 }
  0xc5   : > { %v1227_v34 = vpop.eup %1226  ;;  %v563_v35 = vadd.f32 1.0, %v1225_v30 }
  0xc6   : > { %1230 = vpow2.f32 %v1175_v31  ;;  %v585_v37 = vsel %vm584_vm2, %v1221_v19, %v581_v32  ;;  %v593_v38 = vmul.f32 %v1227_v34, %v562_v20  ;;  %vm598_vm4 = vweird.f32 %v1227_v34  ;;  %v1229_v48 = vpop.eup %1228 }
  0xc7   : > { %1232 = vrcp.f32 %v563_v35  ;;  %v590_v39 = vsel %vm587_vm3, %v589_v36, %v585_v37  ;;  %vm599_vm6 = vmor %vm597_vm5, %vm598_vm4  ;;  %v618_v0 = vand.u32 2147483648, %v563_v35  ;;  %v616_v3 = vand.u32 2147483647, %v563_v35 }
  0xc8   : > { %v817_v40 = vadd.f32 %v1223_v29, %v590_v39  ;;  %v594_v41 = vsub.f32 1.0, %v593_v38  ;;  %1234 = vtanh.f32 %v391_v43  ;;  %vm612_vm9 = vweird.f32 %v563_v35 }
  0xc9   : > { %v461_v42 = vpop.f32.mrf.mxu1  ;;  %v396_v52 = vpop.f32.mrf.mxu0  ;;  %v619_v11 = vor.u32 1.1754944e-38, %v618_v0  ;;  %vm617_vm11 = vcmp.eq.f32.partialorder %v616_v3, 8.507059e+37 }
  0xca   : > { %v462_v45 = vadd.f32 %v461_v42, %v1560_v63  ;;  %865 = vmatmul.f32.vlgmr.msra.gmra.mxu2 %v817_v40  ;;  %v595_v46 = vmul.f32 %v1227_v34, %v594_v41  ;;  %v397_v19 = vadd.f32 %v396_v52, %v1570_v12 }
  0xcc   : > { %v1231_v49 = vpop.eup %1230  ;;  %v1176_v50 = vmul.f32 -1.442695, %v462_v45  ;;  %v596_v51 = vadd.f32 %v1227_v34, %v595_v46 }
  0xcd   : > { %v1233_v53 = vpop.eup %1232  ;;  %v564_v54 = vadd.f32 1.0, %v1231_v49 }
  0xce   : > { %1236 = vpow2.f32 %v1176_v50  ;;  %v600_v56 = vsel %vm599_vm6, %v1227_v34, %v596_v51  ;;  %v608_v57 = vmul.f32 %v1233_v53, %v563_v35  ;;  %vm613_vm8 = vweird.f32 %v1233_v53  ;;  %v1235_v4 = vpop.eup %1234 }
  0xcf   : > { %1238 = vrcp.f32 %v564_v54  ;;  %v605_v58 = vsel %vm602_vm7, %v604_v55, %v600_v56  ;;  %vm614_vm10 = vmor %vm612_vm9, %vm613_vm8  ;;  %v633_v20 = vand.u32 2147483648, %v564_v54  ;;  %v631_v23 = vand.u32 2147483647, %v564_v54 }
  0xd0   : > { %v818_v59 = vadd.f32 %v1229_v48, %v605_v58  ;;  %v609_v60 = vsub.f32 1.0, %v608_v57  ;;  %1240 = vtanh.f32 %v394_v62  ;;  %vm627_vm13 = vweird.f32 %v564_v54 }
  0xd1   : > { %v464_v61 = vpop.f32.mrf.mxu1  ;;  %v399_v8 = vpop.f32.mrf.mxu0  ;;  %v634_v31 = vor.u32 1.1754944e-38, %v633_v20  ;;  %vm632_vm15 = vcmp.eq.f32.partialorder %v631_v23, 8.507059e+37 }
  0xd2   : > { %v465_v1 = vadd.f32 %v464_v61, %v1560_v63  ;;  %868 = vmatmul.f32.gmra.mxu2 %v818_v59  ;;  %v610_v2 = vmul.f32 %v1233_v53, %v609_v60  ;;  %v400_v38 = vadd.f32 %v399_v8, %v1570_v12 }
  0xd4   : > { %v1237_v5 = vpop.eup %1236  ;;  %v1177_v6 = vmul.f32 -1.442695, %v465_v1  ;;  %v611_v7 = vadd.f32 %v1233_v53, %v610_v2 }
  0xd5   : > { %v1239_v9 = vpop.eup %1238  ;;  %v565_v10 = vadd.f32 1.0, %v1237_v5 }
  0xd6   : > { %1242 = vpow2.f32 %v1177_v6  ;;  %v615_v13 = vsel %vm614_vm10, %v1233_v53, %v611_v7  ;;  %v623_v14 = vmul.f32 %v1239_v9, %v564_v54  ;;  %vm628_vm12 = vweird.f32 %v1239_v9  ;;  %v1241_v24 = vpop.eup %1240 }
  0xd7   : > { %1244 = vrcp.f32 %v565_v10  ;;  %v620_v15 = vsel %vm617_vm11, %v619_v11, %v615_v13  ;;  %vm629_vm14 = vmor %vm627_vm13, %vm628_vm12  ;;  %v648_v39 = vand.u32 2147483648, %v565_v10  ;;  %v646_v42 = vand.u32 2147483647, %v565_v10 }
  0xd8   : > { %v819_v16 = vadd.f32 %v1235_v4, %v620_v15  ;;  %v624_v17 = vsub.f32 1.0, %v623_v14  ;;  %1246 = vtanh.f32 %v397_v19  ;;  %vm642_vm1 = vweird.f32 %v565_v10 }
  0xd9   : > { %v467_v18 = vpop.f32.mrf.mxu1  ;;  %v402_v28 = vpop.f32.mrf.mxu0  ;;  %v649_v50 = vor.u32 1.1754944e-38, %v648_v39  ;;  %vm647_vm3 = vcmp.eq.f32.partialorder %v646_v42, 8.507059e+37 }
  0xda   : > { %v468_v21 = vadd.f32 %v467_v18, %v1560_v63  ;;  %871 = vmatmul.f32.gmra.mxu2 %v819_v16  ;;  %v625_v22 = vmul.f32 %v1239_v9, %v624_v17  ;;  %v403_v57 = vadd.f32 %v402_v28, %v1570_v12 }
  0xdc   : > { %v1243_v25 = vpop.eup %1242  ;;  %v1178_v26 = vmul.f32 -1.442695, %v468_v21  ;;  %v626_v27 = vadd.f32 %v1239_v9, %v625_v22 }
  0xdd   : > { %v1245_v29 = vpop.eup %1244  ;;  %v566_v30 = vadd.f32 1.0, %v1243_v25 }
  0xde   : > { %1248 = vpow2.f32 %v1178_v26  ;;  %v630_v32 = vsel %vm629_vm14, %v1239_v9, %v626_v27  ;;  %v638_v33 = vmul.f32 %v1245_v29, %v565_v10  ;;  %vm643_vm0 = vweird.f32 %v1245_v29  ;;  %v1247_v43 = vpop.eup %1246 }
  0xdf   : > { %1250 = vrcp.f32 %v566_v30  ;;  %v635_v34 = vsel %vm632_vm15, %v634_v31, %v630_v32  ;;  %vm644_vm2 = vmor %vm642_vm1, %vm643_vm0  ;;  %v663_v58 = vand.u32 2147483648, %v566_v30  ;;  %v661_v61 = vand.u32 2147483647, %v566_v30 }
  0xe0   : > { %v820_v35 = vadd.f32 %v1241_v24, %v635_v34  ;;  %v639_v36 = vsub.f32 1.0, %v638_v33  ;;  %1252 = vtanh.f32 %v400_v38  ;;  %vm657_vm5 = vweird.f32 %v566_v30 }
  0xe1   : > { %v470_v37 = vpop.f32.mrf.mxu1  ;;  %v405_v47 = vpop.f32.mrf.mxu0  ;;  %v664_v6 = vor.u32 1.1754944e-38, %v663_v58  ;;  %vm662_vm7 = vcmp.eq.f32.partialorder %v661_v61, 8.507059e+37 }
  0xe2   : > { %v471_v40 = vadd.f32 %v470_v37, %v1560_v63  ;;  %874 = vmatmul.f32.gmra.mxu2 %v820_v35  ;;  %v640_v41 = vmul.f32 %v1245_v29, %v639_v36  ;;  %v406_v14 = vadd.f32 %v405_v47, %v1570_v12 }
  0xe4   : > { %v1249_v44 = vpop.eup %1248  ;;  %v1179_v45 = vmul.f32 -1.442695, %v471_v40  ;;  %v641_v46 = vadd.f32 %v1245_v29, %v640_v41 }
  0xe5   : > { %v1251_v48 = vpop.eup %1250  ;;  %v567_v49 = vadd.f32 1.0, %v1249_v44 }
  0xe6   : > { %1254 = vpow2.f32 %v1179_v45  ;;  %v645_v51 = vsel %vm644_vm2, %v1245_v29, %v641_v46  ;;  %v653_v52 = vmul.f32 %v1251_v48, %v566_v30  ;;  %vm658_vm4 = vweird.f32 %v1251_v48  ;;  %v1253_v62 = vpop.eup %1252 }
  0xe7   : > { %1256 = vrcp.f32 %v567_v49  ;;  %v650_v53 = vsel %vm647_vm3, %v649_v50, %v645_v51  ;;  %vm659_vm6 = vmor %vm657_vm5, %vm658_vm4  ;;  %v678_v15 = vand.u32 2147483648, %v567_v49  ;;  %v676_v18 = vand.u32 2147483647, %v567_v49 }
  0xe8   : > { %v821_v54 = vadd.f32 %v1247_v43, %v650_v53  ;;  %v654_v55 = vsub.f32 1.0, %v653_v52  ;;  %1258 = vtanh.f32 %v403_v57  ;;  %vm672_vm9 = vweird.f32 %v567_v49 }
  0xe9   : > { %v473_v56 = vpop.f32.mrf.mxu1  ;;  %v408_v3 = vpop.f32.mrf.mxu0  ;;  %v679_v26 = vor.u32 1.1754944e-38, %v678_v15  ;;  %vm677_vm11 = vcmp.eq.f32.partialorder %v676_v18, 8.507059e+37 }
  0xea   : > { %v474_v59 = vadd.f32 %v473_v56, %v1560_v63  ;;  %877 = vmatmul.f32.gmra.mxu2 %v821_v54  ;;  %v655_v60 = vmul.f32 %v1251_v48, %v654_v55  ;;  %v409_v33 = vadd.f32 %v408_v3, %v1570_v12 }
  0xec   : > { %v1255_v0 = vpop.eup %1254  ;;  %v1180_v1 = vmul.f32 -1.442695, %v474_v59  ;;  %v656_v2 = vadd.f32 %v1251_v48, %v655_v60 }
  0xed   : > { %v1257_v4 = vpop.eup %1256  ;;  %v568_v5 = vadd.f32 1.0, %v1255_v0 }
  0xee   : > { %1260 = vpow2.f32 %v1180_v1  ;;  %v660_v7 = vsel %vm659_vm6, %v1251_v48, %v656_v2  ;;  %v668_v8 = vmul.f32 %v1257_v4, %v567_v49  ;;  %vm673_vm8 = vweird.f32 %v1257_v4  ;;  %v1259_v19 = vpop.eup %1258 }
  0xef   : > { %1262 = vrcp.f32 %v568_v5  ;;  %v665_v9 = vsel %vm662_vm7, %v664_v6, %v660_v7  ;;  %vm674_vm10 = vmor %vm672_vm9, %vm673_vm8  ;;  %v693_v34 = vand.u32 2147483648, %v568_v5  ;;  %v691_v37 = vand.u32 2147483647, %v568_v5 }
  0xf0   : > { %v822_v10 = vadd.f32 %v1253_v62, %v665_v9  ;;  %v669_v11 = vsub.f32 1.0, %v668_v8  ;;  %1264 = vtanh.f32 %v406_v14  ;;  %vm687_vm13 = vweird.f32 %v568_v5 }
  0xf1   : > { %v476_v13 = vpop.f32.mrf.mxu1  ;;  %v411_v23 = vpop.f32.mrf.mxu0  ;;  %v694_v44 = vor.u32 1.1754944e-38, %v693_v34  ;;  %vm692_vm15 = vcmp.eq.f32.partialorder %v691_v37, 8.507059e+37  ;;  %v976_v34 = vld [vmem:[%s1781_s5 + $0x70] sm:$0xff] }
  0xf2   : > { %v477_v16 = vadd.f32 %v476_v13, %v1560_v63  ;;  %880 = vmatmul.f32.gmra.mxu2 %v822_v10  ;;  %v670_v17 = vmul.f32 %v1257_v4, %v669_v11  ;;  %v412_v52 = vadd.f32 %v411_v23, %v1570_v12 }
  0xf4   : > { %v1261_v20 = vpop.eup %1260  ;;  %v1181_v21 = vmul.f32 -1.442695, %v477_v16  ;;  %v671_v22 = vadd.f32 %v1257_v4, %v670_v17 }
  0xf5   : > { %v1263_v24 = vpop.eup %1262  ;;  %v569_v25 = vadd.f32 1.0, %v1261_v20 }
  0xf6   : > { %1266 = vpow2.f32 %v1181_v21  ;;  %v675_v27 = vsel %vm674_vm10, %v1257_v4, %v671_v22  ;;  %v683_v28 = vmul.f32 %v1263_v24, %v568_v5  ;;  %vm688_vm12 = vweird.f32 %v1263_v24  ;;  %v1265_v38 = vpop.eup %1264 }
  0xf7   : > { %1268 = vrcp.f32 %v569_v25  ;;  %v680_v29 = vsel %vm677_vm11, %v679_v26, %v675_v27  ;;  %vm689_vm14 = vmor %vm687_vm13, %vm688_vm12  ;;  %v708_v53 = vand.u32 2147483648, %v569_v25  ;;  %v706_v56 = vand.u32 2147483647, %v569_v25 }
  0xf8   : > { %v823_v30 = vadd.f32 %v1259_v19, %v680_v29  ;;  %v684_v31 = vsub.f32 1.0, %v683_v28  ;;  %1270 = vtanh.f32 %v409_v33  ;;  %vm702_vm1 = vweird.f32 %v569_v25  ;;  %v977_v33 = vld [vmem:[%s1781_s5 + $0x78] sm:$0xff] }
  0xf9   : > { %v479_v32 = vpop.f32.mrf.mxu1  ;;  %v414_v47 = vpop.f32.mrf.mxu0  ;;  %v709_v0 = vor.u32 1.1754944e-38, %v708_v53  ;;  %vm707_vm3 = vcmp.eq.f32.partialorder %v706_v56, 8.507059e+37  ;;  %978 = vmatpush.msra.mxu3 %v977_v33  ;;  %v972_v56 = vld [vmem:[%s1781_s5 + $0x50] sm:$0xff] }
  0xfa   : > { %v480_v35 = vadd.f32 %v479_v32, %v1560_v63  ;;  %883 = vmatmul.f32.gmra.mxu2 %v823_v30  ;;  %v685_v36 = vmul.f32 %v1263_v24, %v684_v31  ;;  %v415_v8 = vadd.f32 %v414_v47, %v1570_v12 }
  0xfb   : > { %979 = vmatpush.msra.mxu3 %v976_v34 }
  0xfc   : > { %v1267_v39 = vpop.eup %1266  ;;  %v1182_v40 = vmul.f32 -1.442695, %v480_v35  ;;  %v686_v41 = vadd.f32 %v1263_v24, %v685_v36 }
  0xfd   : > { %v1269_v42 = vpop.eup %1268  ;;  %v570_v43 = vadd.f32 1.0, %v1267_v39  ;;  %v975_v39 = vld [vmem:[%s1781_s5 + $0x68] sm:$0xff] }
  0xfe   : > { %1272 = vpow2.f32 %v1182_v40  ;;  %v690_v45 = vsel %vm689_vm14, %v1263_v24, %v686_v41  ;;  %v698_v46 = vmul.f32 %v1269_v42, %v569_v25  ;;  %vm703_vm0 = vweird.f32 %v1269_v42  ;;  %v1271_v57 = vpop.eup %1270  ;;  %980 = vmatpush.msra.mxu3 %v975_v39 }
  0xff   : > { %1274 = vrcp.f32 %v570_v43  ;;  %v695_v48 = vsel %vm692_vm15, %v694_v44, %v690_v45  ;;  %vm704_vm2 = vmor %vm702_vm1, %vm703_vm0  ;;  %v723_v9 = vand.u32 2147483648, %v570_v43  ;;  %v721_v13 = vand.u32 2147483647, %v570_v43  ;;  %v974_v45 = vld [vmem:[%s1781_s5 + $0x60] sm:$0xff] }
 0x100   : > { %v824_v49 = vadd.f32 %v1265_v38, %v695_v48  ;;  %v699_v50 = vsub.f32 1.0, %v698_v46  ;;  %1276 = vtanh.f32 %v412_v52  ;;  %vm717_vm5 = vweird.f32 %v570_v43  ;;  %981 = vmatpush.msra.mxu3 %v974_v45 }
 0x101   : > { %v482_v51 = vpop.f32.mrf.mxu1  ;;  %v417_v6 = vpop.f32.mrf.mxu0  ;;  %v724_v20 = vor.u32 1.1754944e-38, %v723_v9  ;;  %vm722_vm7 = vcmp.eq.f32.partialorder %v721_v13, 8.507059e+37 }
 0x102   : > { %v483_v54 = vadd.f32 %v482_v51, %v1560_v63  ;;  %886 = vmatmul.f32.gmra.mxu2 %v824_v49  ;;  %v700_v55 = vmul.f32 %v1269_v42, %v699_v50  ;;  %v418_v27 = vadd.f32 %v417_v6, %v1570_v12 }
 0x104   : > { %v1273_v58 = vpop.eup %1272  ;;  %v1183_v59 = vmul.f32 -1.442695, %v483_v54  ;;  %v701_v60 = vadd.f32 %v1269_v42, %v700_v55  ;;  %v973_v55 = vld [vmem:[%s1781_s5 + $0x58] sm:$0xff] }
 0x105   : > { %v1275_v61 = vpop.eup %1274  ;;  %v1592_v62 = vadd.f32 1.0, %v1273_v58  ;;  %982 = vmatpush.msra.mxu3 %v973_v55 }
 0x106   : > { %1278 = vpow2.f32 %v1183_v59  ;;  %v705_v1 = vsel %vm704_vm2, %v1269_v42, %v701_v60  ;;  %v713_v2 = vmul.f32 %v1275_v61, %v570_v43  ;;  %vm718_vm4 = vweird.f32 %v1275_v61  ;;  %v1277_v14 = vpop.eup %1276 }
 0x107   : > { %1280 = vrcp.f32 %v1592_v62  ;;  %v710_v3 = vsel %vm707_vm3, %v709_v0, %v705_v1  ;;  %vm719_vm6 = vmor %vm717_vm5, %vm718_vm4  ;;  %v738_v28 = vand.u32 2147483648, %v1592_v62  ;;  %v736_v31 = vand.u32 2147483647, %v1592_v62  ;;  %983 = vmatpush.msra.mxu3 %v972_v56 }
 0x108   : > { %v825_v4 = vadd.f32 %v1271_v57, %v710_v3  ;;  %v714_v5 = vsub.f32 1.0, %v713_v2  ;;  %1282 = vtanh.f32 %v415_v8  ;;  %vm732_vm9 = vweird.f32 %v1592_v62 }
 0x109   : > { %v485_v7 = vpop.f32.mrf.mxu1  ;;  %v420_v32 = vpop.f32.mrf.mxu0  ;;  %v739_v42 = vor.u32 1.1754944e-38, %v738_v28  ;;  %vm737_vm11 = vcmp.eq.f32.partialorder %v736_v31, 8.507059e+37  ;;  %v966_v28 = vld [vmem:[%s1781_s5 + $0x20] sm:$0xff] }
 0x10a   : > { %v486_v10 = vadd.f32 %v485_v7, %v1560_v63  ;;  %889 = vmatmul.f32.gmra.mxu2 %v825_v4  ;;  %v715_v11 = vmul.f32 %v1275_v61, %v714_v5  ;;  %v421_v50 = vadd.f32 %v420_v32, %v1570_v12  ;;  %v970_v5 = vld [vmem:[%s1781_s5 + $0x40] sm:$0xff]  ;;  %v965_v32 = vld [vmem:[%s1781_s5 + $0x18] sm:$0xff] }
 0x10c   : > { %v1279_v15 = vpop.eup %1278  ;;  %v1184_v16 = vmul.f32 -1.442695, %v486_v10  ;;  %v716_v17 = vadd.f32 %v1275_v61, %v715_v11 }
 0x10d   : > { %v1281_v18 = vpop.eup %1280  ;;  %v1597_v19 = vadd.f32 1.0, %v1279_v15 }
 0x10e   : > { %1284 = vpow2.f32 %v1184_v16  ;;  %v720_v21 = vsel %vm719_vm6, %v1275_v61, %v716_v17  ;;  %v728_v22 = vmul.f32 %v1281_v18, %v1592_v62  ;;  %vm733_vm8 = vweird.f32 %v1281_v18  ;;  %v1283_v35 = vpop.eup %1282  ;;  %v971_v62 = vld [vmem:[%s1781_s5 + $0x48] sm:$0xff]  ;;  %v969_v16 = vld [vmem:[%s1781_s5 + $0x38] sm:$0xff]  ;;  %v968_v17 = vld [vmem:[%s1781_s5 + $0x30] sm:$0xff] }
 0x10f   : > { %1286 = vrcp.f32 %v1597_v19  ;;  %v725_v23 = vsel %vm722_vm7, %v724_v20, %v720_v21  ;;  %vm734_vm10 = vmor %vm732_vm9, %vm733_vm8  ;;  %v753_v51 = vand.u32 2147483648, %v1597_v19  ;;  %v751_v54 = vand.u32 2147483647, %v1597_v19  ;;  %984 = vmatpush.msra.mxu3 %v971_v62 }
 0x110   : > { %v826_v24 = vadd.f32 %v1277_v14, %v725_v23  ;;  %v729_v25 = vsub.f32 1.0, %v728_v22  ;;  %1288 = vtanh.f32 %v418_v27  ;;  %vm747_vm13 = vweird.f32 %v1597_v19 }
 0x111   : > { %v488_v26 = vpop.f32.mrf.mxu1  ;;  %v423_v61 = vpop.f32.mrf.mxu0  ;;  %v754_v2 = vor.u32 1.1754944e-38, %v753_v51  ;;  %vm752_vm15 = vcmp.eq.f32.partialorder %v751_v54, 8.507059e+37  ;;  %985 = vmatpush.msra.mxu3 %v970_v5 }
 0x112   : > { %v489_v29 = vadd.f32 %v488_v26, %v1560_v63  ;;  %892 = vmatmul.f32.gmra.mxu2 %v826_v24  ;;  %v730_v30 = vmul.f32 %v1281_v18, %v729_v25  ;;  %v424_v10 = vadd.f32 %v423_v61, %v1570_v12 }
 0x113   : > { %986 = vmatpush.msra.mxu3 %v969_v16  ;;  %v931_v16 = vld [vmem:[%s1777_s1 + $0x8] sm:$0xff] }
 0x114   : > { %v1285_v36 = vpop.eup %1284  ;;  %v1185_v37 = vmul.f32 -1.442695, %v489_v29  ;;  %v731_v38 = vadd.f32 %v1281_v18, %v730_v30 }
 0x115   : > { %v1287_v40 = vpop.eup %1286  ;;  %v1615_v41 = vadd.f32 1.0, %v1285_v36  ;;  %987 = vmatpush.msra.mxu3 %v968_v17 }
 0x116   : > { %1290 = vpow2.f32 %v1185_v37  ;;  %v735_v43 = vsel %vm734_vm10, %v1281_v18, %v731_v38  ;;  %v743_v44 = vmul.f32 %v1287_v40, %v1597_v19  ;;  %vm748_vm12 = vweird.f32 %v1287_v40  ;;  %v1289_v57 = vpop.eup %1288 }
 0x117   : > { %1292 = vrcp.f32 %v1615_v41  ;;  %v740_v46 = vsel %vm737_vm11, %v739_v42, %v735_v43  ;;  %vm749_vm14 = vmor %vm747_vm13, %vm748_vm12  ;;  %v768_v11 = vand.u32 2147483648, %v1615_v41  ;;  %v766_v15 = vand.u32 2147483647, %v1615_v41  ;;  %v964_v43 = vld [vmem:[%s1781_s5 + $0x10] sm:$0xff] }
 0x118   : > { %v827_v47 = vadd.f32 %v1283_v35, %v740_v46  ;;  %v744_v48 = vsub.f32 1.0, %v743_v44  ;;  %1294 = vtanh.f32 %v421_v50  ;;  %vm762_vm1 = vweird.f32 %v1615_v41  ;;  %v963_v46 = vld [vmem:[%s1781_s5 + $0x8] sm:$0xff] }
 0x119   : > { %v491_v49 = vpop.f32.mrf.mxu1  ;;  %v769_v24 = vor.u32 1.1754944e-38, %v768_v11  ;;  %vm767_vm3 = vcmp.eq.f32.partialorder %v766_v15, 8.507059e+37  ;;  %v426_v26 = vpop.f32.mrf.mxu0  ;;  %v930_v11 = vld [vmem:[%s1777_s1] sm:$0xff] }
 0x11a   : > { %v492_v52 = vadd.f32 %v491_v49, %v1560_v63  ;;  %895 = vmatmul.f32.gmra.mxu2 %v827_v47  ;;  %v745_v53 = vmul.f32 %v1287_v40, %v744_v48  ;;  %v427_v34 = vadd.f32 %v426_v26, %v1570_v12  ;;  %v962_v48 = vld [vmem:[%s1781_s5] sm:$0xff] }
 0x11c   : > { %v1291_v58 = vpop.eup %1290  ;;  %v1186_v59 = vmul.f32 -1.442695, %v492_v52  ;;  %v746_v60 = vadd.f32 %v1287_v40, %v745_v53 }
 0x11d   : > { %v1293_v0 = vpop.eup %1292  ;;  %v1637_v1 = vadd.f32 1.0, %v1291_v58 }
 0x11e   : > { %1296 = vpow2.f32 %v1186_v59  ;;  %v750_v3 = vsel %vm749_vm14, %v1287_v40, %v746_v60  ;;  %v758_v4 = vmul.f32 %v1293_v0, %v1615_v41  ;;  %vm763_vm0 = vweird.f32 %v1293_v0  ;;  %v1295_v18 = vpop.eup %1294 }
 0x11f   : > { %1298 = vrcp.f32 %v1637_v1  ;;  %v755_v6 = vsel %vm752_vm15, %v754_v2, %v750_v3  ;;  %vm764_vm2 = vmor %vm762_vm1, %vm763_vm0  ;;  %v783_v33 = vand.u32 2147483648, %v1637_v1  ;;  %v781_v36 = vand.u32 2147483647, %v1637_v1 }
 0x120   : > { %v828_v7 = vadd.f32 %v1289_v57, %v755_v6  ;;  %v759_v8 = vsub.f32 1.0, %v758_v4  ;;  %1300 = vtanh.f32 %v424_v10  ;;  %vm777_vm5 = vweird.f32 %v1637_v1 }
 0x121   : > { %v494_v9 = vpop.f32.mrf.mxu1  ;;  %v784_v42 = vor.u32 1.1754944e-38, %v783_v33  ;;  %vm782_vm7 = vcmp.eq.f32.partialorder %v781_v36, 8.507059e+37  ;;  %v429_v50 = vpop.f32.mrf.mxu0  ;;  %vm1043_vm0 = vcmask 130048  }
 0x122   : > { %v495_v13 = vadd.f32 %v494_v9, %v1560_v63  ;;  %898 = vmatmul.f32.gmra.mxu2 %v828_v7  ;;  %v760_v14 = vmul.f32 %v1293_v0, %v759_v8  ;;  %v967_v63 = vld [vmem:[%s1781_s5 + $0x28] sm:$0xff]  ;;  %v430_v55 = vadd.f32 %v429_v50, %v1570_v12 }
 0x123   : > { %988 = vmatpush.msra.mxu3 %v967_v63 }
 0x124   : > { %v1297_v19 = vpop.eup %1296  ;;  %v1187_v20 = vmul.f32 -1.442695, %v495_v13  ;;  %v761_v21 = vadd.f32 %v1293_v0, %v760_v14 }
 0x125   : > { %v1299_v22 = vpop.eup %1298  ;;  %v575_v23 = vadd.f32 1.0, %v1297_v19  ;;  %989 = vmatpush.msra.mxu3 %v966_v28 }
 0x126   : > { %1302 = vpow2.f32 %v1187_v20  ;;  %v765_v25 = vsel %vm764_vm2, %v1293_v0, %v761_v21  ;;  %v773_v27 = vmul.f32 %v1299_v22, %v1637_v1  ;;  %vm778_vm4 = vweird.f32 %v1299_v22  ;;  %v1301_v37 = vpop.eup %1300  ;;  %v932_v20 = vld [vmem:[%s1777_s1 + $0x10] sm:$0xff] }
 0x127   : > { %1304 = vrcp.f32 %v575_v23  ;;  %v770_v29 = vsel %vm767_vm3, %v769_v24, %v765_v25  ;;  %990 = vmatpush.msra.mxu3 %v965_v32  ;;  %vm779_vm6 = vmor %vm777_vm5, %vm778_vm4  ;;  %v798_v52 = vand.u32 2147483648, %v575_v23  ;;  %v796_v54 = vand.u32 2147483647, %v575_v23 }
 0x128   : > { %v829_v30 = vadd.f32 %v1295_v18, %v770_v29  ;;  %v774_v31 = vsub.f32 1.0, %v773_v27  ;;  %1306 = vtanh.f32 %v427_v34  ;;  %vm792_vm9 = vweird.f32 %v575_v23  ;;  %v934_v27 = vld [vmem:[%s1777_s1 + $0x20] sm:$0xff] }
 0x129   : > { %991 = vmatpush.msra.mxu3 %v964_v43  ;;  %v799_v59 = vor.u32 1.1754944e-38, %v798_v52  ;;  %vm797_vm11 = vcmp.eq.f32.partialorder %v796_v54, 8.507059e+37  ;;  %v938_v43 = vld [vmem:[%s1777_s1 + $0x40] sm:$0xff] }
 0x12a   : > { %901 = vmatmul.f32.gmra.mxu2 %v829_v30  ;;  %v775_v35 = vmul.f32 %v1299_v22, %v774_v31  ;;  %v935_v31 = vld [vmem:[%s1777_s1 + $0x28] sm:$0xff] }
 0x12b   : > { %992 = vmatpush.msra.mxu3 %v963_v46 }
 0x12c   : > { %v1303_v38 = vpop.eup %1302  ;;  %v776_v39 = vadd.f32 %v1299_v22, %v775_v35  ;;  %v936_v35 = vld [vmem:[%s1777_s1 + $0x30] sm:$0xff] }
 0x12d   : > { %v1305_v40 = vpop.eup %1304  ;;  %v576_v41 = vadd.f32 1.0, %v1303_v38  ;;  %993 = vmatpush.msra.mxu3 %v962_v48 }
 0x12e   : > { %v780_v44 = vsel %vm779_vm6, %v1299_v22, %v776_v39  ;;  %v788_v45 = vmul.f32 %v1305_v40, %v575_v23  ;;  %vm793_vm8 = vweird.f32 %v1305_v40  ;;  %v1307_v56 = vpop.eup %1306  ;;  %v933_v23 = vld [vmem:[%s1777_s1 + $0x18] sm:$0xff] }
 0x12f   : > { %1308 = vrcp.f32 %v576_v41  ;;  %v785_v47 = vsel %vm782_vm7, %v784_v42, %v780_v44  ;;  %vm794_vm10 = vmor %vm792_vm9, %vm793_vm8  ;;  %v813_v2 = vand.u32 2147483648, %v576_v41  ;;  %v811_v4 = vand.u32 2147483647, %v576_v41  ;;  %v937_v39 = vld [vmem:[%s1777_s1 + $0x38] sm:$0xff] }
 0x130   : > { %v830_v49 = vadd.f32 %v1301_v37, %v785_v47  ;;  %v789_v51 = vsub.f32 1.0, %v788_v45  ;;  %1310 = vtanh.f32 %v430_v55  ;;  %vm807_vm13 = vweird.f32 %v576_v41  ;;  %v939_v47 = vld [vmem:[%s1777_s1 + $0x48] sm:$0xff]  ;;  %v941_v55 = vld [vmem:[%s1777_s1 + $0x58] sm:$0xff] }
 0x131   : > { %v814_v6 = vor.u32 1.1754944e-38, %v813_v2  ;;  %vm812_vm15 = vcmp.eq.f32.partialorder %v811_v4, 8.507059e+37  ;;  %v944_v4 = vld [vmem:[%s1777_s1 + $0x70] sm:$0xff] }
 0x132   : > { %904 = vmatmul.f32.gmra.mxu2 %v830_v49  ;;  %v790_v53 = vmul.f32 %v1305_v40, %v789_v51  ;;  %v940_v51 = vld [vmem:[%s1777_s1 + $0x50] sm:$0xff] }
 0x134   : > { %v791_v57 = vadd.f32 %v1305_v40, %v790_v53 }
 0x135   : > { %v1309_v58 = vpop.eup %1308 }
 0x136   : > { %v795_v60 = vsel %vm794_vm10, %v1305_v40, %v791_v57  ;;  %v803_v61 = vmul.f32 %v1309_v58, %v576_v41  ;;  %vm808_vm12 = vweird.f32 %v1309_v58  ;;  %v1311_v12 = vpop.eup %1310 }
 0x137   : > { %v800_v62 = vsel %vm797_vm11, %v799_v59, %v795_v60  ;;  %vm809_vm14 = vmor %vm807_vm13, %vm808_vm12  ;;  %v942_v59 = vld [vmem:[%s1777_s1 + $0x60] sm:$0xff] }
 0x138   : > { %v831_v0 = vadd.f32 %v1307_v56, %v800_v62  ;;  %v804_v1 = vsub.f32 1.0, %v803_v61 }
 0x13a   : > { %907 = vmatmul.f32.gmra.mxu2 %v831_v0  ;;  %v805_v3 = vmul.f32 %v1309_v58, %v804_v1  ;;  %v943_v0 = vld [vmem:[%s1777_s1 + $0x68] sm:$0xff] }
 0x13c   : > { %v806_v5 = vadd.f32 %v1309_v58, %v805_v3 }
 0x13e   : > { %v810_v7 = vsel %vm809_vm14, %v1309_v58, %v806_v5 }
 0x13f   : > { %v815_v8 = vsel %vm812_vm15, %v814_v6, %v810_v7  ;;  %v945_v7 = vld [vmem:[%s1777_s1 + $0x78] sm:$0xff] }
 0x140   : > { %v832_v9 = vadd.f32 %v1311_v12, %v815_v8 }
 0x142   : > { %910 = vmatmul.f32.gmra.mxu2 %v832_v9 }
 0x14d   : > { %v866_v10 = vpop.f32.mrf.mxu2 }
 0x14e   : > { %v914_v13 = vmax.f32 %v866_v10, 0.0 }
 0x150   : > { %v946_v14 = vmul.f32 %v930_v11, %v914_v13 }
 0x152   : > { %994 = vmatmul.f32.vlgmr.msra.gmra.mxu3 %v946_v14 }
 0x155   : > { %v869_v15 = vpop.f32.mrf.mxu2 }
 0x156   : > { %v915_v17 = vmax.f32 %v869_v15, 0.0 }
 0x158   : > { %v947_v18 = vmul.f32 %v931_v16, %v915_v17 }
 0x15a   : > { %997 = vmatmul.f32.gmra.mxu3 %v947_v18 }
 0x15d   : > { %v872_v19 = vpop.f32.mrf.mxu2 }
 0x15e   : > { %v916_v21 = vmax.f32 %v872_v19, 0.0 }
 0x160   : > { %v948_v63 = vmul.f32 %v932_v20, %v916_v21 }
 0x162   : > { %1000 = vmatmul.f32.gmra.mxu3 %v948_v63 }
 0x165   : > { %v875_v22 = vpop.f32.mrf.mxu2 }
 0x166   : > { %v917_v24 = vmax.f32 %v875_v22, 0.0 }
 0x168   : > { %v949_v25 = vmul.f32 %v933_v23, %v917_v24 }
 0x16a   : > { %1003 = vmatmul.f32.gmra.mxu3 %v949_v25 }
 0x16d   : > { %v878_v26 = vpop.f32.mrf.mxu2 }
 0x16e   : > { %v918_v28 = vmax.f32 %v878_v26, 0.0 }
 0x170   : > { %v950_v29 = vmul.f32 %v934_v27, %v918_v28 }
 0x172   : > { %1006 = vmatmul.f32.gmra.mxu3 %v950_v29 }
 0x175   : > { %v881_v30 = vpop.f32.mrf.mxu2 }
 0x176   : > { %v919_v32 = vmax.f32 %v881_v30, 0.0 }
 0x178   : > { %v951_v33 = vmul.f32 %v935_v31, %v919_v32 }
 0x17a   : > { %1009 = vmatmul.f32.gmra.mxu3 %v951_v33 }
 0x17d   : > { %v884_v34 = vpop.f32.mrf.mxu2 }
 0x17e   : > { %v920_v36 = vmax.f32 %v884_v34, 0.0 }
 0x180   : > { %v952_v37 = vmul.f32 %v936_v35, %v920_v36 }
 0x182   : > { %1012 = vmatmul.f32.gmra.mxu3 %v952_v37 }
 0x185   : > { %v887_v38 = vpop.f32.mrf.mxu2 }
 0x186   : > { %v921_v40 = vmax.f32 %v887_v38, 0.0 }
 0x188   : > { %v953_v41 = vmul.f32 %v937_v39, %v921_v40 }
 0x18a   : > { %1015 = vmatmul.f32.gmra.mxu3 %v953_v41 }
 0x18d   : > { %v890_v42 = vpop.f32.mrf.mxu2 }
 0x18e   : > { %v922_v44 = vmax.f32 %v890_v42, 0.0 }
 0x190   : > { %v954_v45 = vmul.f32 %v938_v43, %v922_v44 }
 0x192   : > { %1018 = vmatmul.f32.gmra.mxu3 %v954_v45 }
 0x195   : > { %v893_v46 = vpop.f32.mrf.mxu2 }
 0x196   : > { %v923_v48 = vmax.f32 %v893_v46, 0.0 }
 0x198   : > { %v955_v49 = vmul.f32 %v939_v47, %v923_v48 }
 0x19a   : > { %1021 = vmatmul.f32.gmra.mxu3 %v955_v49 }
 0x19d   : > { %v896_v50 = vpop.f32.mrf.mxu2 }
 0x19e   : > { %v924_v52 = vmax.f32 %v896_v50, 0.0 }
 0x1a0   : > { %v956_v53 = vmul.f32 %v940_v51, %v924_v52 }
 0x1a2   : > { %1024 = vmatmul.f32.gmra.mxu3 %v956_v53 }
 0x1a5   : > { %v899_v54 = vpop.f32.mrf.mxu2 }
 0x1a6   : > { %v925_v56 = vmax.f32 %v899_v54, 0.0 }
 0x1a8   : > { %v957_v57 = vmul.f32 %v941_v55, %v925_v56 }
 0x1aa   : > { %1027 = vmatmul.f32.gmra.mxu3 %v957_v57 }
 0x1ad   : > { %v902_v58 = vpop.f32.mrf.mxu2 }
 0x1ae   : > { %v926_v60 = vmax.f32 %v902_v58, 0.0 }
 0x1b0   : > { %v958_v61 = vmul.f32 %v942_v59, %v926_v60 }
 0x1b2   : > { %1030 = vmatmul.f32.gmra.mxu3 %v958_v61 }
 0x1b5   : > { %v905_v62 = vpop.f32.mrf.mxu2 }
 0x1b6   : > { %v927_v1 = vmax.f32 %v905_v62, 0.0 }
 0x1b8   : > { %v959_v2 = vmul.f32 %v943_v0, %v927_v1 }
 0x1ba   : > { %1033 = vmatmul.f32.gmra.mxu3 %v959_v2 }
 0x1bd   : > { %v908_v3 = vpop.f32.mrf.mxu2 }
 0x1be   : > { %v928_v5 = vmax.f32 %v908_v3, 0.0 }
 0x1c0   : > { %v960_v12 = vmul.f32 %v944_v4, %v928_v5 }
 0x1c2   : > { %1036 = vmatmul.f32.gmra.mxu3 %v960_v12 }
 0x1c5   : > { %v911_v6 = vpop.f32.mrf.mxu2 }
 0x1c6   : > { %v929_v8 = vmax.f32 %v911_v6, 0.0 }
 0x1c8   : > { %v961_v9 = vmul.f32 %v945_v7, %v929_v8 }
 0x1ca   : > { %1039 = vmatmul.f32.gmra.mxu3 %v961_v9 }
 0x1d5   : > { %v995_v10 = vpop.f32.mrf.mxu3 }
 0x1d6   : > { %1044 = vst.msk [vmem:[%s1733_s16] sm:$0xff] %vm1043_vm0, %v995_v10 }
 0x1dd   : > { %v998_v11 = vpop.f32.mrf.mxu3 }
 0x1de   : > { %1045 = vst.msk [vmem:[%s1733_s16 + $0x8] sm:$0xff] %vm1043_vm0, %v998_v11 }
 0x1e5   : > { %v1001_v13 = vpop.f32.mrf.mxu3 }
 0x1e6   : > { %1046 = vst.msk [vmem:[%s1733_s16 + $0x10] sm:$0xff] %vm1043_vm0, %v1001_v13 }
 0x1ed   : > { %v1004_v14 = vpop.f32.mrf.mxu3 }
 0x1ee   : > { %1047 = vst.msk [vmem:[%s1733_s16 + $0x18] sm:$0xff] %vm1043_vm0, %v1004_v14 }
 0x1f5   : > { %v1007_v15 = vpop.f32.mrf.mxu3 }
 0x1f6   : > { %1048 = vst.msk [vmem:[%s1733_s16 + $0x20] sm:$0xff] %vm1043_vm0, %v1007_v15 }
 0x1fd   : > { %v1010_v16 = vpop.f32.mrf.mxu3 }
 0x1fe   : > { %1049 = vst.msk [vmem:[%s1733_s16 + $0x28] sm:$0xff] %vm1043_vm0, %v1010_v16 }
 0x205   : > { %v1013_v17 = vpop.f32.mrf.mxu3 }
 0x206   : > { %1050 = vst.msk [vmem:[%s1733_s16 + $0x30] sm:$0xff] %vm1043_vm0, %v1013_v17 }
 0x20d   : > { %v1016_v18 = vpop.f32.mrf.mxu3 }
 0x20e   : > { %1051 = vst.msk [vmem:[%s1733_s16 + $0x38] sm:$0xff] %vm1043_vm0, %v1016_v18 }
 0x215   : > { %v1019_v19 = vpop.f32.mrf.mxu3 }
 0x216   : > { %1052 = vst.msk [vmem:[%s1733_s16 + $0x40] sm:$0xff] %vm1043_vm0, %v1019_v19 }
 0x21d   : > { %v1022_v20 = vpop.f32.mrf.mxu3 }
 0x21e   : > { %1053 = vst.msk [vmem:[%s1733_s16 + $0x48] sm:$0xff] %vm1043_vm0, %v1022_v20 }
 0x225   : > { %v1025_v21 = vpop.f32.mrf.mxu3 }
 0x226   : > { %1054 = vst.msk [vmem:[%s1733_s16 + $0x50] sm:$0xff] %vm1043_vm0, %v1025_v21 }
 0x22d   : > { %v1028_v63 = vpop.f32.mrf.mxu3 }
 0x22e   : > { %1055 = vst.msk [vmem:[%s1733_s16 + $0x58] sm:$0xff] %vm1043_vm0, %v1028_v63 }
 0x235   : > { %v1031_v22 = vpop.f32.mrf.mxu3 }
 0x236   : > { %1056 = vst.msk [vmem:[%s1733_s16 + $0x60] sm:$0xff] %vm1043_vm0, %v1031_v22 }
 0x23d   : > { %v1034_v23 = vpop.f32.mrf.mxu3 }
 0x23e   : > { %1057 = vst.msk [vmem:[%s1733_s16 + $0x68] sm:$0xff] %vm1043_vm0, %v1034_v23 }
 0x245   : > { %v1037_v24 = vpop.f32.mrf.mxu3 }
 0x246   : > { %1058 = vst.msk [vmem:[%s1733_s16 + $0x70] sm:$0xff] %vm1043_vm0, %v1037_v24 }
 0x24d   : > { %v1040_v25 = vpop.f32.mrf.mxu3 }
 0x24e   : > { %1059 = vst.msk [vmem:[%s1733_s16 + $0x78] sm:$0xff] %vm1043_vm0, %v1040_v25 }
 0x24f PF: > { %s16_s23 = sadd.s32 1, %s1334_s23   ;;  %s1783_s21 = smov %s1330_s22 }
 0x250   : > { %p13_p5 = scmp.ge.s32.totalorder %s16_s23, 4   ;;  %s1784_s22 = smov %s1786_s24 }
 0x252   :  { %15 = sbr.rel (!%p13_p5) target bundleno = 2 (0x2), region = 77 }

// kernel: model_forward.3
= control target key start
LH: loop header
LB: loop body
LE: loop exit
PB: predicated region body
PF: predicated region fallthrough
CT: control target
= control target key end

     0   :  { %vm47_vm0 = vcmask 130048   ;;  %s1469_s1 = inlined_call_operand.vmem [shape: f32[16,128], index: 1, kind: input, shape index: {}]   ;;  %s1470_s0 = inlined_call_operand.vmem [shape: f32[128,16], index: 0, kind: input, shape index: {}]   ;;  %s1471_s2 = inlined_call_operand.vmem [shape: f32[1,128], index: 2, kind: input, shape index: {}]   ;;  %s1472_s6 = inlined_call_operand.vmem [shape: f32[128,128], index: 6, kind: output, shape index: {0}]   ;;  %s1473_s3 = inlined_call_operand.vmem [shape: f32[1,128], index: 3, kind: input, shape index: {}]   ;;  %s1474_s4 = inlined_call_operand.vmem [shape: f32[1,128], index: 4, kind: input, shape index: {}]   ;;  %s1475_s5 = inlined_call_operand.vmem [shape: f32[128,128], index: 5, kind: input, shape index: {}]   ;;  %s1476_s7 = inlined_call_operand.vmem [shape: f32[128,128], index: 7, kind: output, shape index: {1}]  }
   0x1   :  { %v42_v0 = vld [vmem:[%s1469_s1 + $0x8] sm:$0xff]  ;;  %v41_v1 = vld [vmem:[%s1469_s1] sm:$0xff]  ;;  %v27_v4 = vld [vmem:[%s1470_s0 + $0x10] sm:$0xff] }
   0x2   :  { %110 = vmatpush.msra.mxu0 %v42_v0  ;;  %v25_v2 = vld [vmem:[%s1470_s0] sm:$0xff]  ;;  %681 = vmatpush.msra.mxu3 %v42_v0  ;;  %v26_v3 = vld [vmem:[%s1470_s0 + $0x8] sm:$0xff]  ;;  %v35_v5 = vld [vmem:[%s1470_s0 + $0x50] sm:$0xff] }
   0x3   :  { %v28_v6 = vld [vmem:[%s1470_s0 + $0x18] sm:$0xff]  ;;  %v29_v8 = vld [vmem:[%s1470_s0 + $0x20] sm:$0xff]  ;;  %v30_v10 = vld [vmem:[%s1470_s0 + $0x28] sm:$0xff] }
   0x4   :  { %111 = vmatpush.msra.mxu0 %v41_v1  ;;  %682 = vmatpush.msra.mxu3 %v41_v1  ;;  %v36_v7 = vld [vmem:[%s1470_s0 + $0x58] sm:$0xff]  ;;  %v37_v9 = vld [vmem:[%s1470_s0 + $0x60] sm:$0xff]  ;;  %v38_v11 = vld [vmem:[%s1470_s0 + $0x68] sm:$0xff] }
   0x5   :  { %665 = vmatmul.msk.f32.vlgmr.msra.gmra.mxu0 %vm47_vm0, %v25_v2  ;;  %675 = vmatmul.msk.f32.vlgmr.msra.gmra.mxu3 %vm47_vm0, %v35_v5  ;;  %v31_v12 = vld [vmem:[%s1470_s0 + $0x30] sm:$0xff]  ;;  %v32_v14 = vld [vmem:[%s1470_s0 + $0x38] sm:$0xff]  ;;  %v33_v16 = vld [vmem:[%s1470_s0 + $0x40] sm:$0xff] }
   0x6   :  { %v39_v13 = vld [vmem:[%s1470_s0 + $0x70] sm:$0xff]  ;;  %v40_v15 = vld [vmem:[%s1470_s0 + $0x78] sm:$0xff]  ;;  %v34_v17 = vld [vmem:[%s1470_s0 + $0x48] sm:$0xff] }
   0x7   :  { %v867_v18 = vld [vmem:[%s1471_s2] ss:$0 sm:$0xff] }
   0xd   :  { %666 = vmatmul.msk.f32.gmra.mxu0 %vm47_vm0, %v26_v3  ;;  %676 = vmatmul.msk.f32.gmra.mxu3 %vm47_vm0, %v36_v7  ;;  %v753_v3 = vmov 128.0  }
   0xe   :  { %719 = vrcp.f32 %v753_v3 }
  0x15   :  { %667 = vmatmul.msk.f32.gmra.mxu0 %vm47_vm0, %v27_v4  ;;  %677 = vmatmul.msk.f32.gmra.mxu3 %vm47_vm0, %v37_v9  ;;  %v720_v4 = vpop.eup %719 }
  0x16   :  { %v228_v5 = vmul.f32 128.0, %v720_v4  ;;  %vm232_vm1 = vweird.f32 %v720_v4 }
  0x1d   :  { %668 = vmatmul.msk.f32.gmra.mxu0 %vm47_vm0, %v28_v6  ;;  %678 = vmatmul.msk.f32.gmra.mxu3 %vm47_vm0, %v38_v11  ;;  %v229_v6 = vsub.f32 1.0, %v228_v5 }
  0x1f   :  { %v230_v7 = vmul.f32 %v720_v4, %v229_v6 }
  0x25   :  { %669 = vmatmul.msk.f32.gmra.mxu0 %vm47_vm0, %v29_v8  ;;  %679 = vmatmul.msk.f32.gmra.mxu3 %vm47_vm0, %v39_v13  ;;  %v231_v8 = vadd.f32 %v720_v4, %v230_v7 }
  0x27   :  { %v985_v9 = vsel %vm232_vm1, %v720_v4, %v231_v8 }
  0x2d   :  { %670 = vmatmul.msk.f32.gmra.mxu0 %vm47_vm0, %v30_v10  ;;  %680 = vmatmul.msk.f32.gmra.mxu3 %vm47_vm0, %v40_v15 }
  0x35   :  { %671 = vmatmul.msk.f32.gmra.mxu0 %vm47_vm0, %v31_v12 }
  0x3d   :  { %672 = vmatmul.msk.f32.gmra.mxu0 %vm47_vm0, %v32_v14 }
  0x45   :  { %673 = vmatmul.msk.f32.gmra.mxu0 %vm47_vm0, %v33_v16 }
  0x4d   :  { %674 = vmatmul.msk.f32.gmra.mxu0 %vm47_vm0, %v34_v17 }
  0x82   :  { %v113_v19 = vpop.f32.mrf.mxu0 }
  0x83   :  { %v114_v20 = vadd.f32 %v867_v18, %v113_v19 }
  0x85   :  { %v870_v21 = vmax.f32 %v114_v20, 0.0 }
  0x87   :  { %177 = vst [vmem:[%s1472_s6] sm:$0xff] %v870_v21 }
  0x88   :  { %v143_v29 = vpop.f32.mrf.mxu3 }
  0x89   :  { %v144_v32 = vadd.f32 %v867_v18, %v143_v29 }
  0x8a   :  { %v116_v22 = vpop.f32.mrf.mxu0 }
  0x8b   :  { %v117_v23 = vadd.f32 %v867_v18, %v116_v22  ;;  %v898_v33 = vmax.f32 %v144_v32, 0.0 }
  0x8d   :  { %v877_v24 = vmax.f32 %v117_v23, 0.0  ;;  %187 = vst [vmem:[%s1472_s6 + $0x50] sm:$0xff] %v898_v33 }
  0x8f   :  { %178 = vst [vmem:[%s1472_s6 + $0x8] sm:$0xff] %v877_v24 }
  0x90   :  { %v146_v35 = vpop.f32.mrf.mxu3 }
  0x91   :  { %v147_v38 = vadd.f32 %v867_v18, %v146_v35 }
  0x92   :  { %v119_v25 = vpop.f32.mrf.mxu0 }
  0x93   :  { %v120_v26 = vadd.f32 %v867_v18, %v119_v25  ;;  %v912_v39 = vmax.f32 %v147_v38, 0.0 }
  0x95   :  { %v884_v27 = vmax.f32 %v120_v26, 0.0  ;;  %188 = vst [vmem:[%s1472_s6 + $0x58] sm:$0xff] %v912_v39 }
  0x97   :  { %179 = vst [vmem:[%s1472_s6 + $0x10] sm:$0xff] %v884_v27 }
  0x98   :  { %v149_v41 = vpop.f32.mrf.mxu3 }
  0x99   :  { %v150_v44 = vadd.f32 %v867_v18, %v149_v41 }
  0x9a   :  { %v122_v28 = vpop.f32.mrf.mxu0 }
  0x9b   :  { %v123_v30 = vadd.f32 %v867_v18, %v122_v28  ;;  %v926_v45 = vmax.f32 %v150_v44, 0.0 }
  0x9d   :  { %v891_v31 = vmax.f32 %v123_v30, 0.0  ;;  %189 = vst [vmem:[%s1472_s6 + $0x60] sm:$0xff] %v926_v45 }
  0x9f   :  { %180 = vst [vmem:[%s1472_s6 + $0x18] sm:$0xff] %v891_v31 }
  0xa0   :  { %v152_v47 = vpop.f32.mrf.mxu3 }
  0xa1   :  { %v153_v49 = vadd.f32 %v867_v18, %v152_v47 }
  0xa2   :  { %v125_v34 = vpop.f32.mrf.mxu0 }
  0xa3   :  { %v126_v36 = vadd.f32 %v867_v18, %v125_v34  ;;  %v936_v51 = vmax.f32 %v153_v49, 0.0 }
  0xa5   :  { %v905_v37 = vmax.f32 %v126_v36, 0.0  ;;  %190 = vst [vmem:[%s1472_s6 + $0x68] sm:$0xff] %v936_v51 }
  0xa7   :  { %181 = vst [vmem:[%s1472_s6 + $0x20] sm:$0xff] %v905_v37 }
  0xa8   :  { %v155_v53 = vpop.f32.mrf.mxu3 }
  0xa9   :  { %v156_v55 = vadd.f32 %v867_v18, %v155_v53 }
  0xaa   :  { %v128_v40 = vpop.f32.mrf.mxu0 }
  0xab   :  { %v129_v42 = vadd.f32 %v867_v18, %v128_v40  ;;  %v948_v57 = vmax.f32 %v156_v55, 0.0 }
  0xad   :  { %v919_v43 = vmax.f32 %v129_v42, 0.0  ;;  %191 = vst [vmem:[%s1472_s6 + $0x70] sm:$0xff] %v948_v57 }
  0xaf   :  { %182 = vst [vmem:[%s1472_s6 + $0x28] sm:$0xff] %v919_v43 }
  0xb0   :  { %v158_v59 = vpop.f32.mrf.mxu3 }
  0xb1   :  { %v159_v61 = vadd.f32 %v867_v18, %v158_v59 }
  0xb2   :  { %v131_v46 = vpop.f32.mrf.mxu0 }
  0xb3   :  { %v132_v48 = vadd.f32 %v867_v18, %v131_v46  ;;  %v959_v63 = vmax.f32 %v159_v61, 0.0 }
  0xb5   :  { %v934_v50 = vmax.f32 %v132_v48, 0.0  ;;  %192 = vst [vmem:[%s1472_s6 + $0x78] sm:$0xff] %v959_v63 }
  0xb7   :  { %183 = vst [vmem:[%s1472_s6 + $0x30] sm:$0xff] %v934_v50 }
  0xba   :  { %v134_v52 = vpop.f32.mrf.mxu0 }
  0xbb   :  { %v135_v54 = vadd.f32 %v867_v18, %v134_v52 }
  0xbd   :  { %v168_v56 = vmax.f32 %v135_v54, 0.0 }
  0xbf   :  { %184 = vst [vmem:[%s1472_s6 + $0x38] sm:$0xff] %v168_v56  ;;  %209 = vadd.xlane.f32.xlu0 %v168_v56 }
  0xc2   :  { %v137_v58 = vpop.f32.mrf.mxu0 }
  0xc3   :  { %v138_v60 = vadd.f32 %v867_v18, %v137_v58 }
  0xc5   :  { %v169_v62 = vmax.f32 %v138_v60, 0.0 }
  0xc7   :  { %185 = vst [vmem:[%s1472_s6 + $0x40] sm:$0xff] %v169_v62  ;;  %211 = vadd.xlane.f32.xlu1 %v169_v62  ;;  %195 = vadd.xlane.f32.xlu0 %v870_v21 }
  0xca   :  { %v140_v0 = vpop.f32.mrf.mxu0 }
  0xcb   :  { %v141_v1 = vadd.f32 %v867_v18, %v140_v0 }
  0xcd   :  { %v170_v2 = vmax.f32 %v141_v1, 0.0 }
  0xcf   :  { %186 = vst [vmem:[%s1472_s6 + $0x48] sm:$0xff] %v170_v2  ;;  %213 = vadd.xlane.f32.xlu2 %v170_v2  ;;  %197 = vadd.xlane.f32.xlu1 %v877_v24 }
  0xd0   :  { %215 = vadd.xlane.f32.xlu0 %v898_v33 }
  0xd7   :  { %199 = vadd.xlane.f32.xlu2 %v884_v27  ;;  %201 = vadd.xlane.f32.xlu1 %v891_v31 }
  0xd8   :  { %203 = vadd.xlane.f32.xlu0 %v905_v37 }
  0xdf   :  { %217 = vadd.xlane.f32.xlu2 %v912_v39  ;;  %219 = vadd.xlane.f32.xlu1 %v926_v45 }
  0xe0   :  { %205 = vadd.xlane.f32.xlu0 %v919_v43 }
  0xe7   :  { %223 = vadd.xlane.f32.xlu2 %v948_v57 }
  0xe8   :  { %225 = vadd.xlane.f32.xlu0 %v959_v63 }
  0xef   :  { %221 = vadd.xlane.f32.xlu2 %v936_v51 }
  0xf7   :  { %207 = vadd.xlane.f32.xlu2 %v934_v50 }
 0x132   :  { %v210_v10 = vpop.xlane.xlu0 %209 }
 0x133   :  { %v241_v11 = vmul.f32 %v985_v9, %v210_v10 }
 0x135   :  { %v988_v12 = vsub.f32 %v168_v56, %v241_v11 }
 0x137   :  { %v273_v13 = vmul.f32 %v988_v12, %v988_v12 }
 0x139   :  { %296 = vadd.xlane.f32.xlu1 %v273_v13 }
 0x13a   :  { %v212_v14 = vpop.xlane.xlu1 %211  ;;  %v196_v15 = vpop.xlane.xlu0 %195 }
 0x13b   :  { %v242_v16 = vmul.f32 %v985_v9, %v212_v14  ;;  %v234_v17 = vmul.f32 %v985_v9, %v196_v15 }
 0x13d   :  { %v994_v18 = vsub.f32 %v169_v62, %v242_v16  ;;  %v997_v19 = vsub.f32 %v870_v21, %v234_v17  ;;  %v572_v16 = vld [vmem:[%s1475_s5 + $0x60] sm:$0xff]  ;;  %v570_v17 = vld [vmem:[%s1475_s5 + $0x50] sm:$0xff] }
 0x13f   :  { %v274_v20 = vmul.f32 %v994_v18, %v994_v18  ;;  %v266_v22 = vmul.f32 %v997_v19, %v997_v19 }
 0x141   :  { %298 = vadd.xlane.f32.xlu0 %v274_v20  ;;  %282 = vadd.xlane.f32.xlu1 %v266_v22  ;;  %v569_v20 = vld [vmem:[%s1475_s5 + $0x48] sm:$0xff]  ;;  %v568_v22 = vld [vmem:[%s1475_s5 + $0x40] sm:$0xff] }
 0x142   :  { %v214_v23 = vpop.xlane.xlu2 %213  ;;  %v198_v25 = vpop.xlane.xlu1 %197 }
 0x143   :  { %v243_v26 = vmul.f32 %v985_v9, %v214_v23  ;;  %v235_v28 = vmul.f32 %v985_v9, %v198_v25  ;;  %v216_v29 = vpop.xlane.xlu0 %215  ;;  %v567_v23 = vld [vmem:[%s1475_s5 + $0x38] sm:$0xff]  ;;  %v566_v25 = vld [vmem:[%s1475_s5 + $0x30] sm:$0xff] }
 0x144   :  { %v244_v35 = vmul.f32 %v985_v9, %v216_v29  ;;  %v563_v29 = vld [vmem:[%s1475_s5 + $0x18] sm:$0xff] }
 0x145   :  { %v1005_v30 = vsub.f32 %v170_v2, %v243_v26  ;;  %v1008_v21 = vsub.f32 %v877_v24, %v235_v28  ;;  %v565_v26 = vld [vmem:[%s1475_s5 + $0x28] sm:$0xff]  ;;  %v564_v28 = vld [vmem:[%s1475_s5 + $0x20] sm:$0xff] }
 0x146   :  { %v1018_v24 = vsub.f32 %v898_v33, %v244_v35  ;;  %v560_v35 = vld [vmem:[%s1475_s5] sm:$0xff] }
 0x147   :  { %v275_v32 = vmul.f32 %v1005_v30, %v1005_v30  ;;  %v267_v34 = vmul.f32 %v1008_v21, %v1008_v21 }
 0x148   :  { %v276_v52 = vmul.f32 %v1018_v24, %v1018_v24 }
 0x149   :  { %300 = vadd.xlane.f32.xlu2 %v275_v32  ;;  %284 = vadd.xlane.f32.xlu1 %v267_v34  ;;  %v562_v32 = vld [vmem:[%s1475_s5 + $0x10] sm:$0xff]  ;;  %v561_v34 = vld [vmem:[%s1475_s5 + $0x8] sm:$0xff] }
 0x14a   :  { %v200_v36 = vpop.xlane.xlu2 %199  ;;  %v202_v38 = vpop.xlane.xlu1 %201 }
 0x14b   :  { %v236_v40 = vmul.f32 %v985_v9, %v200_v36  ;;  %v237_v41 = vmul.f32 %v985_v9, %v202_v38  ;;  %v204_v42 = vpop.xlane.xlu0 %203 }
 0x14c   :  { %v238_v49 = vmul.f32 %v985_v9, %v204_v42 }
 0x14d   :  { %v1021_v44 = vsub.f32 %v884_v27, %v236_v40  ;;  %v1024_v46 = vsub.f32 %v891_v31, %v237_v41  ;;  %v575_v27 = vld [vmem:[%s1475_s5 + $0x78] sm:$0xff]  ;;  %v574_v31 = vld [vmem:[%s1475_s5 + $0x70] sm:$0xff] }
 0x14e   :  { %683 = vmatpush.msra.mxu2 %v575_v27  ;;  %576 = vmatpush.msra.mxu1 %v575_v27  ;;  %v1042_v58 = vsub.f32 %v905_v37, %v238_v49 }
 0x14f   :  { %v269_v47 = vmul.f32 %v1024_v46, %v1024_v46  ;;  %v268_v48 = vmul.f32 %v1021_v44, %v1021_v44  ;;  %684 = vmatpush.msrb.mxu3 %v575_v27 }
 0x150   :  { %685 = vmatpush.msra.mxu2 %v574_v31  ;;  %577 = vmatpush.msra.mxu1 %v574_v31  ;;  %v270_v37 = vmul.f32 %v1042_v58, %v1042_v58 }
 0x151   :  { %288 = vadd.xlane.f32.xlu2 %v269_v47  ;;  %286 = vadd.xlane.f32.xlu0 %v268_v48 }
 0x152   :  { %302 = vadd.xlane.f32.xlu1 %v276_v52  ;;  %v218_v33 = vpop.xlane.xlu2 %217  ;;  %v220_v53 = vpop.xlane.xlu1 %219  ;;  %686 = vmatpush.msrb.mxu3 %v574_v31 }
 0x153   :  { %v245_v54 = vmul.f32 %v985_v9, %v218_v33  ;;  %v246_v55 = vmul.f32 %v985_v9, %v220_v53  ;;  %v206_v56 = vpop.xlane.xlu0 %205 }
 0x154   :  { %v239_v0 = vmul.f32 %v985_v9, %v206_v56 }
 0x155   :  { %v1045_v59 = vsub.f32 %v912_v39, %v245_v54  ;;  %v1048_v60 = vsub.f32 %v926_v45, %v246_v55 }
 0x156   :  { %v1059_v1 = vsub.f32 %v919_v43, %v239_v0 }
 0x157   :  { %v278_v61 = vmul.f32 %v1048_v60, %v1048_v60  ;;  %v277_v62 = vmul.f32 %v1045_v59, %v1045_v59 }
 0x158   :  { %v271_v6 = vmul.f32 %v1059_v1, %v1059_v1 }
 0x159   :  { %306 = vadd.xlane.f32.xlu2 %v278_v61  ;;  %304 = vadd.xlane.f32.xlu0 %v277_v62 }
 0x15a   :  { %290 = vadd.xlane.f32.xlu1 %v270_v37  ;;  %v224_v39 = vpop.xlane.xlu2 %223 }
 0x15b   :  { %v248_v45 = vmul.f32 %v985_v9, %v224_v39  ;;  %v226_v2 = vpop.xlane.xlu0 %225 }
 0x15c   :  { %v249_v4 = vmul.f32 %v985_v9, %v226_v2 }
 0x15d   :  { %v1062_v3 = vsub.f32 %v948_v57, %v248_v45 }
 0x15e   :  { %v1070_v8 = vsub.f32 %v959_v63, %v249_v4 }
 0x15f   :  { %v280_v5 = vmul.f32 %v1062_v3, %v1062_v3 }
 0x160   :  { %v281_v11 = vmul.f32 %v1070_v8, %v1070_v8 }
 0x161   :  { %310 = vadd.xlane.f32.xlu0 %v280_v5 }
 0x162   :  { %292 = vadd.xlane.f32.xlu1 %v271_v6  ;;  %v222_v7 = vpop.xlane.xlu2 %221  ;;  %v1141_v6 = vld [vmem:[%s1473_s3] ss:$0 sm:$0xff] }
 0x163   :  { %v247_v43 = vmul.f32 %v985_v9, %v222_v7 }
 0x165   :  { %v1074_v10 = vsub.f32 %v936_v51, %v247_v43  ;;  %v573_v51 = vld [vmem:[%s1475_s5 + $0x68] sm:$0xff] }
 0x166   :  { %687 = vmatpush.msra.mxu2 %v573_v51  ;;  %578 = vmatpush.msra.mxu1 %v573_v51 }
 0x167   :  { %v279_v57 = vmul.f32 %v1074_v10, %v1074_v10  ;;  %688 = vmatpush.msrb.mxu3 %v573_v51 }
 0x168   :  { %689 = vmatpush.msra.mxu2 %v572_v16  ;;  %579 = vmatpush.msra.mxu1 %v572_v16 }
 0x169   :  { %308 = vadd.xlane.f32.xlu2 %v279_v57  ;;  %312 = vadd.xlane.f32.xlu0 %v281_v11 }
 0x16a   :  { %v208_v13 = vpop.xlane.xlu2 %207  ;;  %690 = vmatpush.msrb.mxu3 %v572_v16 }
 0x16b   :  { %v240_v14 = vmul.f32 %v985_v9, %v208_v13  ;;  %v1148_v13 = vld [vmem:[%s1474_s4] ss:$0 sm:$0xff] }
 0x16d   :  { %v1082_v15 = vsub.f32 %v934_v50, %v240_v14  ;;  %v571_v50 = vld [vmem:[%s1475_s5 + $0x58] sm:$0xff] }
 0x16e   :  { %691 = vmatpush.msra.mxu2 %v571_v50  ;;  %580 = vmatpush.msra.mxu1 %v571_v50 }
 0x16f   :  { %v272_v63 = vmul.f32 %v1082_v15, %v1082_v15  ;;  %692 = vmatpush.msrb.mxu3 %v571_v50 }
 0x170   :  { %693 = vmatpush.msra.mxu2 %v570_v17  ;;  %581 = vmatpush.msra.mxu1 %v570_v17 }
 0x171   :  { %294 = vadd.xlane.f32.xlu1 %v272_v63  ;;  %694 = vmatpush.msrb.mxu3 %v570_v17 }
 0x172   :  { %695 = vmatpush.msra.mxu2 %v569_v20  ;;  %582 = vmatpush.msra.mxu1 %v569_v20 }
 0x173   :  { %696 = vmatpush.msrb.mxu3 %v569_v20 }
 0x174   :  { %697 = vmatpush.msra.mxu2 %v568_v22  ;;  %583 = vmatpush.msra.mxu1 %v568_v22 }
 0x175   :  { %698 = vmatpush.msrb.mxu3 %v568_v22 }
 0x176   :  { %699 = vmatpush.msra.mxu2 %v567_v23  ;;  %584 = vmatpush.msra.mxu1 %v567_v23 }
 0x177   :  { %700 = vmatpush.msrb.mxu3 %v567_v23 }
 0x178   :  { %701 = vmatpush.msra.mxu2 %v566_v25  ;;  %585 = vmatpush.msra.mxu1 %v566_v25 }
 0x179   :  { %702 = vmatpush.msrb.mxu3 %v566_v25 }
 0x17a   :  { %703 = vmatpush.msra.mxu2 %v565_v26  ;;  %586 = vmatpush.msra.mxu1 %v565_v26 }
 0x17b   :  { %704 = vmatpush.msrb.mxu3 %v565_v26 }
 0x17c   :  { %705 = vmatpush.msra.mxu2 %v564_v28  ;;  %587 = vmatpush.msra.mxu1 %v564_v28 }
 0x17d   :  { %706 = vmatpush.msrb.mxu3 %v564_v28 }
 0x17e   :  { %707 = vmatpush.msra.mxu2 %v563_v29  ;;  %588 = vmatpush.msra.mxu1 %v563_v29 }
 0x17f   :  { %708 = vmatpush.msrb.mxu3 %v563_v29 }
 0x180   :  { %709 = vmatpush.msra.mxu2 %v562_v32  ;;  %589 = vmatpush.msra.mxu1 %v562_v32 }
 0x181   :  { %710 = vmatpush.msrb.mxu3 %v562_v32 }
 0x182   :  { %711 = vmatpush.msra.mxu2 %v561_v34  ;;  %590 = vmatpush.msra.mxu1 %v561_v34 }
 0x183   :  { %712 = vmatpush.msrb.mxu3 %v561_v34 }
 0x184   :  { %713 = vmatpush.msra.mxu2 %v560_v35  ;;  %591 = vmatpush.msra.mxu1 %v560_v35 }
 0x185   :  { %714 = vmatpush.msrb.mxu3 %v560_v35 }
 0x1ac   :  { %v297_v36 = vpop.xlane.xlu1 %296 }
 0x1ad   :  { %v321_v38 = vmul.f32 %v297_v36, %v985_v9 }
 0x1af   :  { %v337_v40 = vadd.f32 1e-08, %v321_v38 }
 0x1b1   :  { %721 = vrsqrt.f32 %v337_v40  ;;  %vm422_vm3 = vweird.f32 %v337_v40 }
 0x1b4   :  { %v283_v41 = vpop.xlane.xlu1 %282  ;;  %v299_v42 = vpop.xlane.xlu0 %298 }
 0x1b5   :  { %v314_v47 = vmul.f32 %v283_v41, %v985_v9  ;;  %v322_v48 = vmul.f32 %v299_v42, %v985_v9 }
 0x1b7   :  { %v722_v49 = vpop.eup %721  ;;  %v330_v52 = vadd.f32 1e-08, %v314_v47  ;;  %v338_v27 = vadd.f32 1e-08, %v322_v48 }
 0x1b8   :  { %v417_v31 = vmul.f32 %v722_v49, %v337_v40  ;;  %vm423_vm2 = vweird.f32 %v722_v49 }
 0x1b9   :  { %723 = vrsqrt.f32 %v330_v52  ;;  %vm424_vm4 = vmor %vm422_vm3, %vm423_vm2  ;;  %vm352_vm7 = vweird.f32 %v330_v52  ;;  %vm432_vm9 = vweird.f32 %v338_v27 }
 0x1ba   :  { %v418_v33 = vmul.f32 %v722_v49, %v417_v31  ;;  %725 = vrsqrt.f32 %v338_v27 }
 0x1bc   :  { %v419_v53 = vmul.f32 0.5, %v418_v33  ;;  %v301_v54 = vpop.xlane.xlu2 %300  ;;  %v285_v55 = vpop.xlane.xlu1 %284 }
 0x1bd   :  { %v323_v56 = vmul.f32 %v301_v54, %v985_v9  ;;  %v315_v61 = vmul.f32 %v285_v55, %v985_v9 }
 0x1be   :  { %v420_v62 = vsub.f32 1.5, %v419_v53 }
 0x1bf   :  { %v724_v0 = vpop.eup %723  ;;  %v1133_v37 = vadd.f32 1e-08, %v323_v56  ;;  %v1135_v39 = vadd.f32 1e-08, %v315_v61 }
 0x1c0   :  { %v726_v45 = vpop.eup %725  ;;  %v421_v2 = vmul.f32 %v722_v49, %v420_v62  ;;  %v347_v4 = vmul.f32 %v724_v0, %v330_v52  ;;  %vm353_vm5 = vweird.f32 %v724_v0 }
 0x1c1   :  { %v427_v5 = vmul.f32 %v726_v45, %v338_v27  ;;  %727 = vrsqrt.f32 %v1133_v37  ;;  %vm433_vm6 = vweird.f32 %v726_v45  ;;  %vm354_vm8 = vmor %vm352_vm7, %vm353_vm5  ;;  %vm362_vm13 = vweird.f32 %v1135_v39 }
 0x1c2   :  { %v348_v7 = vmul.f32 %v724_v0, %v347_v4  ;;  %729 = vrsqrt.f32 %v1135_v39  ;;  %v425_v43 = vsel %vm424_vm4, %v722_v49, %v421_v2  ;;  %vm434_vm10 = vmor %vm432_vm9, %vm433_vm6  ;;  %vm442_vm15 = vweird.f32 %v1133_v37 }
 0x1c3   :  { %v428_v57 = vmul.f32 %v726_v45, %v427_v5  ;;  %v513_v11 = vmul.f32 %v425_v43, %v988_v12 }
 0x1c4   :  { %v349_v14 = vmul.f32 0.5, %v348_v7  ;;  %v289_v63 = vpop.xlane.xlu2 %288  ;;  %v287_v51 = vpop.xlane.xlu0 %286 }
 0x1c5   :  { %v429_v16 = vmul.f32 0.5, %v428_v57  ;;  %v317_v50 = vmul.f32 %v289_v63, %v985_v9  ;;  %v303_v17 = vpop.xlane.xlu1 %302  ;;  %v316_v20 = vmul.f32 %v287_v51, %v985_v9  ;;  %v532_v22 = vmul.f32 %v1141_v6, %v513_v11 }
 0x1c6   :  { %v350_v23 = vsub.f32 1.5, %v349_v14  ;;  %v324_v12 = vmul.f32 %v303_v17, %v985_v9 }
 0x1c7   :  { %v1154_v25 = vpop.eup %727  ;;  %v430_v26 = vsub.f32 1.5, %v429_v16  ;;  %v1156_v28 = vadd.f32 1e-08, %v317_v50  ;;  %v1158_v29 = vadd.f32 1e-08, %v316_v20  ;;  %v551_v32 = vadd.f32 %v1148_v13, %v532_v22 }
 0x1c8   :  { %v1161_v34 = vpop.eup %729  ;;  %v351_v35 = vmul.f32 %v724_v0, %v350_v23  ;;  %v437_v36 = vmul.f32 %v1154_v25, %v1133_v37  ;;  %v1165_v38 = vadd.f32 1e-08, %v324_v12  ;;  %vm443_vm12 = vweird.f32 %v1154_v25 }
 0x1c9   :  { %v431_v40 = vmul.f32 %v726_v45, %v430_v26  ;;  %v357_v41 = vmul.f32 %v1161_v34, %v1135_v39  ;;  %731 = vrsqrt.f32 %v1156_v28  ;;  %613 = vmatmul.f32.vlgmr.msra.gmra.mxu2 %v551_v32  ;;  %vm363_vm11 = vweird.f32 %v1161_v34  ;;  %vm1232_vm1 = vmor %vm442_vm15, %vm443_vm12 }
 0x1ca   :  { %v438_v42 = vmul.f32 %v1154_v25, %v437_v36  ;;  %733 = vrsqrt.f32 %v1165_v38  ;;  %v355_v48 = vsel %vm354_vm8, %v724_v0, %v351_v35  ;;  %vm1209_vm14 = vmor %vm362_vm13, %vm363_vm11  ;;  %vm372_vm0 = vweird.f32 %v1158_v29 }
 0x1cb   :  { %v358_v47 = vmul.f32 %v1161_v34, %v357_v41  ;;  %735 = vrsqrt.f32 %v1158_v29  ;;  %v506_v33 = vmul.f32 %v355_v48, %v997_v19  ;;  %v435_v53 = vsel %vm434_vm10, %v726_v45, %v431_v40 }
 0x1cc   :  { %v439_v49 = vmul.f32 0.5, %v438_v42  ;;  %v307_v52 = vpop.xlane.xlu2 %306  ;;  %v305_v31 = vpop.xlane.xlu0 %304  ;;  %v514_v61 = vmul.f32 %v435_v53, %v994_v18  ;;  %vm382_vm2 = vweird.f32 %v1156_v28  ;;  %vm452_vm5 = vweird.f32 %v1165_v38 }
 0x1cd   :  { %v359_v54 = vmul.f32 0.5, %v358_v47  ;;  %v326_v55 = vmul.f32 %v307_v52, %v985_v9  ;;  %v291_v27 = vpop.xlane.xlu1 %290  ;;  %v325_v56 = vmul.f32 %v305_v31, %v985_v9  ;;  %v525_v18 = vmul.f32 %v1141_v6, %v506_v33 }
 0x1ce   :  { %v318_v62 = vmul.f32 %v291_v27, %v985_v9  ;;  %v440_v4 = vsub.f32 1.5, %v439_v49  ;;  %v533_v63 = vmul.f32 %v1141_v6, %v514_v61 }
 0x1cf   :  { %v1180_v2 = vpop.eup %731  ;;  %v360_v0 = vsub.f32 1.5, %v359_v54  ;;  %v1183_v5 = vadd.f32 1e-08, %v326_v55  ;;  %v1191_v43 = vadd.f32 1e-08, %v325_v56  ;;  %v544_v22 = vadd.f32 %v1148_v13, %v525_v18 }
 0x1d0   :  { %v1185_v19 = vpop.eup %733  ;;  %v377_v45 = vmul.f32 %v1180_v2, %v1156_v28  ;;  %v1189_v7 = vadd.f32 1e-08, %v318_v62  ;;  %v441_v39 = vmul.f32 %v1154_v25, %v440_v4  ;;  %v552_v12 = vadd.f32 %v1148_v13, %v533_v63 }
 0x1d1   :  { %v1194_v57 = vpop.eup %735  ;;  %v361_v11 = vmul.f32 %v1161_v34, %v360_v0  ;;  %v447_v14 = vmul.f32 %v1185_v19, %v1165_v38  ;;  %737 = vrsqrt.f32 %v1183_v5  ;;  %592 = vmatmul.f32.vlgmr.msra.gmra.mxu1 %v544_v22  ;;  %vm383_vm4 = vweird.f32 %v1180_v2 }
 0x1d2   :  { %v367_v51 = vmul.f32 %v1194_v57, %v1158_v29  ;;  %v378_v16 = vmul.f32 %v1180_v2, %v377_v45  ;;  %739 = vrsqrt.f32 %v1189_v7  ;;  %616 = vmatmul.f32.gmra.mxu2 %v552_v12  ;;  %vm373_vm3 = vweird.f32 %v1194_v57  ;;  %vm1302_vm11 = vmor %vm382_vm2, %vm383_vm4 }
 0x1d3   :  { %v448_v17 = vmul.f32 %v1185_v19, %v447_v14  ;;  %741 = vrsqrt.f32 %v1191_v43  ;;  %v365_v35 = vsel %vm1209_vm14, %v1161_v34, %v361_v11  ;;  %v445_v53 = vsel %vm1232_vm1, %v1154_v25, %v441_v39  ;;  %vm1265_vm7 = vmor %vm372_vm0, %vm373_vm3 }
 0x1d4   :  { %v368_v20 = vmul.f32 %v1194_v57, %v367_v51  ;;  %v311_v23 = vpop.xlane.xlu0 %310  ;;  %v379_v42 = vmul.f32 0.5, %v378_v16  ;;  %v507_v31 = vmul.f32 %v365_v35, %v1008_v21  ;;  %vm453_vm6 = vweird.f32 %v1185_v19 }
 0x1d5   :  { %v293_v26 = vpop.xlane.xlu1 %292  ;;  %v328_v32 = vmul.f32 %v311_v23, %v985_v9  ;;  %v449_v34 = vmul.f32 0.5, %v448_v17  ;;  %v515_v45 = vmul.f32 %v445_v53, %v1005_v30  ;;  %vm392_vm8 = vweird.f32 %v1189_v7  ;;  %vm454_vm13 = vmor %vm452_vm5, %vm453_vm6 }
 0x1d6   :  { %v369_v36 = vmul.f32 0.5, %v368_v20  ;;  %v319_v40 = vmul.f32 %v293_v26, %v985_v9  ;;  %v380_v56 = vsub.f32 1.5, %v379_v42  ;;  %v526_v0 = vmul.f32 %v1141_v6, %v507_v31 }
 0x1d7   :  { %v1224_v41 = vpop.eup %737  ;;  %v1228_v47 = vadd.f32 1e-08, %v328_v32  ;;  %v450_v25 = vsub.f32 1.5, %v449_v34  ;;  %v534_v20 = vmul.f32 %v1141_v6, %v515_v45  ;;  %vm462_vm9 = vweird.f32 %v1191_v43 }
 0x1d8   :  { %v370_v49 = vsub.f32 1.5, %v369_v36  ;;  %v467_v52 = vmul.f32 %v1224_v41, %v1183_v5  ;;  %v1239_v37 = vpop.eup %739  ;;  %v1243_v33 = vadd.f32 1e-08, %v319_v40  ;;  %v545_v17 = vadd.f32 %v1148_v13, %v526_v0 }
 0x1d9   :  { %743 = vrsqrt.f32 %v1228_v47  ;;  %v1249_v54 = vpop.eup %741  ;;  %v387_v27 = vmul.f32 %v1239_v37, %v1189_v7  ;;  %v381_v26 = vmul.f32 %v1180_v2, %v380_v56  ;;  %vm393_vm10 = vweird.f32 %v1239_v37 }
 0x1da   :  { %v371_v21 = vmul.f32 %v1194_v57, %v370_v49  ;;  %v468_v55 = vmul.f32 %v1224_v41, %v467_v52  ;;  %v457_v61 = vmul.f32 %v1249_v54, %v1191_v43  ;;  %745 = vrsqrt.f32 %v1243_v33  ;;  %595 = vmatmul.f32.gmra.mxu1 %v545_v17  ;;  %vm1342_vm1 = vmor %vm392_vm8, %vm393_vm10 }
 0x1db   :  { %v388_v4 = vmul.f32 %v1239_v37, %v387_v27  ;;  %v553_v40 = vadd.f32 %v1148_v13, %v534_v20  ;;  %vm463_vm12 = vweird.f32 %v1249_v54  ;;  %v385_v27 = vsel %vm1302_vm11, %v1180_v2, %v381_v26 }
 0x1dc   :  { %v309_v18 = vpop.xlane.xlu2 %308  ;;  %v313_v11 = vpop.xlane.xlu0 %312  ;;  %v458_v14 = vmul.f32 %v1249_v54, %v457_v61  ;;  %v375_v29 = vsel %vm1265_vm7, %v1194_v57, %v371_v21  ;;  %v469_v16 = vmul.f32 0.5, %v468_v55  ;;  %v451_v57 = vmul.f32 %v1185_v19, %v450_v25  ;;  %vm464_vm14 = vmor %vm462_vm9, %vm463_vm12 }
 0x1dd   :  { %v327_v63 = vmul.f32 %v309_v18, %v985_v9  ;;  %v329_v51 = vmul.f32 %v313_v11, %v985_v9  ;;  %v389_v50 = vmul.f32 0.5, %v388_v4  ;;  %v508_v12 = vmul.f32 %v375_v29, %v1021_v44  ;;  %619 = vmatmul.f32.gmra.mxu2 %v553_v40 }
 0x1de   :  { %v459_v30 = vmul.f32 0.5, %v458_v14  ;;  %v470_v49 = vsub.f32 1.5, %v469_v16  ;;  %v455_v21 = vsel %vm454_vm13, %v1185_v19, %v451_v57  ;;  %v509_v25 = vmul.f32 %v385_v27, %v1024_v46 }
 0x1df   :  { %v1280_v22 = vpop.eup %743  ;;  %v1283_v23 = vadd.f32 1e-08, %v327_v63  ;;  %v1285_v39 = vadd.f32 1e-08, %v329_v51  ;;  %v390_v42 = vsub.f32 1.5, %v389_v50  ;;  %v527_v52 = vmul.f32 %v1141_v6, %v508_v12 }
 0x1e0   :  { %v487_v32 = vmul.f32 %v1280_v22, %v1228_v47  ;;  %v1293_v35 = vpop.eup %745  ;;  %v460_v36 = vsub.f32 1.5, %v459_v30  ;;  %v516_v56 = vmul.f32 %v455_v21, %v1018_v24  ;;  %vm493_vm15 = vweird.f32 %v1280_v22 }
 0x1e1   :  { %747 = vrsqrt.f32 %v1283_v23  ;;  %v397_v48 = vmul.f32 %v1293_v35, %v1243_v33  ;;  %v546_v38 = vadd.f32 %v1148_v13, %v527_v52  ;;  %v391_v62 = vmul.f32 %v1239_v37, %v390_v42 }
 0x1e2   :  { %v488_v34 = vmul.f32 %v1280_v22, %v487_v32  ;;  %v461_v28 = vmul.f32 %v1249_v54, %v460_v36  ;;  %749 = vrsqrt.f32 %v1285_v39  ;;  %v535_v43 = vmul.f32 %v1141_v6, %v516_v56 }
 0x1e3   :  { %v398_v31 = vmul.f32 %v1293_v35, %v397_v48  ;;  %vm473_vm0 = vweird.f32 %v1224_v41  ;;  %vm492_vm2 = vweird.f32 %v1228_v47  ;;  %598 = vmatmul.f32.gmra.mxu1 %v546_v38  ;;  %v528_v11 = vmul.f32 %v1141_v6, %v509_v25 }
 0x1e4   :  { %v489_v53 = vmul.f32 0.5, %v488_v34  ;;  %v295_v55 = vpop.xlane.xlu1 %294  ;;  %v465_v19 = vsel %vm464_vm14, %v1249_v54, %v461_v28  ;;  %vm494_vm3 = vmor %vm492_vm2, %vm493_vm15  ;;  %v554_v7 = vadd.f32 %v1148_v13, %v535_v43  ;;  %v395_v51 = vsel %vm1342_vm1, %v1239_v37, %v391_v62 }
 0x1e5   :  { %v320_v61 = vmul.f32 %v295_v55, %v985_v9  ;;  %v399_v2 = vmul.f32 0.5, %v398_v31  ;;  %v517_v24 = vmul.f32 %v465_v19, %v1045_v59  ;;  %v471_v59 = vmul.f32 %v1224_v41, %v470_v49 }
 0x1e6   :  { %v490_v4 = vsub.f32 1.5, %v489_v53  ;;  %622 = vmatmul.f32.gmra.mxu2 %v554_v7  ;;  %vm472_vm4 = vweird.f32 %v1183_v5  ;;  %vm403_vm6 = vweird.f32 %v1293_v35  ;;  %v547_v37 = vadd.f32 %v1148_v13, %v528_v11 }
 0x1e7   :  { %v1331_v0 = vpop.eup %747  ;;  %v1334_v45 = vadd.f32 1e-08, %v320_v61  ;;  %v400_v29 = vsub.f32 1.5, %v399_v2  ;;  %v536_v16 = vmul.f32 %v1141_v6, %v517_v24  ;;  %vm1367_vm5 = vmor %vm472_vm4, %vm473_vm0  ;;  %v510_v30 = vmul.f32 %v395_v51, %v1042_v58 }
 0x1e8   :  { %v491_v46 = vmul.f32 %v1280_v22, %v490_v4  ;;  %v477_v54 = vmul.f32 %v1331_v0, %v1283_v23  ;;  %v750_v18 = vpop.eup %749  ;;  %v475_v5 = vsel %vm1367_vm5, %v1224_v41, %v471_v59  ;;  %vm402_vm7 = vweird.f32 %v1243_v33 }
 0x1e9   :  { %751 = vrsqrt.f32 %v1334_v45  ;;  %v497_v63 = vmul.f32 %v750_v18, %v1285_v39  ;;  %v401_v32 = vmul.f32 %v1293_v35, %v400_v29  ;;  %vm483_vm8 = vweird.f32 %v1331_v0  ;;  %vm1386_vm10 = vmor %vm402_vm7, %vm403_vm6 }
 0x1ea   :  { %v495_v14 = vsel %vm494_vm3, %v1280_v22, %v491_v46  ;;  %v478_v47 = vmul.f32 %v1331_v0, %v477_v54  ;;  %v555_v36 = vadd.f32 %v1148_v13, %v536_v16  ;;  %vm503_vm9 = vweird.f32 %v750_v18 }
 0x1eb   :  { %v498_v17 = vmul.f32 %v750_v18, %v497_v63  ;;  %v520_v20 = vmul.f32 %v495_v14, %v1062_v3  ;;  %601 = vmatmul.f32.gmra.mxu1 %v547_v37  ;;  %vm482_vm11 = vweird.f32 %v1283_v23  ;;  %v518_v33 = vmul.f32 %v475_v5, %v1048_v60 }
 0x1ec   :  { %v479_v50 = vmul.f32 0.5, %v478_v47  ;;  %vm1393_vm12 = vmor %vm482_vm11, %vm483_vm8  ;;  %vm502_vm13 = vweird.f32 %v1285_v39  ;;  %v529_v28 = vmul.f32 %v1141_v6, %v510_v30  ;;  %v405_v23 = vsel %vm1386_vm10, %v1293_v35, %v401_v32 }
 0x1ed   :  { %v499_v26 = vmul.f32 0.5, %v498_v17  ;;  %v539_v3 = vmul.f32 %v1141_v6, %v520_v20  ;;  %vm504_vm14 = vmor %vm502_vm13, %vm503_vm9  ;;  %v537_v53 = vmul.f32 %v1141_v6, %v518_v33  ;;  %v511_v27 = vmul.f32 %v405_v23, %v1059_v1 }
 0x1ee   :  { %v480_v12 = vsub.f32 1.5, %v479_v50  ;;  %625 = vmatmul.f32.gmra.mxu2 %v555_v36  ;;  %v548_v55 = vadd.f32 %v1148_v13, %v529_v28  ;;  %vm412_vm0 = vweird.f32 %v1334_v45 }
 0x1ef   :  { %v752_v57 = vpop.eup %751  ;;  %v500_v58 = vsub.f32 1.5, %v499_v26  ;;  %v558_v42 = vadd.f32 %v1148_v13, %v539_v3  ;;  %v556_v61 = vadd.f32 %v1148_v13, %v537_v53 }
 0x1f0   :  { %v481_v40 = vmul.f32 %v1331_v0, %v480_v12  ;;  %v407_v44 = vmul.f32 %v752_v57, %v1334_v45  ;;  %vm413_vm15 = vweird.f32 %v752_v57 }
 0x1f1   :  { %v501_v34 = vmul.f32 %v750_v18, %v500_v58  ;;  %634 = vmatmul.f32.vlgmr.msrb.gmra.mxu3 %v558_v42  ;;  %vm414_vm1 = vmor %vm412_vm0, %vm413_vm15 }
 0x1f2   :  { %v408_v49 = vmul.f32 %v752_v57, %v407_v44  ;;  %v485_v52 = vsel %vm1393_vm12, %v1331_v0, %v481_v40 }
 0x1f3   :  { %v505_v31 = vsel %vm504_vm14, %v750_v18, %v501_v34  ;;  %v519_v38 = vmul.f32 %v485_v52, %v1074_v10  ;;  %604 = vmatmul.f32.gmra.mxu1 %v548_v55 }
 0x1f4   :  { %v409_v60 = vmul.f32 0.5, %v408_v49  ;;  %v521_v39 = vmul.f32 %v505_v31, %v1070_v8  ;;  %v530_v8 = vmul.f32 %v1141_v6, %v511_v27 }
 0x1f5   :  { %v538_v4 = vmul.f32 %v1141_v6, %v519_v38 }
 0x1f6   :  { %v410_v21 = vsub.f32 1.5, %v409_v60  ;;  %v540_v35 = vmul.f32 %v1141_v6, %v521_v39  ;;  %628 = vmatmul.f32.gmra.mxu2 %v556_v61  ;;  %v549_v19 = vadd.f32 %v1148_v13, %v530_v8 }
 0x1f7   :  { %v557_v0 = vadd.f32 %v1148_v13, %v538_v4 }
 0x1f8   :  { %v411_v56 = vmul.f32 %v752_v57, %v410_v21  ;;  %v559_v25 = vadd.f32 %v1148_v13, %v540_v35 }
 0x1fa   :  { %v415_v62 = vsel %vm414_vm1, %v752_v57, %v411_v56  ;;  %637 = vmatmul.f32.gmra.mxu3 %v559_v25 }
 0x1fb   :  { %v512_v1 = vmul.f32 %v415_v62, %v1082_v15  ;;  %607 = vmatmul.f32.gmra.mxu1 %v549_v19 }
 0x1fd   :  { %v531_v10 = vmul.f32 %v1141_v6, %v512_v1 }
 0x1fe   :  { %631 = vmatmul.f32.gmra.mxu2 %v557_v0 }
 0x1ff   :  { %v550_v2 = vadd.f32 %v1148_v13, %v531_v10 }
 0x203   :  { %610 = vmatmul.f32.gmra.mxu1 %v550_v2 }
 0x24c   :  { %v614_v43 = vpop.f32.mrf.mxu2 }
 0x24d   :  { %648 = vst [vmem:[%s1476_s7 + $0x38] sm:$0xff] %v614_v43 }
 0x24e   :  { %v593_v45 = vpop.f32.mrf.mxu1 }
 0x24f   :  { %641 = vst [vmem:[%s1476_s7] sm:$0xff] %v593_v45 }
 0x255   :  { %v617_v15 = vpop.f32.mrf.mxu2 }
 0x256   :  { %649 = vst [vmem:[%s1476_s7 + $0x40] sm:$0xff] %v617_v15 }
 0x257   :  { %v596_v6 = vpop.f32.mrf.mxu1 }
 0x258   :  { %642 = vst [vmem:[%s1476_s7 + $0x8] sm:$0xff] %v596_v6 }
 0x260   :  { %v599_v13 = vpop.f32.mrf.mxu1  ;;  %v620_v24 = vpop.f32.mrf.mxu2 }
 0x261   :  { %643 = vst [vmem:[%s1476_s7 + $0x10] sm:$0xff] %v599_v13 }
 0x262   :  { %650 = vst [vmem:[%s1476_s7 + $0x48] sm:$0xff] %v620_v24 }
 0x268   :  { %v602_v9 = vpop.f32.mrf.mxu1 }
 0x269   :  { %v623_v46 = vpop.f32.mrf.mxu2  ;;  %644 = vst [vmem:[%s1476_s7 + $0x18] sm:$0xff] %v602_v9 }
 0x26a   :  { %651 = vst [vmem:[%s1476_s7 + $0x50] sm:$0xff] %v623_v46 }
 0x270   :  { %v605_v54 = vpop.f32.mrf.mxu1 }
 0x271   :  { %v626_v18 = vpop.f32.mrf.mxu2  ;;  %645 = vst [vmem:[%s1476_s7 + $0x20] sm:$0xff] %v605_v54 }
 0x272   :  { %652 = vst [vmem:[%s1476_s7 + $0x58] sm:$0xff] %v626_v18 }
 0x274   :  { %v635_v59 = vpop.f32.mrf.mxu3 }
 0x275   :  { %655 = vst [vmem:[%s1476_s7 + $0x70] sm:$0xff] %v635_v59 }
 0x278   :  { %v608_v7 = vpop.f32.mrf.mxu1 }
 0x279   :  { %v629_v11 = vpop.f32.mrf.mxu2  ;;  %646 = vst [vmem:[%s1476_s7 + $0x28] sm:$0xff] %v608_v7 }
 0x27a   :  { %653 = vst [vmem:[%s1476_s7 + $0x60] sm:$0xff] %v629_v11 }
 0x27d   :  { %v638_v14 = vpop.f32.mrf.mxu3 }
 0x27e   :  { %656 = vst [vmem:[%s1476_s7 + $0x78] sm:$0xff] %v638_v14 }
 0x280   :  { %v611_v47 = vpop.f32.mrf.mxu1 }
 0x281   :  { %v632_v63 = vpop.f32.mrf.mxu2  ;;  %647 = vst [vmem:[%s1476_s7 + $0x30] sm:$0xff] %v611_v47 }
 0x282   :  { %654 = vst [vmem:[%s1476_s7 + $0x68] sm:$0xff] %v632_v63 }

// kernel: model_forward.4
= control target key start
LH: loop header
LB: loop body
LE: loop exit
PB: predicated region body
PF: predicated region fallthrough
CT: control target
= control target key end

     0   :  { %v4281_v36 = vmov 128.0   ;;  %s9090_s0 = inlined_call_operand.vmem [shape: f32[288,128], index: 0, kind: input, shape index: {}]   ;;  %s9091_s1 = inlined_call_operand.vmem [shape: f32[2,128], index: 1, kind: input, shape index: {}]   ;;  %s9092_s2 = inlined_call_operand.vmem [shape: f32[2,128], index: 2, kind: input, shape index: {}]   ;;  %s9093_s3 = inlined_call_operand.vmem [shape: f32[2,128], index: 3, kind: input, shape index: {}]   ;;  %s9094_s4 = inlined_call_operand.vmem [shape: f32[2,128], index: 4, kind: input, shape index: {}]   ;;  %s9095_s5 = inlined_call_operand.vmem [shape: f32[1,128], index: 5, kind: input, shape index: {}]   ;;  %s9096_s6 = inlined_call_operand.vmem [shape: f32[128,256], index: 6, kind: input, shape index: {}]   ;;  %s9097_s7 = inlined_call_operand.vmem [shape: f32[1,256], index: 7, kind: input, shape index: {}]   ;;  %s9098_s8 = inlined_call_operand.vmem [shape: f32[288,256], index: 8, kind: output, shape index: {}]  }
   0x1   :  { %v4330_v0 = vld [vmem:[%s9090_s0 + $0x20] sm:$0xff]  ;;  %v4335_v1 = vld [vmem:[%s9090_s0 + $0x10] sm:$0xff]  ;;  %v4348_v3 = vld [vmem:[%s9090_s0 + $0x28] sm:$0xff]  ;;  %3918 = vrcp.f32 %v4281_v36 }
   0x2   :  { %v4340_v2 = vld [vmem:[%s9090_s0] sm:$0xff]  ;;  %75 = vadd.xlane.f32.xlu2 %v4330_v0  ;;  %71 = vadd.xlane.f32.xlu1 %v4335_v1  ;;  %v4353_v4 = vld [vmem:[%s9090_s0 + $0x18] sm:$0xff]  ;;  %v4358_v5 = vld [vmem:[%s9090_s0 + $0x8] sm:$0xff] }
   0x3   :  { %67 = vadd.xlane.f32.xlu0 %v4340_v2  ;;  %v4366_v6 = vld [vmem:[%s9090_s0 + $0x40] sm:$0xff]  ;;  %v4371_v7 = vld [vmem:[%s9090_s0 + $0x38] sm:$0xff]  ;;  %v4376_v8 = vld [vmem:[%s9090_s0 + $0x30] sm:$0xff] }
   0x4   :  { %v4384_v9 = vld [vmem:[%s9090_s0 + $0x58] sm:$0xff]  ;;  %v4389_v10 = vld [vmem:[%s9090_s0 + $0x50] sm:$0xff]  ;;  %v4394_v11 = vld [vmem:[%s9090_s0 + $0x48] sm:$0xff] }
   0x5   :  { %v4402_v12 = vld [vmem:[%s9090_s0 + $0x70] sm:$0xff]  ;;  %v4407_v13 = vld [vmem:[%s9090_s0 + $0x68] sm:$0xff]  ;;  %v4412_v14 = vld [vmem:[%s9090_s0 + $0x60] sm:$0xff] }
   0x6   :  { %v4420_v15 = vld [vmem:[%s9090_s0 + $0x88] sm:$0xff]  ;;  %v4425_v16 = vld [vmem:[%s9090_s0 + $0x80] sm:$0xff]  ;;  %v4430_v17 = vld [vmem:[%s9090_s0 + $0x78] sm:$0xff] }
   0x7   :  { %v4438_v18 = vld [vmem:[%s9090_s0 + $0xa0] sm:$0xff]  ;;  %v4443_v19 = vld [vmem:[%s9090_s0 + $0x98] sm:$0xff]  ;;  %v4448_v20 = vld [vmem:[%s9090_s0 + $0x90] sm:$0xff]  ;;  %v3919_v37 = vpop.eup %3918 }
   0x8   :  { %v4456_v21 = vld [vmem:[%s9090_s0 + $0xb8] sm:$0xff]  ;;  %v4461_v22 = vld [vmem:[%s9090_s0 + $0xb0] sm:$0xff]  ;;  %v4466_v23 = vld [vmem:[%s9090_s0 + $0xa8] sm:$0xff]  ;;  %v140_v38 = vmul.f32 128.0, %v3919_v37  ;;  %vm144_vm0 = vweird.f32 %v3919_v37 }
   0x9   :  { %v4474_v24 = vld [vmem:[%s9090_s0 + $0xd0] sm:$0xff]  ;;  %v4479_v25 = vld [vmem:[%s9090_s0 + $0xc8] sm:$0xff]  ;;  %v4484_v26 = vld [vmem:[%s9090_s0 + $0xc0] sm:$0xff] }
   0xa   :  { %77 = vadd.xlane.f32.xlu2 %v4348_v3  ;;  %73 = vadd.xlane.f32.xlu1 %v4353_v4  ;;  %v4492_v27 = vld [vmem:[%s9090_s0 + $0xe8] sm:$0xff]  ;;  %v4497_v28 = vld [vmem:[%s9090_s0 + $0xe0] sm:$0xff]  ;;  %v4502_v29 = vld [vmem:[%s9090_s0 + $0xd8] sm:$0xff]  ;;  %v141_v39 = vsub.f32 1.0, %v140_v38 }
   0xb   :  { %69 = vadd.xlane.f32.xlu0 %v4358_v5  ;;  %v4510_v30 = vld [vmem:[%s9090_s0 + $0x100] sm:$0xff]  ;;  %v4515_v31 = vld [vmem:[%s9090_s0 + $0xf8] sm:$0xff]  ;;  %v4520_v32 = vld [vmem:[%s9090_s0 + $0xf0] sm:$0xff] }
   0xc   :  { %v4528_v33 = vld [vmem:[%s9090_s0 + $0x118] sm:$0xff]  ;;  %v4533_v34 = vld [vmem:[%s9090_s0 + $0x110] sm:$0xff]  ;;  %v4538_v35 = vld [vmem:[%s9090_s0 + $0x108] sm:$0xff]  ;;  %v142_v40 = vmul.f32 %v3919_v37, %v141_v39 }
   0xe   :  { %v143_v41 = vadd.f32 %v3919_v37, %v142_v40 }
  0x10   :  { %v4543_v42 = vsel %vm144_vm0, %v3919_v37, %v143_v41 }
  0x12   :  { %83 = vadd.xlane.f32.xlu2 %v4366_v6  ;;  %81 = vadd.xlane.f32.xlu1 %v4371_v7 }
  0x13   :  { %79 = vadd.xlane.f32.xlu0 %v4376_v8 }
  0x1a   :  { %89 = vadd.xlane.f32.xlu2 %v4384_v9  ;;  %87 = vadd.xlane.f32.xlu1 %v4389_v10 }
  0x1b   :  { %85 = vadd.xlane.f32.xlu0 %v4394_v11 }
  0x22   :  { %95 = vadd.xlane.f32.xlu2 %v4402_v12  ;;  %93 = vadd.xlane.f32.xlu1 %v4407_v13 }
  0x23   :  { %91 = vadd.xlane.f32.xlu0 %v4412_v14 }
  0x2a   :  { %101 = vadd.xlane.f32.xlu2 %v4420_v15  ;;  %99 = vadd.xlane.f32.xlu1 %v4425_v16 }
  0x2b   :  { %97 = vadd.xlane.f32.xlu0 %v4430_v17 }
  0x32   :  { %107 = vadd.xlane.f32.xlu2 %v4438_v18  ;;  %105 = vadd.xlane.f32.xlu1 %v4443_v19 }
  0x33   :  { %103 = vadd.xlane.f32.xlu0 %v4448_v20 }
  0x3a   :  { %113 = vadd.xlane.f32.xlu2 %v4456_v21  ;;  %111 = vadd.xlane.f32.xlu1 %v4461_v22 }
  0x3b   :  { %109 = vadd.xlane.f32.xlu0 %v4466_v23 }
  0x42   :  { %119 = vadd.xlane.f32.xlu2 %v4474_v24  ;;  %117 = vadd.xlane.f32.xlu1 %v4479_v25 }
  0x43   :  { %115 = vadd.xlane.f32.xlu0 %v4484_v26 }
  0x4a   :  { %125 = vadd.xlane.f32.xlu2 %v4492_v27  ;;  %123 = vadd.xlane.f32.xlu1 %v4497_v28 }
  0x4b   :  { %121 = vadd.xlane.f32.xlu0 %v4502_v29 }
  0x52   :  { %131 = vadd.xlane.f32.xlu2 %v4510_v30  ;;  %129 = vadd.xlane.f32.xlu1 %v4515_v31 }
  0x53   :  { %127 = vadd.xlane.f32.xlu0 %v4520_v32 }
  0x5a   :  { %137 = vadd.xlane.f32.xlu2 %v4528_v33  ;;  %135 = vadd.xlane.f32.xlu1 %v4533_v34 }
  0x5b   :  { %133 = vadd.xlane.f32.xlu0 %v4538_v35 }
  0x75   :  { %v76_v43 = vpop.xlane.xlu2 %75  ;;  %v72_v44 = vpop.xlane.xlu1 %71 }
  0x76   :  { %v148_v45 = vmul.f32 %v4543_v42, %v72_v44  ;;  %v68_v46 = vpop.xlane.xlu0 %67  ;;  %v150_v60 = vmul.f32 %v4543_v42, %v76_v43 }
  0x77   :  { %v146_v47 = vmul.f32 %v4543_v42, %v68_v46 }
  0x78   :  { %v4548_v48 = vsub.f32 %v4335_v1, %v148_v45  ;;  %v4577_v38 = vsub.f32 %v4330_v0, %v150_v60 }
  0x79   :  { %v4551_v49 = vsub.f32 %v4340_v2, %v146_v47 }
  0x7a   :  { %v220_v50 = vmul.f32 %v4548_v48, %v4548_v48  ;;  %v222_v45 = vmul.f32 %v4577_v38, %v4577_v38 }
  0x7b   :  { %v218_v51 = vmul.f32 %v4551_v49, %v4551_v49 }
  0x7c   :  { %258 = vadd.xlane.f32.xlu2 %v220_v50 }
  0x7d   :  { %254 = vadd.xlane.f32.xlu0 %v218_v51  ;;  %v78_v52 = vpop.xlane.xlu2 %77  ;;  %v74_v53 = vpop.xlane.xlu1 %73 }
  0x7e   :  { %v151_v54 = vmul.f32 %v4543_v42, %v78_v52  ;;  %v149_v55 = vmul.f32 %v4543_v42, %v74_v53  ;;  %v70_v56 = vpop.xlane.xlu0 %69 }
  0x7f   :  { %v147_v57 = vmul.f32 %v4543_v42, %v70_v56 }
  0x80   :  { %v4561_v58 = vsub.f32 %v4348_v3, %v151_v54  ;;  %v4564_v59 = vsub.f32 %v4353_v4, %v149_v55 }
  0x81   :  { %v4568_v61 = vsub.f32 %v4358_v5, %v147_v57 }
  0x82   :  { %v223_v62 = vmul.f32 %v4561_v58, %v4561_v58  ;;  %v221_v63 = vmul.f32 %v4564_v59, %v4564_v59 }
  0x83   :  { %v219_v36 = vmul.f32 %v4568_v61, %v4568_v61 }
  0x84   :  { %264 = vadd.xlane.f32.xlu2 %v223_v62 }
  0x85   :  { %260 = vadd.xlane.f32.xlu0 %v221_v63  ;;  %256 = vadd.xlane.f32.xlu1 %v219_v36  ;;  %v84_v37 = vpop.xlane.xlu2 %83  ;;  %v82_v39 = vpop.xlane.xlu1 %81 }
  0x86   :  { %v154_v40 = vmul.f32 %v4543_v42, %v84_v37  ;;  %v80_v41 = vpop.xlane.xlu0 %79  ;;  %v153_v47 = vmul.f32 %v4543_v42, %v82_v39 }
  0x87   :  { %v152_v43 = vmul.f32 %v4543_v42, %v80_v41 }
  0x88   :  { %v4582_v44 = vsub.f32 %v4366_v6, %v154_v40  ;;  %v4595_v53 = vsub.f32 %v4371_v7, %v153_v47 }
  0x89   :  { %v4587_v46 = vsub.f32 %v4376_v8, %v152_v43 }
  0x8a   :  { %v226_v50 = vmul.f32 %v4582_v44, %v4582_v44  ;;  %v225_v62 = vmul.f32 %v4595_v53, %v4595_v53 }
  0x8b   :  { %v224_v51 = vmul.f32 %v4587_v46, %v4587_v46 }
  0x8c   :  { %270 = vadd.xlane.f32.xlu2 %v226_v50 }
  0x8d   :  { %262 = vadd.xlane.f32.xlu1 %v222_v45  ;;  %266 = vadd.xlane.f32.xlu0 %v224_v51  ;;  %v90_v52 = vpop.xlane.xlu2 %89  ;;  %v88_v54 = vpop.xlane.xlu1 %87 }
  0x8e   :  { %v157_v55 = vmul.f32 %v4543_v42, %v90_v52  ;;  %v86_v56 = vpop.xlane.xlu0 %85  ;;  %v156_v36 = vmul.f32 %v4543_v42, %v88_v54 }
  0x8f   :  { %v155_v57 = vmul.f32 %v4543_v42, %v86_v56 }
  0x90   :  { %v4600_v60 = vsub.f32 %v4384_v9, %v157_v55  ;;  %v4613_v9 = vsub.f32 %v4389_v10, %v156_v36 }
  0x91   :  { %v4605_v63 = vsub.f32 %v4394_v11, %v155_v57 }
  0x92   :  { %v229_v7 = vmul.f32 %v4600_v60, %v4600_v60  ;;  %v228_v47 = vmul.f32 %v4613_v9, %v4613_v9 }
  0x93   :  { %v227_v37 = vmul.f32 %v4605_v63, %v4605_v63 }
  0x94   :  { %276 = vadd.xlane.f32.xlu2 %v229_v7 }
  0x95   :  { %268 = vadd.xlane.f32.xlu1 %v225_v62  ;;  %272 = vadd.xlane.f32.xlu0 %v227_v37  ;;  %v96_v39 = vpop.xlane.xlu2 %95  ;;  %v94_v40 = vpop.xlane.xlu1 %93 }
  0x96   :  { %v160_v41 = vmul.f32 %v4543_v42, %v96_v39  ;;  %v92_v11 = vpop.xlane.xlu0 %91  ;;  %v159_v51 = vmul.f32 %v4543_v42, %v94_v40 }
  0x97   :  { %v158_v43 = vmul.f32 %v4543_v42, %v92_v11 }
  0x98   :  { %v4618_v45 = vsub.f32 %v4402_v12, %v160_v41  ;;  %v4631_v12 = vsub.f32 %v4407_v13, %v159_v51 }
  0x99   :  { %v4623_v50 = vsub.f32 %v4412_v14, %v158_v43 }
  0x9a   :  { %9210 = vst [vmem:[#allocation2_spill] sm:$0xff] %v4618_v45  ;;  %v232_v10 = vmul.f32 %v4618_v45, %v4618_v45  ;;  %v231_v36 = vmul.f32 %v4631_v12, %v4631_v12 }
  0x9b   :  { %v230_v52 = vmul.f32 %v4623_v50, %v4623_v50 }
  0x9c   :  { %282 = vadd.xlane.f32.xlu2 %v232_v10 }
  0x9d   :  { %274 = vadd.xlane.f32.xlu1 %v228_v47  ;;  %278 = vadd.xlane.f32.xlu0 %v230_v52  ;;  %v102_v54 = vpop.xlane.xlu2 %101  ;;  %v100_v55 = vpop.xlane.xlu1 %99 }
  0x9e   :  { %v163_v56 = vmul.f32 %v4543_v42, %v102_v54  ;;  %v98_v14 = vpop.xlane.xlu0 %97  ;;  %v162_v37 = vmul.f32 %v4543_v42, %v100_v55 }
  0x9f   :  { %v161_v57 = vmul.f32 %v4543_v42, %v98_v14 }
  0xa0   :  { %v4636_v62 = vsub.f32 %v4420_v15, %v163_v56  ;;  %v4649_v15 = vsub.f32 %v4425_v16, %v162_v37 }
  0xa1   :  { %v4641_v7 = vsub.f32 %v4430_v17, %v161_v57 }
  0xa2   :  { %v235_v13 = vmul.f32 %v4636_v62, %v4636_v62  ;;  %9211 = vst [vmem:[#allocation3_spill] sm:$0xff] %v4649_v15  ;;  %v234_v51 = vmul.f32 %v4649_v15, %v4649_v15 }
  0xa3   :  { %v233_v39 = vmul.f32 %v4641_v7, %v4641_v7 }
  0xa4   :  { %288 = vadd.xlane.f32.xlu2 %v235_v13 }
  0xa5   :  { %280 = vadd.xlane.f32.xlu1 %v231_v36  ;;  %284 = vadd.xlane.f32.xlu0 %v233_v39  ;;  %v108_v40 = vpop.xlane.xlu2 %107  ;;  %v106_v41 = vpop.xlane.xlu1 %105 }
  0xa6   :  { %v166_v11 = vmul.f32 %v4543_v42, %v108_v40  ;;  %v104_v17 = vpop.xlane.xlu0 %103  ;;  %v165_v52 = vmul.f32 %v4543_v42, %v106_v41 }
  0xa7   :  { %v164_v43 = vmul.f32 %v4543_v42, %v104_v17 }
  0xa8   :  { %v4654_v47 = vsub.f32 %v4438_v18, %v166_v11  ;;  %v4667_v18 = vsub.f32 %v4443_v19, %v165_v52 }
  0xa9   :  { %v4659_v10 = vsub.f32 %v4448_v20, %v164_v43 }
  0xaa   :  { %v238_v16 = vmul.f32 %v4654_v47, %v4654_v47  ;;  %v237_v37 = vmul.f32 %v4667_v18, %v4667_v18 }
  0xab   :  { %v236_v54 = vmul.f32 %v4659_v10, %v4659_v10 }
  0xac   :  { %294 = vadd.xlane.f32.xlu2 %v238_v16 }
  0xad   :  { %286 = vadd.xlane.f32.xlu1 %v234_v51  ;;  %290 = vadd.xlane.f32.xlu0 %v236_v54  ;;  %v114_v55 = vpop.xlane.xlu2 %113  ;;  %v112_v56 = vpop.xlane.xlu1 %111 }
  0xae   :  { %v169_v14 = vmul.f32 %v4543_v42, %v114_v55  ;;  %v110_v20 = vpop.xlane.xlu0 %109  ;;  %v168_v39 = vmul.f32 %v4543_v42, %v112_v56 }
  0xaf   :  { %v167_v57 = vmul.f32 %v4543_v42, %v110_v20 }
  0xb0   :  { %v4672_v36 = vsub.f32 %v4456_v21, %v169_v14  ;;  %v4685_v21 = vsub.f32 %v4461_v22, %v168_v39 }
  0xb1   :  { %v4677_v13 = vsub.f32 %v4466_v23, %v167_v57 }
  0xb2   :  { %9212 = vst [vmem:[#allocation4_spill] sm:$0xff] %v4672_v36  ;;  %v241_v19 = vmul.f32 %v4672_v36, %v4672_v36  ;;  %v240_v52 = vmul.f32 %v4685_v21, %v4685_v21 }
  0xb3   :  { %v239_v40 = vmul.f32 %v4677_v13, %v4677_v13  ;;  %9213 = vst [vmem:[#allocation5_spill] sm:$0xff] %v4685_v21 }
  0xb4   :  { %300 = vadd.xlane.f32.xlu2 %v241_v19 }
  0xb5   :  { %292 = vadd.xlane.f32.xlu1 %v237_v37  ;;  %296 = vadd.xlane.f32.xlu0 %v239_v40  ;;  %v120_v41 = vpop.xlane.xlu2 %119  ;;  %v118_v11 = vpop.xlane.xlu1 %117 }
  0xb6   :  { %v172_v17 = vmul.f32 %v4543_v42, %v120_v41  ;;  %v116_v23 = vpop.xlane.xlu0 %115  ;;  %v171_v54 = vmul.f32 %v4543_v42, %v118_v11 }
  0xb7   :  { %v170_v43 = vmul.f32 %v4543_v42, %v116_v23 }
  0xb8   :  { %v4690_v51 = vsub.f32 %v4474_v24, %v172_v17  ;;  %v4703_v24 = vsub.f32 %v4479_v25, %v171_v54 }
  0xb9   :  { %v4695_v16 = vsub.f32 %v4484_v26, %v170_v43 }
  0xba   :  { %9214 = vst [vmem:[#allocation6_spill] sm:$0xff] %v4690_v51  ;;  %v244_v22 = vmul.f32 %v4690_v51, %v4690_v51  ;;  %v243_v39 = vmul.f32 %v4703_v24, %v4703_v24 }
  0xbb   :  { %9215 = vst [vmem:[#allocation7_spill] sm:$0xff] %v4695_v16  ;;  %v242_v55 = vmul.f32 %v4695_v16, %v4695_v16 }
  0xbc   :  { %306 = vadd.xlane.f32.xlu2 %v244_v22  ;;  %9216 = vst [vmem:[#allocation8_spill] sm:$0xff] %v4703_v24 }
  0xbd   :  { %298 = vadd.xlane.f32.xlu1 %v240_v52  ;;  %302 = vadd.xlane.f32.xlu0 %v242_v55  ;;  %v126_v56 = vpop.xlane.xlu2 %125  ;;  %v124_v14 = vpop.xlane.xlu1 %123 }
  0xbe   :  { %v175_v20 = vmul.f32 %v4543_v42, %v126_v56  ;;  %v122_v26 = vpop.xlane.xlu0 %121  ;;  %v174_v40 = vmul.f32 %v4543_v42, %v124_v14 }
  0xbf   :  { %v173_v57 = vmul.f32 %v4543_v42, %v122_v26 }
  0xc0   :  { %v4708_v37 = vsub.f32 %v4492_v27, %v175_v20  ;;  %v4721_v27 = vsub.f32 %v4497_v28, %v174_v40 }
  0xc1   :  { %v4713_v19 = vsub.f32 %v4502_v29, %v173_v57 }
  0xc2   :  { %9217 = vst [vmem:[#allocation9_spill] sm:$0xff] %v4708_v37  ;;  %v247_v25 = vmul.f32 %v4708_v37, %v4708_v37  ;;  %v246_v54 = vmul.f32 %v4721_v27, %v4721_v27 }
  0xc3   :  { %9218 = vst [vmem:[#allocation10_spill] sm:$0xff] %v4713_v19  ;;  %v245_v41 = vmul.f32 %v4713_v19, %v4713_v19 }
  0xc4   :  { %312 = vadd.xlane.f32.xlu2 %v247_v25  ;;  %9219 = vst [vmem:[#allocation11_spill] sm:$0xff] %v4721_v27 }
  0xc5   :  { %304 = vadd.xlane.f32.xlu1 %v243_v39  ;;  %308 = vadd.xlane.f32.xlu0 %v245_v41  ;;  %v132_v11 = vpop.xlane.xlu2 %131  ;;  %v130_v17 = vpop.xlane.xlu1 %129 }
  0xc6   :  { %v178_v23 = vmul.f32 %v4543_v42, %v132_v11  ;;  %v128_v29 = vpop.xlane.xlu0 %127  ;;  %v177_v55 = vmul.f32 %v4543_v42, %v130_v17 }
  0xc7   :  { %v176_v43 = vmul.f32 %v4543_v42, %v128_v29 }
  0xc8   :  { %v4726_v52 = vsub.f32 %v4510_v30, %v178_v23  ;;  %v4739_v30 = vsub.f32 %v4515_v31, %v177_v55 }
  0xc9   :  { %v4731_v22 = vsub.f32 %v4520_v32, %v176_v43 }
  0xca   :  { %9220 = vst [vmem:[#allocation12_spill] sm:$0xff] %v4726_v52  ;;  %v250_v28 = vmul.f32 %v4726_v52, %v4726_v52  ;;  %v249_v40 = vmul.f32 %v4739_v30, %v4739_v30 }
  0xcb   :  { %9221 = vst [vmem:[#allocation13_spill] sm:$0xff] %v4731_v22  ;;  %v248_v56 = vmul.f32 %v4731_v22, %v4731_v22 }
  0xcc   :  { %318 = vadd.xlane.f32.xlu2 %v250_v28  ;;  %9222 = vst [vmem:[#allocation14_spill] sm:$0xff] %v4739_v30 }
  0xcd   :  { %310 = vadd.xlane.f32.xlu1 %v246_v54  ;;  %314 = vadd.xlane.f32.xlu0 %v248_v56  ;;  %v138_v14 = vpop.xlane.xlu2 %137  ;;  %v136_v32 = vpop.xlane.xlu1 %135 }
  0xce   :  { %v181_v20 = vmul.f32 %v4543_v42, %v138_v14  ;;  %v134_v26 = vpop.xlane.xlu0 %133  ;;  %v180_v41 = vmul.f32 %v4543_v42, %v136_v32 }
  0xcf   :  { %v179_v57 = vmul.f32 %v4543_v42, %v134_v26 }
  0xd0   :  { %v4744_v39 = vsub.f32 %v4528_v33, %v181_v20  ;;  %v4757_v33 = vsub.f32 %v4533_v34, %v180_v41 }
  0xd1   :  { %v4749_v25 = vsub.f32 %v4538_v35, %v179_v57 }
  0xd2   :  { %9223 = vst [vmem:[#allocation15_spill] sm:$0xff] %v4744_v39  ;;  %v253_v31 = vmul.f32 %v4744_v39, %v4744_v39  ;;  %v252_v17 = vmul.f32 %v4757_v33, %v4757_v33 }
  0xd3   :  { %9224 = vst [vmem:[#allocation16_spill] sm:$0xff] %v4749_v25  ;;  %v251_v11 = vmul.f32 %v4749_v25, %v4749_v25 }
  0xd4   :  { %324 = vadd.xlane.f32.xlu2 %v253_v31  ;;  %9225 = vst [vmem:[#allocation17_spill] sm:$0xff] %v4757_v33 }
  0xd5   :  { %316 = vadd.xlane.f32.xlu1 %v249_v40  ;;  %320 = vadd.xlane.f32.xlu0 %v251_v11 }
  0xdd   :  { %322 = vadd.xlane.f32.xlu1 %v252_v17 }
  0xef   :  { %v259_v35 = vpop.xlane.xlu2 %258 }
  0xf0   :  { %v328_v23 = vmul.f32 %v259_v35, %v4543_v42  ;;  %v255_v29 = vpop.xlane.xlu0 %254 }
  0xf1   :  { %v326_v43 = vmul.f32 %v255_v29, %v4543_v42 }
  0xf2   :  { %v364_v54 = vadd.f32 1e-08, %v328_v23 }
  0xf3   :  { %v362_v55 = vadd.f32 1e-08, %v326_v43 }
  0xf4   :  { %3920 = vrsqrt.f32 %v364_v54  ;;  %vm424_vm2 = vweird.f32 %v364_v54 }
  0xf5   :  { %3922 = vrsqrt.f32 %v362_v55  ;;  %vm404_vm5 = vweird.f32 %v362_v55 }
  0xf7   :  { %v265_v28 = vpop.xlane.xlu2 %264 }
  0xf8   :  { %v331_v56 = vmul.f32 %v265_v28, %v4543_v42  ;;  %v257_v14 = vpop.xlane.xlu1 %256  ;;  %v261_v34 = vpop.xlane.xlu0 %260 }
  0xf9   :  { %v327_v20 = vmul.f32 %v257_v14, %v4543_v42  ;;  %v329_v26 = vmul.f32 %v261_v34, %v4543_v42 }
  0xfa   :  { %v3921_v32 = vpop.eup %3920  ;;  %v4766_v57 = vadd.f32 1e-08, %v331_v56 }
  0xfb   :  { %v3923_v40 = vpop.eup %3922  ;;  %v419_v41 = vmul.f32 %v3921_v32, %v364_v54  ;;  %v4768_v31 = vadd.f32 1e-08, %v327_v20  ;;  %v4770_v11 = vadd.f32 1e-08, %v329_v26  ;;  %vm425_vm1 = vweird.f32 %v3921_v32 }
  0xfc   :  { %v399_v17 = vmul.f32 %v3923_v40, %v362_v55  ;;  %3924 = vrsqrt.f32 %v4766_v57  ;;  %vm405_vm3 = vweird.f32 %v3923_v40  ;;  %vm426_vm4 = vmor %vm424_vm2, %vm425_vm1  ;;  %vm454_vm7 = vweird.f32 %v4766_v57 }
  0xfd   :  { %v420_v35 = vmul.f32 %v3921_v32, %v419_v41  ;;  %3926 = vrsqrt.f32 %v4768_v31  ;;  %vm4800_vm6 = vmor %vm404_vm5, %vm405_vm3  ;;  %vm414_vm12 = vweird.f32 %v4768_v31  ;;  %vm434_vm14 = vweird.f32 %v4770_v11 }
  0xfe   :  { %v400_v23 = vmul.f32 %v3923_v40, %v399_v17  ;;  %3928 = vrsqrt.f32 %v4770_v11 }
  0xff   :  { %v421_v29 = vmul.f32 0.5, %v420_v35  ;;  %v271_v43 = vpop.xlane.xlu2 %270 }
 0x100   :  { %v401_v28 = vmul.f32 0.5, %v400_v23  ;;  %v334_v56 = vmul.f32 %v271_v43, %v4543_v42  ;;  %v263_v14 = vpop.xlane.xlu1 %262  ;;  %v267_v34 = vpop.xlane.xlu0 %266 }
 0x101   :  { %v422_v20 = vsub.f32 1.5, %v421_v29  ;;  %v330_v26 = vmul.f32 %v263_v14, %v4543_v42  ;;  %v332_v41 = vmul.f32 %v267_v34, %v4543_v42 }
 0x102   :  { %v4777_v33 = vpop.eup %3924  ;;  %v402_v52 = vsub.f32 1.5, %v401_v28  ;;  %v4779_v30 = vadd.f32 1e-08, %v334_v56 }
 0x103   :  { %v4782_v17 = vpop.eup %3926  ;;  %v423_v22 = vmul.f32 %v3921_v32, %v422_v20  ;;  %v4784_v35 = vadd.f32 1e-08, %v330_v26  ;;  %v449_v29 = vmul.f32 %v4777_v33, %v4766_v57  ;;  %v4796_v14 = vadd.f32 1e-08, %v332_v41 }
 0x104   :  { %v4786_v23 = vpop.eup %3928  ;;  %v409_v43 = vmul.f32 %v4782_v17, %v4768_v31  ;;  %v403_v28 = vmul.f32 %v3923_v40, %v402_v52  ;;  %3930 = vrsqrt.f32 %v4779_v30  ;;  %vm455_vm8 = vweird.f32 %v4777_v33 }
 0x105   :  { %v429_v56 = vmul.f32 %v4786_v23, %v4770_v11  ;;  %3932 = vrsqrt.f32 %v4784_v35  ;;  %v427_v34 = vsel %vm426_vm4, %v3921_v32, %v423_v22  ;;  %v450_v52 = vmul.f32 %v4777_v33, %v449_v29  ;;  %v4815_v32 = vld [vmem:[%s9091_s1] ss:$0 sm:$0xff]  ;;  %vm4864_vm9 = vmor %vm454_vm7, %vm455_vm8 }
 0x106   :  { %v410_v26 = vmul.f32 %v4782_v17, %v409_v43  ;;  %3934 = vrsqrt.f32 %v4796_v14  ;;  %v407_v55 = vsel %vm4800_vm6, %v3923_v40, %v403_v28  ;;  %v760_v22 = vmul.f32 %v427_v34, %v4548_v48 }
 0x107   :  { %v4798_v54 = vpop.xlane.xlu2 %276  ;;  %v430_v25 = vmul.f32 %v4786_v23, %v429_v56  ;;  %v451_v16 = vmul.f32 0.5, %v450_v52  ;;  %v758_v40 = vmul.f32 %v407_v55, %v4551_v49  ;;  %vm415_vm10 = vweird.f32 %v4782_v17 }
 0x108   :  { %v269_v39 = vpop.xlane.xlu1 %268  ;;  %v273_v37 = vpop.xlane.xlu0 %272  ;;  %v411_v48 = vmul.f32 0.5, %v410_v26  ;;  %v797_v34 = vmul.f32 %v4815_v32, %v760_v22  ;;  %vm435_vm11 = vweird.f32 %v4786_v23  ;;  %vm4878_vm13 = vmor %vm414_vm12, %vm415_vm10  ;;  %vm484_vm0 = vweird.f32 %v4779_v30 }
 0x109   :  { %v333_v41 = vmul.f32 %v269_v39, %v4543_v42  ;;  %v4826_v39 = vld [vmem:[%s9092_s2] ss:$0 sm:$0xff]  ;;  %v431_v28 = vmul.f32 0.5, %v430_v25  ;;  %v452_v24 = vsub.f32 1.5, %v451_v16  ;;  %v795_v25 = vmul.f32 %v4815_v32, %v758_v40  ;;  %vm4887_vm15 = vmor %vm434_vm14, %vm435_vm11 }
 0x10a   :  { %v4817_v29 = vpop.eup %3930  ;;  %v834_v49 = vadd.f32 %v4826_v39, %v797_v34  ;;  %v412_v55 = vsub.f32 1.5, %v411_v48  ;;  %vm444_vm4 = vweird.f32 %v4784_v35  ;;  %vm464_vm7 = vweird.f32 %v4796_v14 }
 0x10b   :  { %v4819_v43 = vpop.eup %3932  ;;  %v4821_v56 = vadd.f32 1e-08, %v333_v41  ;;  %v479_v27 = vmul.f32 %v4817_v29, %v4779_v30  ;;  %v335_v41 = vmul.f32 %v273_v37, %v4543_v42  ;;  %v432_v22 = vsub.f32 1.5, %v431_v28 }
 0x10c   :  { %v4830_v20 = vpop.eup %3934  ;;  %v439_v52 = vmul.f32 %v4819_v43, %v4784_v35  ;;  %v4845_v37 = vadd.f32 %v834_v49, %v4335_v1  ;;  %v832_v16 = vadd.f32 %v4826_v39, %v795_v25  ;;  %v453_v48 = vmul.f32 %v4777_v33, %v452_v24 }
 0x10d   :  { %3936 = vrsqrt.f32 %v4821_v56  ;;  %v459_v36 = vmul.f32 %v4830_v20, %v4796_v14  ;;  %v480_v40 = vmul.f32 %v4817_v29, %v479_v27  ;;  %v4851_v51 = vadd.f32 1e-08, %v335_v41 }
 0x10e   :  { %v440_v45 = vmul.f32 %v4819_v43, %v439_v52  ;;  %910 = vadd.xlane.f32.xlu2 %v4845_v37  ;;  %v4856_v28 = vadd.f32 %v832_v16, %v4340_v2  ;;  %v413_v24 = vmul.f32 %v4782_v17, %v412_v55  ;;  %v433_v52 = vmul.f32 %v4786_v23, %v432_v22 }
 0x10f   :  { %v283_v19 = vpop.xlane.xlu2 %282  ;;  %v460_v2 = vmul.f32 %v4830_v20, %v459_v36  ;;  %v481_v57 = vmul.f32 0.5, %v480_v40  ;;  %3938 = vrsqrt.f32 %v4851_v51  ;;  %v457_v36 = vsel %vm4864_vm9, %v4777_v33, %v453_v48 }
 0x110   :  { %v275_v26 = vpop.xlane.xlu1 %274  ;;  %v279_v15 = vpop.xlane.xlu0 %278  ;;  %906 = vadd.xlane.f32.xlu0 %v4856_v28  ;;  %v441_v41 = vmul.f32 0.5, %v440_v45  ;;  %v337_v45 = vmul.f32 %v4798_v54, %v4543_v42  ;;  %v763_v55 = vmul.f32 %v457_v36, %v4561_v58  ;;  %v417_v16 = vsel %vm4878_vm13, %v4782_v17, %v413_v24 }
 0x111   :  { %v336_v34 = vmul.f32 %v275_v26, %v4543_v42  ;;  %v461_v22 = vmul.f32 0.5, %v460_v2  ;;  %v437_v33 = vsel %vm4887_vm15, %v4786_v23, %v433_v52  ;;  %v340_v48 = vmul.f32 %v283_v19, %v4543_v42 }
 0x112   :  { %v442_v40 = vsub.f32 1.5, %v441_v41  ;;  %v800_v54 = vmul.f32 %v4815_v32, %v763_v55  ;;  %v338_v58 = vmul.f32 %v279_v15, %v4543_v42  ;;  %v759_v2 = vmul.f32 %v417_v16, %v4568_v61 }
 0x113   :  { %v4858_v21 = vadd.f32 1e-08, %v336_v34  ;;  %v4869_v27 = vpop.eup %3936  ;;  %v482_v34 = vsub.f32 1.5, %v481_v57  ;;  %v761_v49 = vmul.f32 %v437_v33, %v4564_v59  ;;  %vm485_vm1 = vweird.f32 %v4817_v29 }
 0x114   :  { %v469_v31 = vmul.f32 %v4869_v27, %v4821_v56  ;;  %vm445_vm2 = vweird.f32 %v4819_v43  ;;  %v4912_v23 = vadd.f32 1e-08, %v337_v45  ;;  %v462_v52 = vsub.f32 1.5, %v461_v22  ;;  %vm4937_vm3 = vmor %vm484_vm0, %vm485_vm1 }
 0x115   :  { %3940 = vrsqrt.f32 %v4858_v21  ;;  %v4908_v17 = vpop.eup %3938  ;;  %v837_v57 = vadd.f32 %v4826_v39, %v800_v54  ;;  %v796_v15 = vmul.f32 %v4815_v32, %v759_v2  ;;  %v798_v61 = vmul.f32 %v4815_v32, %v761_v49  ;;  %vm4956_vm6 = vmor %vm444_vm4, %vm445_vm2 }
 0x116   :  { %v470_v19 = vmul.f32 %v4869_v27, %v469_v31  ;;  %v483_v59 = vmul.f32 %v4817_v29, %v482_v34  ;;  %v443_v41 = vmul.f32 %v4819_v43, %v442_v40  ;;  %v4922_v36 = vadd.f32 1e-08, %v340_v48 }
 0x117   :  { %v289_v25 = vpop.xlane.xlu2 %288  ;;  %v4926_v45 = vadd.f32 1e-08, %v338_v58  ;;  %v4929_v31 = vadd.f32 %v837_v57, %v4348_v3  ;;  %v833_v55 = vadd.f32 %v4826_v39, %v796_v15  ;;  %v835_v22 = vadd.f32 %v4826_v39, %v798_v61 }
 0x118   :  { %v281_v11 = vpop.xlane.xlu1 %280  ;;  %v285_v1 = vpop.xlane.xlu0 %284  ;;  %3942 = vrsqrt.f32 %v4912_v23  ;;  %v471_v33 = vmul.f32 0.5, %v470_v19  ;;  %v489_v3 = vmul.f32 %v4908_v17, %v4851_v51  ;;  %v463_v34 = vmul.f32 %v4830_v20, %v462_v52 }
 0x119   :  { %vm465_vm5 = vweird.f32 %v4830_v20  ;;  %916 = vadd.xlane.f32.xlu2 %v4929_v31  ;;  %v4949_v30 = vadd.f32 %v833_v55, %v4358_v5  ;;  %v4952_v40 = vadd.f32 %v835_v22, %v4353_v4  ;;  %3944 = vrsqrt.f32 %v4922_v36 }
 0x11a   :  { %3946 = vrsqrt.f32 %v4926_v45  ;;  %v487_v4 = vsel %vm4937_vm3, %v4817_v29, %v483_v59  ;;  %v447_v5 = vsel %vm4956_vm6, %v4819_v43, %v443_v41  ;;  %vm4976_vm8 = vmor %vm464_vm7, %vm465_vm5  ;;  %v472_v14 = vsub.f32 1.5, %v471_v33 }
 0x11b   :  { %v4915_v24 = vpop.eup %3940  ;;  %908 = vadd.xlane.f32.xlu1 %v4949_v30  ;;  %912 = vadd.xlane.f32.xlu0 %v4952_v40  ;;  %v490_v49 = vmul.f32 %v4908_v17, %v489_v3  ;;  %v339_v19 = vmul.f32 %v281_v11, %v4543_v42  ;;  %v343_v57 = vmul.f32 %v289_v25, %v4543_v42  ;;  %vm475_vm9 = vweird.f32 %v4869_v27 }
 0x11c   :  { %v499_v26 = vmul.f32 %v4915_v24, %v4858_v21  ;;  %v766_v29 = vmul.f32 %v487_v4, %v4582_v44  ;;  %v762_v15 = vmul.f32 %v447_v5, %v4577_v38  ;;  %v467_v43 = vsel %vm4976_vm8, %v4830_v20, %v463_v34 }
 0x11d   :  { %v341_v41 = vmul.f32 %v285_v1, %v4543_v42  ;;  %v473_v44 = vmul.f32 %v4869_v27, %v472_v14  ;;  %v491_v38 = vmul.f32 0.5, %v490_v49  ;;  %v4997_v55 = vadd.f32 1e-08, %v339_v19 }
 0x11e   :  { %v500_v54 = vmul.f32 %v4915_v24, %v499_v26  ;;  %v4988_v61 = vpop.eup %3942  ;;  %v803_v11 = vmul.f32 %v4815_v32, %v766_v29  ;;  %v799_v26 = vmul.f32 %v4815_v32, %v762_v15  ;;  %v764_v20 = vmul.f32 %v467_v43, %v4587_v46 }
 0x11f   :  { %v295_v48 = vpop.xlane.xlu2 %294  ;;  %v4994_v25 = vpop.eup %3944  ;;  %v5002_v16 = vadd.f32 1e-08, %v343_v57  ;;  %vm474_vm10 = vweird.f32 %v4821_v56  ;;  %v5008_v35 = vadd.f32 1e-08, %v341_v41  ;;  %v509_v46 = vmul.f32 %v4988_v61, %v4912_v23 }
 0x120   :  { %v4962_v58 = vpop.xlane.xlu1 %286  ;;  %v291_v52 = vpop.xlane.xlu0 %290  ;;  %v501_v59 = vmul.f32 0.5, %v500_v54  ;;  %v840_v1 = vadd.f32 %v4826_v39, %v803_v11  ;;  %v836_v33 = vadd.f32 %v4826_v39, %v799_v26  ;;  %v801_v54 = vmul.f32 %v4815_v32, %v764_v20  ;;  %vm5023_vm11 = vmor %vm474_vm10, %vm475_vm9 }
 0x121   :  { %v5000_v22 = vpop.eup %3946  ;;  %v344_v3 = vmul.f32 %v291_v52, %v4543_v42  ;;  %v539_v4 = vmul.f32 %v4994_v25, %v4922_v36  ;;  %3948 = vrsqrt.f32 %v4997_v55  ;;  %v477_v57 = vsel %vm5023_vm11, %v4869_v27, %v473_v44 }
 0x122   :  { %v502_v34 = vsub.f32 1.5, %v501_v59  ;;  %v5016_v5 = vadd.f32 %v840_v1, %v4366_v6  ;;  %v5019_v2 = vadd.f32 %v836_v33, %v4330_v0  ;;  %v519_v49 = vmul.f32 %v5000_v22, %v4926_v45 }
 0x123   :  { %v838_v19 = vadd.f32 %v4826_v39, %v801_v54  ;;  %v492_v6 = vsub.f32 1.5, %v491_v38  ;;  %3950 = vrsqrt.f32 %v5002_v16  ;;  %v5034_v0 = vadd.f32 1e-08, %v344_v3 }
 0x124   :  { %9240 = vst [vmem:[#allocation18_spill] sm:$0xff] %v5016_v5  ;;  %922 = vadd.xlane.f32.xlu2 %v5016_v5  ;;  %914 = vadd.xlane.f32.xlu1 %v5019_v2  ;;  %v503_v29 = vmul.f32 %v4915_v24, %v502_v34  ;;  %vm505_vm12 = vweird.f32 %v4915_v24  ;;  %3952 = vrsqrt.f32 %v5008_v35  ;;  %v346_v15 = vmul.f32 %v295_v48, %v4543_v42 }
 0x125   :  { %v510_v59 = vmul.f32 %v4988_v61, %v509_v46  ;;  %v540_v41 = vmul.f32 %v4994_v25, %v539_v4  ;;  %vm504_vm13 = vweird.f32 %v4858_v21  ;;  %v5047_v11 = vadd.f32 %v838_v19, %v4376_v8 }
 0x126   :  { %v520_v27 = vmul.f32 %v5000_v22, %v519_v49  ;;  %3954 = vrsqrt.f32 %v5034_v0  ;;  %v765_v26 = vmul.f32 %v477_v57, %v4595_v53  ;;  %vm495_vm14 = vweird.f32 %v4908_v17  ;;  %vm5054_vm15 = vmor %vm504_vm13, %vm505_vm12 }
 0x127   :  { %v301_v14 = vpop.xlane.xlu2 %300  ;;  %9243 = vst [vmem:[#allocation19_spill] sm:$0xff] %v5047_v11  ;;  %918 = vadd.xlane.f32.xlu0 %v5047_v11  ;;  %v5060_v8 = vpop.eup %3948  ;;  %v493_v38 = vmul.f32 %v4908_v17, %v492_v6  ;;  %v5063_v20 = vadd.f32 1e-08, %v346_v15  ;;  %v342_v53 = vmul.f32 %v4962_v58, %v4543_v42  ;;  %v507_v1 = vsel %vm5054_vm15, %v4915_v24, %v503_v29 }
 0x128   :  { %v293_v52 = vpop.xlane.xlu1 %292  ;;  %v297_v43 = vpop.xlane.xlu0 %296  ;;  %vm494_vm0 = vweird.f32 %v4851_v51  ;;  %v802_v3 = vmul.f32 %v4815_v32, %v765_v26  ;;  %v511_v54 = vmul.f32 0.5, %v510_v59  ;;  %v541_v46 = vmul.f32 0.5, %v540_v41  ;;  %v4208_v59 = vld [vmem:[%s9090_s0 + $0x38] sm:$0xff] }
 0x129   :  { %v345_v44 = vmul.f32 %v293_v52, %v4543_v42  ;;  %v347_v21 = vmul.f32 %v297_v43, %v4543_v42  ;;  %v5070_v33 = vpop.eup %3950  ;;  %v521_v4 = vmul.f32 0.5, %v520_v27  ;;  %vm5080_vm1 = vmor %vm494_vm0, %vm495_vm14  ;;  %v529_v24 = vmul.f32 %v5060_v8, %v4997_v55 }
 0x12a   :  { %v5074_v34 = vpop.eup %3952  ;;  %v839_v51 = vadd.f32 %v4826_v39, %v802_v3  ;;  %v768_v19 = vmul.f32 %v507_v1, %v4613_v9  ;;  %v569_v57 = vmul.f32 %v5070_v33, %v5002_v16  ;;  %3956 = vrsqrt.f32 %v5063_v20 }
 0x12b   :  { %v5076_v56 = vadd.f32 1e-08, %v345_v44  ;;  %v5087_v49 = vadd.f32 1e-08, %v347_v21  ;;  %v5095_v29 = vadd.f32 1e-08, %v342_v53  ;;  %v497_v15 = vsel %vm5080_vm1, %v4908_v17, %v493_v38 }
 0x12c   :  { %v5090_v6 = vpop.eup %3954  ;;  %vm514_vm2 = vweird.f32 %v4912_v23  ;;  %v549_v9 = vmul.f32 %v5074_v34, %v5008_v35  ;;  %v5106_v41 = vadd.f32 %v4208_v59, %v839_v51  ;;  %v349_v27 = vmul.f32 %v301_v14, %v4543_v42 }
 0x12d   :  { %v512_v26 = vsub.f32 1.5, %v511_v54  ;;  %v579_v44 = vmul.f32 %v5090_v6, %v5034_v0  ;;  %3958 = vrsqrt.f32 %v5076_v56  ;;  %v805_v17 = vmul.f32 %v4815_v32, %v768_v19 }
 0x12e   :  { %9248 = vst [vmem:[#allocation20_spill] sm:$0xff] %v5106_v41  ;;  %vm515_vm3 = vweird.f32 %v4988_v61  ;;  %v530_v48 = vmul.f32 %v5060_v8, %v529_v24  ;;  %920 = vadd.xlane.f32.xlu1 %v5106_v41  ;;  %3960 = vrsqrt.f32 %v5087_v49  ;;  %v767_v21 = vmul.f32 %v497_v15, %v4605_v63  ;;  %v4209_v15 = vld [vmem:[%s9090_s0 + $0x50] sm:$0xff] }
 0x12f   :  { %v307_v52 = vpop.xlane.xlu2 %306  ;;  %v542_v38 = vsub.f32 1.5, %v541_v46  ;;  %v522_v14 = vsub.f32 1.5, %v521_v4  ;;  %v570_v53 = vmul.f32 %v5070_v33, %v569_v57  ;;  %3962 = vrsqrt.f32 %v5095_v29  ;;  %vm5134_vm4 = vmor %vm514_vm2, %vm515_vm3 }
 0x130   :  { %v299_v43 = vpop.xlane.xlu1 %298  ;;  %v550_v1 = vmul.f32 %v5074_v34, %v549_v9  ;;  %v5121_v3 = vadd.f32 1e-08, %v349_v27  ;;  %v842_v54 = vadd.f32 %v4826_v39, %v805_v17  ;;  %v303_v58 = vpop.xlane.xlu0 %302  ;;  %v513_v51 = vmul.f32 %v4988_v61, %v512_v26 }
 0x131   :  { %v5124_v24 = vpop.eup %3956  ;;  %v580_v19 = vmul.f32 %v5090_v6, %v579_v44  ;;  %v804_v63 = vmul.f32 %v4815_v32, %v767_v21  ;;  %v348_v46 = vmul.f32 %v299_v43, %v4543_v42  ;;  %vm524_vm5 = vweird.f32 %v4926_v45 }
 0x132   :  { %v531_v57 = vmul.f32 0.5, %v530_v48  ;;  %v5142_v9 = vadd.f32 %v4209_v15, %v842_v54  ;;  %v352_v59 = vmul.f32 %v307_v52, %v4543_v42  ;;  %v5148_v27 = vmul.f32 %v4994_v25, %v542_v38 }
 0x133   :  { %v5145_v43 = vpop.eup %3958  ;;  %v523_v23 = vmul.f32 %v5000_v22, %v522_v14  ;;  %vm525_vm6 = vweird.f32 %v5000_v22  ;;  %v5152_v26 = vmul.f32 0.5, %v570_v53  ;;  %vm534_vm7 = vweird.f32 %v4997_v55  ;;  %v4211_v55 = vld [vmem:[%s9090_s0 + $0x58] sm:$0xff] }
 0x134   :  { %9251 = vst [vmem:[#allocation21_spill] sm:$0xff] %v5142_v9  ;;  %v5154_v44 = vpop.eup %3960  ;;  %v551_v17 = vmul.f32 0.5, %v550_v1  ;;  %v599_v48 = vmul.f32 %v5124_v24, %v5063_v20  ;;  %3964 = vrsqrt.f32 %v5121_v3  ;;  %926 = vadd.xlane.f32.xlu2 %v5142_v9  ;;  %v841_v52 = vadd.f32 %v4826_v39, %v804_v63  ;;  %v4210_v63 = vld [vmem:[%s9090_s0 + $0x48] sm:$0xff]  ;;  %vm5183_vm9 = vmor %vm524_vm5, %vm525_vm6 }
 0x135   :  { %v5162_v38 = vpop.eup %3962  ;;  %vm535_vm8 = vweird.f32 %v5060_v8  ;;  %v581_v14 = vmul.f32 0.5, %v580_v19  ;;  %v5165_v53 = vadd.f32 1e-08, %v348_v46  ;;  %v517_v1 = vsel %vm5134_vm4, %v4988_v61, %v513_v51 }
 0x136   :  { %v532_v15 = vsub.f32 1.5, %v531_v57  ;;  %v589_v5 = vmul.f32 %v5145_v43, %v5076_v56  ;;  %v5175_v9 = vadd.f32 %v4210_v63, %v841_v52  ;;  %v5177_v41 = vadd.f32 1e-08, %v352_v59  ;;  %vm5225_vm12 = vmor %vm534_vm7, %vm535_vm8 }
 0x137   :  { %v313_v21 = vpop.xlane.xlu2 %312  ;;  %v609_v51 = vmul.f32 %v5154_v44, %v5087_v49  ;;  %v350_v46 = vmul.f32 %v303_v58, %v4543_v42  ;;  %v769_v4 = vmul.f32 %v517_v1, %v4600_v60  ;;  %v552_v57 = vsub.f32 1.5, %v551_v17 }
 0x138   :  { %v305_v54 = vpop.xlane.xlu1 %304  ;;  %9252 = vst [vmem:[#allocation22_spill] sm:$0xff] %v5175_v9  ;;  %v600_v59 = vmul.f32 %v5124_v24, %v599_v48  ;;  %v559_v52 = vmul.f32 %v5162_v38, %v5095_v29  ;;  %924 = vadd.xlane.f32.xlu1 %v5175_v9  ;;  %v527_v45 = vsel %vm5183_vm9, %v5000_v22, %v523_v23  ;;  %v582_v63 = vsub.f32 1.5, %v581_v14  ;;  %v309_v61 = vpop.xlane.xlu0 %308 }
 0x139   :  { %vm584_vm10 = vweird.f32 %v5034_v0  ;;  %3966 = vrsqrt.f32 %v5165_v53  ;;  %v806_v58 = vmul.f32 %v4815_v32, %v769_v4  ;;  %v533_v17 = vmul.f32 %v5060_v8, %v532_v15 }
 0x13a   :  { %v5202_v60 = vpop.eup %3964  ;;  %v590_v48 = vmul.f32 %v5145_v43, %v589_v5  ;;  %3968 = vrsqrt.f32 %v5177_v41  ;;  %v770_v1 = vmul.f32 %v527_v45, %v4623_v50  ;;  %vm555_vm11 = vweird.f32 %v5074_v34 }
 0x13b   :  { %v610_v22 = vmul.f32 %v5154_v44, %v609_v51  ;;  %v5210_v23 = vadd.f32 1e-08, %v350_v46  ;;  %v843_v14 = vadd.f32 %v4826_v39, %v806_v58  ;;  %v351_v19 = vmul.f32 %v305_v54, %v4543_v42 }
 0x13c   :  { %v5215_v4 = vmul.f32 %v5074_v34, %v552_v57  ;;  %v5217_v15 = vmul.f32 0.5, %v600_v59  ;;  %v560_v5 = vmul.f32 %v5162_v38, %v559_v52  ;;  %v807_v50 = vmul.f32 %v4815_v32, %v770_v1 }
 0x13d   :  { %vm554_vm13 = vweird.f32 %v5008_v35  ;;  %v583_v54 = vmul.f32 %v5090_v6, %v582_v63  ;;  %vm585_vm14 = vweird.f32 %v5090_v6  ;;  %v629_v46 = vmul.f32 %v5202_v60, %v5121_v3  ;;  %v4213_v35 = vld [vmem:[%s9090_s0 + $0x68] sm:$0xff] }
 0x13e   :  { %v353_v57 = vmul.f32 %v309_v61, %v4543_v42  ;;  %v591_v59 = vmul.f32 0.5, %v590_v48  ;;  %v5238_v52 = vadd.f32 %v4211_v55, %v843_v14  ;;  %v844_v45 = vadd.f32 %v4826_v39, %v807_v50  ;;  %vm586_vm15 = vmor %vm584_vm10, %vm585_vm14 }
 0x13f   :  { %v537_v63 = vsel %vm5225_vm12, %v5060_v8, %v533_v17  ;;  %v5244_v58 = vpop.xlane.xlu2 %318  ;;  %v5246_v1 = vpop.eup %3966  ;;  %v611_v9 = vmul.f32 0.5, %v610_v22  ;;  %3970 = vrsqrt.f32 %v5210_v23  ;;  %v355_v61 = vmul.f32 %v313_v21, %v4543_v42  ;;  %v4212_v8 = vld [vmem:[%s9090_s0 + $0x60] sm:$0xff]  ;;  %vm5297_vm5 = vmor %vm554_vm13, %vm555_vm11 }
 0x140   :  { %9257 = vst [vmem:[#allocation23_spill] sm:$0xff] %v5238_v52  ;;  %v5250_v48 = vadd.f32 1e-08, %v351_v19  ;;  %v311_v11 = vpop.xlane.xlu1 %310  ;;  %v5252_v14 = vpop.eup %3968  ;;  %v602_v50 = vsub.f32 1.5, %v5217_v15  ;;  %v561_v55 = vmul.f32 0.5, %v560_v5  ;;  %vm614_vm0 = vweird.f32 %v5087_v49  ;;  %928 = vadd.xlane.f32.xlu1 %v5238_v52  ;;  %v4214_v49 = vld [vmem:[%s9090_s0 + $0x90] sm:$0xff] }
 0x141   :  { %v5264_v21 = vadd.f32 %v4212_v8, %v844_v45  ;;  %v630_v17 = vmul.f32 %v5202_v60, %v629_v46  ;;  %v5267_v22 = vadd.f32 1e-08, %v353_v57  ;;  %v771_v19 = vmul.f32 %v537_v63, %v4631_v12 }
 0x142   :  { %v587_v15 = vsel %vm586_vm15, %v5090_v6, %v583_v54  ;;  %v592_v0 = vsub.f32 1.5, %v591_v59  ;;  %v619_v5 = vmul.f32 %v5246_v1, %v5165_v53  ;;  %v354_v52 = vmul.f32 %v311_v11, %v4543_v42 }
 0x143   :  { %9258 = vst [vmem:[#allocation24_spill] sm:$0xff] %v5264_v21  ;;  %930 = vadd.xlane.f32.xlu2 %v5264_v21  ;;  %v776_v51 = vmul.f32 %v587_v15, %v4659_v10  ;;  %v612_v45 = vsub.f32 1.5, %v611_v9  ;;  %v5276_v8 = vadd.f32 1e-08, %v355_v61  ;;  %3972 = vrsqrt.f32 %v5250_v48 }
 0x144   :  { %v808_v46 = vmul.f32 %v4815_v32, %v771_v19  ;;  %v562_v12 = vsub.f32 1.5, %v561_v55  ;;  %vm595_vm1 = vweird.f32 %v5145_v43  ;;  %v659_v6 = vmul.f32 %v5252_v14, %v5177_v41  ;;  %v315_v55 = vpop.xlane.xlu0 %314 }
 0x145   :  { %v813_v54 = vmul.f32 %v4815_v32, %v776_v51  ;;  %v5284_v57 = vpop.eup %3970  ;;  %vm615_vm2 = vweird.f32 %v5154_v44  ;;  %3974 = vrsqrt.f32 %v5267_v22  ;;  %v5289_v11 = vadd.f32 1e-08, %v354_v52 }
 0x146   :  { %v845_v10 = vadd.f32 %v4826_v39, %v808_v46  ;;  %vm574_vm3 = vweird.f32 %v5002_v16  ;;  %vm575_vm4 = vweird.f32 %v5070_v33  ;;  %v5301_v59 = vmul.f32 0.5, %v630_v17  ;;  %vm5328_vm8 = vmor %vm614_vm0, %vm615_vm2 }
 0x147   :  { %v593_v63 = vmul.f32 %v5145_v43, %v592_v0  ;;  %v620_v61 = vmul.f32 %v5246_v1, %v619_v5  ;;  %v850_v52 = vadd.f32 %v4826_v39, %v813_v54  ;;  %vm604_vm6 = vweird.f32 %v5063_v20  ;;  %vm5405_vm0 = vmor %vm574_vm3, %vm575_vm4  ;;  %v4216_v20 = vld [vmem:[%s9090_s0 + $0x98] sm:$0xff] }
 0x148   :  { %v613_v19 = vmul.f32 %v5154_v44, %v612_v45  ;;  %3976 = vrsqrt.f32 %v5276_v8  ;;  %v5312_v15 = vadd.f32 %v4213_v35, %v845_v10  ;;  %v557_v17 = vsel %vm5297_vm5, %v5074_v34, %v5215_v4  ;;  %v325_v4 = vpop.xlane.xlu2 %324 }
 0x149   :  { %v9261_v0 = vsub.f32 1.5, %v5152_v26  ;;  %vm605_vm7 = vweird.f32 %v5124_v24  ;;  %v660_v45 = vmul.f32 %v5252_v14, %v659_v6  ;;  %v639_v34 = vmul.f32 %v5284_v57, %v5210_v23  ;;  %v5335_v26 = vpop.eup %3972 }
 0x14a   :  { %vm594_vm9 = vweird.f32 %v5076_v56  ;;  %932 = vadd.xlane.f32.xlu1 %v5312_v15  ;;  %v5342_v46 = vadd.f32 %v4214_v49, %v850_v52  ;;  %3978 = vrsqrt.f32 %v5289_v11  ;;  %v356_v6 = vmul.f32 %v315_v55, %v4543_v42 }
 0x14b   :  { %v5321_v5 = vmul.f32 %v5070_v33, %v9261_v0  ;;  %v5347_v54 = vmul.f32 %v5124_v24, %v602_v50  ;;  %v5350_v10 = vmul.f32 %v5162_v38, %v562_v12  ;;  %vm5354_vm10 = vmor %vm594_vm9, %vm595_vm1  ;;  %v621_v9 = vmul.f32 0.5, %v620_v61  ;;  %v5359_v35 = vpop.eup %3974 }
 0x14c   :  { %v773_v52 = vmul.f32 %v557_v17, %v4641_v7  ;;  %v632_v0 = vsub.f32 1.5, %v5301_v59  ;;  %942 = vadd.xlane.f32.xlu0 %v5342_v46  ;;  %v597_v50 = vsel %vm5354_vm10, %v5145_v43, %v593_v63  ;;  %v617_v12 = vsel %vm5328_vm8, %v5154_v44, %v613_v19  ;;  %vm5421_vm1 = vmor %vm604_vm6, %vm605_vm7 }
 0x14d   :  { %v361_v55 = vmul.f32 %v325_v4, %v4543_v42  ;;  %v661_v49 = vmul.f32 0.5, %v660_v45  ;;  %vm624_vm11 = vweird.f32 %v5165_v53  ;;  %v640_v7 = vmul.f32 %v5284_v57, %v639_v34 }
 0x14e   :  { %v649_v59 = vmul.f32 %v5335_v26, %v5250_v48  ;;  %v5374_v61 = vpop.eup %3976  ;;  %vm664_vm12 = vweird.f32 %v5177_v41  ;;  %v5377_v17 = vadd.f32 1e-08, %v356_v6  ;;  %v810_v43 = vmul.f32 %v4815_v32, %v773_v52 }
 0x14f   :  { %v777_v44 = vmul.f32 %v597_v50, %v4667_v18  ;;  %v779_v63 = vmul.f32 %v617_v12, %v4677_v13  ;;  %vm544_vm13 = vweird.f32 %v4922_v36  ;;  %vm545_vm14 = vweird.f32 %v4994_v25  ;;  %v4215_v12 = vld [vmem:[%s9090_s0 + $0x78] sm:$0xff] }
 0x150   :  { %v622_v19 = vsub.f32 1.5, %v621_v9  ;;  %vm625_vm15 = vweird.f32 %v5246_v1  ;;  %v669_v51 = vmul.f32 %v5359_v35, %v5267_v22  ;;  %v358_v45 = vmul.f32 %v5244_v58, %v4543_v42  ;;  %v5389_v34 = vpop.eup %3978 }
 0x151   :  { %v847_v4 = vadd.f32 %v4826_v39, %v810_v43  ;;  %v814_v18 = vmul.f32 %v4815_v32, %v777_v44  ;;  %v816_v13 = vmul.f32 %v4815_v32, %v779_v63  ;;  %v5394_v6 = vadd.f32 1e-08, %v361_v55  ;;  %v321_v43 = vpop.xlane.xlu0 %320  ;;  %vm5455_vm7 = vmor %vm624_vm11, %vm625_vm15 }
 0x152   :  { %v641_v56 = vmul.f32 0.5, %v640_v7  ;;  %v689_v9 = vmul.f32 %v5374_v61, %v5276_v8  ;;  %v650_v52 = vmul.f32 %v5335_v26, %v649_v59  ;;  %v679_v50 = vmul.f32 %v5389_v34, %v5289_v11 }
 0x153   :  { %3980 = vrsqrt.f32 %v5377_v17  ;;  %v5413_v55 = vadd.f32 %v4215_v12, %v847_v4  ;;  %v851_v7 = vadd.f32 %v4826_v39, %v814_v18  ;;  %v853_v59 = vadd.f32 %v4826_v39, %v816_v13  ;;  %v317_v12 = vpop.xlane.xlu1 %316 }
 0x154   :  { %v662_v44 = vsub.f32 1.5, %v661_v49  ;;  %v670_v63 = vmul.f32 %v5359_v35, %v669_v51  ;;  %v5426_v21 = vadd.f32 1e-08, %v358_v45  ;;  %3982 = vrsqrt.f32 %v5394_v6  ;;  %v4217_v51 = vld [vmem:[%s9090_s0 + $0xa8] sm:$0xff] }
 0x155   :  { %9268 = vst [vmem:[#allocation25_spill] sm:$0xff] %v5413_v55  ;;  %v5430_v4 = vmul.f32 %v5202_v60, %v632_v0  ;;  %vm634_vm2 = vweird.f32 %v5121_v3  ;;  %vm635_vm3 = vweird.f32 %v5202_v60  ;;  %vm665_vm4 = vweird.f32 %v5252_v14  ;;  %936 = vadd.xlane.f32.xlu1 %v5413_v55 }
 0x156   :  { %v5439_v49 = vadd.f32 %v4216_v20, %v851_v7  ;;  %v5444_v0 = vadd.f32 %v4217_v51, %v853_v59  ;;  %v623_v45 = vmul.f32 %v5246_v1, %v622_v19  ;;  %v642_v18 = vsub.f32 1.5, %v641_v56  ;;  %vm5488_vm11 = vmor %vm664_vm12, %vm665_vm4 }
 0x157   :  { %vm654_vm5 = vweird.f32 %v5250_v48  ;;  %v680_v13 = vmul.f32 %v5389_v34, %v679_v50  ;;  %v359_v55 = vmul.f32 %v321_v43, %v4543_v42  ;;  %vm565_vm6 = vweird.f32 %v5162_v38  ;;  %vm5505_vm12 = vmor %vm544_vm13, %vm545_vm14  ;;  %v9291_v43 = vld [vmem:[#allocation3_spill] sm:$0xff] }
 0x158   :  { %v690_v19 = vmul.f32 %v5374_v61, %v689_v9  ;;  %v651_v56 = vmul.f32 0.5, %v650_v52  ;;  %944 = vadd.xlane.f32.xlu0 %v5439_v49  ;;  %948 = vadd.xlane.f32.xlu2 %v5444_v0  ;;  %v577_v50 = vsel %vm5405_vm0, %v5070_v33, %v5321_v5  ;;  %v607_v53 = vsel %vm5421_vm1, %v5124_v24, %v5347_v54  ;;  %vm5545_vm14 = vmor %vm634_vm2, %vm635_vm3 }
 0x159   :  { %v663_v59 = vmul.f32 %v5252_v14, %v662_v44  ;;  %vm655_vm8 = vweird.f32 %v5335_v26  ;;  %v671_v9 = vmul.f32 0.5, %v670_v63  ;;  %vm674_vm9 = vweird.f32 %v5267_v22  ;;  %v5474_v52 = vpop.eup %3980  ;;  %v9288_v22 = vld [vmem:[#allocation4_spill] sm:$0xff] }
 0x15a   :  { %3984 = vrsqrt.f32 %v5426_v21  ;;  %vm564_vm10 = vweird.f32 %v5095_v29  ;;  %v357_v33 = vmul.f32 %v317_v12, %v4543_v42  ;;  %v5478_v5 = vadd.f32 1e-08, %v359_v55  ;;  %v5482_v54 = vpop.eup %3982  ;;  %vm5563_vm2 = vmor %vm654_vm5, %vm655_vm8  ;;  %v4220_v29 = vld [vmem:[%s9090_s0 + $0xb0] sm:$0xff] }
 0x15b   :  { %v775_v58 = vmul.f32 %v577_v50, %v4636_v62  ;;  %v778_v24 = vmul.f32 %v607_v53, %v4654_v47  ;;  %v5493_v16 = vmul.f32 %v5284_v57, %v642_v18  ;;  %vm644_vm15 = vweird.f32 %v5210_v23  ;;  %vm5576_vm3 = vmor %vm564_vm10, %vm565_vm6  ;;  %v323_v48 = vpop.xlane.xlu1 %322 }
 0x15c   :  { %vm645_vm0 = vweird.f32 %v5284_v57  ;;  %vm675_vm1 = vweird.f32 %v5359_v35  ;;  %v681_v62 = vmul.f32 0.5, %v680_v13  ;;  %v627_v47 = vsel %vm5455_vm7, %v5246_v1, %v623_v45  ;;  %v9277_v45 = vld [vmem:[#allocation5_spill] sm:$0xff] }
 0x15d   :  { %v5509_v55 = vmul.f32 0.5, %v690_v19  ;;  %v652_v44 = vsub.f32 1.5, %v651_v56  ;;  %3986 = vrsqrt.f32 %v5478_v5  ;;  %v812_v63 = vmul.f32 %v4815_v32, %v775_v58  ;;  %v9278_v58 = vld [vmem:[#allocation6_spill] sm:$0xff]  ;;  %vm5596_vm6 = vmor %vm674_vm9, %vm675_vm1 }
 0x15e   :  { %v672_v20 = vsub.f32 1.5, %v671_v9  ;;  %v699_v51 = vmul.f32 %v5474_v52, %v5377_v17  ;;  %v815_v1 = vmul.f32 %v4815_v32, %v778_v24  ;;  %v780_v18 = vmul.f32 %v627_v47, %v9277_v45  ;;  %vm5621_vm9 = vmor %vm644_vm15, %vm645_vm0 }
 0x15f   :  { %v749_v36 = vmul.f32 %v5482_v54, %v5394_v6  ;;  %v5519_v13 = vadd.f32 1e-08, %v357_v33  ;;  %v849_v12 = vadd.f32 %v4826_v39, %v812_v63  ;;  %v667_v7 = vsel %vm5488_vm11, %v5252_v14, %v663_v59  ;;  %v4218_v14 = vld [vmem:[%s9090_s0 + $0x88] sm:$0xff] }
 0x160   :  { %v5525_v19 = vpop.eup %3984  ;;  %v682_v56 = vsub.f32 1.5, %v681_v62  ;;  %v852_v50 = vadd.f32 %v4826_v39, %v815_v1  ;;  %v817_v53 = vmul.f32 %v4815_v32, %v780_v18  ;;  %v547_v9 = vsel %vm5505_vm12, %v4994_v25, %v5148_v27  ;;  %v4219_v27 = vld [vmem:[%s9090_s0 + $0xa0] sm:$0xff] }
 0x161   :  { %v653_v33 = vmul.f32 %v5335_v26, %v652_v44  ;;  %vm684_vm13 = vweird.f32 %v5289_v11  ;;  %v5538_v59 = vadd.f32 %v4218_v14, %v849_v12  ;;  %v784_v24 = vmul.f32 %v667_v7, %v9278_v58  ;;  %v9283_v1 = vld [vmem:[#allocation2_spill] sm:$0xff]  ;;  %v4221_v11 = vld [vmem:[%s9090_s0 + $0xd0] sm:$0xff] }
 0x162   :  { %v673_v25 = vmul.f32 %v5359_v35, %v672_v20  ;;  %vm685_vm4 = vweird.f32 %v5389_v34  ;;  %v5554_v62 = vadd.f32 %v4219_v27, %v852_v50  ;;  %v854_v47 = vadd.f32 %v4826_v39, %v817_v53  ;;  %v9297_v12 = vld [vmem:[#allocation10_spill] sm:$0xff] }
 0x163   :  { %v5557_v41 = vpop.eup %3986  ;;  %v700_v44 = vmul.f32 %v5474_v52, %v699_v51  ;;  %v750_v63 = vmul.f32 %v5482_v54, %v749_v36  ;;  %940 = vadd.xlane.f32.xlu1 %v5538_v59  ;;  %v821_v20 = vmul.f32 %v4815_v32, %v784_v24  ;;  %v772_v45 = vmul.f32 %v547_v9, %v9283_v1  ;;  %vm5632_vm11 = vmor %vm684_vm13, %vm685_vm4 }
 0x164   :  { %vm694_vm5 = vweird.f32 %v5276_v8  ;;  %vm695_vm7 = vweird.f32 %v5374_v61  ;;  %v683_v51 = vmul.f32 %v5389_v34, %v682_v56  ;;  %3988 = vrsqrt.f32 %v5519_v13  ;;  %946 = vadd.xlane.f32.xlu0 %v5554_v62 }
 0x165   :  { %v729_v18 = vmul.f32 %v5557_v41, %v5478_v5  ;;  %v5590_v36 = vadd.f32 %v4220_v29, %v854_v47  ;;  %vm734_vm8 = vweird.f32 %v5478_v5  ;;  %v858_v7 = vadd.f32 %v4826_v39, %v821_v20  ;;  %vm5711_vm12 = vmor %vm694_vm5, %vm695_vm7 }
 0x166   :  { %v809_v56 = vmul.f32 %v4815_v32, %v772_v45  ;;  %v637_v50 = vsel %vm5545_vm14, %v5202_v60, %v5430_v4  ;;  %v567_v14 = vsel %vm5576_vm3, %v5162_v38, %v5350_v10  ;;  %v657_v58 = vsel %vm5563_vm2, %v5335_v26, %v653_v33  ;;  %v9294_v10 = vld [vmem:[#allocation8_spill] sm:$0xff] }
 0x167   :  { %v730_v53 = vmul.f32 %v5557_v41, %v729_v18  ;;  %950 = vadd.xlane.f32.xlu2 %v5590_v36  ;;  %v781_v9 = vmul.f32 %v637_v50, %v9288_v22  ;;  %v751_v4 = vmul.f32 0.5, %v750_v63  ;;  %vm735_vm10 = vweird.f32 %v5557_v41  ;;  %v9298_v22 = vld [vmem:[#allocation11_spill] sm:$0xff] }
 0x168   :  { %v846_v24 = vadd.f32 %v4826_v39, %v809_v56  ;;  %v774_v27 = vmul.f32 %v567_v14, %v9291_v43  ;;  %v783_v33 = vmul.f32 %v657_v58, %v9294_v10  ;;  %v677_v47 = vsel %vm5596_vm6, %v5359_v35, %v673_v25  ;;  %v4222_v35 = vld [vmem:[%s9090_s0 + $0x70] sm:$0xff]  ;;  %vm5663_vm0 = vmor %vm734_vm8, %vm735_vm10  ;;  %v4223_v56 = vld [vmem:[%s9090_s0 + $0xb8] sm:$0xff] }
 0x169   :  { %v731_v23 = vmul.f32 0.5, %v730_v53  ;;  %v818_v26 = vmul.f32 %v4815_v32, %v781_v9  ;;  %v692_v3 = vsub.f32 1.5, %v5509_v55  ;;  %v5642_v63 = vmul.f32 0.5, %v700_v44  ;;  %v5700_v58 = vld [vmem:[%s9092_s2] ss:$0 sm:$0xff]  ;;  %v9304_v10 = vld [vmem:[#allocation16_spill] sm:$0xff] }
 0x16a   :  { %vm754_vm15 = vweird.f32 %v5394_v6  ;;  %v5648_v20 = vadd.f32 %v4221_v11, %v858_v7  ;;  %v5650_v1 = vpop.eup %3988  ;;  %v5655_v25 = vadd.f32 %v4222_v35, %v846_v24  ;;  %v811_v44 = vmul.f32 %v4815_v32, %v774_v27 }
 0x16b   :  { %v732_v45 = vsub.f32 1.5, %v731_v23  ;;  %v855_v55 = vadd.f32 %v4826_v39, %v818_v26  ;;  %v752_v18 = vsub.f32 1.5, %v751_v4  ;;  %v785_v7 = vmul.f32 %v677_v47, %v9297_v12  ;;  %v9299_v4 = vld [vmem:[#allocation7_spill] sm:$0xff] }
 0x16c   :  { %958 = vadd.xlane.f32.xlu1 %v5648_v20  ;;  %v647_v39 = vsel %vm5621_vm9, %v5284_v57, %v5493_v16  ;;  %v687_v32 = vsel %vm5632_vm11, %v5389_v34, %v683_v51  ;;  %vm755_vm1 = vweird.f32 %v5482_v54  ;;  %934 = vadd.xlane.f32.xlu0 %v5655_v25  ;;  %v5687_v57 = vld [vmem:[%s9091_s1] ss:$0 sm:$0xff]  ;;  %v709_v34 = vmul.f32 %v5650_v1, %v5519_v13  ;;  %v4228_v12 = vld [vmem:[%s9090_s0 + $0xc8] sm:$0xff] }
 0x16d   :  { %v733_v5 = vmul.f32 %v5557_v41, %v732_v45  ;;  %v5682_v50 = vadd.f32 %v4223_v56, %v855_v55  ;;  %v820_v16 = vmul.f32 %v5687_v57, %v783_v33  ;;  %v360_v51 = vmul.f32 %v323_v48, %v4543_v42  ;;  %vm5722_vm13 = vmor %vm754_vm15, %vm755_vm1  ;;  %v4227_v45 = vld [vmem:[%s9090_s0 + $0x80] sm:$0xff] }
 0x16e   :  { %v822_v53 = vmul.f32 %v5687_v57, %v785_v7  ;;  %v786_v9 = vmul.f32 %v687_v32, %v9298_v22  ;;  %v693_v14 = vmul.f32 %v5374_v61, %v692_v3  ;;  %v848_v60 = vadd.f32 %v5700_v58, %v811_v44 }
 0x16f   :  { %952 = vadd.xlane.f32.xlu2 %v5682_v50  ;;  %v782_v24 = vmul.f32 %v647_v39, %v9299_v4  ;;  %v737_v43 = vsel %vm5663_vm0, %v5557_v41, %v733_v5  ;;  %v753_v38 = vmul.f32 %v5482_v54, %v752_v18  ;;  %v702_v26 = vsub.f32 1.5, %v5642_v63  ;;  %v4226_v63 = vld [vmem:[%s9090_s0 + $0xd8] sm:$0xff]  ;;  %v4230_v4 = vld [vmem:[%s9090_s0 + $0xc0] sm:$0xff] }
 0x170   :  { %v859_v23 = vadd.f32 %v5700_v58, %v822_v53  ;;  %v857_v8 = vadd.f32 %v5700_v58, %v820_v16  ;;  %v791_v33 = vmul.f32 %v737_v43, %v9304_v10  ;;  %v710_v47 = vmul.f32 %v5650_v1, %v709_v34  ;;  %v9305_v39 = vld [vmem:[#allocation9_spill] sm:$0xff]  ;;  %v9306_v16 = vld [vmem:[#allocation15_spill] sm:$0xff] }
 0x171   :  { %v5729_v3 = vadd.f32 1e-08, %v360_v51  ;;  %v823_v6 = vmul.f32 %v5687_v57, %v786_v9  ;;  %v5740_v48 = vadd.f32 %v4227_v45, %v848_v60  ;;  %v819_v35 = vmul.f32 %v5687_v57, %v782_v24  ;;  %v4229_v9 = vld [vmem:[%s9090_s0 + $0xe0] sm:$0xff]  ;;  %v4231_v43 = vld [vmem:[%s9090_s0 + $0x108] sm:$0xff]  ;;  %v9309_v10 = vld [vmem:[#allocation13_spill] sm:$0xff] }
 0x172   :  { %v5734_v11 = vadd.f32 %v4226_v63, %v859_v23  ;;  %v828_v55 = vmul.f32 %v5687_v57, %v791_v33  ;;  %v697_v44 = vsel %vm5711_vm12, %v5374_v61, %v693_v14  ;;  %v757_v18 = vsel %vm5722_vm13, %v5482_v54, %v753_v38  ;;  %v4232_v45 = vld [vmem:[%s9090_s0 + $0xe8] sm:$0xff] }
 0x173   :  { %v719_v29 = vmul.f32 %v5525_v19, %v5426_v21  ;;  %vm704_vm14 = vweird.f32 %v5377_v17  ;;  %vm705_vm4 = vweird.f32 %v5474_v52  ;;  %v5759_v61 = vadd.f32 %v4228_v12, %v857_v8 }
 0x174   :  { %960 = vadd.xlane.f32.xlu1 %v5734_v11  ;;  %938 = vadd.xlane.f32.xlu0 %v5740_v48  ;;  %v711_v7 = vmul.f32 0.5, %v710_v47  ;;  %3990 = vrsqrt.f32 %v5729_v3  ;;  %v860_v54 = vadd.f32 %v5700_v58, %v823_v6  ;;  %v787_v32 = vmul.f32 %v697_v44, %v9305_v39  ;;  %vm5769_vm2 = vmor %vm704_vm14, %vm705_vm4 }
 0x175   :  { %v703_v5 = vmul.f32 %v5474_v52, %v702_v26  ;;  %v856_v17 = vadd.f32 %v5700_v58, %v819_v35  ;;  %v865_v56 = vadd.f32 %v5700_v58, %v828_v55  ;;  %v793_v34 = vmul.f32 %v757_v18, %v9306_v16 }
 0x176   :  { %v720_v53 = vmul.f32 %v5525_v19, %v719_v29  ;;  %v712_v22 = vsub.f32 1.5, %v711_v7  ;;  %v5777_v14 = vadd.f32 %v4229_v9, %v860_v54  ;;  %v824_v60 = vmul.f32 %v5687_v57, %v787_v32  ;;  %v4233_v29 = vld [vmem:[%s9090_s0 + $0x118] sm:$0xff]  ;;  %v9313_v9 = vld [vmem:[#allocation12_spill] sm:$0xff] }
 0x177   :  { %956 = vadd.xlane.f32.xlu2 %v5759_v61  ;;  %v5783_v24 = vadd.f32 %v4230_v4, %v856_v17  ;;  %v5788_v27 = vadd.f32 %v4231_v43, %v865_v56  ;;  %v830_v38 = vmul.f32 %v5687_v57, %v793_v34  ;;  %v707_v23 = vsel %vm5769_vm2, %v5474_v52, %v703_v5  ;;  %v9312_v5 = vld [vmem:[#allocation14_spill] sm:$0xff] }
 0x178   :  { %vm714_vm3 = vweird.f32 %v5519_v13  ;;  %vm715_vm5 = vweird.f32 %v5650_v1  ;;  %v721_v41 = vmul.f32 0.5, %v720_v53  ;;  %v861_v8 = vadd.f32 %v5700_v58, %v824_v60 }
 0x179   :  { %v788_v33 = vmul.f32 %v707_v23, %v9309_v10  ;;  %v713_v47 = vmul.f32 %v5650_v1, %v712_v22  ;;  %v867_v52 = vadd.f32 %v5700_v58, %v830_v38  ;;  %vm5804_vm7 = vmor %vm714_vm3, %vm715_vm5  ;;  %vm724_vm6 = vweird.f32 %v5426_v21  ;;  %v4234_v21 = vld [vmem:[%s9090_s0 + $0xf0] sm:$0xff]  ;;  %v4235_v23 = vld [vmem:[%s9090_s0 + $0xf8] sm:$0xff] }
 0x17a   :  { %v3991_v26 = vpop.eup %3990  ;;  %v722_v13 = vsub.f32 1.5, %v721_v41  ;;  %v5811_v35 = vadd.f32 %v4232_v45, %v861_v8  ;;  %vm725_vm8 = vweird.f32 %v5525_v19  ;;  %vm744_vm10 = vweird.f32 %v5729_v3 }
 0x17b   :  { %v739_v63 = vmul.f32 %v3991_v26, %v5729_v3  ;;  %v825_v55 = vmul.f32 %v5687_v57, %v788_v33  ;;  %v5817_v12 = vadd.f32 %v4233_v29, %v867_v52  ;;  %v717_v7 = vsel %vm5804_vm7, %v5650_v1, %v713_v47  ;;  %vm726_vm9 = vmor %vm724_vm6, %vm725_vm8  ;;  %v9314_v52 = vld [vmem:[#allocation17_spill] sm:$0xff] }
 0x17c   :  { %962 = vadd.xlane.f32.xlu1 %v5777_v14  ;;  %954 = vadd.xlane.f32.xlu0 %v5783_v24  ;;  %v789_v17 = vmul.f32 %v717_v7, %v9312_v5  ;;  %v723_v56 = vmul.f32 %v5525_v19, %v722_v13  ;;  %vm745_vm11 = vweird.f32 %v3991_v26 }
 0x17d   :  { %v740_v18 = vmul.f32 %v3991_v26, %v739_v63  ;;  %v862_v32 = vadd.f32 %v5700_v58, %v825_v55  ;;  %vm746_vm15 = vmor %vm744_vm10, %vm745_vm11 }
 0x17e   :  { %v727_v53 = vsel %vm726_vm9, %v5525_v19, %v723_v56 }
 0x17f   :  { %972 = vadd.xlane.f32.xlu2 %v5788_v27  ;;  %v741_v1 = vmul.f32 0.5, %v740_v18  ;;  %v5838_v34 = vadd.f32 %v4234_v21, %v862_v32  ;;  %v790_v60 = vmul.f32 %v727_v53, %v9313_v9 }
 0x181   :  { %v742_v51 = vsub.f32 1.5, %v741_v1  ;;  %v911_v41 = vpop.xlane.xlu2 %910  ;;  %v827_v3 = vmul.f32 %v5687_v57, %v790_v60 }
 0x182   :  { %v980_v33 = vmul.f32 %v911_v41, %v4543_v42 }
 0x183   :  { %v907_v44 = vpop.xlane.xlu0 %906  ;;  %v743_v4 = vmul.f32 %v3991_v26, %v742_v51  ;;  %v864_v63 = vadd.f32 %v5700_v58, %v827_v3 }
 0x184   :  { %v978_v54 = vmul.f32 %v907_v44, %v4543_v42  ;;  %964 = vadd.xlane.f32.xlu1 %v5811_v35  ;;  %976 = vadd.xlane.f32.xlu0 %v5817_v12  ;;  %v5863_v13 = vsub.f32 %v4845_v37, %v980_v33 }
 0x185   :  { %v747_v8 = vsel %vm746_vm15, %v3991_v26, %v743_v4 }
 0x186   :  { %v5828_v39 = vsub.f32 %v4856_v28, %v978_v54  ;;  %v826_v28 = vmul.f32 %v5687_v57, %v789_v17  ;;  %v792_v6 = vmul.f32 %v747_v8, %v9314_v52  ;;  %v1052_v29 = vmul.f32 %v5863_v13, %v5863_v13  ;;  %v4237_v54 = vld [vmem:[%s9090_s0 + $0x110] sm:$0xff] }
 0x188   :  { %v1050_v16 = vmul.f32 %v5828_v39, %v5828_v39  ;;  %v863_v22 = vadd.f32 %v5700_v58, %v826_v28  ;;  %v829_v55 = vmul.f32 %v5687_v57, %v792_v6  ;;  %v9317_v6 = vld [vmem:[#allocation18_spill] sm:$0xff] }
 0x18a   :  { %v5850_v19 = vadd.f32 %v4235_v23, %v863_v22  ;;  %v866_v37 = vadd.f32 %v5700_v58, %v829_v55  ;;  %v9315_v22 = vld [vmem:[#allocation19_spill] sm:$0xff] }
 0x18c   :  { %966 = vadd.xlane.f32.xlu1 %v5838_v34  ;;  %1086 = vadd.xlane.f32.xlu0 %v1050_v16  ;;  %v5882_v32 = vadd.f32 %v4237_v54, %v866_v37 }
 0x18e   :  { %v909_v43 = vpop.xlane.xlu1 %908  ;;  %v913_v45 = vpop.xlane.xlu0 %912 }
 0x18f   :  { %v979_v38 = vmul.f32 %v909_v43, %v4543_v42  ;;  %v981_v18 = vmul.f32 %v913_v45, %v4543_v42 }
 0x191   :  { %v5854_v10 = vsub.f32 %v4949_v30, %v979_v38  ;;  %v4236_v30 = vld [vmem:[%s9090_s0 + $0x100] sm:$0xff]  ;;  %v5877_v7 = vsub.f32 %v4952_v40, %v981_v18  ;;  %v917_v40 = vpop.xlane.xlu2 %916 }
 0x192   :  { %v5868_v26 = vadd.f32 %v4236_v30, %v864_v63  ;;  %v983_v56 = vmul.f32 %v917_v40, %v4543_v42 }
 0x193   :  { %v1051_v47 = vmul.f32 %v5854_v10, %v5854_v10  ;;  %v1053_v5 = vmul.f32 %v5877_v7, %v5877_v7 }
 0x194   :  { %968 = vadd.xlane.f32.xlu1 %v5850_v19  ;;  %v5895_v21 = vsub.f32 %v4929_v31, %v983_v56  ;;  %v9316_v31 = vld [vmem:[#allocation20_spill] sm:$0xff] }
 0x195   :  { %1088 = vadd.xlane.f32.xlu2 %v1051_v47 }
 0x196   :  { %v1055_v53 = vmul.f32 %v5895_v21, %v5895_v21 }
 0x197   :  { %v915_v44 = vpop.xlane.xlu1 %914 }
 0x198   :  { %v982_v57 = vmul.f32 %v915_v44, %v4543_v42 }
 0x199   :  { %v923_v60 = vpop.xlane.xlu2 %922 }
 0x19a   :  { %v5889_v58 = vsub.f32 %v5019_v2, %v982_v57  ;;  %v919_v28 = vpop.xlane.xlu0 %918  ;;  %v986_v33 = vmul.f32 %v923_v60, %v4543_v42 }
 0x19b   :  { %v984_v51 = vmul.f32 %v919_v28, %v4543_v42 }
 0x19c   :  { %970 = vadd.xlane.f32.xlu1 %v5868_v26  ;;  %v1054_v1 = vmul.f32 %v5889_v58, %v5889_v58  ;;  %v5925_v30 = vsub.f32 %v9317_v6, %v986_v33 }
 0x19d   :  { %1090 = vadd.xlane.f32.xlu2 %v1052_v29  ;;  %v5903_v9 = vsub.f32 %v9315_v22, %v984_v51 }
 0x19e   :  { %v1058_v44 = vmul.f32 %v5925_v30, %v5925_v30 }
 0x19f   :  { %v1056_v43 = vmul.f32 %v5903_v9, %v5903_v9 }
 0x1a1   :  { %v921_v17 = vpop.xlane.xlu1 %920 }
 0x1a2   :  { %v985_v4 = vmul.f32 %v921_v17, %v4543_v42 }
 0x1a4   :  { %974 = vadd.xlane.f32.xlu1 %v5882_v32  ;;  %v5909_v38 = vsub.f32 %v9316_v31, %v985_v4 }
 0x1a5   :  { %1092 = vadd.xlane.f32.xlu2 %v1053_v5 }
 0x1a6   :  { %v1057_v47 = vmul.f32 %v5909_v38, %v5909_v38 }
 0x1a7   :  { %v5913_v3 = vpop.xlane.xlu2 %926 }
 0x1ab   :  { %v925_v16 = vpop.xlane.xlu1 %924 }
 0x1ad   :  { %1094 = vadd.xlane.f32.xlu2 %v1054_v1 }
 0x1b3   :  { %v5900_v2 = vpop.xlane.xlu1 %928 }
 0x1b5   :  { %1096 = vadd.xlane.f32.xlu2 %v1055_v53 }
 0x1b6   :  { %v5931_v18 = vpop.xlane.xlu2 %930 }
 0x1bd   :  { %1098 = vadd.xlane.f32.xlu2 %v1056_v43  ;;  %v5911_v23 = vpop.xlane.xlu1 %932 }
 0x1bf   :  { %v943_v41 = vpop.xlane.xlu0 %942 }
 0x1c0   :  { %v996_v8 = vmul.f32 %v943_v41, %v4543_v42 }
 0x1c2   :  { %v5920_v63 = vsub.f32 %v5342_v46, %v996_v8 }
 0x1c4   :  { %v1068_v52 = vmul.f32 %v5920_v63, %v5920_v63 }
 0x1c5   :  { %1100 = vadd.xlane.f32.xlu2 %v1057_v47 }
 0x1c6   :  { %1122 = vadd.xlane.f32.xlu1 %v1068_v52 }
 0x1c8   :  { %v5927_v45 = vpop.xlane.xlu1 %936 }
 0x1cb   :  { %v945_v55 = vpop.xlane.xlu0 %944  ;;  %v949_v54 = vpop.xlane.xlu2 %948 }
 0x1cc   :  { %v997_v29 = vmul.f32 %v945_v55, %v4543_v42  ;;  %v999_v56 = vmul.f32 %v949_v54, %v4543_v42  ;;  %v9318_v55 = vld [vmem:[#allocation22_spill] sm:$0xff] }
 0x1cd   :  { %1102 = vadd.xlane.f32.xlu2 %v1058_v44 }
 0x1ce   :  { %v5935_v46 = vsub.f32 %v5439_v49, %v997_v29  ;;  %v5951_v53 = vsub.f32 %v5444_v0, %v999_v56  ;;  %v987_v0 = vmul.f32 %v925_v16, %v4543_v42 }
 0x1d0   :  { %v1069_v37 = vmul.f32 %v5935_v46, %v5935_v46  ;;  %v1071_v60 = vmul.f32 %v5951_v53, %v5951_v53 }
 0x1d2   :  { %1124 = vadd.xlane.f32.xlu1 %v1069_v37 }
 0x1d6   :  { %v5939_v57 = vpop.xlane.xlu1 %940 }
 0x1d7   :  { %v947_v5 = vpop.xlane.xlu0 %946 }
 0x1d8   :  { %v998_v17 = vmul.f32 %v947_v5, %v4543_v42 }
 0x1da   :  { %v5943_v40 = vsub.f32 %v5554_v62, %v998_v17  ;;  %v951_v28 = vpop.xlane.xlu2 %950 }
 0x1db   :  { %v1000_v22 = vmul.f32 %v951_v28, %v4543_v42 }
 0x1dc   :  { %v1070_v1 = vmul.f32 %v5943_v40, %v5943_v40 }
 0x1dd   :  { %v5960_v31 = vsub.f32 %v5590_v36, %v1000_v22  ;;  %v5972_v36 = vsub.f32 %v9318_v55, %v987_v0  ;;  %v991_v0 = vmul.f32 %v5911_v23, %v4543_v42 }
 0x1de   :  { %1126 = vadd.xlane.f32.xlu0 %v1070_v1  ;;  %v989_v1 = vmul.f32 %v5900_v2, %v4543_v42 }
 0x1df   :  { %v959_v49 = vpop.xlane.xlu1 %958  ;;  %v5948_v51 = vpop.xlane.xlu0 %934  ;;  %v1072_v52 = vmul.f32 %v5960_v31, %v5960_v31  ;;  %v1059_v16 = vmul.f32 %v5972_v36, %v5972_v36 }
 0x1e2   :  { %v953_v41 = vpop.xlane.xlu2 %952 }
 0x1e3   :  { %v1001_v47 = vmul.f32 %v953_v41, %v4543_v42 }
 0x1e5   :  { %v5975_v44 = vsub.f32 %v5682_v50, %v1001_v47 }
 0x1e6   :  { %1128 = vadd.xlane.f32.xlu0 %v1071_v60 }
 0x1e7   :  { %v961_v62 = vpop.xlane.xlu1 %960  ;;  %v5957_v43 = vpop.xlane.xlu0 %938  ;;  %v1073_v37 = vmul.f32 %v5975_v44, %v5975_v44 }
 0x1e8   :  { %v1005_v4 = vmul.f32 %v961_v62, %v4543_v42 }
 0x1ea   :  { %v5963_v8 = vsub.f32 %v5734_v11, %v1005_v4  ;;  %v957_v56 = vpop.xlane.xlu2 %956  ;;  %v9319_v4 = vld [vmem:[#allocation23_spill] sm:$0xff] }
 0x1eb   :  { %v1003_v22 = vmul.f32 %v957_v56, %v4543_v42  ;;  %v5998_v41 = vsub.f32 %v9319_v4, %v989_v1 }
 0x1ec   :  { %v1077_v33 = vmul.f32 %v5963_v8, %v5963_v8 }
 0x1ee   :  { %1140 = vadd.xlane.f32.xlu1 %v1077_v33  ;;  %1130 = vadd.xlane.f32.xlu0 %v1072_v52  ;;  %v1061_v33 = vmul.f32 %v5998_v41, %v5998_v41  ;;  %v1004_v52 = vmul.f32 %v959_v49, %v4543_v42 }
 0x1ef   :  { %v963_v6 = vpop.xlane.xlu1 %962  ;;  %v955_v11 = vpop.xlane.xlu0 %954 }
 0x1f0   :  { %v1002_v29 = vmul.f32 %v955_v11, %v4543_v42  ;;  %v6017_v11 = vsub.f32 %v5312_v15, %v991_v0  ;;  %v990_v0 = vmul.f32 %v5931_v18, %v4543_v42 }
 0x1f2   :  { %v5984_v17 = vsub.f32 %v5783_v24, %v1002_v29  ;;  %9320 = vst [vmem:[#allocation5_spill] sm:$0xff] %v6017_v11  ;;  %v973_v23 = vpop.xlane.xlu2 %972 }
 0x1f3   :  { %v1011_v49 = vmul.f32 %v973_v23, %v4543_v42 }
 0x1f4   :  { %v1074_v60 = vmul.f32 %v5984_v17, %v5984_v17 }
 0x1f6   :  { %1104 = vadd.xlane.f32.xlu1 %v1059_v16  ;;  %1132 = vadd.xlane.f32.xlu0 %v1073_v37  ;;  %v6020_v16 = vsub.f32 %v5648_v20, %v1004_v52 }
 0x1f7   :  { %v965_v54 = vpop.xlane.xlu1 %964 }
 0x1f8   :  { %v1007_v5 = vmul.f32 %v965_v54, %v4543_v42  ;;  %v1063_v54 = vmul.f32 %v6017_v11, %v6017_v11  ;;  %v1076_v15 = vmul.f32 %v6020_v16, %v6020_v16 }
 0x1fa   :  { %v5987_v50 = vsub.f32 %v5811_v35, %v1007_v5  ;;  %v6001_v35 = vsub.f32 %v5759_v61, %v1003_v22  ;;  %v1006_v5 = vmul.f32 %v963_v6, %v4543_v42 }
 0x1fc   :  { %v1079_v28 = vmul.f32 %v5987_v50, %v5987_v50  ;;  %v1075_v55 = vmul.f32 %v6001_v35, %v6001_v35  ;;  %v6037_v56 = vsub.f32 %v5777_v14, %v1006_v5 }
 0x1fe   :  { %1144 = vadd.xlane.f32.xlu2 %v1079_v28  ;;  %1134 = vadd.xlane.f32.xlu0 %v1074_v60  ;;  %v988_v28 = vmul.f32 %v5913_v3, %v4543_v42  ;;  %v1078_v6 = vmul.f32 %v6037_v56, %v6037_v56 }
 0x1ff   :  { %v967_v62 = vpop.xlane.xlu1 %966 }
 0x200   :  { %v1008_v24 = vmul.f32 %v967_v62, %v4543_v42  ;;  %v977_v62 = vpop.xlane.xlu0 %976 }
 0x201   :  { %v1013_v4 = vmul.f32 %v977_v62, %v4543_v42 }
 0x202   :  { %v6004_v2 = vsub.f32 %v5838_v34, %v1008_v24 }
 0x203   :  { %v6060_v52 = vsub.f32 %v5817_v12, %v1013_v4  ;;  %v992_v12 = vmul.f32 %v5948_v51, %v4543_v42 }
 0x204   :  { %v1080_v47 = vmul.f32 %v6004_v2, %v6004_v2 }
 0x206   :  { %1108 = vadd.xlane.f32.xlu2 %v1061_v33  ;;  %1146 = vadd.xlane.f32.xlu1 %v1080_v47 }
 0x207   :  { %1136 = vadd.xlane.f32.xlu0 %v1075_v55  ;;  %v969_v61 = vpop.xlane.xlu1 %968  ;;  %v9322_v55 = vld [vmem:[#allocation24_spill] sm:$0xff] }
 0x208   :  { %v1009_v34 = vmul.f32 %v969_v61, %v4543_v42  ;;  %v1089_v47 = vpop.xlane.xlu2 %1088  ;;  %v1085_v61 = vmul.f32 %v6060_v52, %v6060_v52 }
 0x209   :  { %v1159_v51 = vmul.f32 %v1089_v47, %v4543_v42 }
 0x20a   :  { %v6023_v29 = vsub.f32 %v5850_v19, %v1009_v34  ;;  %v6034_v19 = vsub.f32 %v5788_v27, %v1011_v49  ;;  %v9321_v27 = vld [vmem:[#allocation21_spill] sm:$0xff]  ;;  %v1087_v49 = vpop.xlane.xlu0 %1086 }
 0x20b   :  { %v6047_v24 = vsub.f32 %v9321_v27, %v988_v28  ;;  %v6091_v62 = vadd.f32 1e-08, %v1159_v51 }
 0x20c   :  { %v1081_v37 = vmul.f32 %v6023_v29, %v6023_v29  ;;  %v1083_v1 = vmul.f32 %v6034_v19, %v6034_v19 }
 0x20d   :  { %v1060_v33 = vmul.f32 %v6047_v24, %v6047_v24  ;;  %vm1246_vm5 = vweird.f32 %v6091_v62 }
 0x20e   :  { %1148 = vadd.xlane.f32.xlu2 %v1081_v37  ;;  %1112 = vadd.xlane.f32.xlu1 %v1063_v54  ;;  %v1158_v54 = vmul.f32 %v1087_v49, %v4543_v42  ;;  %v995_v49 = vmul.f32 %v5939_v57, %v4543_v42 }
 0x20f   :  { %1138 = vadd.xlane.f32.xlu0 %v1076_v15  ;;  %v971_v20 = vpop.xlane.xlu1 %970 }
 0x210   :  { %v1010_v34 = vmul.f32 %v971_v20, %v4543_v42  ;;  %v1091_v37 = vpop.xlane.xlu2 %1090  ;;  %v1194_v15 = vadd.f32 1e-08, %v1158_v54  ;;  %v6079_v20 = vsub.f32 %v5655_v25, %v992_v12  ;;  %v994_v25 = vmul.f32 %v5957_v43, %v4543_v42 }
 0x211   :  { %v6122_v57 = vsub.f32 %v5538_v59, %v995_v49 }
 0x212   :  { %v6071_v23 = vsub.f32 %v5868_v26, %v1010_v34  ;;  %v993_v26 = vmul.f32 %v5927_v45, %v4543_v42  ;;  %3992 = vrsqrt.f32 %v1194_v15  ;;  %v1064_v28 = vmul.f32 %v6079_v20, %v6079_v20 }
 0x213   :  { %3994 = vrsqrt.f32 %v6091_v62  ;;  %9325 = vst [vmem:[#allocation2_spill] sm:$0xff] %v6122_v57  ;;  %v1067_v59 = vmul.f32 %v6122_v57, %v6122_v57  ;;  %vm1236_vm12 = vweird.f32 %v1194_v15 }
 0x214   :  { %v1082_v5 = vmul.f32 %v6071_v23, %v6071_v23 }
 0x216   :  { %1152 = vadd.xlane.f32.xlu2 %v1083_v1 }
 0x217   :  { %1142 = vadd.xlane.f32.xlu0 %v1078_v6  ;;  %v975_v22 = vpop.xlane.xlu1 %974  ;;  %v9323_v6 = vld [vmem:[#allocation25_spill] sm:$0xff] }
 0x218   :  { %v1012_v60 = vmul.f32 %v975_v22, %v4543_v42  ;;  %v1093_v1 = vpop.xlane.xlu2 %1092  ;;  %v6087_v22 = vsub.f32 %v9323_v6, %v993_v26 }
 0x21a   :  { %v6050_v14 = vsub.f32 %v5882_v32, %v1012_v60  ;;  %v6063_v32 = vsub.f32 %v9322_v55, %v990_v0  ;;  %v6089_v60 = vpop.eup %3992  ;;  %v1065_v45 = vmul.f32 %v6087_v22, %v6087_v22  ;;  %v6102_v55 = vsub.f32 %v5740_v48, %v994_v25 }
 0x21b   :  { %v1231_v4 = vmul.f32 %v6089_v60, %v1194_v15  ;;  %vm1237_vm0 = vweird.f32 %v6089_v60 }
 0x21c   :  { %v1084_v3 = vmul.f32 %v6050_v14, %v6050_v14  ;;  %v1062_v18 = vmul.f32 %v6063_v32, %v6063_v32  ;;  %9324 = vst [vmem:[#allocation6_spill] sm:$0xff] %v6102_v55  ;;  %v1066_v12 = vmul.f32 %v6102_v55, %v6102_v55  ;;  %vm6142_vm13 = vmor %vm1236_vm12, %vm1237_vm0 }
 0x21d   :  { %v1232_v43 = vmul.f32 %v6089_v60, %v1231_v4 }
 0x21e   :  { %1154 = vadd.xlane.f32.xlu2 %v1084_v3 }
 0x21f   :  { %1106 = vadd.xlane.f32.xlu0 %v1060_v33  ;;  %v1161_v33 = vmul.f32 %v1093_v1, %v4543_v42  ;;  %v1233_v54 = vmul.f32 0.5, %v1232_v43 }
 0x220   :  { %v1095_v3 = vpop.xlane.xlu2 %1094 }
 0x221   :  { %v6106_v34 = vadd.f32 1e-08, %v1161_v33  ;;  %v1162_v26 = vmul.f32 %v1095_v3, %v4543_v42  ;;  %v1234_v25 = vsub.f32 1.5, %v1233_v54 }
 0x223   :  { %v1235_v43 = vmul.f32 %v6089_v60, %v1234_v25  ;;  %vm1266_vm10 = vweird.f32 %v6106_v34 }
 0x226   :  { %1156 = vadd.xlane.f32.xlu2 %v1085_v61  ;;  %v1160_v61 = vmul.f32 %v1091_v37, %v4543_v42 }
 0x227   :  { %1110 = vadd.xlane.f32.xlu0 %v1062_v18  ;;  %v6108_v18 = vpop.eup %3994 }
 0x228   :  { %v1241_v37 = vmul.f32 %v6108_v18, %v6091_v62  ;;  %vm1247_vm2 = vweird.f32 %v6108_v18 }
 0x229   :  { %vm6189_vm7 = vmor %vm1246_vm5, %vm1247_vm2 }
 0x22a   :  { %v1242_v4 = vmul.f32 %v6108_v18, %v1241_v37 }
 0x22f   :  { %1150 = vadd.xlane.f32.xlu0 %v1082_v5  ;;  %v6114_v5 = vadd.f32 1e-08, %v1160_v61 }
 0x231   :  { %vm1256_vm15 = vweird.f32 %v6114_v5 }
 0x237   :  { %1114 = vadd.xlane.f32.xlu0 %v1064_v28  ;;  %v1097_v28 = vpop.xlane.xlu2 %1096 }
 0x238   :  { %v1163_v37 = vmul.f32 %v1097_v28, %v4543_v42 }
 0x239   :  { %v1123_v27 = vpop.xlane.xlu1 %1122 }
 0x23a   :  { %v1176_v0 = vmul.f32 %v1123_v27, %v4543_v42 }
 0x23c   :  { %v1212_v47 = vadd.f32 1e-08, %v1176_v0  ;;  %v6128_v0 = vadd.f32 1e-08, %v1162_v26 }
 0x23e   :  { %3996 = vrsqrt.f32 %v1212_v47  ;;  %vm1416_vm14 = vweird.f32 %v1212_v47 }
 0x23f   :  { %1116 = vadd.xlane.f32.xlu0 %v1065_v45  ;;  %3998 = vrsqrt.f32 %v6106_v34  ;;  %v1099_v15 = vpop.xlane.xlu2 %1098 }
 0x240   :  { %4000 = vrsqrt.f32 %v6114_v5 }
 0x244   :  { %v3997_v1 = vpop.eup %3996 }
 0x245   :  { %v1125_v48 = vpop.xlane.xlu1 %1124  ;;  %v1411_v6 = vmul.f32 %v3997_v1, %v1212_v47  ;;  %v6131_v3 = vpop.eup %3998  ;;  %vm1417_vm1 = vweird.f32 %v3997_v1 }
 0x246   :  { %v1177_v51 = vmul.f32 %v1125_v48, %v4543_v42  ;;  %v6137_v49 = vpop.eup %4000  ;;  %v1261_v54 = vmul.f32 %v6131_v3, %v6106_v34  ;;  %vm1418_vm4 = vmor %vm1416_vm14, %vm1417_vm1  ;;  %vm1267_vm11 = vweird.f32 %v6131_v3 }
 0x247   :  { %1118 = vadd.xlane.f32.xlu0 %v1066_v12  ;;  %v1412_v27 = vmul.f32 %v3997_v1, %v1411_v6  ;;  %v1243_v12 = vmul.f32 0.5, %v1242_v4  ;;  %v1239_v6 = vsel %vm6142_vm13, %v6089_v60, %v1235_v43  ;;  %v6159_v60 = vld [vmem:[%s9093_s3] ss:$0 sm:$0xff]  ;;  %v6161_v43 = vadd.f32 1e-08, %v1163_v37  ;;  %v1101_v55 = vpop.xlane.xlu2 %1100  ;;  %vm6240_vm0 = vmor %vm1266_vm10, %vm1267_vm11 }
 0x248   :  { %v6125_v45 = vadd.f32 1e-08, %v1177_v51  ;;  %v1262_v28 = vmul.f32 %v6131_v3, %v1261_v54  ;;  %vm1257_vm9 = vweird.f32 %v6137_v49 }
 0x249   :  { %v1413_v33 = vmul.f32 0.5, %v1412_v27  ;;  %v1251_v27 = vmul.f32 %v6137_v49, %v6114_v5  ;;  %v1244_v57 = vsub.f32 1.5, %v1243_v12  ;;  %vm6261_vm12 = vmor %vm1256_vm15, %vm1257_vm9 }
 0x24a   :  { %4002 = vrsqrt.f32 %v6125_v45  ;;  %vm1426_vm6 = vweird.f32 %v6125_v45 }
 0x24b   :  { %v1414_v61 = vsub.f32 1.5, %v1413_v33  ;;  %4004 = vrsqrt.f32 %v6128_v0  ;;  %v1252_v54 = vmul.f32 %v6137_v49, %v1251_v27  ;;  %v1245_v37 = vmul.f32 %v6108_v18, %v1244_v57 }
 0x24d   :  { %v1415_v26 = vmul.f32 %v3997_v1, %v1414_v61  ;;  %v1249_v62 = vsel %vm6189_vm7, %v6108_v18, %v1245_v37 }
 0x24f   :  { %1120 = vadd.xlane.f32.xlu0 %v1067_v59  ;;  %v1419_v4 = vsel %vm1418_vm4, %v3997_v1, %v1415_v26  ;;  %v1590_v26 = vmul.f32 %v1239_v6, %v5828_v39  ;;  %vm1276_vm4 = vweird.f32 %v6128_v0 }
 0x250   :  { %v4003_v51 = vpop.eup %4002  ;;  %v1608_v47 = vmul.f32 %v1419_v4, %v5920_v63  ;;  %v6172_v63 = vld [vmem:[%s9094_s4] ss:$0 sm:$0xff]  ;;  %v1263_v4 = vmul.f32 0.5, %v1262_v28 }
 0x251   :  { %v1127_v25 = vpop.xlane.xlu0 %1126  ;;  %v1421_v33 = vmul.f32 %v4003_v51, %v6125_v45  ;;  %v6165_v1 = vpop.eup %4004  ;;  %vm1427_vm3 = vweird.f32 %v4003_v51  ;;  %v1627_v28 = vmul.f32 %v6159_v60, %v1590_v26 }
 0x252   :  { %v1178_v59 = vmul.f32 %v1127_v25, %v4543_v42  ;;  %v1645_v12 = vmul.f32 %v6159_v60, %v1608_v47  ;;  %v1271_v39 = vmul.f32 %v6165_v1, %v6128_v0  ;;  %v1264_v11 = vsub.f32 1.5, %v1263_v4  ;;  %vm1428_vm8 = vmor %vm1426_vm6, %vm1427_vm3 }
 0x253   :  { %v1422_v61 = vmul.f32 %v4003_v51, %v1421_v33  ;;  %v1664_v18 = vadd.f32 %v6172_v63, %v1627_v28  ;;  %v1591_v4 = vmul.f32 %v1249_v62, %v5854_v10  ;;  %vm1277_vm2 = vweird.f32 %v6165_v1 }
 0x254   :  { %v6163_v48 = vadd.f32 1e-08, %v1178_v59  ;;  %v1682_v33 = vadd.f32 %v6172_v63, %v1645_v12  ;;  %v4238_v59 = vld [vmem:[%s9090_s0 + $0x90] sm:$0xff]  ;;  %vm6304_vm3 = vmor %vm1276_vm4, %vm1277_vm2 }
 0x255   :  { %v1423_v25 = vmul.f32 0.5, %v1422_v61  ;;  %v1253_v61 = vmul.f32 0.5, %v1252_v54  ;;  %v1164_v54 = vmul.f32 %v1099_v15, %v4543_v42  ;;  %v1265_v15 = vmul.f32 %v6131_v3, %v1264_v11 }
 0x256   :  { %4006 = vrsqrt.f32 %v6163_v48  ;;  %v6186_v57 = vadd.f32 %v4238_v59, %v1682_v33  ;;  %v1272_v33 = vmul.f32 %v6165_v1, %v1271_v39  ;;  %vm1436_vm13 = vweird.f32 %v6163_v48 }
 0x257   :  { %4008 = vrsqrt.f32 %v6161_v43  ;;  %v1424_v6 = vsub.f32 1.5, %v1423_v25  ;;  %v1254_v47 = vsub.f32 1.5, %v1253_v61  ;;  %v6219_v28 = vadd.f32 1e-08, %v1164_v54 }
 0x258   :  { %9328 = vst [vmem:[#allocation4_spill] sm:$0xff] %v6186_v57  ;;  %1774 = vadd.xlane.f32.xlu0 %v6186_v57  ;;  %v1273_v39 = vmul.f32 0.5, %v1272_v33  ;;  %v1165_v33 = vmul.f32 %v1101_v55, %v4543_v42  ;;  %v4240_v55 = vld [vmem:[%s9090_s0 + $0x98] sm:$0xff]  ;;  %v1269_v34 = vsel %vm6240_vm0, %v6131_v3, %v1265_v15 }
 0x259   :  { %v1129_v27 = vpop.xlane.xlu0 %1128  ;;  %v1425_v12 = vmul.f32 %v4003_v51, %v1424_v6  ;;  %v1255_v11 = vmul.f32 %v6137_v49, %v1254_v47  ;;  %vm1296_vm2 = vweird.f32 %v6219_v28 }
 0x25a   :  { %v1179_v25 = vmul.f32 %v1129_v27, %v4543_v42 }
 0x25b   :  { %v1429_v6 = vsel %vm1428_vm8, %v4003_v51, %v1425_v12  ;;  %v1259_v15 = vsel %vm6261_vm12, %v6137_v49, %v1255_v11  ;;  %vm1286_vm8 = vweird.f32 %v6161_v43 }
 0x25c   :  { %v6199_v26 = vpop.eup %4006  ;;  %v6203_v59 = vadd.f32 1e-08, %v1179_v25  ;;  %v1609_v45 = vmul.f32 %v1429_v6, %v5935_v46  ;;  %v4239_v6 = vld [vmem:[%s9090_s0] sm:$0xff] }
 0x25d   :  { %v1431_v27 = vmul.f32 %v6199_v26, %v6163_v48  ;;  %v6209_v37 = vpop.eup %4008  ;;  %vm1437_vm1 = vweird.f32 %v6199_v26  ;;  %v1593_v48 = vmul.f32 %v1269_v34, %v5877_v7 }
 0x25e   :  { %4010 = vrsqrt.f32 %v6203_v59  ;;  %v1646_v46 = vmul.f32 %v6159_v60, %v1609_v45  ;;  %v1281_v10 = vmul.f32 %v6209_v37, %v6161_v43  ;;  %v6229_v45 = vadd.f32 %v4239_v6, %v1664_v18  ;;  %vm1438_vm14 = vmor %vm1436_vm13, %vm1437_vm1 }
 0x25f   :  { %v1432_v51 = vmul.f32 %v6199_v26, %v1431_v27  ;;  %v1628_v27 = vmul.f32 %v6159_v60, %v1591_v4  ;;  %v1274_v4 = vsub.f32 1.5, %v1273_v39  ;;  %4012 = vrsqrt.f32 %v6219_v28 }
 0x260   :  { %v1683_v62 = vadd.f32 %v6172_v63, %v1646_v46  ;;  %9331 = vst [vmem:[#allocation3_spill] sm:$0xff] %v6229_v45  ;;  %1738 = vadd.xlane.f32.xlu0 %v6229_v45  ;;  %v6274_v39 = vadd.f32 1e-08, %v1165_v33  ;;  %vm1446_vm7 = vweird.f32 %v6203_v59  ;;  %vm1287_vm9 = vweird.f32 %v6209_v37 }
 0x261   :  { %v6221_v12 = vpop.xlane.xlu1 %1140  ;;  %v1433_v61 = vmul.f32 0.5, %v1432_v51  ;;  %v1131_v25 = vpop.xlane.xlu0 %1130  ;;  %vm6380_vm11 = vmor %vm1286_vm8, %vm1287_vm9 }
 0x262   :  { %v1180_v54 = vmul.f32 %v1131_v25, %v4543_v42  ;;  %v6248_v47 = vadd.f32 %v4240_v55, %v1683_v62  ;;  %v1282_v25 = vmul.f32 %v6209_v37, %v1281_v10  ;;  %v1103_v62 = vpop.xlane.xlu2 %1102  ;;  %v1665_v10 = vadd.f32 %v6172_v63, %v1628_v27 }
 0x263   :  { %v1434_v18 = vsub.f32 1.5, %v1433_v61  ;;  %v1166_v49 = vmul.f32 %v1103_v62, %v4543_v42  ;;  %v1592_v55 = vmul.f32 %v1259_v15, %v5863_v13 }
 0x264   :  { %9334 = vst [vmem:[#allocation8_spill] sm:$0xff] %v6248_v47  ;;  %v6251_v5 = vpop.eup %4010  ;;  %v6257_v46 = vadd.f32 1e-08, %v1180_v54  ;;  %1776 = vadd.xlane.f32.xlu2 %v6248_v47  ;;  %v1283_v27 = vmul.f32 0.5, %v1282_v25 }
 0x265   :  { %v1435_v6 = vmul.f32 %v6199_v26, %v1434_v18  ;;  %v1441_v3 = vmul.f32 %v6251_v5, %v6203_v59  ;;  %v1275_v18 = vmul.f32 %v6165_v1, %v1274_v4  ;;  %v6290_v45 = vpop.eup %4012  ;;  %v4241_v4 = vld [vmem:[%s9090_s0 + $0x8] sm:$0xff]  ;;  %vm1447_vm5 = vweird.f32 %v6251_v5 }
 0x266   :  { %4014 = vrsqrt.f32 %v6257_v46  ;;  %v6297_v62 = vadd.f32 %v4241_v4, %v1665_v10  ;;  %vm1448_vm6 = vmor %vm1446_vm7, %vm1447_vm5  ;;  %vm1456_vm15 = vweird.f32 %v6257_v46  ;;  %vm1297_vm5 = vweird.f32 %v6290_v45 }
 0x267   :  { %v1439_v54 = vsel %vm1438_vm14, %v6199_v26, %v1435_v6  ;;  %v1442_v51 = vmul.f32 %v6251_v5, %v1441_v3  ;;  %4016 = vrsqrt.f32 %v6274_v39  ;;  %v1630_v3 = vmul.f32 %v6159_v60, %v1593_v48 }
 0x268   :  { %v1610_v11 = vmul.f32 %v1439_v54, %v5943_v40  ;;  %9337 = vst [vmem:[#allocation10_spill] sm:$0xff] %v6297_v62  ;;  %v1279_v10 = vsel %vm6304_vm3, %v6165_v1, %v1275_v18  ;;  %v6317_v54 = vadd.f32 1e-08, %v1166_v49  ;;  %v1284_v48 = vsub.f32 1.5, %v1283_v27 }
 0x269   :  { %v1105_v33 = vpop.xlane.xlu1 %1104  ;;  %v1443_v61 = vmul.f32 0.5, %v1442_v51  ;;  %v1133_v34 = vpop.xlane.xlu0 %1132  ;;  %v1291_v1 = vmul.f32 %v6290_v45, %v6219_v28  ;;  %v1629_v18 = vmul.f32 %v6159_v60, %v1592_v55  ;;  %v1667_v27 = vadd.f32 %v6172_v63, %v1630_v3 }
 0x26a   :  { %v1167_v7 = vmul.f32 %v1105_v33, %v4543_v42  ;;  %v1181_v26 = vmul.f32 %v1133_v34, %v4543_v42  ;;  %v1647_v40 = vmul.f32 %v6159_v60, %v1610_v11 }
 0x26b   :  { %v1444_v25 = vsub.f32 1.5, %v1443_v61  ;;  %v4242_v61 = vld [vmem:[%s9090_s0 + $0xa0] sm:$0xff]  ;;  %v1292_v3 = vmul.f32 %v6290_v45, %v1291_v1 }
 0x26c   :  { %v6309_v6 = vadd.f32 1e-08, %v1167_v7  ;;  %v6312_v15 = vpop.eup %4014  ;;  %v6319_v0 = vadd.f32 1e-08, %v1181_v26  ;;  %v1684_v51 = vadd.f32 %v6172_v63, %v1647_v40  ;;  %1740 = vadd.xlane.f32.xlu2 %v6297_v62 }
 0x26d   :  { %v1445_v11 = vmul.f32 %v6251_v5, %v1444_v25  ;;  %v1451_v33 = vmul.f32 %v6312_v15, %v6257_v46  ;;  %v6342_v34 = vpop.eup %4016  ;;  %v6352_v25 = vmul.f32 %v6209_v37, %v1284_v48  ;;  %vm1457_vm10 = vweird.f32 %v6312_v15 }
 0x26e   :  { %4018 = vrsqrt.f32 %v6309_v6  ;;  %v6339_v7 = vadd.f32 %v4242_v61, %v1684_v51  ;;  %v1301_v1 = vmul.f32 %v6342_v34, %v6274_v39  ;;  %vm1458_vm0 = vmor %vm1456_vm15, %vm1457_vm10  ;;  %v1185_v46 = vmul.f32 %v6221_v12, %v4543_v42 }
 0x26f   :  { %4020 = vrsqrt.f32 %v6319_v0  ;;  %v1449_v59 = vsel %vm1448_vm6, %v6251_v5, %v1445_v11  ;;  %v1452_v49 = vmul.f32 %v6312_v15, %v1451_v33  ;;  %v1594_v5 = vmul.f32 %v1279_v10, %v5889_v58  ;;  %v4243_v33 = vld [vmem:[%s9090_s0 + $0x18] sm:$0xff]  ;;  %vm6498_vm6 = vmor %vm1296_vm2, %vm1297_vm5 }
 0x270   :  { %4022 = vrsqrt.f32 %v6317_v54  ;;  %v1611_v55 = vmul.f32 %v1449_v59, %v5951_v53  ;;  %1778 = vadd.xlane.f32.xlu1 %v6339_v7  ;;  %v1666_v53 = vadd.f32 %v6172_v63, %v1629_v18  ;;  %v6365_v59 = vadd.f32 %v4243_v33, %v1667_v27 }
 0x271   :  { %v1145_v26 = vpop.xlane.xlu2 %1144  ;;  %v1453_v4 = vmul.f32 0.5, %v1452_v49  ;;  %v1135_v13 = vpop.xlane.xlu0 %1134  ;;  %v1289_v43 = vsel %vm6380_vm11, %v6209_v37, %v6352_v25  ;;  %v1293_v37 = vmul.f32 0.5, %v1292_v3  ;;  %v1302_v25 = vmul.f32 %v6342_v34, %v1301_v1  ;;  %v4245_v3 = vld [vmem:[%s9090_s0 + $0xa8] sm:$0xff] }
 0x272   :  { %v1187_v40 = vmul.f32 %v1145_v26, %v4543_v42  ;;  %v1182_v51 = vmul.f32 %v1135_v13, %v4543_v42  ;;  %9340 = vst [vmem:[#allocation11_spill] sm:$0xff] %v6365_v59  ;;  %v1648_v61 = vmul.f32 %v6159_v60, %v1611_v55  ;;  %v1631_v62 = vmul.f32 %v6159_v60, %v1594_v5 }
 0x273   :  { %v1454_v58 = vsub.f32 1.5, %v1453_v4  ;;  %vm1326_vm12 = vweird.f32 %v6309_v6  ;;  %vm1466_vm14 = vweird.f32 %v6319_v0  ;;  %vm1307_vm9 = vweird.f32 %v6342_v34 }
 0x274   :  { %v6357_v11 = vpop.eup %4018  ;;  %v6360_v10 = vadd.f32 1e-08, %v1187_v40  ;;  %v6373_v49 = vadd.f32 1e-08, %v1182_v51  ;;  %1744 = vadd.xlane.f32.xlu2 %v6365_v59 }
 0x275   :  { %v6367_v48 = vpop.eup %4020  ;;  %v1321_v18 = vmul.f32 %v6357_v11, %v6309_v6  ;;  %v1455_v27 = vmul.f32 %v6312_v15, %v1454_v58  ;;  %v4244_v58 = vld [vmem:[%s9090_s0 + $0x10] sm:$0xff]  ;;  %vm1327_vm1 = vweird.f32 %v6357_v11 }
 0x276   :  { %v1461_v4 = vmul.f32 %v6367_v48, %v6319_v0  ;;  %4024 = vrsqrt.f32 %v6360_v10  ;;  %v6390_v55 = vpop.eup %4022  ;;  %v6407_v33 = vadd.f32 %v4244_v58, %v1666_v53  ;;  %vm1467_vm13 = vweird.f32 %v6367_v48  ;;  %vm6440_vm4 = vmor %vm1326_vm12, %vm1327_vm1 }
 0x277   :  { %v1322_v40 = vmul.f32 %v6357_v11, %v1321_v18  ;;  %4026 = vrsqrt.f32 %v6373_v49  ;;  %v1459_v13 = vsel %vm1458_vm0, %v6312_v15, %v1455_v27  ;;  %v1685_v18 = vadd.f32 %v6172_v63, %v1648_v61  ;;  %vm6451_vm3 = vmor %vm1466_vm14, %vm1467_vm13 }
 0x278   :  { %v1462_v51 = vmul.f32 %v6367_v48, %v1461_v4  ;;  %9343 = vst [vmem:[#allocation7_spill] sm:$0xff] %v6407_v33  ;;  %v1311_v12 = vmul.f32 %v6390_v55, %v6317_v54  ;;  %v1612_v15 = vmul.f32 %v1459_v13, %v5960_v31  ;;  %1742 = vadd.xlane.f32.xlu1 %v6407_v33  ;;  %v6425_v31 = vadd.f32 1e-08, %v1185_v46 }
 0x279   :  { %v1323_v26 = vmul.f32 0.5, %v1322_v40  ;;  %v1109_v59 = vpop.xlane.xlu2 %1108  ;;  %v6420_v1 = vadd.f32 %v4245_v3, %v1685_v18  ;;  %vm1526_vm8 = vweird.f32 %v6360_v10  ;;  %vm1476_vm15 = vweird.f32 %v6373_v49 }
 0x27a   :  { %v1463_v27 = vmul.f32 0.5, %v1462_v51  ;;  %v1137_v4 = vpop.xlane.xlu0 %1136  ;;  %v1169_v0 = vmul.f32 %v1109_v59, %v4543_v42  ;;  %vm1306_vm0 = vweird.f32 %v6274_v39  ;;  %vm1317_vm13 = vweird.f32 %v6390_v55 }
 0x27b   :  { %v1324_v53 = vsub.f32 1.5, %v1323_v26  ;;  %9344 = vst [vmem:[#allocation16_spill] sm:$0xff] %v6420_v1  ;;  %v1183_v61 = vmul.f32 %v1137_v4, %v4543_v42  ;;  %1780 = vadd.xlane.f32.xlu0 %v6420_v1  ;;  %v1595_v4 = vmul.f32 %v1289_v43, %v5895_v21  ;;  %v1303_v43 = vmul.f32 0.5, %v1302_v25  ;;  %v4246_v25 = vld [vmem:[%s9090_s0 + $0x20] sm:$0xff]  ;;  %vm6553_vm12 = vmor %vm1306_vm0, %vm1307_vm9 }
 0x27c   :  { %v6423_v40 = vpop.eup %4024  ;;  %v1464_v13 = vsub.f32 1.5, %v1463_v27  ;;  %v1649_v27 = vmul.f32 %v6159_v60, %v1612_v15  ;;  %v1312_v15 = vmul.f32 %v6390_v55, %v1311_v12  ;;  %vm1316_vm14 = vweird.f32 %v6317_v54 }
 0x27d   :  { %v6429_v5 = vpop.eup %4026  ;;  %v1325_v51 = vmul.f32 %v6357_v11, %v1324_v53  ;;  %v1521_v58 = vmul.f32 %v6423_v40, %v6360_v10  ;;  %v6436_v26 = vadd.f32 1e-08, %v1183_v61  ;;  %v1668_v61 = vadd.f32 %v6172_v63, %v1631_v62 }
 0x27e   :  { %v1465_v46 = vmul.f32 %v6367_v48, %v1464_v13  ;;  %v1471_v18 = vmul.f32 %v6429_v5, %v6373_v49  ;;  %v1294_v13 = vsub.f32 1.5, %v1293_v37  ;;  %v6467_v37 = vadd.f32 1e-08, %v1169_v0  ;;  %v4248_v49 = vld [vmem:[%s9090_s0 + $0x28] sm:$0xff] }
 0x27f   :  { %v1522_v3 = vmul.f32 %v6423_v40, %v1521_v58  ;;  %v1329_v33 = vsel %vm6440_vm4, %v6357_v11, %v1325_v51  ;;  %4028 = vrsqrt.f32 %v6436_v26  ;;  %v1686_v11 = vadd.f32 %v6172_v63, %v1649_v27  ;;  %vm6585_vm4 = vmor %vm1316_vm14, %vm1317_vm13 }
 0x280   :  { %v1469_v59 = vsel %vm6451_vm3, %v6367_v48, %v1465_v46  ;;  %v1472_v21 = vmul.f32 %v6429_v5, %v1471_v18  ;;  %4030 = vrsqrt.f32 %v6425_v31  ;;  %v1599_v6 = vmul.f32 %v1329_v33, %v5972_v36  ;;  %v4247_v18 = vld [vmem:[%s9090_s0 + $0xb0] sm:$0xff] }
 0x281   :  { %v1523_v1 = vmul.f32 0.5, %v1522_v3  ;;  %v1149_v58 = vpop.xlane.xlu2 %1148  ;;  %v1613_v48 = vmul.f32 %v1469_v59, %v5975_v44  ;;  %v6475_v12 = vadd.f32 %v4246_v25, %v1668_v61  ;;  %v6481_v0 = vadd.f32 %v4247_v18, %v1686_v11 }
 0x282   :  { %v1473_v62 = vmul.f32 0.5, %v1472_v21  ;;  %v1139_v51 = vpop.xlane.xlu0 %1138  ;;  %v1632_v36 = vmul.f32 %v6159_v60, %v1595_v4  ;;  %v1295_v44 = vmul.f32 %v6290_v45, %v1294_v13  ;;  %vm1527_vm7 = vweird.f32 %v6423_v40  ;;  %v4249_v4 = vld [vmem:[%s9090_s0 + $0x48] sm:$0xff] }
 0x283   :  { %v1524_v46 = vsub.f32 1.5, %v1523_v1  ;;  %9349 = vst [vmem:[#allocation9_spill] sm:$0xff] %v6475_v12  ;;  %v1184_v27 = vmul.f32 %v1139_v51, %v4543_v42  ;;  %1746 = vadd.xlane.f32.xlu0 %v6475_v12  ;;  %v1304_v53 = vsub.f32 1.5, %v1303_v43  ;;  %v1313_v3 = vmul.f32 0.5, %v1312_v15  ;;  %1782 = vadd.xlane.f32.xlu1 %v6481_v0  ;;  %vm6510_vm10 = vmor %vm1526_vm8, %vm1527_vm7 }
 0x284   :  { %9350 = vst [vmem:[#allocation15_spill] sm:$0xff] %v6481_v0  ;;  %v1474_v1 = vsub.f32 1.5, %v1473_v62  ;;  %4032 = vrsqrt.f32 %v6467_v37  ;;  %v1189_v61 = vmul.f32 %v1149_v58, %v4543_v42  ;;  %v1636_v13 = vmul.f32 %v6159_v60, %v1599_v6 }
 0x285   :  { %v1525_v33 = vmul.f32 %v6423_v40, %v1524_v46  ;;  %v6492_v59 = vpop.eup %4028  ;;  %v1650_v21 = vmul.f32 %v6159_v60, %v1613_v48  ;;  %v6516_v58 = vadd.f32 1e-08, %v1184_v27  ;;  %v1669_v10 = vadd.f32 %v6172_v63, %v1632_v36 }
 0x286   :  { %v6505_v43 = vpop.eup %4030  ;;  %v1481_v28 = vmul.f32 %v6492_v59, %v6436_v26  ;;  %v1299_v62 = vsel %vm6498_vm6, %v6290_v45, %v1295_v44  ;;  %v1475_v51 = vmul.f32 %v6429_v5, %v1474_v1  ;;  %vm1477_vm11 = vweird.f32 %v6429_v5 }
 0x287   :  { %v1529_v11 = vsel %vm6510_vm10, %v6423_v40, %v1525_v33  ;;  %v1305_v48 = vmul.f32 %v6342_v34, %v1304_v53  ;;  %v1314_v46 = vsub.f32 1.5, %v1313_v3  ;;  %v6529_v18 = vadd.f32 1e-08, %v1189_v61  ;;  %vm6540_vm1 = vmor %vm1476_vm15, %vm1477_vm11 }
 0x288   :  { %v1482_v25 = vmul.f32 %v6492_v59, %v1481_v28  ;;  %v1501_v45 = vmul.f32 %v6505_v43, %v6425_v31  ;;  %v1673_v40 = vadd.f32 %v6172_v63, %v1636_v13  ;;  %v1687_v36 = vadd.f32 %v6172_v63, %v1650_v21  ;;  %v4250_v28 = vld [vmem:[%s9090_s0 + $0xb8] sm:$0xff] }
 0x289   :  { %v1153_v6 = vpop.xlane.xlu2 %1152  ;;  %v1619_v33 = vmul.f32 %v1529_v11, %v5987_v50  ;;  %4034 = vrsqrt.f32 %v6516_v58  ;;  %v6548_v53 = vadd.f32 %v4248_v49, %v1669_v10  ;;  %v1596_v3 = vmul.f32 %v1299_v62, %v5903_v9 }
 0x28a   :  { %v1143_v27 = vpop.xlane.xlu0 %1142  ;;  %v6536_v44 = vpop.eup %4032  ;;  %v1479_v50 = vsel %vm6540_vm1, %v6429_v5, %v1475_v51  ;;  %v1483_v61 = vmul.f32 0.5, %v1482_v25  ;;  %v6563_v13 = vadd.f32 %v4249_v4, %v1673_v40  ;;  %v1309_v9 = vsel %vm6553_vm12, %v6342_v34, %v1305_v48 }
 0x28b   :  { %9357 = vst [vmem:[#allocation13_spill] sm:$0xff] %v6548_v53  ;;  %v1315_v21 = vmul.f32 %v6390_v55, %v1314_v46  ;;  %4036 = vrsqrt.f32 %v6529_v18  ;;  %1748 = vadd.xlane.f32.xlu1 %v6548_v53  ;;  %v1502_v5 = vmul.f32 %v6505_v43, %v1501_v45  ;;  %v1341_v15 = vmul.f32 %v6536_v44, %v6467_v37  ;;  %v1147_v48 = vpop.xlane.xlu1 %1146 }
 0x28c   :  { %9360 = vst [vmem:[#allocation14_spill] sm:$0xff] %v6563_v13  ;;  %1756 = vadd.xlane.f32.xlu0 %v6563_v13  ;;  %v6579_v34 = vadd.f32 %v4250_v28, %v1687_v36  ;;  %v1186_v10 = vmul.f32 %v1143_v27, %v4543_v42  ;;  %v1614_v62 = vmul.f32 %v1479_v50, %v5984_v17  ;;  %v1484_v46 = vsub.f32 1.5, %v1483_v61 }
 0x28d   :  { %v1656_v11 = vmul.f32 %v6159_v60, %v1619_v33  ;;  %v1191_v25 = vmul.f32 %v1153_v6, %v4543_v42  ;;  %v1597_v27 = vmul.f32 %v1309_v9, %v5909_v38  ;;  %v1319_v17 = vsel %vm6585_vm4, %v6390_v55, %v1315_v21 }
 0x28e   :  { %9361 = vst [vmem:[#allocation12_spill] sm:$0xff] %v6579_v34  ;;  %1784 = vadd.xlane.f32.xlu2 %v6579_v34  ;;  %v1503_v36 = vmul.f32 0.5, %v1502_v5  ;;  %v1342_v33 = vmul.f32 %v6536_v44, %v1341_v15  ;;  %v6598_v1 = vadd.f32 1e-08, %v1186_v10  ;;  %v1633_v49 = vmul.f32 %v6159_v60, %v1596_v3  ;;  %v4251_v3 = vld [vmem:[%s9090_s0 + $0xe8] sm:$0xff] }
 0x28f   :  { %v6591_v45 = vpop.eup %4034  ;;  %v1188_v6 = vmul.f32 %v1147_v48, %v4543_v42  ;;  %vm1487_vm2 = vweird.f32 %v6492_v59  ;;  %v1693_v38 = vadd.f32 %v6172_v63, %v1656_v11  ;;  %v1651_v50 = vmul.f32 %v6159_v60, %v1614_v62  ;;  %v4252_v48 = vld [vmem:[%s9090_s0 + $0xc0] sm:$0xff] }
 0x290   :  { %v1485_v55 = vmul.f32 %v6492_v59, %v1484_v46  ;;  %v1491_v61 = vmul.f32 %v6591_v45, %v6516_v58  ;;  %v6610_v4 = vadd.f32 1e-08, %v1191_v25  ;;  %4038 = vrsqrt.f32 %v6598_v1 }
 0x291   :  { %v1155_v54 = vpop.xlane.xlu2 %1154  ;;  %v6601_v39 = vpop.eup %4036  ;;  %v6616_v9 = vadd.f32 %v4251_v3, %v1693_v38  ;;  %v1688_v21 = vadd.f32 %v6172_v63, %v1651_v50  ;;  %v1634_v15 = vmul.f32 %v6159_v60, %v1597_v27  ;;  %v1343_v28 = vmul.f32 0.5, %v1342_v33 }
 0x292   :  { %v1107_v40 = vpop.xlane.xlu0 %1106  ;;  %v1192_v5 = vmul.f32 %v1155_v54, %v4543_v42  ;;  %vm1486_vm3 = vweird.f32 %v6436_v26  ;;  %v1541_v10 = vmul.f32 %v6601_v39, %v6529_v18  ;;  %v1598_v62 = vmul.f32 %v1319_v17, %v5925_v30 }
 0x293   :  { %9364 = vst [vmem:[#allocation17_spill] sm:$0xff] %v6616_v9  ;;  %v6625_v11 = vadd.f32 1e-08, %v1188_v6  ;;  %vm6629_vm5 = vmor %vm1486_vm3, %vm1487_vm2  ;;  %v6637_v26 = vadd.f32 %v4252_v48, %v1688_v21  ;;  %v1504_v46 = vsub.f32 1.5, %v1503_v36  ;;  %v1492_v25 = vmul.f32 %v6591_v45, %v1491_v61 }
 0x294   :  { %1796 = vadd.xlane.f32.xlu0 %v6616_v9  ;;  %v1489_v30 = vsel %vm6629_vm5, %v6492_v59, %v1485_v55  ;;  %4040 = vrsqrt.f32 %v6610_v4  ;;  %vm1506_vm7 = vweird.f32 %v6425_v31  ;;  %v6646_v27 = vadd.f32 1e-08, %v1192_v5 }
 0x295   :  { %9367 = vst [vmem:[#allocation19_spill] sm:$0xff] %v6637_v26  ;;  %1786 = vadd.xlane.f32.xlu1 %v6637_v26  ;;  %v1670_v17 = vadd.f32 %v6172_v63, %v1633_v49  ;;  %v1671_v33 = vadd.f32 %v6172_v63, %v1634_v15  ;;  %v1344_v6 = vsub.f32 1.5, %v1343_v28  ;;  %v1542_v59 = vmul.f32 %v6601_v39, %v1541_v10 }
 0x296   :  { %v6650_v36 = vpop.eup %4038  ;;  %v1168_v38 = vmul.f32 %v1107_v40, %v4543_v42  ;;  %vm1507_vm6 = vweird.f32 %v6505_v43  ;;  %4042 = vrsqrt.f32 %v6625_v11  ;;  %v1615_v55 = vmul.f32 %v1489_v30, %v6001_v35  ;;  %v4253_v35 = vld [vmem:[%s9090_s0 + $0x30] sm:$0xff] }
 0x297   :  { %v1511_v49 = vmul.f32 %v6650_v36, %v6598_v1  ;;  %v6661_v3 = vmul.f32 %v6505_v43, %v1504_v46  ;;  %v1493_v21 = vmul.f32 0.5, %v1492_v25  ;;  %v1635_v40 = vmul.f32 %v6159_v60, %v1598_v62  ;;  %v1113_v46 = vpop.xlane.xlu1 %1112  ;;  %vm6684_vm9 = vmor %vm1506_vm7, %vm1507_vm6 }
 0x298   :  { %vm1347_vm8 = vweird.f32 %v6536_v44  ;;  %4044 = vrsqrt.f32 %v6646_v27  ;;  %v6672_v28 = vadd.f32 %v4253_v35, %v1670_v17  ;;  %v1345_v51 = vmul.f32 %v6536_v44, %v1344_v6  ;;  %v4254_v6 = vld [vmem:[%s9090_s0 + $0x38] sm:$0xff] }
 0x299   :  { %v1157_v61 = vpop.xlane.xlu2 %1156  ;;  %v1512_v15 = vmul.f32 %v6650_v36, %v1511_v49  ;;  %v1543_v48 = vmul.f32 0.5, %v1542_v59  ;;  %v6677_v30 = vadd.f32 1e-08, %v1168_v38  ;;  %v6693_v59 = vadd.f32 %v4254_v6, %v1671_v33 }
 0x29a   :  { %v1111_v54 = vpop.xlane.xlu0 %1110  ;;  %9368 = vst [vmem:[#allocation20_spill] sm:$0xff] %v6672_v28  ;;  %v6674_v10 = vpop.eup %4040  ;;  %v1193_v62 = vmul.f32 %v1157_v61, %v4543_v42  ;;  %v1509_v31 = vsel %vm6684_vm9, %v6505_v43, %v6661_v3  ;;  %vm1346_vm10 = vweird.f32 %v6467_v37  ;;  %v1494_v38 = vsub.f32 1.5, %v1493_v21 }
 0x29b   :  { %v1170_v50 = vmul.f32 %v1111_v54, %v4543_v42  ;;  %v1513_v17 = vmul.f32 0.5, %v1512_v15  ;;  %v1652_v54 = vmul.f32 %v6159_v60, %v1615_v55  ;;  %9371 = vst [vmem:[#allocation18_spill] sm:$0xff] %v6693_v59  ;;  %vm6707_vm11 = vmor %vm1346_vm10, %vm1347_vm8  ;;  %v1171_v33 = vmul.f32 %v1113_v46, %v4543_v42 }
 0x29c   :  { %v6703_v49 = vpop.eup %4042  ;;  %v1561_v61 = vmul.f32 %v6674_v10, %v6610_v4  ;;  %vm1517_vm15 = vweird.f32 %v6650_v36  ;;  %v1349_v3 = vsel %vm6707_vm11, %v6536_v44, %v1345_v51  ;;  %v1544_v21 = vsub.f32 1.5, %v1543_v48 }
 0x29d   :  { %v6663_v5 = vadd.f32 1e-08, %v1170_v50  ;;  %v6701_v50 = vadd.f32 %v6172_v63, %v1635_v40  ;;  %v1514_v43 = vsub.f32 1.5, %v1513_v17  ;;  %1750 = vadd.xlane.f32.xlu1 %v6672_v28  ;;  %v6720_v40 = vadd.f32 1e-08, %v1193_v62 }
 0x29e   :  { %v6722_v15 = vpop.eup %4044  ;;  %vm1516_vm0 = vweird.f32 %v6598_v1  ;;  %v1689_v46 = vadd.f32 %v6172_v63, %v1652_v54  ;;  %v1531_v17 = vmul.f32 %v6703_v49, %v6625_v11  ;;  %v1495_v44 = vmul.f32 %v6591_v45, %v1494_v38 }
 0x29f   :  { %4046 = vrsqrt.f32 %v6663_v5  ;;  %v1515_v35 = vmul.f32 %v6650_v36, %v1514_v43  ;;  %vm1496_vm1 = vweird.f32 %v6516_v58  ;;  %vm1497_vm12 = vweird.f32 %v6591_v45  ;;  %vm1518_vm13 = vmor %vm1516_vm0, %vm1517_vm15 }
 0x2a0   :  { %4048 = vrsqrt.f32 %v6677_v30  ;;  %v1601_v1 = vmul.f32 %v1349_v3, %v5998_v41  ;;  %v1562_v48 = vmul.f32 %v6674_v10, %v1561_v61  ;;  %v1571_v58 = vmul.f32 %v6722_v15, %v6646_v27  ;;  %vm6750_vm4 = vmor %vm1496_vm1, %vm1497_vm12 }
 0x2a1   :  { %v1519_v62 = vsel %vm1518_vm13, %v6650_v36, %v1515_v35  ;;  %4050 = vrsqrt.f32 %v6720_v40  ;;  %v1545_v55 = vmul.f32 %v6601_v39, %v1544_v21  ;;  %vm1547_vm14 = vweird.f32 %v6601_v39 }
 0x2a2   :  { %v1151_v37 = vpop.xlane.xlu0 %1150  ;;  %v1618_v6 = vmul.f32 %v1519_v62, %v6037_v56  ;;  %v4255_v56 = vld [vmem:[%s9090_s0 + $0xc8] sm:$0xff]  ;;  %v6763_v43 = vmul.f32 %v1509_v31, %v5963_v8  ;;  %vm1546_vm2 = vweird.f32 %v6529_v18  ;;  %v6771_v35 = vadd.f32 1e-08, %v1171_v33 }
 0x2a3   :  { %v1190_v25 = vmul.f32 %v1151_v37, %v4543_v42  ;;  %v6757_v36 = vadd.f32 %v4255_v56, %v1689_v46  ;;  %v1499_v37 = vsel %vm6750_vm4, %v6591_v45, %v1495_v44  ;;  %v1563_v46 = vmul.f32 0.5, %v1562_v48  ;;  %vm6777_vm3 = vmor %vm1546_vm2, %vm1547_vm14 }
 0x2a4   :  { %v1655_v21 = vmul.f32 %v6159_v60, %v1618_v6  ;;  %v1638_v62 = vmul.f32 %v6159_v60, %v1601_v1  ;;  %v1572_v45 = vmul.f32 %v6722_v15, %v1571_v58  ;;  %v1532_v33 = vmul.f32 %v6703_v49, %v1531_v17  ;;  %v4256_v58 = vld [vmem:[%s9090_s0 + $0xe0] sm:$0xff] }
 0x2a5   :  { %v6735_v51 = vpop.eup %4046  ;;  %v6740_v54 = vadd.f32 1e-08, %v1190_v25  ;;  %9376 = vst [vmem:[#allocation22_spill] sm:$0xff] %v6757_v36  ;;  %1788 = vadd.xlane.f32.xlu1 %v6757_v36  ;;  %v1549_v48 = vsel %vm6777_vm3, %v6601_v39, %v1545_v55  ;;  %v1616_v1 = vmul.f32 %v1499_v37, %v6020_v16  ;;  %v1564_v16 = vsub.f32 1.5, %v1563_v46 }
 0x2a6   :  { %v1351_v38 = vmul.f32 %v6735_v51, %v6663_v5  ;;  %v6760_v61 = vpop.eup %4048  ;;  %v1692_v44 = vadd.f32 %v6172_v63, %v1655_v21  ;;  %vm1357_vm5 = vweird.f32 %v6735_v51  ;;  %vm1356_vm7 = vweird.f32 %v6663_v5 }
 0x2a7   :  { %4052 = vrsqrt.f32 %v6740_v54  ;;  %v1331_v6 = vmul.f32 %v6760_v61, %v6677_v30  ;;  %v1675_v39 = vadd.f32 %v6172_v63, %v1638_v62  ;;  %v1573_v55 = vmul.f32 0.5, %v1572_v45  ;;  %vm1358_vm6 = vmor %vm1356_vm7, %vm1357_vm5 }
 0x2a8   :  { %v1352_v3 = vmul.f32 %v6735_v51, %v1351_v38  ;;  %v6791_v38 = vpop.eup %4050  ;;  %v6797_v56 = vadd.f32 %v4256_v58, %v1692_v44  ;;  %4054 = vrsqrt.f32 %v6771_v35  ;;  %v1621_v8 = vmul.f32 %v1549_v48, %v6023_v29 }
 0x2a9   :  { %v1332_v46 = vmul.f32 %v6760_v61, %v1331_v6  ;;  %v1653_v5 = vmul.f32 %v6159_v60, %v1616_v1  ;;  %vm1566_vm8 = vweird.f32 %v6610_v4  ;;  %v1581_v62 = vmul.f32 %v6791_v38, %v6720_v40  ;;  %v4257_v1 = vld [vmem:[%s9090_s0 + $0x58] sm:$0xff] }
 0x2aa   :  { %v1115_v25 = vpop.xlane.xlu0 %1114  ;;  %v1353_v31 = vmul.f32 0.5, %v1352_v3  ;;  %9379 = vst [vmem:[#allocation23_spill] sm:$0xff] %v6797_v56  ;;  %1794 = vadd.xlane.f32.xlu2 %v6797_v56  ;;  %v1565_v44 = vmul.f32 %v6674_v10, %v1564_v16  ;;  %vm1567_vm9 = vweird.f32 %v6674_v10  ;;  %vm1576_vm10 = vweird.f32 %v6646_v27 }
 0x2ab   :  { %v1172_v18 = vmul.f32 %v1115_v25, %v4543_v42  ;;  %v6811_v25 = vmul.f32 0.5, %v1532_v33  ;;  %v1574_v33 = vsub.f32 1.5, %v1573_v55  ;;  %v1333_v58 = vmul.f32 0.5, %v1332_v46  ;;  %vm6845_vm11 = vmor %vm1566_vm8, %vm1567_vm9 }
 0x2ac   :  { %v1354_v41 = vsub.f32 1.5, %v1353_v31  ;;  %v1690_v16 = vadd.f32 %v6172_v63, %v1653_v5  ;;  %v1582_v55 = vmul.f32 %v6791_v38, %v1581_v62  ;;  %vm1577_vm0 = vweird.f32 %v6722_v15 }
 0x2ad   :  { %v6799_v17 = vadd.f32 1e-08, %v1172_v18  ;;  %v6801_v3 = vpop.eup %4052  ;;  %1752 = vadd.xlane.f32.xlu1 %v6693_v59  ;;  %vm1556_vm1 = vweird.f32 %v6740_v54  ;;  %vm6884_vm13 = vmor %vm1576_vm10, %vm1577_vm0  ;;  %vm1337_vm14 = vweird.f32 %v6760_v61  ;;  %vm1536_vm2 = vweird.f32 %v6625_v11  ;;  %v4266_v11 = vld [vmem:[%s9090_s0 + $0x70] sm:$0xff] }
 0x2ae   :  { %v1355_v37 = vmul.f32 %v6735_v51, %v1354_v41  ;;  %v1551_v21 = vmul.f32 %v6801_v3, %v6740_v54  ;;  %v6834_v41 = vpop.eup %4054  ;;  %vm1557_vm15 = vweird.f32 %v6801_v3  ;;  %vm1537_vm5 = vweird.f32 %v6703_v49 }
 0x2af   :  { %4056 = vrsqrt.f32 %v6799_v17  ;;  %vm1558_vm12 = vmor %vm1556_vm1, %vm1557_vm15  ;;  %v1361_v27 = vmul.f32 %v6834_v41, %v6771_v35  ;;  %vm1376_vm3 = vweird.f32 %v6799_v17  ;;  %vm1336_vm7 = vweird.f32 %v6677_v30  ;;  %v6941_v30 = vld [vmem:[%s9093_s3] ss:$0 sm:$0xff] }
 0x2b0   :  { %v1359_v45 = vsel %vm1358_vm6, %v6735_v51, %v1355_v37  ;;  %v1552_v31 = vmul.f32 %v6801_v3, %v1551_v21  ;;  %v6831_v51 = vadd.f32 %v4257_v1, %v1675_v39  ;;  %v1334_v1 = vsub.f32 1.5, %v1333_v58  ;;  %vm6932_vm8 = vmor %vm1336_vm7, %vm1337_vm14 }
 0x2b1   :  { %v1602_v29 = vmul.f32 %v1359_v45, %v6063_v32  ;;  %v1658_v32 = vmul.f32 %v6159_v60, %v1621_v8  ;;  %v1569_v8 = vsel %vm6845_vm11, %v6674_v10, %v1565_v44  ;;  %v4258_v44 = vld [vmem:[%s9090_s0 + $0xd0] sm:$0xff]  ;;  %v1534_v39 = vsub.f32 1.5, %v6811_v25  ;;  %vm6989_vm0 = vmor %vm1536_vm2, %vm1537_vm5 }
 0x2b2   :  { %v1117_v18 = vpop.xlane.xlu0 %1116  ;;  %v1553_v48 = vmul.f32 0.5, %v1552_v31  ;;  %9380 = vst [vmem:[#allocation21_spill] sm:$0xff] %v6831_v51  ;;  %v1575_v31 = vmul.f32 %v6722_v15, %v1574_v33  ;;  %1760 = vadd.xlane.f32.xlu2 %v6831_v51  ;;  %v4259_v33 = vld [vmem:[%s9090_s0 + $0x60] sm:$0xff]  ;;  %vm1587_vm9 = vweird.f32 %v6791_v38  ;;  %vm1586_vm10 = vweird.f32 %v6720_v40  ;;  %v4265_v40 = vld [vmem:[%s9090_s0 + $0x108] sm:$0xff] }
 0x2b3   :  { %v1173_v6 = vmul.f32 %v1117_v18, %v4543_v42  ;;  %v1639_v37 = vmul.f32 %v6159_v60, %v1602_v29  ;;  %v6869_v29 = vadd.f32 %v4258_v44, %v1690_v16  ;;  %v1695_v18 = vadd.f32 %v6172_v63, %v1658_v32  ;;  %vm6972_vm15 = vmor %vm1586_vm10, %vm1587_vm9 }
 0x2b4   :  { %v1554_v45 = vsub.f32 1.5, %v1553_v48  ;;  %v1623_v48 = vmul.f32 %v1569_v8, %v6034_v19  ;;  %v4260_v19 = vld [vmem:[%s9090_s0 + $0x40] sm:$0xff]  ;;  %vm1366_vm2 = vweird.f32 %v6771_v35 }
 0x2b5   :  { %v6839_v21 = vpop.eup %4056  ;;  %v6851_v46 = vadd.f32 1e-08, %v1173_v6  ;;  %v1676_v5 = vadd.f32 %v6172_v63, %v1639_v37  ;;  %9383 = vst [vmem:[#allocation24_spill] sm:$0xff] %v6869_v29  ;;  %v1583_v6 = vmul.f32 0.5, %v1582_v55  ;;  %1790 = vadd.xlane.f32.xlu1 %v6869_v29 }
 0x2b6   :  { %v1371_v4 = vmul.f32 %v6839_v21, %v6799_v17  ;;  %v1555_v62 = vmul.f32 %v6801_v3, %v1554_v45  ;;  %vm1377_vm4 = vweird.f32 %v6839_v21 }
 0x2b7   :  { %4058 = vrsqrt.f32 %v6851_v46  ;;  %v6875_v54 = vadd.f32 %v4259_v33, %v1676_v5  ;;  %vm1378_vm6 = vmor %vm1376_vm3, %vm1377_vm4  ;;  %vm1386_vm1 = vweird.f32 %v6851_v46 }
 0x2b8   :  { %v1372_v10 = vmul.f32 %v6839_v21, %v1371_v4  ;;  %v1559_v37 = vsel %vm1558_vm12, %v6801_v3, %v1555_v62  ;;  %v6894_v3 = vadd.f32 %v4260_v19, %v6701_v50  ;;  %v4261_v50 = vld [vmem:[%s9090_s0 + $0xf8] sm:$0xff]  ;;  %v1535_v19 = vmul.f32 %v6703_v49, %v1534_v39 }
 0x2b9   :  { %9384 = vst [vmem:[#allocation25_spill] sm:$0xff] %v6875_v54  ;;  %v1622_v32 = vmul.f32 %v1559_v37, %v6071_v23  ;;  %1762 = vadd.xlane.f32.xlu0 %v6875_v54  ;;  %v1579_v23 = vsel %vm6884_vm13, %v6722_v15, %v1575_v31  ;;  %v6908_v8 = vadd.f32 %v4261_v50, %v1695_v18  ;;  %v1584_v31 = vsub.f32 1.5, %v1583_v6 }
 0x2ba   :  { %v1373_v45 = vmul.f32 0.5, %v1372_v10  ;;  %9387 = vst [vmem:[#allocation26_spill] sm:$0xff] %v6894_v3  ;;  %v1119_v25 = vpop.xlane.xlu0 %1118  ;;  %v1335_v15 = vmul.f32 %v6760_v61, %v1334_v1  ;;  %v1660_v10 = vmul.f32 %v6159_v60, %v1623_v48  ;;  %v1362_v37 = vmul.f32 %v6834_v41, %v1361_v27  ;;  %v4263_v1 = vld [vmem:[%s9090_s0 + $0x100] sm:$0xff] }
 0x2bb   :  { %v1174_v58 = vmul.f32 %v1119_v25, %v4543_v42  ;;  %9388 = vst [vmem:[#allocation27_spill] sm:$0xff] %v6908_v8  ;;  %v1659_v4 = vmul.f32 %v6159_v60, %v1622_v32  ;;  %1800 = vadd.xlane.f32.xlu2 %v6908_v8  ;;  %v1654_v48 = vmul.f32 %v6941_v30, %v6763_v43  ;;  %vm1367_vm13 = vweird.f32 %v6834_v41 }
 0x2bc   :  { %v1374_v55 = vsub.f32 1.5, %v1373_v45  ;;  %v1624_v16 = vmul.f32 %v1579_v23, %v6050_v14  ;;  %v6958_v45 = vld [vmem:[%s9094_s4] ss:$0 sm:$0xff]  ;;  %v1585_v25 = vmul.f32 %v6791_v38, %v1584_v31  ;;  %v1539_v60 = vsel %vm6989_vm0, %v6703_v49, %v1535_v19  ;;  %v4267_v49 = vld [vmem:[%s9090_s0 + $0xd8] sm:$0xff]  ;;  %vm1368_vm5 = vmor %vm1366_vm2, %vm1367_vm13 }
 0x2bd   :  { %v6911_v5 = vpop.eup %4058  ;;  %v6915_v62 = vadd.f32 1e-08, %v1174_v58  ;;  %v1696_v33 = vadd.f32 %v6172_v63, %v1659_v4  ;;  %v1697_v43 = vadd.f32 %v6958_v45, %v1660_v10  ;;  %1754 = vadd.xlane.f32.xlu1 %v6894_v3  ;;  %v1620_v19 = vmul.f32 %v1539_v60, %v6004_v2 }
 0x2be   :  { %v1375_v44 = vmul.f32 %v6839_v21, %v1374_v55  ;;  %v1381_v18 = vmul.f32 %v6911_v5, %v6851_v46  ;;  %vm1387_vm11 = vweird.f32 %v6911_v5  ;;  %v1691_v55 = vadd.f32 %v6958_v45, %v1654_v48 }
 0x2bf   :  { %4060 = vrsqrt.f32 %v6915_v62  ;;  %v6948_v6 = vadd.f32 %v4263_v1, %v1696_v33  ;;  %vm1388_vm12 = vmor %vm1386_vm1, %vm1387_vm11  ;;  %vm1396_vm4 = vweird.f32 %v6915_v62  ;;  %v1657_v35 = vmul.f32 %v6941_v30, %v1620_v19 }
 0x2c0   :  { %v1379_v63 = vsel %vm1378_vm6, %v6839_v21, %v1375_v44  ;;  %v1382_v17 = vmul.f32 %v6911_v5, %v1381_v18  ;;  %v1339_v21 = vsel %vm6932_vm8, %v6760_v61, %v1335_v15  ;;  %v6979_v15 = vadd.f32 %v4265_v40, %v1697_v43 }
 0x2c1   :  { %9391 = vst [vmem:[#allocation28_spill] sm:$0xff] %v6948_v6  ;;  %v1604_v32 = vmul.f32 %v1379_v63, %v6079_v20  ;;  %1802 = vadd.xlane.f32.xlu0 %v6948_v6  ;;  %v1363_v20 = vmul.f32 0.5, %v1362_v37  ;;  %v1600_v58 = vmul.f32 %v1339_v21, %v6047_v24  ;;  %v1661_v24 = vmul.f32 %v6941_v30, %v1624_v16 }
 0x2c2   :  { %v1383_v14 = vmul.f32 0.5, %v1382_v17  ;;  %v1121_v61 = vpop.xlane.xlu0 %1120  ;;  %9394 = vst [vmem:[#allocation29_spill] sm:$0xff] %v6979_v15  ;;  %v1589_v18 = vsel %vm6972_vm15, %v6791_v38, %v1585_v25  ;;  %v7015_v17 = vadd.f32 %v4267_v49, %v1691_v55 }
 0x2c3   :  { %v1175_v27 = vmul.f32 %v1121_v61, %v4543_v42  ;;  %v1641_v23 = vmul.f32 %v6941_v30, %v1604_v32  ;;  %1804 = vadd.xlane.f32.xlu2 %v6979_v15  ;;  %v1637_v48 = vmul.f32 %v6941_v30, %v1600_v58  ;;  %v1364_v1 = vsub.f32 1.5, %v1363_v20  ;;  %v4268_v61 = vld [vmem:[%s9090_s0 + $0x110] sm:$0xff] }
 0x2c4   :  { %v1384_v39 = vsub.f32 1.5, %v1383_v14  ;;  %9398 = vst [vmem:[#allocation31_spill] sm:$0xff] %v7015_v17  ;;  %v1625_v16 = vmul.f32 %v1589_v18, %v6060_v52  ;;  %v1698_v32 = vadd.f32 %v6958_v45, %v1661_v24  ;;  %v9402_v18 = vld [vmem:[#allocation6_spill] sm:$0xff] }
 0x2c5   :  { %v4061_v50 = vpop.eup %4060  ;;  %v6981_v31 = vadd.f32 1e-08, %v1175_v27  ;;  %v1678_v10 = vadd.f32 %v6958_v45, %v1641_v23  ;;  %1792 = vadd.xlane.f32.xlu1 %v7015_v17  ;;  %v1674_v14 = vadd.f32 %v6958_v45, %v1637_v48  ;;  %v1694_v48 = vadd.f32 %v6958_v45, %v1657_v35 }
 0x2c6   :  { %v1385_v33 = vmul.f32 %v6911_v5, %v1384_v39  ;;  %v1391_v37 = vmul.f32 %v4061_v50, %v6915_v62  ;;  %vm1397_vm14 = vweird.f32 %v4061_v50  ;;  %v7031_v20 = vadd.f32 %v4268_v61, %v1698_v32  ;;  %v4269_v39 = vld [vmem:[%s9090_s0 + $0x78] sm:$0xff]  ;;  %v4270_v62 = vld [vmem:[%s9090_s0 + $0x50] sm:$0xff] }
 0x2c7   :  { %4062 = vrsqrt.f32 %v6981_v31  ;;  %v7009_v38 = vadd.f32 %v4266_v11, %v1678_v10  ;;  %v1662_v27 = vmul.f32 %v6941_v30, %v1625_v16  ;;  %vm1398_vm3 = vmor %vm1396_vm4, %vm1397_vm14  ;;  %v7049_v24 = vadd.f32 %v4270_v62, %v1674_v14  ;;  %v4274_v62 = vld [vmem:[%s9090_s0 + $0x88] sm:$0xff] }
 0x2c8   :  { %v1389_v46 = vsel %vm1388_vm12, %v6911_v5, %v1385_v33  ;;  %v1392_v63 = vmul.f32 %v4061_v50, %v1391_v37  ;;  %9399 = vst [vmem:[#allocation32_spill] sm:$0xff] %v7031_v20  ;;  %vm1406_vm6 = vweird.f32 %v6981_v31 }
 0x2c9   :  { %9397 = vst [vmem:[#allocation30_spill] sm:$0xff] %v7009_v38  ;;  %v1605_v21 = vmul.f32 %v1389_v46, %v6087_v22  ;;  %1766 = vadd.xlane.f32.xlu0 %v7009_v38  ;;  %v1365_v22 = vmul.f32 %v6834_v41, %v1364_v1  ;;  %v1699_v37 = vadd.f32 %v6958_v45, %v1662_v27  ;;  %v9403_v46 = vld [vmem:[#allocation5_spill] sm:$0xff] }
 0x2ca   :  { %v1393_v43 = vmul.f32 0.5, %v1392_v63  ;;  %9401 = vst [vmem:[#allocation34_spill] sm:$0xff] %v7049_v24 }
 0x2cb   :  { %v1642_v5 = vmul.f32 %v6941_v30, %v1605_v21  ;;  %1806 = vadd.xlane.f32.xlu2 %v7031_v20  ;;  %v1775_v10 = vpop.xlane.xlu0 %1774  ;;  %v1369_v44 = vsel %vm1368_vm5, %v6834_v41, %v1365_v22  ;;  %v4271_v41 = vld [vmem:[%s9090_s0 + $0x118] sm:$0xff]  ;;  %v9407_v22 = vld [vmem:[#allocation2_spill] sm:$0xff] }
 0x2cc   :  { %v1394_v25 = vsub.f32 1.5, %v1393_v43  ;;  %v1603_v63 = vmul.f32 %v1369_v44, %v9403_v46  ;;  %v7064_v1 = vadd.f32 %v4271_v41, %v1699_v37  ;;  %v4272_v43 = vld [vmem:[%s9090_s0 + $0x80] sm:$0xff] }
 0x2cd   :  { %v4063_v52 = vpop.eup %4062  ;;  %v1679_v23 = vadd.f32 %v6958_v45, %v1642_v5  ;;  %1758 = vadd.xlane.f32.xlu1 %v7049_v24 }
 0x2ce   :  { %v1395_v58 = vmul.f32 %v4061_v50, %v1394_v25  ;;  %v1401_v2 = vmul.f32 %v4063_v52, %v6981_v31  ;;  %vm1407_vm7 = vweird.f32 %v4063_v52  ;;  %9404 = vst [vmem:[#allocation6_spill] sm:$0xff] %v7064_v1  ;;  %v4273_v25 = vld [vmem:[%s9090_s0 + $0xf0] sm:$0xff]  ;;  %v1640_v31 = vmul.f32 %v6941_v30, %v1603_v63 }
 0x2cf   :  { %v7042_v55 = vadd.f32 %v4269_v39, %v1679_v23  ;;  %vm1408_vm8 = vmor %vm1406_vm6, %vm1407_vm7  ;;  %v7080_v14 = vadd.f32 %v4273_v25, %v1694_v48  ;;  %v9411_v48 = vld [vmem:[#allocation10_spill] sm:$0xff] }
 0x2d0   :  { %v1399_v4 = vsel %vm1398_vm3, %v4061_v50, %v1395_v58  ;;  %v1402_v40 = vmul.f32 %v4063_v52, %v1401_v2  ;;  %v1828_v50 = vmul.f32 %v1775_v10, %v4543_v42  ;;  %v1677_v2 = vadd.f32 %v6958_v45, %v1640_v31  ;;  %v4275_v10 = vld [vmem:[%s9090_s0 + $0x68] sm:$0xff] }
 0x2d1   :  { %9400 = vst [vmem:[#allocation33_spill] sm:$0xff] %v7042_v55  ;;  %v1606_v33 = vmul.f32 %v1399_v4, %v9402_v18  ;;  %1768 = vadd.xlane.f32.xlu0 %v7042_v55  ;;  %v9410_v18 = vld [vmem:[#allocation3_spill] sm:$0xff] }
 0x2d2   :  { %v1403_v60 = vmul.f32 0.5, %v1402_v40  ;;  %v7070_v32 = vsub.f32 %v6186_v57, %v1828_v50  ;;  %9406 = vst [vmem:[#allocation35_spill] sm:$0xff] %v7080_v14 }
 0x2d3   :  { %v1643_v11 = vmul.f32 %v6941_v30, %v1606_v33  ;;  %1808 = vadd.xlane.f32.xlu2 %v7064_v1  ;;  %v1739_v39 = vpop.xlane.xlu0 %1738 }
 0x2d4   :  { %v1404_v49 = vsub.f32 1.5, %v1403_v60  ;;  %v1900_v23 = vmul.f32 %v7070_v32, %v7070_v32  ;;  %v1810_v44 = vmul.f32 %v1739_v39, %v4543_v42 }
 0x2d5   :  { %v1680_v16 = vadd.f32 %v6958_v45, %v1643_v11  ;;  %1798 = vadd.xlane.f32.xlu1 %v7080_v14 }
 0x2d6   :  { %v1405_v21 = vmul.f32 %v4063_v52, %v1404_v49  ;;  %v7111_v33 = vsub.f32 %v9410_v18, %v1810_v44 }
 0x2d7   :  { %v7075_v5 = vadd.f32 %v4272_v43, %v1680_v16  ;;  %v1777_v27 = vpop.xlane.xlu2 %1776 }
 0x2d8   :  { %v1409_v19 = vsel %vm1408_vm8, %v4063_v52, %v1405_v21  ;;  %v1829_v52 = vmul.f32 %v1777_v27, %v4543_v42  ;;  %v1882_v63 = vmul.f32 %v7111_v33, %v7111_v33  ;;  %v9413_v27 = vld [vmem:[#allocation7_spill] sm:$0xff] }
 0x2d9   :  { %9405 = vst [vmem:[#allocation5_spill] sm:$0xff] %v7075_v5  ;;  %v1607_v61 = vmul.f32 %v1409_v19, %v9407_v22  ;;  %1770 = vadd.xlane.f32.xlu0 %v7075_v5  ;;  %v9412_v22 = vld [vmem:[#allocation16_spill] sm:$0xff] }
 0x2da   :  { %v7093_v40 = vsub.f32 %v6248_v47, %v1829_v52 }
 0x2db   :  { %v1644_v58 = vmul.f32 %v6941_v30, %v1607_v61  ;;  %1954 = vadd.xlane.f32.xlu2 %v1900_v23  ;;  %v7103_v30 = vadd.f32 %v4275_v10, %v1677_v2 }
 0x2dd   :  { %v1681_v4 = vadd.f32 %v6958_v45, %v1644_v58  ;;  %9409 = vst [vmem:[#allocation36_spill] sm:$0xff] %v7103_v30  ;;  %1764 = vadd.xlane.f32.xlu1 %v7103_v30  ;;  %v1901_v45 = vmul.f32 %v7093_v40, %v7093_v40 }
 0x2df   :  { %v7098_v35 = vadd.f32 %v4274_v62, %v1681_v4  ;;  %v1741_v37 = vpop.xlane.xlu2 %1740  ;;  %v9414_v4 = vld [vmem:[#allocation11_spill] sm:$0xff] }
 0x2e0   :  { %v1811_v11 = vmul.f32 %v1741_v37, %v4543_v42 }
 0x2e1   :  { %9408 = vst [vmem:[#allocation2_spill] sm:$0xff] %v7098_v35  ;;  %1772 = vadd.xlane.f32.xlu0 %v7098_v35 }
 0x2e2   :  { %v7123_v41 = vsub.f32 %v9411_v48, %v1811_v11 }
 0x2e3   :  { %v1779_v60 = vpop.xlane.xlu1 %1778  ;;  %1956 = vadd.xlane.f32.xlu2 %v1901_v45 }
 0x2e4   :  { %v1830_v50 = vmul.f32 %v1779_v60, %v4543_v42  ;;  %v1883_v19 = vmul.f32 %v7123_v41, %v7123_v41 }
 0x2e6   :  { %v7116_v46 = vsub.f32 %v6339_v7, %v1830_v50 }
 0x2e7   :  { %v1745_v31 = vpop.xlane.xlu2 %1744 }
 0x2e8   :  { %v1902_v49 = vmul.f32 %v7116_v46, %v7116_v46  ;;  %v1813_v52 = vmul.f32 %v1745_v31, %v4543_v42 }
 0x2e9   :  { %1918 = vadd.xlane.f32.xlu0 %v1882_v63 }
 0x2ea   :  { %v7141_v62 = vsub.f32 %v9414_v4, %v1813_v52 }
 0x2eb   :  { %v1743_v16 = vpop.xlane.xlu1 %1742  ;;  %1958 = vadd.xlane.f32.xlu2 %v1902_v49 }
 0x2ec   :  { %v1812_v21 = vmul.f32 %v1743_v16, %v4543_v42  ;;  %v1885_v50 = vmul.f32 %v7141_v62, %v7141_v62 }
 0x2ee   :  { %v1781_v43 = vpop.xlane.xlu0 %1780  ;;  %v7133_v23 = vsub.f32 %v9413_v27, %v1812_v21 }
 0x2ef   :  { %v1831_v25 = vmul.f32 %v1781_v43, %v4543_v42 }
 0x2f0   :  { %v1884_v39 = vmul.f32 %v7133_v23, %v7133_v23 }
 0x2f1   :  { %1920 = vadd.xlane.f32.xlu0 %v1883_v19  ;;  %v7130_v61 = vsub.f32 %v9412_v22, %v1831_v25 }
 0x2f3   :  { %v1903_v58 = vmul.f32 %v7130_v61, %v7130_v61 }
 0x2f5   :  { %1960 = vadd.xlane.f32.xlu2 %v1903_v58 }
 0x2f6   :  { %v1747_v2 = vpop.xlane.xlu0 %1746  ;;  %v1783_v10 = vpop.xlane.xlu1 %1782 }
 0x2f7   :  { %v1814_v44 = vmul.f32 %v1747_v2, %v4543_v42  ;;  %v1832_v45 = vmul.f32 %v1783_v10, %v4543_v42 }
 0x2f9   :  { %1922 = vadd.xlane.f32.xlu0 %v1884_v39  ;;  %v7146_v37 = vsub.f32 %v6481_v0, %v1832_v45  ;;  %v7149_v60 = vsub.f32 %v6475_v12, %v1814_v44 }
 0x2fb   :  { %v1904_v11 = vmul.f32 %v7146_v37, %v7146_v37  ;;  %v1886_v63 = vmul.f32 %v7149_v60, %v7149_v60 }
 0x2fd   :  { %1924 = vadd.xlane.f32.xlu2 %v1885_v50  ;;  %1962 = vadd.xlane.f32.xlu1 %v1904_v11 }
 0x2fe   :  { %v1749_v49 = vpop.xlane.xlu1 %1748 }
 0x2ff   :  { %v1815_v16 = vmul.f32 %v1749_v49, %v4543_v42 }
 0x301   :  { %1926 = vadd.xlane.f32.xlu0 %v1886_v63  ;;  %v7159_v21 = vsub.f32 %v6548_v53, %v1815_v16  ;;  %v1785_v43 = vpop.xlane.xlu2 %1784  ;;  %v1757_v63 = vpop.xlane.xlu0 %1756 }
 0x302   :  { %v1833_v19 = vmul.f32 %v1785_v43, %v4543_v42 }
 0x303   :  { %v1887_v25 = vmul.f32 %v7159_v21, %v7159_v21 }
 0x304   :  { %v7165_v31 = vsub.f32 %v6579_v34, %v1833_v19 }
 0x305   :  { %1928 = vadd.xlane.f32.xlu1 %v1887_v25 }
 0x306   :  { %v1905_v52 = vmul.f32 %v7165_v31, %v7165_v31 }
 0x308   :  { %1964 = vadd.xlane.f32.xlu2 %v1905_v52  ;;  %v1787_v58 = vpop.xlane.xlu1 %1786 }
 0x309   :  { %v1834_v2 = vmul.f32 %v1787_v58, %v4543_v42  ;;  %v7187_v52 = vpop.xlane.xlu0 %1796 }
 0x30b   :  { %v7171_v39 = vsub.f32 %v6637_v26, %v1834_v2 }
 0x30d   :  { %v1906_v10 = vmul.f32 %v7171_v39, %v7171_v39 }
 0x30f   :  { %1966 = vadd.xlane.f32.xlu0 %v1906_v10 }
 0x310   :  { %v1751_v44 = vpop.xlane.xlu1 %1750 }
 0x311   :  { %v1816_v45 = vmul.f32 %v1751_v44, %v4543_v42 }
 0x313   :  { %v7177_v50 = vsub.f32 %v6672_v28, %v1816_v45 }
 0x315   :  { %v1888_v11 = vmul.f32 %v7177_v50, %v7177_v50 }
 0x317   :  { %1930 = vadd.xlane.f32.xlu2 %v1888_v11 }
 0x318   :  { %v1789_v49 = vpop.xlane.xlu1 %1788 }
 0x319   :  { %v1835_v16 = vmul.f32 %v1789_v49, %v4543_v42 }
 0x31b   :  { %v7183_v43 = vsub.f32 %v6757_v36, %v1835_v16 }
 0x31d   :  { %v1907_v19 = vmul.f32 %v7183_v43, %v7183_v43  ;;  %v1795_v25 = vpop.xlane.xlu2 %1794 }
 0x31f   :  { %1968 = vadd.xlane.f32.xlu1 %v1907_v19 }
 0x320   :  { %v1753_v58 = vpop.xlane.xlu1 %1752 }
 0x321   :  { %v1817_v2 = vmul.f32 %v1753_v58, %v4543_v42 }
 0x323   :  { %v7191_v10 = vsub.f32 %v6693_v59, %v1817_v2 }
 0x325   :  { %9415 = vst [vmem:[#allocation3_spill] sm:$0xff] %v7191_v10  ;;  %v1889_v44 = vmul.f32 %v7191_v10, %v7191_v10  ;;  %v7195_v45 = vpop.xlane.xlu2 %1760 }
 0x327   :  { %1932 = vadd.xlane.f32.xlu0 %v1889_v44 }
 0x328   :  { %v1791_v11 = vpop.xlane.xlu1 %1790 }
 0x329   :  { %v1836_v16 = vmul.f32 %v1791_v11, %v4543_v42 }
 0x32b   :  { %v7200_v36 = vsub.f32 %v6869_v29, %v1836_v16 }
 0x32c   :  { %v1763_v49 = vpop.xlane.xlu0 %1762 }
 0x32d   :  { %v1822_v19 = vmul.f32 %v1763_v49, %v4543_v42  ;;  %9416 = vst [vmem:[#allocation10_spill] sm:$0xff] %v7200_v36  ;;  %v1908_v2 = vmul.f32 %v7200_v36, %v7200_v36 }
 0x32e   :  { %v1801_v59 = vpop.xlane.xlu2 %1800 }
 0x32f   :  { %v7203_v58 = vsub.f32 %v6875_v54, %v1822_v19  ;;  %v1841_v44 = vmul.f32 %v1801_v59, %v4543_v42  ;;  %1970 = vadd.xlane.f32.xlu2 %v1908_v2 }
 0x330   :  { %v1755_v11 = vpop.xlane.xlu1 %1754 }
 0x331   :  { %9417 = vst [vmem:[#allocation7_spill] sm:$0xff] %v7203_v58  ;;  %v1894_v10 = vmul.f32 %v7203_v58, %v7203_v58  ;;  %v7211_v49 = vsub.f32 %v6908_v8, %v1841_v44  ;;  %v1818_v29 = vmul.f32 %v1755_v11, %v4543_v42 }
 0x333   :  { %1942 = vadd.xlane.f32.xlu0 %v1894_v10  ;;  %9418 = vst [vmem:[#allocation37_spill] sm:$0xff] %v7211_v49  ;;  %v7216_v54 = vsub.f32 %v6894_v3, %v1818_v29  ;;  %v1913_v36 = vmul.f32 %v7211_v49, %v7211_v49 }
 0x334   :  { %v1803_v16 = vpop.xlane.xlu0 %1802 }
 0x335   :  { %v1842_v19 = vmul.f32 %v1803_v16, %v4543_v42  ;;  %v1890_v59 = vmul.f32 %v7216_v54, %v7216_v54 }
 0x336   :  { %v1805_v10 = vpop.xlane.xlu2 %1804 }
 0x337   :  { %v7221_v58 = vsub.f32 %v6948_v6, %v1842_v19  ;;  %v1843_v44 = vmul.f32 %v1805_v10, %v4543_v42  ;;  %1934 = vadd.xlane.f32.xlu1 %v1890_v59  ;;  %1980 = vadd.xlane.f32.xlu2 %v1913_v36  ;;  %v1819_v36 = vmul.f32 %v1757_v63, %v4543_v42 }
 0x338   :  { %v1793_v11 = vpop.xlane.xlu1 %1792 }
 0x339   :  { %9419 = vst [vmem:[#allocation38_spill] sm:$0xff] %v7221_v58  ;;  %v1914_v2 = vmul.f32 %v7221_v58, %v7221_v58  ;;  %v7229_v29 = vsub.f32 %v6979_v15, %v1843_v44  ;;  %v1837_v19 = vmul.f32 %v1793_v11, %v4543_v42 }
 0x33b   :  { %9420 = vst [vmem:[#allocation39_spill] sm:$0xff] %v7229_v29  ;;  %1982 = vadd.xlane.f32.xlu0 %v1914_v2  ;;  %v7234_v6 = vsub.f32 %v7015_v17, %v1837_v19  ;;  %v1915_v49 = vmul.f32 %v7229_v29, %v7229_v29 }
 0x33c   :  { %v1767_v16 = vpop.xlane.xlu0 %1766 }
 0x33d   :  { %v1824_v8 = vmul.f32 %v1767_v16, %v4543_v42  ;;  %v1909_v59 = vmul.f32 %v7234_v6, %v7234_v6 }
 0x33e   :  { %v1807_v2 = vpop.xlane.xlu2 %1806 }
 0x33f   :  { %v7239_v10 = vsub.f32 %v7009_v38, %v1824_v8  ;;  %v1844_v11 = vmul.f32 %v1807_v2, %v4543_v42  ;;  %1972 = vadd.xlane.f32.xlu1 %v1909_v59  ;;  %1984 = vadd.xlane.f32.xlu2 %v1915_v49  ;;  %v7251_v8 = vsub.f32 %v6563_v13, %v1819_v36 }
 0x340   :  { %v1838_v2 = vmul.f32 %v1795_v25, %v4543_v42 }
 0x341   :  { %9421 = vst [vmem:[#allocation40_spill] sm:$0xff] %v7239_v10  ;;  %v1896_v44 = vmul.f32 %v7239_v10, %v7239_v10  ;;  %v7248_v16 = vsub.f32 %v7031_v20, %v1844_v11  ;;  %v1891_v49 = vmul.f32 %v7251_v8, %v7251_v8  ;;  %v1759_v20 = vpop.xlane.xlu1 %1758 }
 0x343   :  { %9422 = vst [vmem:[#allocation41_spill] sm:$0xff] %v7248_v16  ;;  %1946 = vadd.xlane.f32.xlu0 %v1896_v44  ;;  %v1916_v38 = vmul.f32 %v7248_v16, %v7248_v16 }
 0x344   :  { %v1769_v19 = vpop.xlane.xlu0 %1768 }
 0x345   :  { %v1825_v63 = vmul.f32 %v1769_v19, %v4543_v42 }
 0x346   :  { %v1809_v59 = vpop.xlane.xlu2 %1808 }
 0x347   :  { %v7257_v15 = vsub.f32 %v7042_v55, %v1825_v63  ;;  %v1845_v36 = vmul.f32 %v1809_v59, %v4543_v42  ;;  %1986 = vadd.xlane.f32.xlu2 %v1916_v38  ;;  %1936 = vadd.xlane.f32.xlu1 %v1891_v49  ;;  %v7269_v63 = vsub.f32 %v6797_v56, %v1838_v2 }
 0x348   :  { %v1820_v38 = vmul.f32 %v1759_v20, %v4543_v42 }
 0x349   :  { %9423 = vst [vmem:[#allocation42_spill] sm:$0xff] %v7257_v15  ;;  %v1897_v44 = vmul.f32 %v7257_v15, %v7257_v15  ;;  %v7266_v11 = vsub.f32 %v7064_v1, %v1845_v36  ;;  %v1910_v49 = vmul.f32 %v7269_v63, %v7269_v63  ;;  %v1799_v10 = vpop.xlane.xlu1 %1798 }
 0x34a   :  { %v7284_v1 = vsub.f32 %v7049_v24, %v1820_v38 }
 0x34b   :  { %9424 = vst [vmem:[#allocation43_spill] sm:$0xff] %v7266_v11  ;;  %1948 = vadd.xlane.f32.xlu0 %v1897_v44  ;;  %v1917_v16 = vmul.f32 %v7266_v11, %v7266_v11 }
 0x34c   :  { %v1771_v19 = vpop.xlane.xlu0 %1770  ;;  %9426 = vst [vmem:[#allocation45_spill] sm:$0xff] %v7284_v1 }
 0x34d   :  { %v1826_v25 = vmul.f32 %v1771_v19, %v4543_v42 }
 0x34e   :  { %v1955_v59 = vpop.xlane.xlu2 %1954 }
 0x34f   :  { %v7275_v55 = vsub.f32 %v7075_v5, %v1826_v25  ;;  %v2008_v2 = vmul.f32 %v1955_v59, %v4543_v42  ;;  %1988 = vadd.xlane.f32.xlu2 %v1917_v16  ;;  %1974 = vadd.xlane.f32.xlu1 %v1910_v49  ;;  %v1839_v5 = vmul.f32 %v7187_v52, %v4543_v42 }
 0x350   :  { %v1892_v59 = vmul.f32 %v7284_v1, %v7284_v1 }
 0x351   :  { %9425 = vst [vmem:[#allocation44_spill] sm:$0xff] %v7275_v55  ;;  %v1898_v44 = vmul.f32 %v7275_v55, %v7275_v55  ;;  %v2044_v36 = vadd.f32 1e-08, %v2008_v2 }
 0x353   :  { %1950 = vadd.xlane.f32.xlu0 %v1898_v44  ;;  %4064 = vrsqrt.f32 %v2044_v36  ;;  %vm2248_vm10 = vweird.f32 %v2044_v36 }
 0x354   :  { %v1773_v19 = vpop.xlane.xlu0 %1772 }
 0x355   :  { %v1827_v25 = vmul.f32 %v1773_v19, %v4543_v42 }
 0x356   :  { %v1957_v16 = vpop.xlane.xlu2 %1956 }
 0x357   :  { %v7288_v20 = vsub.f32 %v7098_v35, %v1827_v25  ;;  %v2009_v44 = vmul.f32 %v1957_v16, %v4543_v42  ;;  %1938 = vadd.xlane.f32.xlu1 %v1892_v59  ;;  %v7298_v25 = vsub.f32 %v6616_v9, %v1839_v5 }
 0x359   :  { %9427 = vst [vmem:[#allocation46_spill] sm:$0xff] %v7288_v20  ;;  %v1899_v49 = vmul.f32 %v7288_v20, %v7288_v20  ;;  %v4065_v38 = vpop.eup %4064  ;;  %v2045_v2 = vadd.f32 1e-08, %v2009_v44  ;;  %v1821_v20 = vmul.f32 %v7195_v45, %v4543_v42  ;;  %v1911_v59 = vmul.f32 %v7298_v25, %v7298_v25 }
 0x35a   :  { %9428 = vst [vmem:[#allocation47_spill] sm:$0xff] %v7298_v25  ;;  %v2243_v35 = vmul.f32 %v4065_v38, %v2044_v36  ;;  %vm2249_vm9 = vweird.f32 %v4065_v38 }
 0x35b   :  { %1952 = vadd.xlane.f32.xlu0 %v1899_v49  ;;  %4066 = vrsqrt.f32 %v2045_v2  ;;  %vm2250_vm11 = vmor %vm2248_vm10, %vm2249_vm9  ;;  %vm2258_vm0 = vweird.f32 %v2045_v2 }
 0x35c   :  { %v1919_v19 = vpop.xlane.xlu0 %1918  ;;  %v2244_v11 = vmul.f32 %v4065_v38, %v2243_v35  ;;  %v7310_v35 = vsub.f32 %v6831_v51, %v1821_v20 }
 0x35d   :  { %v1990_v52 = vmul.f32 %v1919_v19, %v4543_v42 }
 0x35e   :  { %v2245_v16 = vmul.f32 0.5, %v2244_v11  ;;  %v1959_v49 = vpop.xlane.xlu2 %1958  ;;  %9429 = vst [vmem:[#allocation48_spill] sm:$0xff] %v7310_v35  ;;  %v1893_v9 = vmul.f32 %v7310_v35, %v7310_v35 }
 0x35f   :  { %v7301_v55 = vadd.f32 1e-08, %v1990_v52  ;;  %v2010_v5 = vmul.f32 %v1959_v49, %v4543_v42  ;;  %1976 = vadd.xlane.f32.xlu1 %v1911_v59 }
 0x360   :  { %v2246_v44 = vsub.f32 1.5, %v2245_v16  ;;  %v7319_v16 = vld [vmem:[%s9091_s1 + $0x1] ss:$0 sm:$0xff] }
 0x361   :  { %4068 = vrsqrt.f32 %v7301_v55  ;;  %v4067_v19 = vpop.eup %4066  ;;  %v7312_v52 = vadd.f32 1e-08, %v2010_v5  ;;  %v1840_v5 = vmul.f32 %v1799_v10, %v4543_v42  ;;  %vm2068_vm13 = vweird.f32 %v7301_v55 }
 0x362   :  { %v2247_v15 = vmul.f32 %v4065_v38, %v2246_v44  ;;  %v2253_v11 = vmul.f32 %v4067_v19, %v2045_v2  ;;  %vm2259_vm15 = vweird.f32 %v4067_v19 }
 0x363   :  { %4070 = vrsqrt.f32 %v7312_v52  ;;  %v7337_v25 = vsub.f32 %v7080_v14, %v1840_v5  ;;  %vm2260_vm1 = vmor %vm2258_vm0, %vm2259_vm15  ;;  %vm2268_vm2 = vweird.f32 %v7312_v52 }
 0x364   :  { %v1921_v45 = vpop.xlane.xlu0 %1920  ;;  %v2251_v49 = vsel %vm2250_vm11, %v4065_v38, %v2247_v15  ;;  %v2254_v20 = vmul.f32 %v4067_v19, %v2253_v11 }
 0x365   :  { %v1991_v29 = vmul.f32 %v1921_v45, %v4543_v42  ;;  %v2440_v36 = vmul.f32 %v2251_v49, %v7070_v32  ;;  %v7329_v45 = vld [vmem:[%s9092_s2 + $0x1] ss:$0 sm:$0xff] }
 0x366   :  { %v2255_v51 = vmul.f32 0.5, %v2254_v20 }
 0x367   :  { %v4069_v59 = vpop.eup %4068  ;;  %v7321_v58 = vadd.f32 1e-08, %v1991_v29  ;;  %v1765_v29 = vpop.xlane.xlu1 %1764  ;;  %v2477_v32 = vmul.f32 %v7319_v16, %v2440_v36  ;;  %1940 = vadd.xlane.f32.xlu1 %v1893_v9 }
 0x368   :  { %v2063_v44 = vmul.f32 %v4069_v59, %v7301_v55  ;;  %v1961_v15 = vpop.xlane.xlu2 %1960  ;;  %v2256_v11 = vsub.f32 1.5, %v2255_v51  ;;  %vm2069_vm12 = vweird.f32 %v4069_v59  ;;  %v1823_v36 = vmul.f32 %v1765_v29, %v4543_v42 }
 0x369   :  { %4072 = vrsqrt.f32 %v7321_v58  ;;  %v2011_v10 = vmul.f32 %v1961_v15, %v4543_v42  ;;  %v4071_v49 = vpop.eup %4070  ;;  %v2514_v56 = vadd.f32 %v7329_v45, %v2477_v32  ;;  %vm7355_vm14 = vmor %vm2068_vm13, %vm2069_vm12  ;;  %vm2078_vm7 = vweird.f32 %v7321_v58 }
 0x36a   :  { %v2064_v38 = vmul.f32 %v4069_v59, %v2063_v44  ;;  %v2257_v1 = vmul.f32 %v4067_v19, %v2256_v11  ;;  %v2263_v44 = vmul.f32 %v4071_v49, %v7312_v52  ;;  %vm2269_vm4 = vweird.f32 %v4071_v49 }
 0x36b   :  { %v7339_v24 = vadd.f32 1e-08, %v2011_v10  ;;  %v7346_v9 = vadd.f32 %v2514_v56, %v6186_v57  ;;  %vm2270_vm3 = vmor %vm2268_vm2, %vm2269_vm4 }
 0x36c   :  { %v2065_v20 = vmul.f32 0.5, %v2064_v38  ;;  %v1923_v35 = vpop.xlane.xlu0 %1922  ;;  %v2261_v38 = vsel %vm2260_vm1, %v4067_v19, %v2257_v1  ;;  %v2264_v10 = vmul.f32 %v4071_v49, %v2263_v44  ;;  %v1912_v1 = vmul.f32 %v7337_v25, %v7337_v25 }
 0x36d   :  { %v1992_v15 = vmul.f32 %v1923_v35, %v4543_v42  ;;  %4074 = vrsqrt.f32 %v7339_v24  ;;  %v2441_v2 = vmul.f32 %v2261_v38, %v7093_v40  ;;  %2606 = vadd.xlane.f32.xlu2 %v7346_v9  ;;  %vm2278_vm8 = vweird.f32 %v7339_v24 }
 0x36e   :  { %v2066_v51 = vsub.f32 1.5, %v2065_v20  ;;  %v2265_v56 = vmul.f32 0.5, %v2264_v10 }
 0x36f   :  { %v4073_v5 = vpop.eup %4072  ;;  %v7349_v32 = vadd.f32 1e-08, %v1992_v15  ;;  %v2478_v15 = vmul.f32 %v7319_v16, %v2441_v2  ;;  %1978 = vadd.xlane.f32.xlu1 %v1912_v1 }
 0x370   :  { %v2067_v11 = vmul.f32 %v4069_v59, %v2066_v51  ;;  %v2073_v35 = vmul.f32 %v4073_v5, %v7321_v58  ;;  %v1925_v19 = vpop.xlane.xlu2 %1924  ;;  %v1963_v55 = vpop.xlane.xlu1 %1962  ;;  %v7367_v51 = vsub.f32 %v7103_v30, %v1823_v36  ;;  %v2266_v38 = vsub.f32 1.5, %v2265_v56 }
 0x371   :  { %4076 = vrsqrt.f32 %v7349_v32  ;;  %v1993_v44 = vmul.f32 %v1925_v19, %v4543_v42  ;;  %v2012_v10 = vmul.f32 %v1963_v55, %v4543_v42  ;;  %v2515_v36 = vadd.f32 %v7329_v45, %v2478_v15 }
 0x372   :  { %v2071_v40 = vsel %vm7355_vm14, %v4069_v59, %v2067_v11  ;;  %v2074_v29 = vmul.f32 %v4073_v5, %v2073_v35  ;;  %v2267_v20 = vmul.f32 %v4071_v49, %v2266_v38  ;;  %vm2079_vm5 = vweird.f32 %v4073_v5 }
 0x373   :  { %v4075_v57 = vpop.eup %4074  ;;  %v2422_v14 = vmul.f32 %v2071_v40, %v7111_v33  ;;  %v7372_v11 = vadd.f32 1e-08, %v1993_v44  ;;  %v7375_v19 = vadd.f32 1e-08, %v2012_v10  ;;  %vm2080_vm6 = vmor %vm2078_vm7, %vm2079_vm5  ;;  %vm2088_vm10 = vweird.f32 %v7349_v32 }
 0x374   :  { %v2075_v59 = vmul.f32 0.5, %v2074_v29  ;;  %v1927_v35 = vpop.xlane.xlu0 %1926  ;;  %v2273_v2 = vmul.f32 %v4075_v57, %v7339_v24  ;;  %v2271_v52 = vsel %vm2270_vm3, %v4071_v49, %v2267_v20  ;;  %v1895_v29 = vmul.f32 %v7367_v51, %v7367_v51 }
 0x375   :  { %4078 = vrsqrt.f32 %v7372_v11  ;;  %v1994_v33 = vmul.f32 %v1927_v35, %v4543_v42  ;;  %v2442_v55 = vmul.f32 %v2271_v52, %v7116_v46  ;;  %v2459_v49 = vmul.f32 %v7319_v16, %v2422_v14 }
 0x376   :  { %v2076_v56 = vsub.f32 1.5, %v2075_v59  ;;  %v2274_v40 = vmul.f32 %v4075_v57, %v2273_v2  ;;  %4080 = vrsqrt.f32 %v7375_v19  ;;  %v7389_v59 = vadd.f32 %v2515_v36, %v6248_v47 }
 0x377   :  { %v4077_v1 = vpop.eup %4076  ;;  %v7386_v10 = vadd.f32 1e-08, %v1994_v33  ;;  %v2479_v46 = vmul.f32 %v7319_v16, %v2442_v55  ;;  %vm2279_vm9 = vweird.f32 %v4075_v57  ;;  %1944 = vadd.xlane.f32.xlu1 %v1895_v29  ;;  %vm2288_vm13 = vweird.f32 %v7375_v19 }
 0x378   :  { %v2077_v44 = vmul.f32 %v4073_v5, %v2076_v56  ;;  %v2083_v15 = vmul.f32 %v4077_v1, %v7349_v32  ;;  %v2275_v38 = vmul.f32 0.5, %v2274_v40  ;;  %v1929_v2 = vpop.xlane.xlu1 %1928  ;;  %2608 = vadd.xlane.f32.xlu2 %v7389_v59  ;;  %vm2089_vm11 = vweird.f32 %v4077_v1  ;;  %vm2280_vm15 = vmor %vm2278_vm8, %vm2279_vm9 }
 0x379   :  { %4082 = vrsqrt.f32 %v7386_v10  ;;  %v1995_v14 = vmul.f32 %v1929_v2, %v4543_v42  ;;  %v2516_v29 = vadd.f32 %v7329_v45, %v2479_v46  ;;  %vm2090_vm0 = vmor %vm2088_vm10, %vm2089_vm11  ;;  %vm2098_vm14 = vweird.f32 %v7372_v11 }
 0x37a   :  { %v2081_v35 = vsel %vm2080_vm6, %v4073_v5, %v2077_v44  ;;  %v2084_v20 = vmul.f32 %v4077_v1, %v2083_v15  ;;  %v2276_v56 = vsub.f32 1.5, %v2275_v38  ;;  %v2496_v5 = vadd.f32 %v7329_v45, %v2459_v49 }
 0x37b   :  { %v2423_v58 = vmul.f32 %v2081_v35, %v7123_v41  ;;  %v4079_v36 = vpop.eup %4078  ;;  %v1965_v55 = vpop.xlane.xlu2 %1964  ;;  %v7406_v38 = vadd.f32 1e-08, %v1995_v14  ;;  %vm2108_vm5 = vweird.f32 %v7386_v10 }
 0x37c   :  { %v2085_v33 = vmul.f32 0.5, %v2084_v20  ;;  %v4081_v52 = vpop.eup %4080  ;;  %v2277_v40 = vmul.f32 %v4075_v57, %v2276_v56  ;;  %v2093_v41 = vmul.f32 %v4079_v36, %v7372_v11  ;;  %v2013_v2 = vmul.f32 %v1965_v55, %v4543_v42 }
 0x37d   :  { %v2283_v15 = vmul.f32 %v4081_v52, %v7375_v19  ;;  %v2460_v35 = vmul.f32 %v7319_v16, %v2423_v58  ;;  %v7411_v56 = vadd.f32 %v2496_v5, %v9410_v18  ;;  %4084 = vrsqrt.f32 %v7406_v38 }
 0x37e   :  { %v2086_v44 = vsub.f32 1.5, %v2085_v33  ;;  %v2281_v49 = vsel %vm2280_vm15, %v4075_v57, %v2277_v40  ;;  %v2094_v20 = vmul.f32 %v4079_v36, %v2093_v41  ;;  %v7418_v58 = vadd.f32 1e-08, %v2013_v2 }
 0x37f   :  { %v2443_v46 = vmul.f32 %v2281_v49, %v7130_v61  ;;  %v2284_v30 = vmul.f32 %v4081_v52, %v2283_v15  ;;  %v4083_v24 = vpop.eup %4082  ;;  %2570 = vadd.xlane.f32.xlu0 %v7411_v56  ;;  %v7422_v57 = vadd.f32 %v2516_v29, %v6339_v7  ;;  %vm2099_vm1 = vweird.f32 %v4079_v36 }
 0x380   :  { %v2087_v47 = vmul.f32 %v4077_v1, %v2086_v44  ;;  %v2095_v33 = vmul.f32 0.5, %v2094_v20  ;;  %v2103_v61 = vmul.f32 %v4083_v24, %v7386_v10  ;;  %vm2289_vm12 = vweird.f32 %v4081_v52  ;;  %vm2100_vm4 = vmor %vm2098_vm14, %vm2099_vm1 }
 0x381   :  { %v2285_v5 = vmul.f32 0.5, %v2284_v30  ;;  %4086 = vrsqrt.f32 %v7418_v58  ;;  %2610 = vadd.xlane.f32.xlu2 %v7422_v57  ;;  %v2497_v44 = vadd.f32 %v7329_v45, %v2460_v35  ;;  %v2480_v29 = vmul.f32 %v7319_v16, %v2443_v46  ;;  %vm2290_vm2 = vmor %vm2288_vm13, %vm2289_vm12 }
 0x382   :  { %v2091_v14 = vsel %vm2090_vm0, %v4077_v1, %v2087_v47  ;;  %v2096_v41 = vsub.f32 1.5, %v2095_v33  ;;  %v2104_v55 = vmul.f32 %v4083_v24, %v2103_v61  ;;  %v1967_v49 = vpop.xlane.xlu0 %1966  ;;  %vm2109_vm3 = vweird.f32 %v4083_v24 }
 0x383   :  { %v2424_v40 = vmul.f32 %v2091_v14, %v7133_v23  ;;  %v2286_v32 = vsub.f32 1.5, %v2285_v5  ;;  %v4085_v23 = vpop.eup %4084  ;;  %v7435_v20 = vadd.f32 %v2497_v44, %v9411_v48  ;;  %v2517_v35 = vadd.f32 %v7329_v45, %v2480_v29  ;;  %vm2110_vm7 = vmor %vm2108_vm5, %vm2109_vm3 }
 0x384   :  { %v2097_v47 = vmul.f32 %v4079_v36, %v2096_v41  ;;  %v2105_v15 = vmul.f32 0.5, %v2104_v55  ;;  %v2113_v19 = vmul.f32 %v4085_v23, %v7406_v38  ;;  %v2014_v11 = vmul.f32 %v1967_v49, %v4543_v42 }
 0x385   :  { %v2461_v30 = vmul.f32 %v7319_v16, %v2424_v40  ;;  %v2287_v1 = vmul.f32 %v4081_v52, %v2286_v32  ;;  %v7443_v5 = vadd.f32 %v2517_v35, %v9412_v22  ;;  %vm2119_vm6 = vweird.f32 %v4085_v23 }
 0x386   :  { %v2101_v2 = vsel %vm2100_vm4, %v4079_v36, %v2097_v47  ;;  %v2106_v14 = vsub.f32 1.5, %v2105_v15  ;;  %v2114_v41 = vmul.f32 %v4085_v23, %v2113_v19  ;;  %v7446_v32 = vadd.f32 1e-08, %v2014_v11 }
 0x387   :  { %v2291_v46 = vsel %vm2290_vm2, %v4081_v52, %v2287_v1  ;;  %v2425_v33 = vmul.f32 %v2101_v2, %v7141_v62  ;;  %v4087_v61 = vpop.eup %4086  ;;  %2572 = vadd.xlane.f32.xlu0 %v7435_v20  ;;  %v2498_v36 = vadd.f32 %v7329_v45, %v2461_v30  ;;  %vm2118_vm8 = vweird.f32 %v7406_v38 }
 0x388   :  { %v2444_v40 = vmul.f32 %v2291_v46, %v7146_v37  ;;  %v2107_v55 = vmul.f32 %v4083_v24, %v2106_v14  ;;  %v2293_v52 = vmul.f32 %v4087_v61, %v7418_v58  ;;  %v2115_v44 = vmul.f32 0.5, %v2114_v41  ;;  %vm2120_vm9 = vmor %vm2118_vm8, %vm2119_vm6 }
 0x389   :  { %v2462_v62 = vmul.f32 %v7319_v16, %v2425_v33  ;;  %4088 = vrsqrt.f32 %v7446_v32  ;;  %2612 = vadd.xlane.f32.xlu2 %v7443_v5  ;;  %v7460_v15 = vadd.f32 %v2498_v36, %v9413_v27  ;;  %vm2299_vm10 = vweird.f32 %v4087_v61 }
 0x38a   :  { %v2111_v37 = vsel %vm2110_vm7, %v4083_v24, %v2107_v55  ;;  %v2294_v29 = vmul.f32 %v4087_v61, %v2293_v52  ;;  %v2481_v30 = vmul.f32 %v7319_v16, %v2444_v40  ;;  %v2116_v10 = vsub.f32 1.5, %v2115_v44  ;;  %v1931_v35 = vpop.xlane.xlu2 %1930 }
 0x38b   :  { %v2499_v47 = vadd.f32 %v7329_v45, %v2462_v62  ;;  %v2426_v1 = vmul.f32 %v2111_v37, %v7149_v60  ;;  %v1996_v24 = vmul.f32 %v1931_v35, %v4543_v42  ;;  %vm2298_vm11 = vweird.f32 %v7418_v58 }
 0x38c   :  { %v2295_v49 = vmul.f32 0.5, %v2294_v29  ;;  %v2518_v2 = vadd.f32 %v7329_v45, %v2481_v30  ;;  %v2117_v19 = vmul.f32 %v4085_v23, %v2116_v10  ;;  %vm2300_vm15 = vmor %vm2298_vm11, %vm2299_vm10  ;;  %vm2308_vm1 = vweird.f32 %v7446_v32 }
 0x38d   :  { %v7466_v11 = vadd.f32 %v2499_v47, %v9414_v4  ;;  %v2463_v46 = vmul.f32 %v7319_v16, %v2426_v1  ;;  %v2032_v40 = vadd.f32 1e-08, %v1996_v24  ;;  %v9441_v4 = vld [vmem:[#allocation48_spill] sm:$0xff] }
 0x38e   :  { %v2296_v60 = vsub.f32 1.5, %v2295_v49  ;;  %v7470_v33 = vadd.f32 %v2518_v2, %v6481_v0  ;;  %v2121_v38 = vsel %vm2120_vm9, %v4085_v23, %v2117_v19 }
 0x38f   :  { %v4089_v14 = vpop.eup %4088  ;;  %2574 = vadd.xlane.f32.xlu0 %v7460_v15  ;;  %v2500_v41 = vadd.f32 %v7329_v45, %v2463_v46  ;;  %v2427_v36 = vmul.f32 %v2121_v38, %v7159_v21  ;;  %4090 = vrsqrt.f32 %v2032_v40  ;;  %vm2128_vm14 = vweird.f32 %v2032_v40 }
 0x390   :  { %v2297_v55 = vmul.f32 %v4087_v61, %v2296_v60  ;;  %v2303_v52 = vmul.f32 %v4089_v14, %v7446_v32  ;;  %2614 = vadd.xlane.f32.xlu1 %v7470_v33  ;;  %vm2309_vm0 = vweird.f32 %v4089_v14 }
 0x391   :  { %2576 = vadd.xlane.f32.xlu2 %v7466_v11  ;;  %v2464_v44 = vmul.f32 %v7319_v16, %v2427_v36  ;;  %v7482_v29 = vadd.f32 %v2500_v41, %v6475_v12  ;;  %vm2310_vm12 = vmor %vm2308_vm1, %vm2309_vm0 }
 0x392   :  { %v2301_v62 = vsel %vm2300_vm15, %v4087_v61, %v2297_v55  ;;  %v2304_v23 = vmul.f32 %v4089_v14, %v2303_v52  ;;  %v1969_v47 = vpop.xlane.xlu1 %1968 }
 0x393   :  { %v2445_v37 = vmul.f32 %v2301_v62, %v7165_v31  ;;  %v2501_v58 = vadd.f32 %v7329_v45, %v2464_v44  ;;  %v2015_v30 = vmul.f32 %v1969_v47, %v4543_v42 }
 0x394   :  { %v2305_v21 = vmul.f32 0.5, %v2304_v23 }
 0x395   :  { %v2482_v1 = vmul.f32 %v7319_v16, %v2445_v37  ;;  %v7488_v61 = vadd.f32 %v2501_v58, %v6548_v53  ;;  %v4091_v49 = vpop.eup %4090  ;;  %v2051_v35 = vadd.f32 1e-08, %v2015_v30 }
 0x396   :  { %v2306_v10 = vsub.f32 1.5, %v2305_v21  ;;  %v2123_v19 = vmul.f32 %v4091_v49, %v2032_v40  ;;  %vm2129_vm13 = vweird.f32 %v4091_v49 }
 0x397   :  { %2578 = vadd.xlane.f32.xlu0 %v7482_v29  ;;  %v2519_v31 = vadd.f32 %v7329_v45, %v2482_v1  ;;  %4092 = vrsqrt.f32 %v2051_v35  ;;  %vm2130_vm4 = vmor %vm2128_vm14, %vm2129_vm13  ;;  %vm2318_vm3 = vweird.f32 %v2051_v35 }
 0x398   :  { %v2307_v2 = vmul.f32 %v4089_v14, %v2306_v10  ;;  %2580 = vadd.xlane.f32.xlu1 %v7488_v61  ;;  %v2124_v60 = vmul.f32 %v4091_v49, %v2123_v19 }
 0x399   :  { %v7495_v24 = vadd.f32 %v2519_v31, %v6579_v34 }
 0x39a   :  { %v2311_v46 = vsel %vm2310_vm12, %v4089_v14, %v2307_v2  ;;  %v2125_v41 = vmul.f32 0.5, %v2124_v60  ;;  %v1933_v36 = vpop.xlane.xlu0 %1932 }
 0x39b   :  { %v2446_v38 = vmul.f32 %v2311_v46, %v7171_v39  ;;  %2616 = vadd.xlane.f32.xlu2 %v7495_v24  ;;  %v1997_v55 = vmul.f32 %v1933_v36, %v4543_v42 }
 0x39c   :  { %v2126_v52 = vsub.f32 1.5, %v2125_v41 }
 0x39d   :  { %v2483_v32 = vmul.f32 %v7319_v16, %v2446_v38  ;;  %v4093_v62 = vpop.eup %4092  ;;  %v2033_v23 = vadd.f32 1e-08, %v1997_v55 }
 0x39e   :  { %v2127_v37 = vmul.f32 %v4091_v49, %v2126_v52  ;;  %v2313_v14 = vmul.f32 %v4093_v62, %v2051_v35  ;;  %vm2319_vm2 = vweird.f32 %v4093_v62 }
 0x39f   :  { %v2520_v44 = vadd.f32 %v7329_v45, %v2483_v32  ;;  %4094 = vrsqrt.f32 %v2033_v23  ;;  %vm2320_vm5 = vmor %vm2318_vm3, %vm2319_vm2  ;;  %vm2138_vm6 = vweird.f32 %v2033_v23 }
 0x3a0   :  { %v2131_v21 = vsel %vm2130_vm4, %v4091_v49, %v2127_v37  ;;  %v2314_v47 = vmul.f32 %v4093_v62, %v2313_v14 }
 0x3a1   :  { %v7503_v39 = vadd.f32 %v2520_v44, %v6637_v26  ;;  %v2428_v58 = vmul.f32 %v2131_v21, %v7177_v50 }
 0x3a2   :  { %v2315_v30 = vmul.f32 0.5, %v2314_v47  ;;  %v1971_v1 = vpop.xlane.xlu2 %1970 }
 0x3a3   :  { %2618 = vadd.xlane.f32.xlu1 %v7503_v39  ;;  %v2016_v10 = vmul.f32 %v1971_v1, %v4543_v42  ;;  %v2465_v31 = vmul.f32 %v7319_v16, %v2428_v58 }
 0x3a4   :  { %v2316_v2 = vsub.f32 1.5, %v2315_v30  ;;  %v9432_v30 = vld [vmem:[#allocation3_spill] sm:$0xff] }
 0x3a5   :  { %v4095_v40 = vpop.eup %4094  ;;  %v2052_v19 = vadd.f32 1e-08, %v2016_v10  ;;  %v2502_v46 = vadd.f32 %v7329_v45, %v2465_v31  ;;  %v9433_v10 = vld [vmem:[#allocation22_spill] sm:$0xff] }
 0x3a6   :  { %v2317_v60 = vmul.f32 %v4093_v62, %v2316_v2  ;;  %v2133_v49 = vmul.f32 %v4095_v40, %v2033_v23  ;;  %vm2139_vm7 = vweird.f32 %v4095_v40 }
 0x3a7   :  { %4096 = vrsqrt.f32 %v2052_v19  ;;  %v7511_v50 = vadd.f32 %v2502_v46, %v6672_v28  ;;  %vm2140_vm8 = vmor %vm2138_vm6, %vm2139_vm7  ;;  %vm2328_vm10 = vweird.f32 %v2052_v19 }
 0x3a8   :  { %v2321_v38 = vsel %vm2320_vm5, %v4093_v62, %v2317_v60  ;;  %v2134_v41 = vmul.f32 %v4095_v40, %v2133_v49 }
 0x3a9   :  { %v2447_v36 = vmul.f32 %v2321_v38, %v7183_v43 }
 0x3aa   :  { %v2135_v55 = vmul.f32 0.5, %v2134_v41  ;;  %v1935_v32 = vpop.xlane.xlu1 %1934 }
 0x3ab   :  { %2582 = vadd.xlane.f32.xlu1 %v7511_v50  ;;  %v1998_v52 = vmul.f32 %v1935_v32, %v4543_v42  ;;  %v2484_v44 = vmul.f32 %v7319_v16, %v2447_v36 }
 0x3ac   :  { %v2136_v37 = vsub.f32 1.5, %v2135_v55  ;;  %v7525_v55 = vpop.xlane.xlu0 %1942 }
 0x3ad   :  { %v4097_v35 = vpop.eup %4096  ;;  %v2034_v14 = vadd.f32 1e-08, %v1998_v52  ;;  %v2521_v21 = vadd.f32 %v7329_v45, %v2484_v44 }
 0x3ae   :  { %v2137_v47 = vmul.f32 %v4095_v40, %v2136_v37  ;;  %v2323_v62 = vmul.f32 %v4097_v35, %v2052_v19  ;;  %vm2329_vm9 = vweird.f32 %v4097_v35 }
 0x3af   :  { %4098 = vrsqrt.f32 %v2034_v14  ;;  %v7520_v31 = vadd.f32 %v2521_v21, %v9433_v10  ;;  %vm2330_vm11 = vmor %vm2328_vm10, %vm2329_vm9  ;;  %vm2148_vm0 = vweird.f32 %v2034_v14 }
 0x3b0   :  { %v2141_v43 = vsel %vm2140_vm8, %v4095_v40, %v2137_v47  ;;  %v2324_v58 = vmul.f32 %v4097_v35, %v2323_v62  ;;  %v9434_v47 = vld [vmem:[#allocation10_spill] sm:$0xff] }
 0x3b1   :  { %v2429_v1 = vmul.f32 %v2141_v43, %v9432_v30  ;;  %v9435_v43 = vld [vmem:[#allocation18_spill] sm:$0xff] }
 0x3b2   :  { %v2325_v2 = vmul.f32 0.5, %v2324_v58  ;;  %v1973_v46 = vpop.xlane.xlu1 %1972 }
 0x3b3   :  { %2620 = vadd.xlane.f32.xlu1 %v7520_v31  ;;  %v2017_v60 = vmul.f32 %v1973_v46, %v4543_v42  ;;  %v2466_v49 = vmul.f32 %v7319_v16, %v2429_v1 }
 0x3b4   :  { %v2326_v38 = vsub.f32 1.5, %v2325_v2 }
 0x3b5   :  { %v4099_v23 = vpop.eup %4098  ;;  %v2053_v41 = vadd.f32 1e-08, %v2017_v60  ;;  %v2503_v32 = vadd.f32 %v7329_v45, %v2466_v49 }
 0x3b6   :  { %v2327_v36 = vmul.f32 %v4097_v35, %v2326_v38  ;;  %v2143_v40 = vmul.f32 %v4099_v23, %v2034_v14  ;;  %vm2149_vm15 = vweird.f32 %v4099_v23 }
 0x3b7   :  { %4100 = vrsqrt.f32 %v2053_v41  ;;  %v7530_v58 = vadd.f32 %v2503_v32, %v9435_v43  ;;  %vm2150_vm1 = vmor %vm2148_vm0, %vm2149_vm15  ;;  %vm2338_vm13 = vweird.f32 %v2053_v41 }
 0x3b8   :  { %v2331_v52 = vsel %vm2330_vm11, %v4097_v35, %v2327_v36  ;;  %v2144_v44 = vmul.f32 %v4099_v23, %v2143_v40  ;;  %v7535_v35 = vpop.xlane.xlu0 %1982 }
 0x3b9   :  { %v2448_v62 = vmul.f32 %v2331_v52, %v9434_v47 }
 0x3ba   :  { %v2145_v37 = vmul.f32 0.5, %v2144_v44  ;;  %v1937_v21 = vpop.xlane.xlu1 %1936 }
 0x3bb   :  { %v1999_v30 = vmul.f32 %v1937_v21, %v4543_v42  ;;  %2584 = vadd.xlane.f32.xlu1 %v7530_v58  ;;  %v2485_v60 = vmul.f32 %v7319_v16, %v2448_v62  ;;  %v9436_v21 = vld [vmem:[#allocation24_spill] sm:$0xff]  ;;  %v7542_v62 = vpop.xlane.xlu2 %1980 }
 0x3bc   :  { %v2146_v19 = vsub.f32 1.5, %v2145_v37  ;;  %v2021_v22 = vmul.f32 %v7542_v62, %v4543_v42 }
 0x3bd   :  { %v4101_v1 = vpop.eup %4100  ;;  %v2035_v2 = vadd.f32 1e-08, %v1999_v30  ;;  %v2522_v32 = vadd.f32 %v7329_v45, %v2485_v60 }
 0x3be   :  { %v2333_v46 = vmul.f32 %v4101_v1, %v2053_v41  ;;  %v2147_v38 = vmul.f32 %v4099_v23, %v2146_v19  ;;  %vm2339_vm12 = vweird.f32 %v4101_v1  ;;  %v7630_v62 = vadd.f32 1e-08, %v2021_v22 }
 0x3bf   :  { %4102 = vrsqrt.f32 %v2035_v2  ;;  %v7540_v47 = vadd.f32 %v2522_v32, %v9436_v21  ;;  %vm2340_vm14 = vmor %vm2338_vm13, %vm2339_vm12  ;;  %vm2158_vm2 = vweird.f32 %v2035_v2 }
 0x3c0   :  { %v2334_v49 = vmul.f32 %v4101_v1, %v2333_v46  ;;  %v2151_v37 = vsel %vm2150_vm1, %v4099_v23, %v2147_v38  ;;  %v7546_v43 = vpop.xlane.xlu0 %1946 }
 0x3c1   :  { %v2430_v46 = vmul.f32 %v2151_v37, %v7216_v54 }
 0x3c2   :  { %v2335_v36 = vmul.f32 0.5, %v2334_v49  ;;  %v1975_v40 = vpop.xlane.xlu1 %1974 }
 0x3c3   :  { %v2018_v44 = vmul.f32 %v1975_v40, %v4543_v42  ;;  %2622 = vadd.xlane.f32.xlu1 %v7540_v47  ;;  %v2467_v32 = vmul.f32 %v7319_v16, %v2430_v46 }
 0x3c4   :  { %v2336_v52 = vsub.f32 1.5, %v2335_v36 }
 0x3c5   :  { %v4103_v19 = vpop.eup %4102  ;;  %v2054_v14 = vadd.f32 1e-08, %v2018_v44  ;;  %v2504_v44 = vadd.f32 %v7329_v45, %v2467_v32 }
 0x3c6   :  { %v2337_v30 = vmul.f32 %v4101_v1, %v2336_v52  ;;  %v2153_v49 = vmul.f32 %v4103_v19, %v2035_v2  ;;  %vm2159_vm4 = vweird.f32 %v4103_v19 }
 0x3c7   :  { %4104 = vrsqrt.f32 %v2054_v14  ;;  %vm2160_vm3 = vmor %vm2158_vm2, %vm2159_vm4  ;;  %vm2348_vm7 = vweird.f32 %v2054_v14 }
 0x3c8   :  { %v2341_v60 = vsel %vm2340_vm14, %v4101_v1, %v2337_v30  ;;  %v2154_v36 = vmul.f32 %v4103_v19, %v2153_v49  ;;  %v7553_v1 = vpop.xlane.xlu2 %1984 }
 0x3c9   :  { %v2449_v38 = vmul.f32 %v2341_v60, %v7234_v6  ;;  %v7556_v6 = vadd.f32 %v2504_v44, %v6894_v3 }
 0x3ca   :  { %v1939_v23 = vpop.xlane.xlu1 %1938  ;;  %v2155_v40 = vmul.f32 0.5, %v2154_v36 }
 0x3cb   :  { %v2000_v41 = vmul.f32 %v1939_v23, %v4543_v42  ;;  %v2486_v54 = vmul.f32 %v7319_v16, %v2449_v38  ;;  %2586 = vadd.xlane.f32.xlu1 %v7556_v6 }
 0x3cc   :  { %v2156_v52 = vsub.f32 1.5, %v2155_v40  ;;  %v7561_v40 = vpop.xlane.xlu0 %1948 }
 0x3cd   :  { %v2036_v21 = vadd.f32 1e-08, %v2000_v41  ;;  %v4105_v30 = vpop.eup %4104  ;;  %v2523_v23 = vadd.f32 %v7329_v45, %v2486_v54 }
 0x3ce   :  { %v2157_v37 = vmul.f32 %v4103_v19, %v2156_v52  ;;  %v2343_v60 = vmul.f32 %v4105_v30, %v2054_v14  ;;  %vm2349_vm5 = vweird.f32 %v4105_v30 }
 0x3cf   :  { %4106 = vrsqrt.f32 %v2036_v21  ;;  %v7566_v44 = vadd.f32 %v2523_v23, %v7015_v17  ;;  %vm2350_vm6 = vmor %vm2348_vm7, %vm2349_vm5  ;;  %vm2168_vm9 = vweird.f32 %v2036_v21 }
 0x3d0   :  { %v2161_v46 = vsel %vm2160_vm3, %v4103_v19, %v2157_v37  ;;  %v2344_v38 = vmul.f32 %v4105_v30, %v2343_v60  ;;  %v7572_v60 = vpop.xlane.xlu2 %1986 }
 0x3d1   :  { %v2431_v36 = vmul.f32 %v2161_v46, %v7251_v8 }
 0x3d2   :  { %v1977_v49 = vpop.xlane.xlu1 %1976  ;;  %v2345_v41 = vmul.f32 0.5, %v2344_v38 }
 0x3d3   :  { %v2019_v2 = vmul.f32 %v1977_v49, %v4543_v42  ;;  %v2468_v32 = vmul.f32 %v7319_v16, %v2431_v36  ;;  %2624 = vadd.xlane.f32.xlu1 %v7566_v44 }
 0x3d4   :  { %v2346_v8 = vsub.f32 1.5, %v2345_v41  ;;  %v2002_v41 = vmul.f32 %v7525_v55, %v4543_v42  ;;  %v7580_v14 = vpop.xlane.xlu0 %1950 }
 0x3d5   :  { %v4107_v52 = vpop.eup %4106  ;;  %v2055_v19 = vadd.f32 1e-08, %v2019_v2  ;;  %v2505_v37 = vadd.f32 %v7329_v45, %v2468_v32 }
 0x3d6   :  { %v2163_v46 = vmul.f32 %v4107_v52, %v2036_v21  ;;  %v2347_v49 = vmul.f32 %v4105_v30, %v2346_v8  ;;  %vm2169_vm8 = vweird.f32 %v4107_v52  ;;  %v7582_v10 = vadd.f32 1e-08, %v2002_v41  ;;  %v9438_v21 = vld [vmem:[#allocation23_spill] sm:$0xff] }
 0x3d7   :  { %4108 = vrsqrt.f32 %v2055_v19  ;;  %v7570_v54 = vadd.f32 %v2505_v37, %v6563_v13  ;;  %vm2170_vm10 = vmor %vm2168_vm9, %vm2169_vm8  ;;  %vm2358_vm15 = vweird.f32 %v2055_v19 }
 0x3d8   :  { %v2164_v36 = vmul.f32 %v4107_v52, %v2163_v46  ;;  %v2351_v2 = vsel %vm2350_vm6, %v4105_v30, %v2347_v49  ;;  %vm2188_vm8 = vweird.f32 %v7582_v10 }
 0x3d9   :  { %2588 = vadd.xlane.f32.xlu0 %v7570_v54  ;;  %v2450_v37 = vmul.f32 %v2351_v2, %v7269_v63 }
 0x3da   :  { %v1941_v38 = vpop.xlane.xlu1 %1940  ;;  %v2165_v32 = vmul.f32 0.5, %v2164_v36 }
 0x3db   :  { %v2001_v23 = vmul.f32 %v1941_v38, %v4543_v42  ;;  %v2487_v30 = vmul.f32 %v7319_v16, %v2450_v37  ;;  %v9437_v38 = vld [vmem:[#allocation45_spill] sm:$0xff] }
 0x3dc   :  { %v2166_v17 = vsub.f32 1.5, %v2165_v32  ;;  %v7588_v32 = vpop.xlane.xlu2 %1988 }
 0x3dd   :  { %v2037_v13 = vadd.f32 1e-08, %v2001_v23  ;;  %v4109_v8 = vpop.eup %4108  ;;  %v2524_v23 = vadd.f32 %v7329_v45, %v2487_v30 }
 0x3de   :  { %v2167_v46 = vmul.f32 %v4107_v52, %v2166_v17  ;;  %v2353_v3 = vmul.f32 %v4109_v8, %v2055_v19  ;;  %vm2359_vm11 = vweird.f32 %v4109_v8 }
 0x3df   :  { %4110 = vrsqrt.f32 %v2037_v13  ;;  %v7592_v41 = vadd.f32 %v2524_v23, %v9438_v21  ;;  %vm2360_vm0 = vmor %vm2358_vm15, %vm2359_vm11  ;;  %v9440_v21 = vld [vmem:[#allocation47_spill] sm:$0xff]  ;;  %vm2178_vm12 = vweird.f32 %v2037_v13 }
 0x3e0   :  { %v2171_v49 = vsel %vm2170_vm10, %v4107_v52, %v2167_v46  ;;  %v2354_v36 = vmul.f32 %v4109_v8, %v2353_v3  ;;  %4112 = vrsqrt.f32 %v7582_v10 }
 0x3e1   :  { %v2432_v63 = vmul.f32 %v2171_v49, %v9437_v38  ;;  %2626 = vadd.xlane.f32.xlu2 %v7592_v41  ;;  %v7597_v49 = vpop.xlane.xlu0 %1952 }
 0x3e2   :  { %v1979_v55 = vpop.xlane.xlu1 %1978  ;;  %v2355_v28 = vmul.f32 0.5, %v2354_v36 }
 0x3e3   :  { %v2020_v2 = vmul.f32 %v1979_v55, %v4543_v42  ;;  %v2469_v52 = vmul.f32 %v7319_v16, %v2432_v63  ;;  %v9439_v55 = vld [vmem:[#allocation34_spill] sm:$0xff] }
 0x3e4   :  { %v2356_v3 = vsub.f32 1.5, %v2355_v28  ;;  %v2607_v19 = vpop.xlane.xlu2 %2606 }
 0x3e5   :  { %v4111_v17 = vpop.eup %4110  ;;  %v2056_v26 = vadd.f32 1e-08, %v2020_v2  ;;  %v2506_v46 = vadd.f32 %v7329_v45, %v2469_v52 }
 0x3e6   :  { %v2173_v37 = vmul.f32 %v4111_v17, %v2037_v13  ;;  %v2357_v30 = vmul.f32 %v4109_v8, %v2356_v3  ;;  %v7602_v28 = vpop.eup %4112  ;;  %vm2179_vm1 = vweird.f32 %v4111_v17 }
 0x3e7   :  { %4114 = vrsqrt.f32 %v2056_v26  ;;  %v7600_v38 = vadd.f32 %v2506_v46, %v9439_v55  ;;  %vm2180_vm13 = vmor %vm2178_vm12, %vm2179_vm1  ;;  %vm2368_vm4 = vweird.f32 %v2056_v26  ;;  %vm2189_vm5 = vweird.f32 %v7602_v28 }
 0x3e8   :  { %v2174_v36 = vmul.f32 %v4111_v17, %v2173_v37  ;;  %v2361_v23 = vsel %vm2360_vm0, %v4109_v8, %v2357_v30  ;;  %v2022_v37 = vmul.f32 %v7535_v35, %v4543_v42  ;;  %v2183_v30 = vmul.f32 %v7602_v28, %v7582_v10  ;;  %vm2190_vm9 = vmor %vm2188_vm8, %vm2189_vm5 }
 0x3e9   :  { %v2451_v53 = vmul.f32 %v2361_v23, %v9440_v21  ;;  %2590 = vadd.xlane.f32.xlu1 %v7600_v38  ;;  %vm2378_vm1 = vweird.f32 %v7630_v62 }
 0x3ea   :  { %v2175_v2 = vmul.f32 0.5, %v2174_v36  ;;  %v1945_v63 = vpop.xlane.xlu1 %1944  ;;  %v7613_v12 = vadd.f32 1e-08, %v2022_v37 }
 0x3eb   :  { %v2003_v52 = vmul.f32 %v1945_v63, %v4543_v42  ;;  %v2488_v8 = vmul.f32 %v7319_v16, %v2451_v53 }
 0x3ec   :  { %v2176_v3 = vsub.f32 1.5, %v2175_v2  ;;  %vm2388_vm11 = vweird.f32 %v7613_v12 }
 0x3ed   :  { %v4115_v34 = vpop.eup %4114  ;;  %v2039_v46 = vadd.f32 1e-08, %v2003_v52  ;;  %v2525_v23 = vadd.f32 %v7329_v45, %v2488_v8  ;;  %v9442_v52 = vld [vmem:[#allocation17_spill] sm:$0xff] }
 0x3ee   :  { %v2177_v36 = vmul.f32 %v4111_v17, %v2176_v3  ;;  %v2363_v21 = vmul.f32 %v4115_v34, %v2056_v26  ;;  %v2184_v3 = vmul.f32 %v7602_v28, %v2183_v30  ;;  %vm2369_vm14 = vweird.f32 %v4115_v34 }
 0x3ef   :  { %4116 = vrsqrt.f32 %v2039_v46  ;;  %v7617_v0 = vadd.f32 %v2525_v23, %v9442_v52  ;;  %v2609_v23 = vpop.xlane.xlu2 %2608  ;;  %vm2370_vm2 = vmor %vm2368_vm4, %vm2369_vm14  ;;  %vm2198_vm7 = vweird.f32 %v2039_v46 }
 0x3f0   :  { %v2181_v2 = vsel %vm2180_vm13, %v4111_v17, %v2177_v36  ;;  %v2364_v63 = vmul.f32 %v4115_v34, %v2363_v21  ;;  %4118 = vrsqrt.f32 %v7613_v12  ;;  %v2185_v36 = vmul.f32 0.5, %v2184_v3 }
 0x3f1   :  { %v2433_v35 = vmul.f32 %v2181_v2, %v9441_v4  ;;  %2628 = vadd.xlane.f32.xlu0 %v7617_v0  ;;  %v9443_v2 = vld [vmem:[#allocation21_spill] sm:$0xff]  ;;  %4120 = vrsqrt.f32 %v7630_v62 }
 0x3f2   :  { %v2571_v55 = vpop.xlane.xlu0 %2570  ;;  %v2365_v13 = vmul.f32 0.5, %v2364_v63  ;;  %v2186_v22 = vsub.f32 1.5, %v2185_v36 }
 0x3f3   :  { %v2642_v53 = vmul.f32 %v2571_v55, %v4543_v42  ;;  %v2470_v37 = vmul.f32 %v7319_v16, %v2433_v35 }
 0x3f4   :  { %v2366_v8 = vsub.f32 1.5, %v2365_v13 }
 0x3f5   :  { %v7625_v17 = vsub.f32 %v7411_v56, %v2642_v53  ;;  %v4117_v4 = vpop.eup %4116  ;;  %v2507_v55 = vadd.f32 %v7329_v45, %v2470_v37  ;;  %v2660_v56 = vmul.f32 %v2607_v19, %v4543_v42 }
 0x3f6   :  { %v2367_v30 = vmul.f32 %v4115_v34, %v2366_v8  ;;  %v2193_v21 = vmul.f32 %v4117_v4, %v2039_v46  ;;  %v7641_v8 = vpop.eup %4118  ;;  %vm2199_vm3 = vweird.f32 %v4117_v4 }
 0x3f7   :  { %v7634_v63 = vadd.f32 %v2507_v55, %v9443_v2  ;;  %v2714_v35 = vmul.f32 %v7625_v17, %v7625_v17  ;;  %v7645_v19 = vsub.f32 %v7346_v9, %v2660_v56  ;;  %v2383_v9 = vmul.f32 %v7641_v8, %v7613_v12  ;;  %vm7658_vm6 = vmor %vm2198_vm7, %vm2199_vm3 }
 0x3f8   :  { %v2371_v53 = vsel %vm2370_vm2, %v4115_v34, %v2367_v30  ;;  %v2194_v13 = vmul.f32 %v4117_v4, %v2193_v21  ;;  %v2187_v30 = vmul.f32 %v7602_v28, %v2186_v22  ;;  %vm2389_vm10 = vweird.f32 %v7641_v8 }
 0x3f9   :  { %v2452_v3 = vmul.f32 %v2371_v53, %v7337_v25  ;;  %2592 = vadd.xlane.f32.xlu2 %v7634_v63  ;;  %2750 = vadd.xlane.f32.xlu0 %v2714_v35  ;;  %v2732_v56 = vmul.f32 %v7645_v19, %v7645_v19  ;;  %v9446_v35 = vld [vmem:[#allocation35_spill] sm:$0xff]  ;;  %v2611_v53 = vpop.xlane.xlu2 %2610  ;;  %v2384_v10 = vmul.f32 %v7641_v8, %v2383_v9  ;;  %vm7745_vm15 = vmor %vm2388_vm11, %vm2389_vm10 }
 0x3fa   :  { %v2573_v52 = vpop.xlane.xlu0 %2572  ;;  %v2195_v37 = vmul.f32 0.5, %v2194_v13  ;;  %v2191_v22 = vsel %vm2190_vm9, %v7602_v28, %v2187_v30 }
 0x3fb   :  { %v2643_v26 = vmul.f32 %v2573_v52, %v4543_v42  ;;  %v2489_v55 = vmul.f32 %v7319_v16, %v2452_v3  ;;  %v2023_v52 = vmul.f32 %v7553_v1, %v4543_v42  ;;  %v2661_v16 = vmul.f32 %v2609_v23, %v4543_v42  ;;  %v7673_v3 = vpop.eup %4120 }
 0x3fc   :  { %v2196_v25 = vsub.f32 1.5, %v2195_v37  ;;  %v2385_v9 = vmul.f32 0.5, %v2384_v10  ;;  %v7723_v10 = vld [vmem:[%s9092_s2 + $0x1] ss:$0 sm:$0xff]  ;;  %vm2379_vm0 = vweird.f32 %v7673_v3 }
 0x3fd   :  { %v7648_v34 = vsub.f32 %v7435_v20, %v2643_v26  ;;  %v2526_v36 = vadd.f32 %v7329_v45, %v2489_v55  ;;  %v7680_v37 = vadd.f32 1e-08, %v2023_v52  ;;  %v9447_v52 = vld [vmem:[#allocation7_spill] sm:$0xff]  ;;  %vm2380_vm12 = vmor %vm2378_vm1, %vm2379_vm0 }
 0x3fe   :  { %v2197_v21 = vmul.f32 %v4117_v4, %v2196_v25  ;;  %v7686_v25 = vsub.f32 %v7389_v59, %v2661_v16  ;;  %v2434_v30 = vmul.f32 %v2191_v22, %v9447_v52  ;;  %v2662_v59 = vmul.f32 %v2611_v53, %v4543_v42 }
 0x3ff   :  { %v7666_v1 = vadd.f32 %v2526_v36, %v9446_v35  ;;  %v2715_v45 = vmul.f32 %v7648_v34, %v7648_v34  ;;  %4122 = vrsqrt.f32 %v7680_v37  ;;  %v2386_v53 = vsub.f32 1.5, %v2385_v9  ;;  %v9456_v35 = vld [vmem:[#allocation27_spill] sm:$0xff] }
 0x400   :  { %v2201_v46 = vsel %vm7658_vm6, %v4117_v4, %v2197_v21  ;;  %v2373_v21 = vmul.f32 %v7673_v3, %v7630_v62  ;;  %v7718_v22 = vsub.f32 %v7422_v57, %v2662_v59  ;;  %vm2398_vm14 = vweird.f32 %v7680_v37 }
 0x401   :  { %2786 = vadd.xlane.f32.xlu2 %v2732_v56  ;;  %2630 = vadd.xlane.f32.xlu1 %v7666_v1  ;;  %v2435_v55 = vmul.f32 %v2201_v46, %v7367_v51  ;;  %v2387_v52 = vmul.f32 %v7641_v8, %v2386_v53  ;;  %v9451_v53 = vld [vmem:[#allocation25_spill] sm:$0xff] }
 0x402   :  { %v2575_v13 = vpop.xlane.xlu0 %2574  ;;  %2752 = vadd.xlane.f32.xlu0 %v2715_v45  ;;  %v2374_v56 = vmul.f32 %v7673_v3, %v2373_v21  ;;  %v2005_v45 = vmul.f32 %v7561_v40, %v4543_v42  ;;  %v2734_v59 = vmul.f32 %v7718_v22, %v7718_v22 }
 0x403   :  { %v2644_v23 = vmul.f32 %v2575_v13, %v4543_v42  ;;  %v2615_v26 = vpop.xlane.xlu1 %2614  ;;  %v2004_v13 = vmul.f32 %v7546_v43, %v4543_v42 }
 0x404   :  { %v2664_v4 = vmul.f32 %v2615_v26, %v4543_v42  ;;  %v7728_v21 = vadd.f32 1e-08, %v2005_v45 }
 0x405   :  { %v7689_v36 = vsub.f32 %v7460_v15, %v2644_v23  ;;  %v2733_v15 = vmul.f32 %v7686_v25, %v7686_v25  ;;  %v2613_v23 = vpop.xlane.xlu2 %2612  ;;  %v7733_v57 = vadd.f32 1e-08, %v2004_v13 }
 0x406   :  { %v7694_v28 = vsub.f32 %v7470_v33, %v2664_v4  ;;  %v7708_v33 = vld [vmem:[%s9091_s1 + $0x1] ss:$0 sm:$0xff]  ;;  %v7726_v4 = vpop.eup %4122  ;;  %v2663_v9 = vmul.f32 %v2613_v23, %v4543_v42  ;;  %4124 = vrsqrt.f32 %v7728_v21  ;;  %v2391_v23 = vsel %vm7745_vm15, %v7641_v8, %v2387_v52 }
 0x407   :  { %v2716_v20 = vmul.f32 %v7689_v36, %v7689_v36  ;;  %v2472_v16 = vmul.f32 %v7708_v33, %v2435_v55  ;;  %v2471_v46 = vmul.f32 %v7708_v33, %v2434_v30  ;;  %v2375_v55 = vmul.f32 0.5, %v2374_v56 }
 0x408   :  { %v2736_v51 = vmul.f32 %v7694_v28, %v7694_v28  ;;  %v2393_v56 = vmul.f32 %v7726_v4, %v7680_v37  ;;  %4126 = vrsqrt.f32 %v7733_v57  ;;  %v7760_v12 = vsub.f32 %v7443_v5, %v2663_v9 }
 0x409   :  { %2788 = vadd.xlane.f32.xlu2 %v2733_v15  ;;  %v2509_v40 = vadd.f32 %v7723_v10, %v2472_v16  ;;  %v2508_v43 = vadd.f32 %v7723_v10, %v2471_v46  ;;  %v9448_v15 = vld [vmem:[#allocation36_spill] sm:$0xff]  ;;  %v2376_v16 = vsub.f32 1.5, %v2375_v55  ;;  %vm2399_vm13 = vweird.f32 %v7726_v4 }
 0x40a   :  { %2794 = vadd.xlane.f32.xlu1 %v2736_v51  ;;  %2754 = vadd.xlane.f32.xlu0 %v2716_v20  ;;  %v2579_v30 = vpop.xlane.xlu0 %2578  ;;  %v2394_v55 = vmul.f32 %v7726_v4, %v2393_v56  ;;  %v2735_v9 = vmul.f32 %v7760_v12, %v7760_v12  ;;  %vm2400_vm4 = vmor %vm2398_vm14, %vm2399_vm13  ;;  %vm2218_vm5 = vweird.f32 %v7728_v21  ;;  %vm2208_vm6 = vweird.f32 %v7733_v57 }
 0x40b   :  { %v2581_v26 = vpop.xlane.xlu1 %2580  ;;  %v7740_v20 = vadd.f32 %v2509_v40, %v9448_v15  ;;  %v2646_v46 = vmul.f32 %v2579_v30, %v4543_v42  ;;  %v7752_v13 = vadd.f32 %v2508_v43, %v9451_v53  ;;  %v2377_v40 = vmul.f32 %v7673_v3, %v2376_v16 }
 0x40c   :  { %v2647_v51 = vmul.f32 %v2581_v26, %v4543_v42  ;;  %v7774_v5 = vpop.eup %4124  ;;  %v2395_v56 = vmul.f32 0.5, %v2394_v55 }
 0x40d   :  { %v2577_v43 = vpop.xlane.xlu2 %2576  ;;  %v7771_v52 = vsub.f32 %v7482_v29, %v2646_v46  ;;  %v2381_v16 = vsel %vm2380_vm12, %v7673_v3, %v2377_v40  ;;  %v2213_v46 = vmul.f32 %v7774_v5, %v7728_v21  ;;  %vm2219_vm2 = vweird.f32 %v7774_v5  ;;  %v9457_v21 = vld [vmem:[#allocation42_spill] sm:$0xff] }
 0x40e   :  { %v7763_v26 = vsub.f32 %v7488_v61, %v2647_v51  ;;  %v2645_v61 = vmul.f32 %v2577_v43, %v4543_v42  ;;  %v7782_v45 = vpop.eup %4126  ;;  %v2396_v3 = vsub.f32 1.5, %v2395_v56  ;;  %v9454_v56 = vld [vmem:[#allocation28_spill] sm:$0xff]  ;;  %vm2220_vm7 = vmor %vm2218_vm5, %vm2219_vm2 }
 0x40f   :  { %v2718_v29 = vmul.f32 %v7771_v52, %v7771_v52  ;;  %v2203_v40 = vmul.f32 %v7782_v45, %v7733_v57  ;;  %vm2209_vm3 = vweird.f32 %v7782_v45  ;;  %v2006_v57 = vmul.f32 %v7580_v14, %v4543_v42 }
 0x410   :  { %v2719_v51 = vmul.f32 %v7763_v26, %v7763_v26  ;;  %vm2210_vm8 = vmor %vm2208_vm6, %vm2209_vm3 }
 0x411   :  { %2790 = vadd.xlane.f32.xlu2 %v2734_v59  ;;  %v9452_v59 = vld [vmem:[#allocation38_spill] sm:$0xff] }
 0x412   :  { %2596 = vadd.xlane.f32.xlu1 %v7740_v20  ;;  %2594 = vadd.xlane.f32.xlu0 %v7752_v13  ;;  %v2454_v8 = vmul.f32 %v2391_v23, %v9452_v59  ;;  %v9453_v23 = vld [vmem:[#allocation37_spill] sm:$0xff]  ;;  %v7791_v59 = vsub.f32 %v7466_v11, %v2645_v61  ;;  %v2204_v11 = vmul.f32 %v7782_v45, %v2203_v40 }
 0x413   :  { %v2453_v43 = vmul.f32 %v2381_v16, %v9453_v23  ;;  %v2397_v16 = vmul.f32 %v7726_v4, %v2396_v3 }
 0x414   :  { %v2491_v62 = vmul.f32 %v7708_v33, %v2454_v8  ;;  %v2717_v8 = vmul.f32 %v7791_v59, %v7791_v59 }
 0x415   :  { %v2490_v15 = vmul.f32 %v7708_v33, %v2453_v43  ;;  %v2401_v23 = vsel %vm2400_vm4, %v7726_v4, %v2397_v16  ;;  %v2205_v43 = vmul.f32 0.5, %v2204_v11  ;;  %v2617_v3 = vpop.xlane.xlu2 %2616 }
 0x416   :  { %v2619_v30 = vpop.xlane.xlu1 %2618 }
 0x417   :  { %v2666_v61 = vmul.f32 %v2619_v30, %v4543_v42  ;;  %v2024_v30 = vmul.f32 %v7572_v60, %v4543_v42  ;;  %v2206_v4 = vsub.f32 1.5, %v2205_v43 }
 0x419   :  { %2792 = vadd.xlane.f32.xlu2 %v2735_v9  ;;  %v2528_v9 = vadd.f32 %v7723_v10, %v2491_v62  ;;  %v7812_v40 = vsub.f32 %v7503_v39, %v2666_v61  ;;  %v7830_v11 = vadd.f32 1e-08, %v2024_v30 }
 0x41a   :  { %2760 = vadd.xlane.f32.xlu1 %v2719_v51  ;;  %2758 = vadd.xlane.f32.xlu0 %v2718_v29  ;;  %v2214_v51 = vmul.f32 %v7774_v5, %v2213_v46  ;;  %v2527_v46 = vadd.f32 %v7723_v10, %v2490_v15 }
 0x41b   :  { %v7805_v29 = vadd.f32 %v2528_v9, %v9454_v56  ;;  %v9455_v56 = vld [vmem:[#allocation39_spill] sm:$0xff]  ;;  %v2738_v39 = vmul.f32 %v7812_v40, %v7812_v40  ;;  %4128 = vrsqrt.f32 %v7830_v11  ;;  %vm2408_vm10 = vweird.f32 %v7830_v11 }
 0x41c   :  { %v2215_v62 = vmul.f32 0.5, %v2214_v51  ;;  %v2455_v37 = vmul.f32 %v2401_v23, %v9455_v56  ;;  %v2665_v51 = vmul.f32 %v2617_v3, %v4543_v42  ;;  %v7820_v15 = vadd.f32 %v2527_v46, %v9456_v35 }
 0x41e   :  { %v2583_v55 = vpop.xlane.xlu1 %2582  ;;  %v2216_v9 = vsub.f32 1.5, %v2215_v62  ;;  %v7833_v61 = vsub.f32 %v7495_v24, %v2665_v51  ;;  %v9459_v51 = vld [vmem:[#allocation29_spill] sm:$0xff] }
 0x41f   :  { %v2648_v24 = vmul.f32 %v2583_v55, %v4543_v42 }
 0x420   :  { %v2217_v60 = vmul.f32 %v7774_v5, %v2216_v9  ;;  %v2737_v46 = vmul.f32 %v7833_v61, %v7833_v61 }
 0x421   :  { %2756 = vadd.xlane.f32.xlu2 %v2717_v8  ;;  %v7855_v55 = vsub.f32 %v7511_v50, %v2648_v24 }
 0x422   :  { %2634 = vadd.xlane.f32.xlu0 %v7805_v29  ;;  %v2221_v62 = vsel %vm2220_vm7, %v7774_v5, %v2217_v60  ;;  %v9458_v5 = vld [vmem:[#allocation40_spill] sm:$0xff] }
 0x423   :  { %v2437_v30 = vmul.f32 %v2221_v62, %v9457_v21  ;;  %v2720_v50 = vmul.f32 %v7855_v55, %v7855_v55 }
 0x425   :  { %v2474_v60 = vmul.f32 %v7708_v33, %v2437_v30  ;;  %v9461_v30 = vld [vmem:[#allocation30_spill] sm:$0xff] }
 0x426   :  { %v2621_v8 = vpop.xlane.xlu1 %2620 }
 0x427   :  { %v2667_v53 = vmul.f32 %v2621_v8, %v4543_v42 }
 0x429   :  { %v7823_v16 = vsub.f32 %v7520_v31, %v2667_v53  ;;  %2632 = vadd.xlane.f32.xlu2 %v7820_v15  ;;  %v2492_v31 = vmul.f32 %v7708_v33, %v2455_v37  ;;  %v2207_v53 = vmul.f32 %v7782_v45, %v2206_v4 }
 0x42a   :  { %2798 = vadd.xlane.f32.xlu0 %v2738_v39  ;;  %v2025_v39 = vmul.f32 %v7588_v32, %v4543_v42  ;;  %v2511_v32 = vadd.f32 %v7723_v10, %v2474_v60 }
 0x42b   :  { %v2739_v56 = vmul.f32 %v7823_v16, %v7823_v16  ;;  %v2529_v23 = vadd.f32 %v7723_v10, %v2492_v31  ;;  %v2211_v43 = vsel %vm2210_vm8, %v7782_v45, %v2207_v53  ;;  %v4129_v45 = vpop.eup %4128 }
 0x42c   :  { %v2436_v8 = vmul.f32 %v2211_v43, %v9458_v5  ;;  %v2403_v31 = vmul.f32 %v4129_v45, %v7830_v11  ;;  %v7875_v53 = vadd.f32 1e-08, %v2025_v39  ;;  %vm2409_vm9 = vweird.f32 %v4129_v45 }
 0x42d   :  { %2800 = vadd.xlane.f32.xlu1 %v2739_v56  ;;  %v7861_v4 = vadd.f32 %v2529_v23, %v9459_v51  ;;  %v7869_v56 = vadd.f32 1e-08, %v2006_v57  ;;  %v9460_v23 = vld [vmem:[#allocation33_spill] sm:$0xff]  ;;  %vm2410_vm11 = vmor %vm2408_vm10, %vm2409_vm9 }
 0x42e   :  { %v2585_v3 = vpop.xlane.xlu1 %2584  ;;  %v2404_v24 = vmul.f32 %v4129_v45, %v2403_v31  ;;  %v7882_v43 = vadd.f32 %v2511_v32, %v9460_v23  ;;  %v9462_v51 = vld [vmem:[#allocation41_spill] sm:$0xff]  ;;  %vm2418_vm13 = vweird.f32 %v7875_v53 }
 0x42f   :  { %v2649_v9 = vmul.f32 %v2585_v3, %v4543_v42  ;;  %4130 = vrsqrt.f32 %v7869_v56  ;;  %v2007_v3 = vmul.f32 %v7597_v49, %v4543_v42  ;;  %vm2228_vm1 = vweird.f32 %v7869_v56 }
 0x430   :  { %4132 = vrsqrt.f32 %v7875_v53  ;;  %v2405_v57 = vmul.f32 0.5, %v2404_v24 }
 0x431   :  { %2796 = vadd.xlane.f32.xlu2 %v2737_v46  ;;  %v7858_v37 = vsub.f32 %v7530_v58, %v2649_v9  ;;  %v2473_v58 = vmul.f32 %v7708_v33, %v2436_v8  ;;  %v7892_v8 = vadd.f32 1e-08, %v2007_v3 }
 0x432   :  { %v2406_v60 = vsub.f32 1.5, %v2405_v57 }
 0x433   :  { %v2721_v14 = vmul.f32 %v7858_v37, %v7858_v37  ;;  %v2510_v62 = vadd.f32 %v7723_v10, %v2473_v58  ;;  %4134 = vrsqrt.f32 %v7892_v8  ;;  %vm2238_vm2 = vweird.f32 %v7892_v8 }
 0x435   :  { %2636 = vadd.xlane.f32.xlu1 %v7861_v4  ;;  %2764 = vadd.xlane.f32.xlu0 %v2721_v14  ;;  %v7889_v9 = vadd.f32 %v2510_v62, %v9461_v30  ;;  %v4131_v5 = vpop.eup %4130  ;;  %v2407_v62 = vmul.f32 %v4129_v45, %v2406_v60 }
 0x436   :  { %v2623_v46 = vpop.xlane.xlu1 %2622  ;;  %v4133_v39 = vpop.eup %4132  ;;  %v2223_v49 = vmul.f32 %v4131_v5, %v7869_v56  ;;  %vm2229_vm15 = vweird.f32 %v4131_v5 }
 0x437   :  { %v2668_v21 = vmul.f32 %v2623_v46, %v4543_v42  ;;  %v2411_v57 = vsel %vm2410_vm11, %v4129_v45, %v2407_v62  ;;  %vm2419_vm0 = vweird.f32 %v4133_v39  ;;  %vm2230_vm12 = vmor %vm2228_vm1, %vm2229_vm15 }
 0x438   :  { %v2224_v24 = vmul.f32 %v4131_v5, %v2223_v49  ;;  %v2456_v49 = vmul.f32 %v2411_v57, %v9462_v51  ;;  %vm2420_vm14 = vmor %vm2418_vm13, %vm2419_vm0 }
 0x439   :  { %2762 = vadd.xlane.f32.xlu2 %v2720_v50  ;;  %v7895_v14 = vsub.f32 %v7540_v47, %v2668_v21  ;;  %v2413_v50 = vmul.f32 %v4133_v39, %v7875_v53  ;;  %v4135_v21 = vpop.eup %4134 }
 0x43a   :  { %vm2239_vm4 = vweird.f32 %v4135_v21 }
 0x43b   :  { %v2740_v32 = vmul.f32 %v7895_v14, %v7895_v14  ;;  %v2414_v47 = vmul.f32 %v4133_v39, %v2413_v50  ;;  %vm2240_vm3 = vmor %vm2238_vm2, %vm2239_vm4 }
 0x43d   :  { %2600 = vadd.xlane.f32.xlu0 %v7882_v43  ;;  %v2415_v23 = vmul.f32 0.5, %v2414_v47  ;;  %v2493_v47 = vmul.f32 %v7708_v33, %v2456_v49 }
 0x43e   :  { %v2587_v58 = vpop.xlane.xlu1 %2586 }
 0x43f   :  { %v2650_v31 = vmul.f32 %v2587_v58, %v4543_v42  ;;  %v2225_v58 = vmul.f32 0.5, %v2224_v24  ;;  %v2416_v45 = vsub.f32 1.5, %v2415_v23 }
 0x441   :  { %2598 = vadd.xlane.f32.xlu2 %v7889_v9  ;;  %v7904_v46 = vsub.f32 %v7556_v6, %v2650_v31  ;;  %v2233_v6 = vmul.f32 %v4135_v21, %v7892_v8  ;;  %v2226_v50 = vsub.f32 1.5, %v2225_v58  ;;  %v3543_v8 = vld [vmem:[%s9096_s6 + $0xf8] sm:$0xff] }
 0x442   :  { %3675 = vmatpush.msra.mxu1 %v3543_v8  ;;  %3892 = vmatpush.msra.mxu3 %v3543_v8 }
 0x443   :  { %v2722_v3 = vmul.f32 %v7904_v46, %v7904_v46  ;;  %v2234_v62 = vmul.f32 %v4135_v21, %v2233_v6 }
 0x445   :  { %2766 = vadd.xlane.f32.xlu1 %v2722_v3  ;;  %v2417_v3 = vmul.f32 %v4133_v39, %v2416_v45  ;;  %v9465_v45 = vld [vmem:[#allocation43_spill] sm:$0xff] }
 0x446   :  { %v2625_v30 = vpop.xlane.xlu1 %2624 }
 0x447   :  { %v2669_v31 = vmul.f32 %v2625_v30, %v4543_v42  ;;  %v2227_v30 = vmul.f32 %v4131_v5, %v2226_v50  ;;  %v2421_v57 = vsel %vm2420_vm14, %v4133_v39, %v2417_v3 }
 0x449   :  { %2802 = vadd.xlane.f32.xlu2 %v2740_v32  ;;  %v7914_v32 = vsub.f32 %v7566_v44, %v2669_v31  ;;  %v2235_v44 = vmul.f32 0.5, %v2234_v62  ;;  %v2231_v23 = vsel %vm2230_vm12, %v4131_v5, %v2227_v30  ;;  %v2457_v62 = vmul.f32 %v2421_v57, %v9465_v45  ;;  %v3538_v45 = vld [vmem:[%s9096_s6 + $0xd0] sm:$0xff] }
 0x44b   :  { %v2741_v24 = vmul.f32 %v7914_v32, %v7914_v32  ;;  %v2236_v6 = vsub.f32 1.5, %v2235_v44  ;;  %v2494_v44 = vmul.f32 %v7708_v33, %v2457_v62  ;;  %v3539_v62 = vld [vmem:[%s9096_s6 + $0xd8] sm:$0xff] }
 0x44c   :  { %v2589_v60 = vpop.xlane.xlu0 %2588 }
 0x44d   :  { %v2651_v11 = vmul.f32 %v2589_v60, %v4543_v42  ;;  %2804 = vadd.xlane.f32.xlu0 %v2741_v24  ;;  %v9463_v60 = vld [vmem:[#allocation44_spill] sm:$0xff]  ;;  %v2237_v5 = vmul.f32 %v4135_v21, %v2236_v6 }
 0x44e   :  { %v2438_v49 = vmul.f32 %v2231_v23, %v9463_v60  ;;  %v9468_v60 = vld [vmem:[#allocation5_spill] sm:$0xff] }
 0x44f   :  { %v7917_v35 = vsub.f32 %v7570_v54, %v2651_v11  ;;  %v2530_v54 = vadd.f32 %v7723_v10, %v2493_v47  ;;  %v9464_v11 = vld [vmem:[#allocation32_spill] sm:$0xff]  ;;  %v2241_v47 = vsel %vm2240_vm3, %v4135_v21, %v2237_v5  ;;  %v9467_v21 = vld [vmem:[#allocation46_spill] sm:$0xff] }
 0x450   :  { %v2439_v23 = vmul.f32 %v2241_v47, %v9467_v21  ;;  %v9470_v5 = vld [vmem:[#allocation6_spill] sm:$0xff] }
 0x451   :  { %v2723_v51 = vmul.f32 %v7917_v35, %v7917_v35  ;;  %v7930_v50 = vadd.f32 %v2530_v54, %v9464_v11  ;;  %v3542_v54 = vld [vmem:[%s9096_s6 + $0xf0] sm:$0xff] }
 0x452   :  { %3550 = vmatpush.msra.mxu0 %v3542_v54  ;;  %3876 = vmatpush.msra.mxu2 %v3542_v54  ;;  %v3535_v54 = vld [vmem:[%s9096_s6 + $0xb8] sm:$0xff] }
 0x453   :  { %2768 = vadd.xlane.f32.xlu2 %v2723_v51  ;;  %v2475_v51 = vmul.f32 %v7708_v33, %v2438_v49 }
 0x454   :  { %v2627_v58 = vpop.xlane.xlu2 %2626 }
 0x455   :  { %v2670_v31 = vmul.f32 %v2627_v58, %v4543_v42  ;;  %v2512_v30 = vadd.f32 %v7723_v10, %v2475_v51  ;;  %v3541_v58 = vld [vmem:[%s9096_s6 + $0xe8] sm:$0xff]  ;;  %v2476_v51 = vmul.f32 %v7708_v33, %v2439_v23  ;;  %v3534_v33 = vld [vmem:[%s9096_s6 + $0xb0] sm:$0xff]  ;;  %v3532_v23 = vld [vmem:[%s9096_s6 + $0xa0] sm:$0xff] }
 0x456   :  { %3676 = vmatpush.msra.mxu1 %v3541_v58  ;;  %3893 = vmatpush.msra.mxu3 %v3541_v58 }
 0x457   :  { %v7933_v56 = vsub.f32 %v7592_v41, %v2670_v31  ;;  %v7963_v49 = vadd.f32 %v2512_v30, %v9468_v60  ;;  %v2531_v31 = vadd.f32 %v7723_v10, %v2494_v44  ;;  %v3536_v30 = vld [vmem:[%s9096_s6 + $0xc0] sm:$0xff]  ;;  %v2513_v21 = vadd.f32 %v7723_v10, %v2476_v51  ;;  %v3530_v10 = vld [vmem:[%s9096_s6 + $0x90] sm:$0xff] }
 0x458   :  { %3677 = vmatpush.msra.mxu1 %v3539_v62  ;;  %3894 = vmatpush.msra.mxu3 %v3539_v62 }
 0x459   :  { %v2742_v39 = vmul.f32 %v7933_v56, %v7933_v56 }
 0x45b   :  { %2638 = vadd.xlane.f32.xlu2 %v7930_v50  ;;  %2806 = vadd.xlane.f32.xlu1 %v2742_v39  ;;  %v7978_v39 = vadd.f32 %v2531_v31, %v9470_v5  ;;  %v9472_v31 = vld [vmem:[#allocation2_spill] sm:$0xff] }
 0x45c   :  { %v2591_v53 = vpop.xlane.xlu1 %2590 }
 0x45d   :  { %v2652_v24 = vmul.f32 %v2591_v53, %v4543_v42 }
 0x45f   :  { %v7943_v41 = vsub.f32 %v7600_v38, %v2652_v24  ;;  %v3540_v38 = vld [vmem:[%s9096_s6 + $0xe0] sm:$0xff] }
 0x460   :  { %3551 = vmatpush.msra.mxu0 %v3540_v38  ;;  %3877 = vmatpush.msra.mxu2 %v3540_v38 }
 0x461   :  { %9466 = vst [vmem:[#allocation3_spill] sm:$0xff] %v7943_v41  ;;  %v2724_v3 = vmul.f32 %v7943_v41, %v7943_v41 }
 0x462   :  { %3552 = vmatpush.msra.mxu0 %v3538_v45  ;;  %3878 = vmatpush.msra.mxu2 %v3538_v45  ;;  %v8020_v45 = vadd.f32 %v2513_v21, %v9472_v31 }
 0x463   :  { %2770 = vadd.xlane.f32.xlu0 %v2724_v3  ;;  %2602 = vadd.xlane.f32.xlu1 %v7963_v49  ;;  %v3537_v3 = vld [vmem:[%s9096_s6 + $0xc8] sm:$0xff] }
 0x464   :  { %v2629_v57 = vpop.xlane.xlu0 %2628  ;;  %3553 = vmatpush.msra.mxu0 %v3536_v30  ;;  %3678 = vmatpush.msra.mxu1 %v3537_v3  ;;  %9473 = vst [vmem:[#allocation47_spill] sm:$0xff] %v8020_v45 }
 0x465   :  { %v2671_v6 = vmul.f32 %v2629_v57, %v4543_v42  ;;  %v3533_v57 = vld [vmem:[%s9096_s6 + $0xa8] sm:$0xff]  ;;  %3879 = vmatpush.msra.mxu2 %v3536_v30  ;;  %3895 = vmatpush.msra.mxu3 %v3537_v3 }
 0x466   :  { %3554 = vmatpush.msra.mxu0 %v3534_v33  ;;  %3679 = vmatpush.msra.mxu1 %v3535_v54  ;;  %v3529_v30 = vld [vmem:[%s9096_s6 + $0x88] sm:$0xff] }
 0x467   :  { %v7975_v53 = vsub.f32 %v7617_v0, %v2671_v6  ;;  %v3531_v6 = vld [vmem:[%s9096_s6 + $0x98] sm:$0xff]  ;;  %3880 = vmatpush.msra.mxu2 %v3534_v33  ;;  %3896 = vmatpush.msra.mxu3 %v3535_v54  ;;  %v3526_v33 = vld [vmem:[%s9096_s6 + $0x70] sm:$0xff] }
 0x468   :  { %3555 = vmatpush.msra.mxu0 %v3532_v23  ;;  %3680 = vmatpush.msra.mxu1 %v3533_v57 }
 0x469   :  { %9469 = vst [vmem:[#allocation10_spill] sm:$0xff] %v7975_v53  ;;  %v2743_v24 = vmul.f32 %v7975_v53, %v7975_v53  ;;  %3881 = vmatpush.msra.mxu2 %v3532_v23  ;;  %v3524_v23 = vld [vmem:[%s9096_s6 + $0x60] sm:$0xff]  ;;  %3897 = vmatpush.msra.mxu3 %v3533_v57  ;;  %v3522_v57 = vld [vmem:[%s9096_s6 + $0x50] sm:$0xff] }
 0x46a   :  { %3556 = vmatpush.msra.mxu0 %v3530_v10  ;;  %3681 = vmatpush.msra.mxu1 %v3531_v6 }
 0x46b   :  { %2640 = vadd.xlane.f32.xlu0 %v7978_v39  ;;  %2808 = vadd.xlane.f32.xlu2 %v2743_v24 }
 0x46c   :  { %v2593_v47 = vpop.xlane.xlu2 %2592  ;;  %v2751_v44 = vpop.xlane.xlu0 %2750  ;;  %3682 = vmatpush.msra.mxu1 %v3529_v30  ;;  %3882 = vmatpush.msra.mxu2 %v3530_v10  ;;  %v3523_v10 = vld [vmem:[%s9096_s6 + $0x58] sm:$0xff] }
 0x46d   :  { %v2653_v0 = vmul.f32 %v2593_v47, %v4543_v42  ;;  %v2822_v38 = vmul.f32 %v2751_v44, %v4543_v42  ;;  %v3527_v44 = vld [vmem:[%s9096_s6 + $0x78] sm:$0xff]  ;;  %3898 = vmatpush.msra.mxu3 %v3531_v6  ;;  %v3521_v6 = vld [vmem:[%s9096_s6 + $0x48] sm:$0xff] }
 0x46e   :  { %3683 = vmatpush.msra.mxu1 %v3527_v44 }
 0x46f   :  { %v7998_v8 = vsub.f32 %v7634_v63, %v2653_v0  ;;  %v8008_v58 = vadd.f32 1e-08, %v2822_v38  ;;  %v3528_v0 = vld [vmem:[%s9096_s6 + $0x80] sm:$0xff]  ;;  %3899 = vmatpush.msra.mxu3 %v3529_v30  ;;  %v3519_v30 = vld [vmem:[%s9096_s6 + $0x38] sm:$0xff] }
 0x470   :  { %3557 = vmatpush.msra.mxu0 %v3528_v0  ;;  %3883 = vmatpush.msra.mxu2 %v3528_v0 }
 0x471   :  { %9471 = vst [vmem:[#allocation45_spill] sm:$0xff] %v7998_v8  ;;  %v2725_v63 = vmul.f32 %v7998_v8, %v7998_v8  ;;  %4136 = vrsqrt.f32 %v8008_v58  ;;  %3900 = vmatpush.msra.mxu3 %v3527_v44  ;;  %v3517_v44 = vld [vmem:[%s9096_s6 + $0x28] sm:$0xff]  ;;  %vm2900_vm7 = vweird.f32 %v8008_v58 }
 0x472   :  { %3558 = vmatpush.msra.mxu0 %v3526_v33  ;;  %3884 = vmatpush.msra.mxu2 %v3526_v33  ;;  %v3516_v33 = vld [vmem:[%s9096_s6 + $0x20] sm:$0xff] }
 0x473   :  { %2772 = vadd.xlane.f32.xlu1 %v2725_v63  ;;  %2604 = vadd.xlane.f32.xlu2 %v8020_v45  ;;  %v3525_v63 = vld [vmem:[%s9096_s6 + $0x68] sm:$0xff] }
 0x474   :  { %v2787_v62 = vpop.xlane.xlu2 %2786  ;;  %v2631_v24 = vpop.xlane.xlu1 %2630  ;;  %3559 = vmatpush.msra.mxu0 %v3524_v23  ;;  %3684 = vmatpush.msra.mxu1 %v3525_v63 }
 0x475   :  { %v2840_v51 = vmul.f32 %v2787_v62, %v4543_v42  ;;  %v2672_v47 = vmul.f32 %v2631_v24, %v4543_v42  ;;  %v2753_v3 = vpop.xlane.xlu0 %2752  ;;  %3885 = vmatpush.msra.mxu2 %v3524_v23  ;;  %3901 = vmatpush.msra.mxu3 %v3525_v63 }
 0x476   :  { %v2823_v21 = vmul.f32 %v2753_v3, %v4543_v42  ;;  %3560 = vmatpush.msra.mxu0 %v3522_v57  ;;  %3685 = vmatpush.msra.mxu1 %v3523_v10 }
 0x477   :  { %v8037_v54 = vadd.f32 1e-08, %v2840_v51  ;;  %v8040_v38 = vsub.f32 %v7666_v1, %v2672_v47  ;;  %v8049_v62 = vpop.eup %4136  ;;  %v3520_v47 = vld [vmem:[%s9096_s6 + $0x40] sm:$0xff]  ;;  %3886 = vmatpush.msra.mxu2 %v3522_v57  ;;  %3902 = vmatpush.msra.mxu3 %v3523_v10 }
 0x478   :  { %v8052_v1 = vadd.f32 1e-08, %v2823_v21  ;;  %v2895_v51 = vmul.f32 %v8049_v62, %v8008_v58  ;;  %3561 = vmatpush.msra.mxu0 %v3520_v47  ;;  %3686 = vmatpush.msra.mxu1 %v3521_v6  ;;  %vm2901_vm5 = vweird.f32 %v8049_v62 }
 0x479   :  { %9474 = vst [vmem:[#allocation48_spill] sm:$0xff] %v8040_v38  ;;  %4138 = vrsqrt.f32 %v8037_v54  ;;  %v2744_v24 = vmul.f32 %v8040_v38, %v8040_v38  ;;  %3887 = vmatpush.msra.mxu2 %v3520_v47  ;;  %3903 = vmatpush.msra.mxu3 %v3521_v6  ;;  %vm8115_vm6 = vmor %vm2900_vm7, %vm2901_vm5  ;;  %vm3080_vm10 = vweird.f32 %v8037_v54 }
 0x47a   :  { %4140 = vrsqrt.f32 %v8052_v1  ;;  %v2896_v3 = vmul.f32 %v8049_v62, %v2895_v51  ;;  %3687 = vmatpush.msra.mxu1 %v3519_v30  ;;  %vm2910_vm11 = vweird.f32 %v8052_v1 }
 0x47b   :  { %2810 = vadd.xlane.f32.xlu0 %v2744_v24  ;;  %v3518_v24 = vld [vmem:[%s9096_s6 + $0x30] sm:$0xff]  ;;  %3904 = vmatpush.msra.mxu3 %v3519_v30 }
 0x47c   :  { %v2789_v0 = vpop.xlane.xlu2 %2788  ;;  %v2897_v60 = vmul.f32 0.5, %v2896_v3  ;;  %3562 = vmatpush.msra.mxu0 %v3518_v24  ;;  %3688 = vmatpush.msra.mxu1 %v3517_v44 }
 0x47d   :  { %v2795_v21 = vpop.xlane.xlu1 %2794  ;;  %v2841_v31 = vmul.f32 %v2789_v0, %v4543_v42  ;;  %v2755_v51 = vpop.xlane.xlu0 %2754  ;;  %3888 = vmatpush.msra.mxu2 %v3518_v24  ;;  %3905 = vmatpush.msra.mxu3 %v3517_v44 }
 0x47e   :  { %v2844_v5 = vmul.f32 %v2795_v21, %v4543_v42  ;;  %v2824_v0 = vmul.f32 %v2755_v51, %v4543_v42  ;;  %v2898_v3 = vsub.f32 1.5, %v2897_v60  ;;  %v3514_v60 = vld [vmem:[%s9096_s6 + $0x10] sm:$0xff]  ;;  %3563 = vmatpush.msra.mxu0 %v3516_v33 }
 0x47f   :  { %v8080_v11 = vpop.eup %4138  ;;  %v8082_v38 = vadd.f32 1e-08, %v2841_v31  ;;  %3889 = vmatpush.msra.mxu2 %v3516_v33 }
 0x480   :  { %v3075_v21 = vmul.f32 %v8080_v11, %v8037_v54  ;;  %v8093_v2 = vadd.f32 1e-08, %v2844_v5  ;;  %v8095_v31 = vpop.eup %4140  ;;  %v8099_v23 = vadd.f32 1e-08, %v2824_v0  ;;  %v3515_v5 = vld [vmem:[%s9096_s6 + $0x18] sm:$0xff]  ;;  %v2899_v63 = vmul.f32 %v8049_v62, %v2898_v3  ;;  %3564 = vmatpush.msra.mxu0 %v3514_v60 }
 0x481   :  { %4142 = vrsqrt.f32 %v8082_v38  ;;  %v2905_v8 = vmul.f32 %v8095_v31, %v8052_v1  ;;  %3689 = vmatpush.msra.mxu1 %v3515_v5  ;;  %vm3081_vm8 = vweird.f32 %v8080_v11  ;;  %3890 = vmatpush.msra.mxu2 %v3514_v60  ;;  %vm2911_vm9 = vweird.f32 %v8095_v31 }
 0x482   :  { %v3076_v51 = vmul.f32 %v8080_v11, %v3075_v21  ;;  %4144 = vrsqrt.f32 %v8099_v23  ;;  %v2903_v58 = vsel %vm8115_vm6, %v8049_v62, %v2899_v63  ;;  %3906 = vmatpush.msra.mxu3 %v3515_v5  ;;  %vm8171_vm15 = vmor %vm3080_vm10, %vm3081_vm8  ;;  %vm3090_vm12 = vweird.f32 %v8082_v38 }
 0x483   :  { %v2906_v0 = vmul.f32 %v8095_v31, %v2905_v8  ;;  %4146 = vrsqrt.f32 %v8093_v2  ;;  %v3513_v8 = vld [vmem:[%s9096_s6 + $0x8] sm:$0xff]  ;;  %vm8189_vm0 = vmor %vm2910_vm11, %vm2911_vm9  ;;  %vm2920_vm13 = vweird.f32 %v8099_v23  ;;  %vm3120_vm14 = vweird.f32 %v8093_v2 }
 0x484   :  { %v3077_v10 = vmul.f32 0.5, %v3076_v51  ;;  %v2791_v3 = vpop.xlane.xlu2 %2790  ;;  %v3512_v51 = vld [vmem:[%s9096_s6] sm:$0xff]  ;;  %3690 = vmatpush.msra.mxu1 %v3513_v8  ;;  %3907 = vmatpush.msra.mxu3 %v3513_v8 }
 0x485   :  { %v2597_v21 = vpop.xlane.xlu1 %2596  ;;  %v2842_v47 = vmul.f32 %v2791_v3, %v4543_v42  ;;  %v2907_v41 = vmul.f32 0.5, %v2906_v0  ;;  %v2595_v45 = vpop.xlane.xlu0 %2594  ;;  %3565 = vmatpush.msra.mxu0 %v3512_v51  ;;  %3891 = vmatpush.msra.mxu2 %v3512_v51  ;;  %v8182_v51 = vld [vmem:[%s9094_s4 + $0x1] ss:$0 sm:$0xff] }
 0x486   :  { %v2655_v6 = vmul.f32 %v2597_v21, %v4543_v42  ;;  %v3078_v53 = vsub.f32 1.5, %v3077_v10  ;;  %v2654_v57 = vmul.f32 %v2595_v45, %v4543_v42  ;;  %v3254_v21 = vmul.f32 %v2903_v58, %v7625_v17  ;;  %v8147_v10 = vld [vmem:[%s9093_s3 + $0x1] ss:$0 sm:$0xff] }
 0x487   :  { %v8132_v62 = vpop.eup %4142  ;;  %v8134_v63 = vadd.f32 1e-08, %v2842_v47  ;;  %v2908_v24 = vsub.f32 1.5, %v2907_v41 }
 0x488   :  { %v8138_v3 = vsub.f32 %v7740_v20, %v2655_v6  ;;  %v3085_v30 = vmul.f32 %v8132_v62, %v8082_v38  ;;  %v8149_v0 = vpop.eup %4144  ;;  %v3079_v20 = vmul.f32 %v8080_v11, %v3078_v53  ;;  %v8154_v45 = vsub.f32 %v7752_v13, %v2654_v57 }
 0x489   :  { %4148 = vrsqrt.f32 %v8134_v63  ;;  %v8158_v41 = vpop.eup %4146  ;;  %v2909_v33 = vmul.f32 %v8095_v31, %v2908_v24  ;;  %v2915_v53 = vmul.f32 %v8149_v0, %v8099_v23  ;;  %v3291_v1 = vmul.f32 %v8147_v10, %v3254_v21 }
 0x48a   :  { %9477 = vst [vmem:[#allocation7_spill] sm:$0xff] %v8138_v3  ;;  %v2727_v17 = vmul.f32 %v8138_v3, %v8138_v3  ;;  %v3086_v44 = vmul.f32 %v8132_v62, %v3085_v30  ;;  %v3115_v13 = vmul.f32 %v8158_v41, %v8093_v2  ;;  %v2726_v47 = vmul.f32 %v8154_v45, %v8154_v45 }
 0x48b   :  { %9478 = vst [vmem:[#allocation38_spill] sm:$0xff] %v8154_v45  ;;  %v2916_v58 = vmul.f32 %v8149_v0, %v2915_v53  ;;  %v3083_v57 = vsel %vm8171_vm15, %v8080_v11, %v3079_v20  ;;  %v2913_v8 = vsel %vm8189_vm0, %v8095_v31, %v2909_v33  ;;  %v3328_v31 = vadd.f32 %v8182_v51, %v3291_v1 }
 0x48c   :  { %2776 = vadd.xlane.f32.xlu0 %v2727_v17  ;;  %v3087_v5 = vmul.f32 0.5, %v3086_v44  ;;  %v2793_v54 = vpop.xlane.xlu2 %2792  ;;  %v3116_v30 = vmul.f32 %v8158_v41, %v3115_v13  ;;  %2774 = vadd.xlane.f32.xlu1 %v2726_v47  ;;  %v3272_v13 = vmul.f32 %v3083_v57, %v7645_v19  ;;  %v3255_v33 = vmul.f32 %v2913_v8, %v7648_v34  ;;  %v8221_v19 = vld [vmem:[%s9095_s5] ss:$0 sm:$0xff] }
 0x48d   :  { %v2761_v6 = vpop.xlane.xlu1 %2760  ;;  %v2843_v21 = vmul.f32 %v2793_v54, %v4543_v42  ;;  %v2917_v53 = vmul.f32 0.5, %v2916_v58  ;;  %v2759_v11 = vpop.xlane.xlu0 %2758  ;;  %vm3091_vm1 = vweird.f32 %v8132_v62  ;;  %v3364_v1 = vadd.f32 %v3328_v31, %v9410_v18 }
 0x48e   :  { %v2827_v17 = vmul.f32 %v2761_v6, %v4543_v42  ;;  %v3088_v44 = vsub.f32 1.5, %v3087_v5  ;;  %v2826_v3 = vmul.f32 %v2759_v11, %v4543_v42  ;;  %v3117_v54 = vmul.f32 0.5, %v3116_v30  ;;  %vm8231_vm4 = vmor %vm3090_vm12, %vm3091_vm1 }
 0x48f   :  { %v8199_v20 = vpop.eup %4148  ;;  %v8201_v60 = vadd.f32 1e-08, %v2843_v21  ;;  %v2918_v47 = vsub.f32 1.5, %v2917_v53  ;;  %v3309_v30 = vmul.f32 %v8147_v10, %v3272_v13  ;;  %vm2921_vm2 = vweird.f32 %v8149_v0 }
 0x490   :  { %v8204_v45 = vadd.f32 1e-08, %v2827_v17  ;;  %v3095_v6 = vmul.f32 %v8199_v20, %v8134_v63  ;;  %v8213_v5 = vadd.f32 1e-08, %v2826_v3  ;;  %v3089_v58 = vmul.f32 %v8132_v62, %v3088_v44  ;;  %vm8263_vm6 = vmor %vm2920_vm13, %vm2921_vm2 }
 0x491   :  { %4150 = vrsqrt.f32 %v8201_v60  ;;  %v3118_v34 = vsub.f32 1.5, %v3117_v54  ;;  %vm3121_vm3 = vweird.f32 %v8158_v41  ;;  %vm3100_vm5 = vweird.f32 %v8134_v63 }
 0x492   :  { %v3096_v24 = vmul.f32 %v8199_v20, %v3095_v6  ;;  %4152 = vrsqrt.f32 %v8204_v45  ;;  %v3292_v17 = vmul.f32 %v8147_v10, %v3255_v33  ;;  %v3093_v18 = vsel %vm8231_vm4, %v8132_v62, %v3089_v58  ;;  %vm8283_vm10 = vmor %vm3120_vm14, %vm3121_vm3 }
 0x493   :  { %4154 = vrsqrt.f32 %v8213_v5  ;;  %v2919_v8 = vmul.f32 %v8149_v0, %v2918_v47  ;;  %vm3400_vm7 = vcmp.gt.f32.partialorder %v3364_v1, 0.0  ;;  %v3440_v44 = vmul.f32 %v8221_v19, %v3364_v1 }
 0x494   :  { %v3097_v3 = vmul.f32 0.5, %v3096_v24  ;;  %v2757_v57 = vpop.xlane.xlu2 %2756  ;;  %v3329_v31 = vadd.f32 %v8182_v51, %v3292_v17  ;;  %v3119_v24 = vmul.f32 %v8158_v41, %v3118_v34  ;;  %v3346_v47 = vadd.f32 %v8182_v51, %v3309_v30 }
 0x495   :  { %v2825_v38 = vmul.f32 %v2757_v57, %v4543_v42  ;;  %v2635_v53 = vpop.xlane.xlu0 %2634  ;;  %v3476_v58 = vsel %vm3400_vm7, %v3364_v1, %v3440_v44  ;;  %vm3101_vm8 = vweird.f32 %v8199_v20  ;;  %vm3110_vm9 = vweird.f32 %v8201_v60 }
 0x496   :  { %v3098_v13 = vsub.f32 1.5, %v3097_v3  ;;  %v2674_v6 = vmul.f32 %v2635_v53, %v4543_v42  ;;  %3566 = vmatmul.f32.vlgmr.msra.gmra.mxu0 %v3476_v58  ;;  %3691 = vmatmul.f32.vlgmr.msra.gmra.mxu1 %v3476_v58  ;;  %v3273_v1 = vmul.f32 %v3093_v18, %v7686_v25  ;;  %v2923_v23 = vsel %vm8263_vm6, %v8149_v0, %v2919_v8  ;;  %v9490_v53 = vld [vmem:[#allocation4_spill] sm:$0xff]  ;;  %vm8306_vm0 = vmor %vm3100_vm5, %vm3101_vm8 }
 0x497   :  { %v8245_v11 = vpop.eup %4150  ;;  %v8247_v54 = vadd.f32 1e-08, %v2825_v38  ;;  %v3365_v0 = vadd.f32 %v3329_v31, %v9411_v48  ;;  %v3123_v8 = vsel %vm8283_vm10, %v8158_v41, %v3119_v24  ;;  %vm2950_vm13 = vweird.f32 %v8204_v45 }
 0x498   :  { %v8251_v33 = vpop.eup %4152  ;;  %v3105_v62 = vmul.f32 %v8245_v11, %v8201_v60  ;;  %v3099_v17 = vmul.f32 %v8199_v20, %v3098_v13  ;;  %v8290_v18 = vsub.f32 %v7805_v29, %v2674_v6  ;;  %vm3111_vm11 = vweird.f32 %v8245_v11 }
 0x499   :  { %v8257_v57 = vpop.eup %4154  ;;  %v2945_v34 = vmul.f32 %v8251_v33, %v8204_v45  ;;  %4156 = vrsqrt.f32 %v8247_v54  ;;  %vm3401_vm15 = vcmp.gt.f32.partialorder %v3365_v0, 0.0  ;;  %v3441_v13 = vmul.f32 %v8221_v19, %v3365_v0  ;;  %vm8327_vm12 = vmor %vm3110_vm9, %vm3111_vm11 }
 0x49a   :  { %v3106_v30 = vmul.f32 %v8245_v11, %v3105_v62  ;;  %v2935_v21 = vmul.f32 %v8257_v57, %v8213_v5  ;;  %9489 = vst [vmem:[#allocation37_spill] sm:$0xff] %v8290_v18  ;;  %v3382_v62 = vadd.f32 %v3346_v47, %v9490_v53  ;;  %v2746_v29 = vmul.f32 %v8290_v18, %v8290_v18 }
 0x49b   :  { %v2946_v25 = vmul.f32 %v8251_v33, %v2945_v34  ;;  %v3103_v3 = vsel %vm8306_vm0, %v8199_v20, %v3099_v17  ;;  %v3477_v34 = vsel %vm3401_vm15, %v3365_v0, %v3441_v13  ;;  %v3256_v18 = vmul.f32 %v2923_v23, %v7689_v36 }
 0x49c   :  { %v3107_v44 = vmul.f32 0.5, %v3106_v30  ;;  %v2936_v2 = vmul.f32 %v8257_v57, %v2935_v21  ;;  %v2633_v58 = vpop.xlane.xlu2 %2632  ;;  %vm3418_vm1 = vcmp.gt.f32.partialorder %v3382_v62, 0.0  ;;  %v3458_v31 = vmul.f32 %v8221_v19, %v3382_v62  ;;  %2814 = vadd.xlane.f32.xlu1 %v2746_v29 }
 0x49d   :  { %v2947_v6 = vmul.f32 0.5, %v2946_v25  ;;  %v2799_v24 = vpop.xlane.xlu0 %2798  ;;  %v2673_v63 = vmul.f32 %v2633_v58, %v4543_v42  ;;  %v3276_v58 = vmul.f32 %v3123_v8, %v7694_v28  ;;  %vm2940_vm14 = vweird.f32 %v8213_v5 }
 0x49e   :  { %v3108_v41 = vsub.f32 1.5, %v3107_v44  ;;  %v2846_v30 = vmul.f32 %v2799_v24, %v4543_v42  ;;  %v2937_v38 = vmul.f32 0.5, %v2936_v2  ;;  %v3310_v44 = vmul.f32 %v8147_v10, %v3273_v1  ;;  %3569 = vmatmul.f32.gmra.mxu0 %v3477_v34  ;;  %3694 = vmatmul.f32.gmra.mxu1 %v3477_v34 }
 0x49f   :  { %v8311_v47 = vpop.eup %4156  ;;  %v3494_v17 = vsel %vm3418_vm1, %v3382_v62, %v3458_v31  ;;  %v8333_v0 = vsub.f32 %v7820_v15, %v2673_v63  ;;  %v3274_v1 = vmul.f32 %v3103_v3, %v7718_v22  ;;  %v2948_v60 = vsub.f32 1.5, %v2947_v6 }
 0x4a0   :  { %v3109_v21 = vmul.f32 %v8245_v11, %v3108_v41  ;;  %v2925_v25 = vmul.f32 %v8311_v47, %v8247_v54  ;;  %v2801_v53 = vpop.xlane.xlu1 %2800  ;;  %v8335_v2 = vadd.f32 1e-08, %v2846_v30  ;;  %3620 = vmatmul.f32.vlgmr.msra.gmra.mxu2 %v3494_v17  ;;  %3745 = vmatmul.f32.vlgmr.msra.gmra.mxu3 %v3494_v17  ;;  %v2938_v15 = vsub.f32 1.5, %v2937_v38  ;;  %v9495_v41 = vld [vmem:[#allocation8_spill] sm:$0xff] }
 0x4a1   :  { %vm2951_vm4 = vweird.f32 %v8251_v33  ;;  %v3347_v62 = vadd.f32 %v8182_v51, %v3310_v44  ;;  %vm2930_vm2 = vweird.f32 %v8247_v54  ;;  %v2847_v29 = vmul.f32 %v2801_v53, %v4543_v42 }
 0x4a2   :  { %v3113_v36 = vsel %vm8327_vm12, %v8245_v11, %v3109_v21  ;;  %v2926_v23 = vmul.f32 %v8311_v47, %v2925_v25  ;;  %4158 = vrsqrt.f32 %v8335_v2  ;;  %v3293_v28 = vmul.f32 %v8147_v10, %v3256_v18  ;;  %vm8374_vm6 = vmor %vm2950_vm13, %vm2951_vm4 }
 0x4a3   :  { %v3275_v13 = vmul.f32 %v3113_v36, %v7760_v12  ;;  %v2745_v8 = vmul.f32 %v8333_v0, %v8333_v0  ;;  %v8355_v48 = vmul.f32 %v8251_v33, %v2948_v60  ;;  %v3383_v6 = vadd.f32 %v3347_v62, %v9495_v41 }
 0x4a4   :  { %v2927_v22 = vmul.f32 0.5, %v2926_v23  ;;  %v2797_v11 = vpop.xlane.xlu2 %2796  ;;  %v3311_v24 = vmul.f32 %v8147_v10, %v3274_v1  ;;  %vm2941_vm3 = vweird.f32 %v8257_v57  ;;  %v8361_v3 = vadd.f32 1e-08, %v2847_v29 }
 0x4a5   :  { %v2845_v31 = vmul.f32 %v2797_v11, %v4543_v42  ;;  %v3330_v34 = vadd.f32 %v8182_v51, %v3293_v28  ;;  %2812 = vadd.xlane.f32.xlu2 %v2745_v8  ;;  %vm2931_vm5 = vweird.f32 %v8311_v47  ;;  %vm3419_vm7 = vcmp.gt.f32.partialorder %v3383_v6, 0.0  ;;  %vm8400_vm9 = vmor %vm2940_vm14, %vm2941_vm3 }
 0x4a6   :  { %v2928_v12 = vsub.f32 1.5, %v2927_v22  ;;  %v3459_v18 = vmul.f32 %v8221_v19, %v3383_v6  ;;  %4160 = vrsqrt.f32 %v8361_v3  ;;  %v3348_v25 = vadd.f32 %v8182_v51, %v3311_v24  ;;  %vm8411_vm10 = vmor %vm2930_vm2, %vm2931_vm5 }
 0x4a7   :  { %v8366_v63 = vadd.f32 1e-08, %v2845_v31  ;;  %v3366_v38 = vadd.f32 %v3330_v34, %v9413_v27  ;;  %v3312_v53 = vmul.f32 %v8147_v10, %v3275_v13  ;;  %v2939_v20 = vmul.f32 %v8257_v57, %v2938_v15 }
 0x4a8   :  { %v8368_v30 = vpop.eup %4158  ;;  %v2637_v44 = vpop.xlane.xlu1 %2636  ;;  %v2953_v45 = vsel %vm8374_vm6, %v8251_v33, %v8355_v48  ;;  %v3495_v1 = vsel %vm3419_vm7, %v3383_v6, %v3459_v18  ;;  %v2929_v60 = vmul.f32 %v8311_v47, %v2928_v12  ;;  %v3384_v15 = vadd.f32 %v3348_v25, %v6339_v7  ;;  %v9502_v18 = vld [vmem:[#allocation16_spill] sm:$0xff] }
 0x4a9   :  { %v3135_v17 = vmul.f32 %v8368_v30, %v8335_v2  ;;  %v2765_v36 = vpop.xlane.xlu0 %2764  ;;  %3623 = vmatmul.f32.gmra.mxu2 %v3495_v1  ;;  %3748 = vmatmul.f32.gmra.mxu3 %v3495_v1  ;;  %vm3402_vm8 = vcmp.gt.f32.partialorder %v3366_v38, 0.0  ;;  %v3442_v27 = vmul.f32 %v8221_v19, %v3366_v38  ;;  %4162 = vrsqrt.f32 %v8366_v63 }
 0x4aa   :  { %v2675_v33 = vmul.f32 %v2637_v44, %v4543_v42  ;;  %v3313_v62 = vmul.f32 %v8147_v10, %v3276_v58  ;;  %v2829_v29 = vmul.f32 %v2765_v36, %v4543_v42  ;;  %v3349_v7 = vadd.f32 %v8182_v51, %v3312_v53 }
 0x4ab   :  { %v3136_v23 = vmul.f32 %v8368_v30, %v3135_v17  ;;  %v3478_v13 = vsel %vm3402_vm8, %v3366_v38, %v3442_v27  ;;  %vm3420_vm11 = vcmp.gt.f32.partialorder %v3384_v15, 0.0  ;;  %v3460_v8 = vmul.f32 %v8221_v19, %v3384_v15 }
 0x4ac   :  { %v2763_v22 = vpop.xlane.xlu2 %2762  ;;  %3572 = vmatmul.f32.gmra.mxu0 %v3478_v13  ;;  %3697 = vmatmul.f32.gmra.mxu1 %v3478_v13  ;;  %v8417_v48 = vsub.f32 %v7861_v4, %v2675_v33  ;;  %v8419_v41 = vpop.eup %4160  ;;  %v2943_v6 = vsel %vm8400_vm9, %v8257_v57, %v2939_v20  ;;  %v2933_v54 = vsel %vm8411_vm10, %v8311_v47, %v2929_v60  ;;  %v8427_v31 = vadd.f32 1e-08, %v2829_v29 }
 0x4ad   :  { %v2828_v28 = vmul.f32 %v2763_v22, %v4543_v42  ;;  %v3137_v5 = vmul.f32 0.5, %v3136_v23  ;;  %v3145_v34 = vmul.f32 %v8419_v41, %v8361_v3  ;;  %v3496_v4 = vsel %vm3420_vm11, %v3384_v15, %v3460_v8 }
 0x4ae   :  { %v3385_v21 = vadd.f32 %v3349_v7, %v9502_v18  ;;  %vm3140_vm15 = vweird.f32 %v8335_v2  ;;  %vm3141_vm0 = vweird.f32 %v8368_v30  ;;  %4164 = vrsqrt.f32 %v8427_v31  ;;  %v9505_v2 = vld [vmem:[#allocation15_spill] sm:$0xff] }
 0x4af   :  { %v8429_v24 = vadd.f32 1e-08, %v2828_v28  ;;  %v3138_v12 = vsub.f32 1.5, %v3137_v5  ;;  %v8434_v38 = vpop.eup %4162  ;;  %v2747_v57 = vmul.f32 %v8417_v48, %v8417_v48  ;;  %v3146_v25 = vmul.f32 %v8419_v41, %v3145_v34  ;;  %vm8457_vm1 = vmor %vm3140_vm15, %vm3141_vm0 }
 0x4b0   :  { %v3125_v44 = vmul.f32 %v8434_v38, %v8366_v63  ;;  %v3350_v20 = vadd.f32 %v8182_v51, %v3313_v62  ;;  %v3258_v17 = vmul.f32 %v2943_v6, %v7771_v52  ;;  %v3257_v1 = vmul.f32 %v2933_v54, %v7791_v59 }
 0x4b1   :  { %v3139_v47 = vmul.f32 %v8368_v30, %v3138_v12  ;;  %v2601_v53 = vpop.xlane.xlu0 %2600  ;;  %3626 = vmatmul.f32.gmra.mxu2 %v3496_v4  ;;  %3751 = vmatmul.f32.gmra.mxu3 %v3496_v4  ;;  %4166 = vrsqrt.f32 %v8429_v24  ;;  %v3259_v60 = vmul.f32 %v2953_v45, %v7763_v26  ;;  %v3147_v27 = vmul.f32 0.5, %v3146_v25 }
 0x4b2   :  { %v2657_v36 = vmul.f32 %v2601_v53, %v4543_v42  ;;  %v3126_v23 = vmul.f32 %v8434_v38, %v3125_v44  ;;  %2816 = vadd.xlane.f32.xlu0 %v2747_v57  ;;  %v3461_v15 = vmul.f32 %v8221_v19, %v3385_v21  ;;  %vm3130_vm12 = vweird.f32 %v8366_v63 }
 0x4b3   :  { %vm3421_vm13 = vcmp.gt.f32.partialorder %v3385_v21, 0.0  ;;  %v3143_v45 = vsel %vm8457_vm1, %v8368_v30, %v3139_v47  ;;  %vm3150_vm14 = vweird.f32 %v8361_v3  ;;  %vm3131_vm4 = vweird.f32 %v8434_v38 }
 0x4b4   :  { %v2599_v33 = vpop.xlane.xlu2 %2598  ;;  %v8463_v26 = vsub.f32 %v7882_v43, %v2657_v36  ;;  %v3127_v22 = vmul.f32 0.5, %v3126_v23  ;;  %v3386_v62 = vadd.f32 %v3350_v20, %v9505_v2  ;;  %v8472_v11 = vpop.eup %4164  ;;  %v3294_v29 = vmul.f32 %v8147_v10, %v3257_v1  ;;  %vm3132_vm5 = vmor %vm3130_vm12, %vm3131_vm4 }
 0x4b5   :  { %v2656_v59 = vmul.f32 %v2599_v33, %v4543_v42  ;;  %v3295_v28 = vmul.f32 %v8147_v10, %v3258_v17  ;;  %v3148_v30 = vsub.f32 1.5, %v3147_v27  ;;  %v2965_v58 = vmul.f32 %v8472_v11, %v8427_v31  ;;  %v9509_v33 = vld [vmem:[#allocation9_spill] sm:$0xff] }
 0x4b6   :  { %v2729_v43 = vmul.f32 %v8463_v26, %v8463_v26  ;;  %v3128_v7 = vsub.f32 1.5, %v3127_v22  ;;  %v3497_v5 = vsel %vm3421_vm13, %v3385_v21, %v3461_v15  ;;  %vm3151_vm2 = vweird.f32 %v8419_v41  ;;  %v9506_v21 = vld [vmem:[#allocation11_spill] sm:$0xff] }
 0x4b7   :  { %v8475_v13 = vsub.f32 %v7889_v9, %v2656_v59  ;;  %v8484_v8 = vpop.eup %4166  ;;  %vm2970_vm3 = vweird.f32 %v8427_v31  ;;  %v3331_v9 = vadd.f32 %v8182_v51, %v3294_v29  ;;  %v3278_v54 = vmul.f32 %v3143_v45, %v7812_v40  ;;  %vm8515_vm9 = vmor %vm3150_vm14, %vm3151_vm2 }
 0x4b8   :  { %2780 = vadd.xlane.f32.xlu1 %v2729_v43  ;;  %v3129_v12 = vmul.f32 %v8434_v38, %v3128_v7  ;;  %v2966_v34 = vmul.f32 %v8472_v11, %v2965_v58  ;;  %v2955_v4 = vmul.f32 %v8484_v8, %v8429_v24  ;;  %vm3422_vm7 = vcmp.gt.f32.partialorder %v3386_v62, 0.0  ;;  %v2767_v3 = vpop.xlane.xlu1 %2766 }
 0x4b9   :  { %v2728_v6 = vmul.f32 %v8475_v13, %v8475_v13  ;;  %3629 = vmatmul.f32.gmra.mxu2 %v3497_v5  ;;  %3754 = vmatmul.f32.gmra.mxu3 %v3497_v5  ;;  %v3462_v18 = vmul.f32 %v8221_v19, %v3386_v62  ;;  %v3367_v57 = vadd.f32 %v3331_v9, %v9506_v21  ;;  %vm2971_vm8 = vweird.f32 %v8472_v11  ;;  %v9514_v9 = vld [vmem:[#allocation12_spill] sm:$0xff] }
 0x4ba   :  { %v3332_v40 = vadd.f32 %v8182_v51, %v3295_v28  ;;  %v3149_v47 = vmul.f32 %v8419_v41, %v3148_v30  ;;  %v3133_v25 = vsel %vm3132_vm5, %v8434_v38, %v3129_v12  ;;  %v2967_v44 = vmul.f32 0.5, %v2966_v34  ;;  %vm8536_vm11 = vmor %vm2970_vm3, %vm2971_vm8 }
 0x4bb   :  { %v2956_v53 = vmul.f32 %v8484_v8, %v2955_v4  ;;  %2778 = vadd.xlane.f32.xlu2 %v2728_v6  ;;  %v3277_v63 = vmul.f32 %v3133_v25, %v7833_v61  ;;  %vm3403_vm6 = vcmp.gt.f32.partialorder %v3367_v57, 0.0  ;;  %v3443_v17 = vmul.f32 %v8221_v19, %v3367_v57  ;;  %v9515_v4 = vld [vmem:[#allocation13_spill] sm:$0xff] }
 0x4bc   :  { %v2803_v20 = vpop.xlane.xlu2 %2802  ;;  %v2968_v36 = vsub.f32 1.5, %v2967_v44  ;;  %v3296_v23 = vmul.f32 %v8147_v10, %v3259_v60  ;;  %v3368_v52 = vadd.f32 %v3332_v40, %v9509_v33  ;;  %v3153_v45 = vsel %vm8515_vm9, %v8419_v41, %v3149_v47 }
 0x4bd   :  { %v2848_v1 = vmul.f32 %v2803_v20, %v4543_v42  ;;  %v2957_v27 = vmul.f32 0.5, %v2956_v53  ;;  %v3479_v61 = vsel %vm3403_vm6, %v3367_v57, %v3443_v17  ;;  %v3314_v59 = vmul.f32 %v8147_v10, %v3277_v63  ;;  %v9516_v63 = vld [vmem:[#allocation19_spill] sm:$0xff] }
 0x4be   :  { %v2969_v60 = vmul.f32 %v8472_v11, %v2968_v36  ;;  %vm2961_vm10 = vweird.f32 %v8484_v8  ;;  %3575 = vmatmul.f32.gmra.mxu0 %v3479_v61  ;;  %3700 = vmatmul.f32.gmra.mxu1 %v3479_v61  ;;  %v2830_v2 = vmul.f32 %v2767_v3, %v4543_v42  ;;  %v3315_v29 = vmul.f32 %v8147_v10, %v3278_v54 }
 0x4bf   :  { %v8519_v15 = vadd.f32 1e-08, %v2848_v1  ;;  %v2958_v22 = vsub.f32 1.5, %v2957_v27  ;;  %v3351_v43 = vadd.f32 %v8182_v51, %v3314_v59  ;;  %vm2960_vm15 = vweird.f32 %v8429_v24 }
 0x4c0   :  { %v3498_v30 = vsel %vm3422_vm7, %v3386_v62, %v3462_v18  ;;  %v3333_v7 = vadd.f32 %v8182_v51, %v3296_v23  ;;  %vm8544_vm0 = vmor %vm2960_vm15, %vm2961_vm10  ;;  %v8548_v5 = vadd.f32 1e-08, %v2830_v2  ;;  %v3444_v31 = vmul.f32 %v8221_v19, %v3368_v52  ;;  %v9517_v2 = vld [vmem:[#allocation20_spill] sm:$0xff] }
 0x4c1   :  { %4168 = vrsqrt.f32 %v8519_v15  ;;  %v2959_v28 = vmul.f32 %v8484_v8, %v2958_v22  ;;  %3632 = vmatmul.f32.gmra.mxu2 %v3498_v30  ;;  %3757 = vmatmul.f32.gmra.mxu3 %v3498_v30  ;;  %v3387_v6 = vadd.f32 %v3351_v43, %v9514_v9  ;;  %v3279_v54 = vmul.f32 %v3153_v45, %v7823_v16 }
 0x4c2   :  { %v2973_v24 = vsel %vm8536_vm11, %v8472_v11, %v2969_v60  ;;  %vm3404_vm1 = vcmp.gt.f32.partialorder %v3368_v52, 0.0  ;;  %4170 = vrsqrt.f32 %v8548_v5  ;;  %v3352_v12 = vadd.f32 %v8182_v51, %v3315_v29 }
 0x4c3   :  { %v2963_v62 = vsel %vm8544_vm0, %v8484_v8, %v2959_v28  ;;  %vm3423_vm12 = vcmp.gt.f32.partialorder %v3387_v6, 0.0  ;;  %v3463_v34 = vmul.f32 %v8221_v19, %v3387_v6  ;;  %v3369_v18 = vadd.f32 %v3333_v7, %v9515_v4  ;;  %v2805_v8 = vpop.xlane.xlu0 %2804  ;;  %v9518_v7 = vld [vmem:[#allocation22_spill] sm:$0xff] }
 0x4c4   :  { %v3261_v16 = vmul.f32 %v2973_v24, %v7858_v37  ;;  %v3260_v57 = vmul.f32 %v2963_v62, %v7855_v55  ;;  %v3480_v11 = vsel %vm3404_vm1, %v3368_v52, %v3444_v31  ;;  %v3316_v44 = vmul.f32 %v8147_v10, %v3279_v54 }
 0x4c5   :  { %v3499_v47 = vsel %vm3423_vm12, %v3387_v6, %v3463_v34  ;;  %v2849_v53 = vmul.f32 %v2805_v8, %v4543_v42  ;;  %v3388_v17 = vadd.f32 %v3352_v12, %v9516_v63  ;;  %vm3405_vm13 = vcmp.gt.f32.partialorder %v3369_v18, 0.0 }
 0x4c6   :  { %3578 = vmatmul.f32.gmra.mxu0 %v3480_v11  ;;  %3703 = vmatmul.f32.gmra.mxu1 %v3480_v11  ;;  %v2769_v25 = vpop.xlane.xlu2 %2768  ;;  %v3445_v27 = vmul.f32 %v8221_v19, %v3369_v18  ;;  %v3297_v23 = vmul.f32 %v8147_v10, %v3260_v57  ;;  %v3298_v33 = vmul.f32 %v8147_v10, %v3261_v16  ;;  %vm3160_vm2 = vweird.f32 %v8519_v15  ;;  %v9519_v57 = vld [vmem:[#allocation18_spill] sm:$0xff] }
 0x4c7   :  { %v4169_v21 = vpop.eup %4168  ;;  %v2831_v20 = vmul.f32 %v2769_v25, %v4543_v42  ;;  %v8570_v55 = vadd.f32 1e-08, %v2849_v53  ;;  %v3353_v52 = vadd.f32 %v8182_v51, %v3316_v44  ;;  %vm3424_vm14 = vcmp.gt.f32.partialorder %v3388_v17, 0.0 }
 0x4c8   :  { %v3155_v40 = vmul.f32 %v4169_v21, %v8519_v15  ;;  %v4171_v37 = vpop.eup %4170  ;;  %v3334_v59 = vadd.f32 %v8182_v51, %v3297_v23  ;;  %v3464_v45 = vmul.f32 %v8221_v19, %v3388_v17  ;;  %vm3161_vm4 = vweird.f32 %v4169_v21 }
 0x4c9   :  { %3635 = vmatmul.f32.gmra.mxu2 %v3499_v47  ;;  %3760 = vmatmul.f32.gmra.mxu3 %v3499_v47  ;;  %v8572_v36 = vadd.f32 1e-08, %v2831_v20  ;;  %v2975_v38 = vmul.f32 %v4171_v37, %v8548_v5  ;;  %4172 = vrsqrt.f32 %v8570_v55  ;;  %v3481_v3 = vsel %vm3405_vm13, %v3369_v18, %v3445_v27  ;;  %vm3162_vm3 = vmor %vm3160_vm2, %vm3161_vm4 }
 0x4ca   :  { %v3156_v1 = vmul.f32 %v4169_v21, %v3155_v40  ;;  %v3370_v43 = vadd.f32 %v3334_v59, %v9517_v2  ;;  %v3335_v30 = vadd.f32 %v8182_v51, %v3298_v33  ;;  %v3389_v58 = vadd.f32 %v3353_v52, %v9518_v7 }
 0x4cb   :  { %v2976_v60 = vmul.f32 %v4171_v37, %v2975_v38  ;;  %4174 = vrsqrt.f32 %v8572_v36  ;;  %v3500_v15 = vsel %vm3424_vm14, %v3388_v17, %v3464_v45  ;;  %vm2981_vm5 = vweird.f32 %v4171_v37 }
 0x4cc   :  { %v3157_v61 = vmul.f32 0.5, %v3156_v1  ;;  %v3446_v9 = vmul.f32 %v8221_v19, %v3370_v43  ;;  %vm3406_vm7 = vcmp.gt.f32.partialorder %v3370_v43, 0.0  ;;  %vm2980_vm6 = vweird.f32 %v8548_v5 }
 0x4cd   :  { %v2977_v29 = vmul.f32 0.5, %v2976_v60  ;;  %v3371_v11 = vadd.f32 %v3335_v30, %v9519_v57  ;;  %vm2982_vm8 = vmor %vm2980_vm6, %vm2981_vm5  ;;  %vm3425_vm9 = vcmp.gt.f32.partialorder %v3389_v58, 0.0  ;;  %vm3170_vm0 = vweird.f32 %v8570_v55 }
 0x4ce   :  { %v3158_v22 = vsub.f32 1.5, %v3157_v61  ;;  %3581 = vmatmul.f32.gmra.mxu0 %v3481_v3  ;;  %3706 = vmatmul.f32.gmra.mxu1 %v3481_v3  ;;  %v2639_v28 = vpop.xlane.xlu2 %2638  ;;  %v2807_v16 = vpop.xlane.xlu1 %2806  ;;  %vm2990_vm12 = vweird.f32 %v8572_v36 }
 0x4cf   :  { %v2676_v31 = vmul.f32 %v2639_v28, %v4543_v42  ;;  %v2978_v6 = vsub.f32 1.5, %v2977_v29  ;;  %v4173_v24 = vpop.eup %4172  ;;  %v3447_v17 = vmul.f32 %v8221_v19, %v3371_v11  ;;  %vm3407_vm15 = vcmp.gt.f32.partialorder %v3371_v11, 0.0 }
 0x4d0   :  { %v3159_v41 = vmul.f32 %v4169_v21, %v3158_v22  ;;  %v3165_v18 = vmul.f32 %v4173_v24, %v8570_v55  ;;  %vm3171_vm10 = vweird.f32 %v4173_v24  ;;  %v9520_v22 = vld [vmem:[#allocation24_spill] sm:$0xff] }
 0x4d1   :  { %v8594_v12 = vsub.f32 %v7930_v50, %v2676_v31  ;;  %3638 = vmatmul.f32.gmra.mxu2 %v3500_v15  ;;  %3763 = vmatmul.f32.gmra.mxu3 %v3500_v15  ;;  %v4175_v34 = vpop.eup %4174  ;;  %v2979_v4 = vmul.f32 %v4171_v37, %v2978_v6  ;;  %v3482_v50 = vsel %vm3406_vm7, %v3370_v43, %v3446_v9  ;;  %vm3172_vm1 = vmor %vm3170_vm0, %vm3171_vm10 }
 0x4d2   :  { %v3163_v54 = vsel %vm3162_vm3, %v4169_v21, %v3159_v41  ;;  %v3465_v21 = vmul.f32 %v8221_v19, %v3389_v58  ;;  %v2985_v5 = vmul.f32 %v4175_v34, %v8572_v36  ;;  %v3166_v47 = vmul.f32 %v4173_v24, %v3165_v18  ;;  %v9521_v36 = vld [vmem:[#allocation26_spill] sm:$0xff] }
 0x4d3   :  { %v3280_v62 = vmul.f32 %v3163_v54, %v7895_v14  ;;  %v2850_v14 = vmul.f32 %v2807_v16, %v4543_v42  ;;  %v2748_v40 = vmul.f32 %v8594_v12, %v8594_v12  ;;  %v2983_v8 = vsel %vm2982_vm8, %v4171_v37, %v2979_v4 }
 0x4d4   :  { %v3262_v25 = vmul.f32 %v2983_v8, %v7904_v46  ;;  %v2986_v44 = vmul.f32 %v4175_v34, %v2985_v5  ;;  %v3167_v63 = vmul.f32 0.5, %v3166_v47  ;;  %v3501_v37 = vsel %vm3425_vm9, %v3389_v58, %v3465_v21 }
 0x4d5   :  { %v8606_v53 = vadd.f32 1e-08, %v2850_v14  ;;  %2818 = vadd.xlane.f32.xlu2 %v2748_v40  ;;  %v3317_v20 = vmul.f32 %v8147_v10, %v3280_v62  ;;  %vm2991_vm11 = vweird.f32 %v4175_v34  ;;  %v3483_v41 = vsel %vm3407_vm15, %v3371_v11, %v3447_v17 }
 0x4d6   :  { %3584 = vmatmul.f32.gmra.mxu0 %v3482_v50  ;;  %3709 = vmatmul.f32.gmra.mxu1 %v3482_v50  ;;  %v2771_v1 = vpop.xlane.xlu0 %2770  ;;  %v2987_v27 = vmul.f32 0.5, %v2986_v44  ;;  %v3168_v38 = vsub.f32 1.5, %v3167_v63  ;;  %v3299_v46 = vmul.f32 %v8147_v10, %v3262_v25  ;;  %v2603_v45 = vpop.xlane.xlu1 %2602  ;;  %vm2992_vm13 = vmor %vm2990_vm12, %vm2991_vm11  ;;  %v9522_v63 = vld [vmem:[#allocation31_spill] sm:$0xff] }
 0x4d7   :  { %4176 = vrsqrt.f32 %v8606_v53  ;;  %v2832_v23 = vmul.f32 %v2771_v1, %v4543_v42  ;;  %v3354_v61 = vadd.f32 %v8182_v51, %v3317_v20  ;;  %v2658_v43 = vmul.f32 %v2603_v45, %v4543_v42 }
 0x4d8   :  { %v2988_v33 = vsub.f32 1.5, %v2987_v27  ;;  %v3169_v59 = vmul.f32 %v4173_v24, %v3168_v38  ;;  %v3336_v60 = vadd.f32 %v8182_v51, %v3299_v46  ;;  %vm3180_vm3 = vweird.f32 %v8606_v53 }
 0x4d9   :  { %3641 = vmatmul.f32.gmra.mxu2 %v3501_v37  ;;  %3766 = vmatmul.f32.gmra.mxu3 %v3501_v37  ;;  %v8614_v52 = vadd.f32 1e-08, %v2832_v23  ;;  %v3390_v3 = vadd.f32 %v3354_v61, %v9520_v22  ;;  %v8627_v58 = vsub.f32 %v7963_v49, %v2658_v43  ;;  %v9524_v22 = vld [vmem:[#allocation47_spill] sm:$0xff] }
 0x4da   :  { %v2989_v2 = vmul.f32 %v4175_v34, %v2988_v33  ;;  %v3173_v29 = vsel %vm3172_vm1, %v4173_v24, %v3169_v59  ;;  %v3372_v31 = vadd.f32 %v3336_v60, %v9521_v36  ;;  %v9525_v36 = vld [vmem:[#allocation3_spill] sm:$0xff] }
 0x4db   :  { %4178 = vrsqrt.f32 %v8614_v52  ;;  %vm3426_vm14 = vcmp.gt.f32.partialorder %v3390_v3, 0.0  ;;  %v3466_v55 = vmul.f32 %v8221_v19, %v3390_v3  ;;  %v3281_v30 = vmul.f32 %v3173_v29, %v7914_v32 }
 0x4dc   :  { %v2993_v7 = vsel %vm2992_vm13, %v4175_v34, %v2989_v2  ;;  %v2730_v24 = vmul.f32 %v8627_v58, %v8627_v58  ;;  %v3448_v57 = vmul.f32 %v8221_v19, %v3372_v31  ;;  %vm3408_vm4 = vcmp.gt.f32.partialorder %v3372_v31, 0.0 }
 0x4dd   :  { %v4177_v28 = vpop.eup %4176  ;;  %v3263_v9 = vmul.f32 %v2993_v7, %v7917_v35  ;;  %v3502_v32 = vsel %vm3426_vm14, %v3390_v3, %v3466_v55  ;;  %v3318_v4 = vmul.f32 %v8147_v10, %v3281_v30  ;;  %vm3000_vm9 = vweird.f32 %v8614_v52 }
 0x4de   :  { %v3175_v15 = vmul.f32 %v4177_v28, %v8606_v53  ;;  %3587 = vmatmul.f32.gmra.mxu0 %v3483_v41  ;;  %3712 = vmatmul.f32.gmra.mxu1 %v3483_v41  ;;  %v2809_v6 = vpop.xlane.xlu2 %2808  ;;  %v2641_v54 = vpop.xlane.xlu0 %2640  ;;  %vm3181_vm2 = vweird.f32 %v4177_v28  ;;  %v3484_v44 = vsel %vm3408_vm4, %v3372_v31, %v3448_v57 }
 0x4df   :  { %v2851_v62 = vmul.f32 %v2809_v6, %v4543_v42  ;;  %v2677_v49 = vmul.f32 %v2641_v54, %v4543_v42  ;;  %v3300_v18 = vmul.f32 %v8147_v10, %v3263_v9  ;;  %2782 = vadd.xlane.f32.xlu0 %v2730_v24  ;;  %v3355_v14 = vadd.f32 %v8182_v51, %v3318_v4  ;;  %vm3182_vm7 = vmor %vm3180_vm3, %vm3181_vm2  ;;  %v9526_v24 = vld [vmem:[#allocation23_spill] sm:$0xff] }
 0x4e0   :  { %v3176_v34 = vmul.f32 %v4177_v28, %v3175_v15 }
 0x4e1   :  { %v4179_v35 = vpop.eup %4178  ;;  %v8638_v16 = vadd.f32 1e-08, %v2851_v62  ;;  %3644 = vmatmul.f32.gmra.mxu2 %v3502_v32  ;;  %3769 = vmatmul.f32.gmra.mxu3 %v3502_v32  ;;  %v8643_v5 = vsub.f32 %v7978_v39, %v2677_v49  ;;  %v3337_v50 = vadd.f32 %v8182_v51, %v3300_v18  ;;  %v3391_v17 = vadd.f32 %v3355_v14, %v9522_v63  ;;  %v9523_v39 = vld [vmem:[#allocation14_spill] sm:$0xff] }
 0x4e2   :  { %v3177_v11 = vmul.f32 0.5, %v3176_v34  ;;  %v2995_v21 = vmul.f32 %v4179_v35, %v8614_v52  ;;  %vm3001_vm5 = vweird.f32 %v4179_v35 }
 0x4e3   :  { %4180 = vrsqrt.f32 %v8638_v16  ;;  %v2749_v47 = vmul.f32 %v8643_v5, %v8643_v5  ;;  %v3373_v1 = vadd.f32 %v3337_v50, %v9523_v39  ;;  %vm3427_vm6 = vcmp.gt.f32.partialorder %v3391_v17, 0.0  ;;  %vm3002_vm10 = vmor %vm3000_vm9, %vm3001_vm5  ;;  %v9527_v50 = vld [vmem:[#allocation34_spill] sm:$0xff] }
 0x4e4   :  { %v3178_v40 = vsub.f32 1.5, %v3177_v11  ;;  %v2996_v8 = vmul.f32 %v4179_v35, %v2995_v21  ;;  %v3467_v61 = vmul.f32 %v8221_v19, %v3391_v17  ;;  %vm3190_vm0 = vweird.f32 %v8638_v16  ;;  %v8693_v39 = vld [vmem:[%s9094_s4 + $0x1] ss:$0 sm:$0xff] }
 0x4e5   :  { %2820 = vadd.xlane.f32.xlu1 %v2749_v47  ;;  %vm3409_vm8 = vcmp.gt.f32.partialorder %v3373_v1, 0.0  ;;  %v3449_v53 = vmul.f32 %v8221_v19, %v3373_v1 }
 0x4e6   :  { %v2773_v25 = vpop.xlane.xlu1 %2772  ;;  %v3179_v27 = vmul.f32 %v4177_v28, %v3178_v40  ;;  %v2997_v37 = vmul.f32 0.5, %v2996_v8  ;;  %3590 = vmatmul.f32.gmra.mxu0 %v3484_v44  ;;  %3715 = vmatmul.f32.gmra.mxu1 %v3484_v44  ;;  %v2605_v23 = vpop.xlane.xlu2 %2604  ;;  %v3503_v29 = vsel %vm3427_vm6, %v3391_v17, %v3467_v61  ;;  %v9528_v8 = vld [vmem:[#allocation10_spill] sm:$0xff]  ;;  %v9530_v61 = vld [vmem:[#allocation17_spill] sm:$0xff] }
 0x4e7   :  { %v2833_v20 = vmul.f32 %v2773_v25, %v4543_v42  ;;  %v2659_v46 = vmul.f32 %v2605_v23, %v4543_v42  ;;  %v3485_v41 = vsel %vm3409_vm8, %v3373_v1, %v3449_v53  ;;  %v9529_v23 = vld [vmem:[#allocation45_spill] sm:$0xff] }
 0x4e8   :  { %v3183_v33 = vsel %vm3182_vm7, %v4177_v28, %v3179_v27  ;;  %v2998_v59 = vsub.f32 1.5, %v2997_v37 }
 0x4e9   :  { %v8655_v38 = vadd.f32 1e-08, %v2833_v20  ;;  %v4181_v45 = vpop.eup %4180  ;;  %v3282_v60 = vmul.f32 %v3183_v33, %v7933_v56  ;;  %v8663_v3 = vsub.f32 %v9524_v22, %v2659_v46  ;;  %3647 = vmatmul.f32.gmra.mxu2 %v3503_v29  ;;  %3772 = vmatmul.f32.gmra.mxu3 %v3503_v29 }
 0x4ea   :  { %v2999_v2 = vmul.f32 %v4179_v35, %v2998_v59  ;;  %v3185_v43 = vmul.f32 %v4181_v45, %v8638_v16  ;;  %vm3191_vm11 = vweird.f32 %v4181_v45 }
 0x4eb   :  { %4182 = vrsqrt.f32 %v8655_v38  ;;  %v2731_v55 = vmul.f32 %v8663_v3, %v8663_v3  ;;  %v3319_v56 = vmul.f32 %v8147_v10, %v3282_v60  ;;  %v8678_v10 = vld [vmem:[%s9093_s3 + $0x1] ss:$0 sm:$0xff]  ;;  %vm3192_vm1 = vmor %vm3190_vm0, %vm3191_vm11  ;;  %vm3010_vm14 = vweird.f32 %v8655_v38 }
 0x4ec   :  { %v3003_v28 = vsel %vm3002_vm10, %v4179_v35, %v2999_v2  ;;  %v3186_v30 = vmul.f32 %v4181_v45, %v3185_v43 }
 0x4ed   :  { %v3264_v31 = vmul.f32 %v3003_v28, %v9525_v36  ;;  %2784 = vadd.xlane.f32.xlu2 %v2731_v55  ;;  %v3356_v9 = vadd.f32 %v8182_v51, %v3319_v56  ;;  %v9532_v36 = vld [vmem:[#allocation48_spill] sm:$0xff] }
 0x4ee   :  { %v2811_v7 = vpop.xlane.xlu0 %2810  ;;  %v3187_v15 = vmul.f32 0.5, %v3186_v30  ;;  %3593 = vmatmul.f32.gmra.mxu0 %v3485_v41  ;;  %3718 = vmatmul.f32.gmra.mxu1 %v3485_v41 }
 0x4ef   :  { %v2852_v52 = vmul.f32 %v2811_v7, %v4543_v42  ;;  %v3392_v62 = vadd.f32 %v3356_v9, %v9526_v24  ;;  %v3301_v32 = vmul.f32 %v8678_v10, %v3264_v31 }
 0x4f0   :  { %v3188_v34 = vsub.f32 1.5, %v3187_v15 }
 0x4f1   :  { %v4183_v6 = vpop.eup %4182  ;;  %v2888_v54 = vadd.f32 1e-08, %v2852_v52  ;;  %vm3428_vm15 = vcmp.gt.f32.partialorder %v3392_v62, 0.0  ;;  %v3468_v4 = vmul.f32 %v8221_v19, %v3392_v62  ;;  %v3338_v57 = vadd.f32 %v8182_v51, %v3301_v32  ;;  %v8708_v52 = vld [vmem:[%s9095_s5] ss:$0 sm:$0xff] }
 0x4f2   :  { %v3005_v49 = vmul.f32 %v4183_v6, %v8655_v38  ;;  %v3189_v18 = vmul.f32 %v4181_v45, %v3188_v34  ;;  %vm3011_vm12 = vweird.f32 %v4183_v6 }
 0x4f3   :  { %4184 = vrsqrt.f32 %v2888_v54  ;;  %v3504_v11 = vsel %vm3428_vm15, %v3392_v62, %v3468_v4  ;;  %v3374_v40 = vadd.f32 %v3338_v57, %v9527_v50  ;;  %vm3012_vm4 = vmor %vm3010_vm14, %vm3011_vm12  ;;  %vm3200_vm5 = vweird.f32 %v2888_v54  ;;  %v9533_v4 = vld [vmem:[#allocation35_spill] sm:$0xff] }
 0x4f4   :  { %v3006_v35 = vmul.f32 %v4183_v6, %v3005_v49  ;;  %v3193_v21 = vsel %vm3192_vm1, %v4181_v45, %v3189_v18  ;;  %3650 = vmatmul.f32.gmra.mxu2 %v3504_v11  ;;  %3775 = vmatmul.f32.gmra.mxu3 %v3504_v11  ;;  %v3544_v11 = vld [vmem:[%s9097_s7] sm:$0x3] }
 0x4f5   :  { %v3283_v47 = vmul.f32 %v3193_v21, %v9528_v8  ;;  %vm3410_vm13 = vcmp.gt.f32.partialorder %v3374_v40, 0.0  ;;  %v3450_v44 = vmul.f32 %v8221_v19, %v3374_v40  ;;  %v8718_v8 = vperm.slane %v3544_v11, 0 }
 0x4f6   :  { %v3007_v14 = vmul.f32 0.5, %v3006_v35 }
 0x4f7   :  { %v3320_v16 = vmul.f32 %v8678_v10, %v3283_v47  ;;  %v3486_v17 = vsel %vm3410_vm13, %v3374_v40, %v3450_v44  ;;  %v8720_v44 = vperm.slane %v3544_v11, 1 }
 0x4f8   :  { %v3008_v25 = vsub.f32 1.5, %v3007_v14  ;;  %3596 = vmatmul.f32.gmra.mxu0 %v3486_v17  ;;  %3721 = vmatmul.f32.gmra.mxu1 %v3486_v17 }
 0x4f9   :  { %v4185_v20 = vpop.eup %4184  ;;  %v3357_v1 = vadd.f32 %v8693_v39, %v3320_v16 }
 0x4fa   :  { %v3009_v63 = vmul.f32 %v4183_v6, %v3008_v25  ;;  %v3195_v51 = vmul.f32 %v4185_v20, %v2888_v54  ;;  %vm3201_vm3 = vweird.f32 %v4185_v20 }
 0x4fb   :  { %v3393_v33 = vadd.f32 %v3357_v1, %v9530_v61  ;;  %vm3202_vm7 = vmor %vm3200_vm5, %vm3201_vm3 }
 0x4fc   :  { %v3013_v27 = vsel %vm3012_vm4, %v4183_v6, %v3009_v63  ;;  %v3196_v37 = vmul.f32 %v4185_v20, %v3195_v51 }
 0x4fd   :  { %v3265_v46 = vmul.f32 %v3013_v27, %v9529_v23  ;;  %vm3429_vm2 = vcmp.gt.f32.partialorder %v3393_v33, 0.0  ;;  %v3469_v53 = vmul.f32 %v8221_v19, %v3393_v33  ;;  %v9531_v19 = vld [vmem:[#allocation21_spill] sm:$0xff] }
 0x4fe   :  { %v3197_v59 = vmul.f32 0.5, %v3196_v37 }
 0x4ff   :  { %v2777_v38 = vpop.xlane.xlu0 %2776  ;;  %v3302_v60 = vmul.f32 %v8678_v10, %v3265_v46  ;;  %v2775_v2 = vpop.xlane.xlu1 %2774  ;;  %v3505_v43 = vsel %vm3429_vm2, %v3393_v33, %v3469_v53  ;;  %v9534_v46 = vld [vmem:[#allocation38_spill] sm:$0xff] }
 0x500   :  { %v2835_v45 = vmul.f32 %v2777_v38, %v4543_v42  ;;  %v3198_v22 = vsub.f32 1.5, %v3197_v59  ;;  %v2834_v56 = vmul.f32 %v2775_v2, %v4543_v42  ;;  %3653 = vmatmul.f32.gmra.mxu2 %v3505_v43  ;;  %3778 = vmatmul.f32.gmra.mxu3 %v3505_v43 }
 0x501   :  { %v3339_v41 = vadd.f32 %v8693_v39, %v3302_v60 }
 0x502   :  { %v2871_v29 = vadd.f32 1e-08, %v2835_v45  ;;  %v3199_v55 = vmul.f32 %v4185_v20, %v3198_v22  ;;  %v2870_v7 = vadd.f32 1e-08, %v2834_v56  ;;  %v9535_v45 = vld [vmem:[#allocation7_spill] sm:$0xff]  ;;  %v9536_v56 = vld [vmem:[#allocation25_spill] sm:$0xff] }
 0x503   :  { %v3375_v28 = vadd.f32 %v3339_v41, %v9531_v19 }
 0x504   :  { %4186 = vrsqrt.f32 %v2871_v29  ;;  %v3203_v30 = vsel %vm3202_vm7, %v4185_v20, %v3199_v55  ;;  %vm3020_vm10 = vweird.f32 %v2870_v7  ;;  %vm3030_vm0 = vweird.f32 %v2871_v29 }
 0x505   :  { %v3284_v31 = vmul.f32 %v3203_v30, %v9532_v36  ;;  %vm3411_vm6 = vcmp.gt.f32.partialorder %v3375_v28, 0.0  ;;  %v3451_v9 = vmul.f32 %v8708_v52, %v3375_v28  ;;  %4188 = vrsqrt.f32 %v2870_v7 }
 0x507   :  { %v3487_v15 = vsel %vm3411_vm6, %v3375_v28, %v3451_v9  ;;  %v3321_v54 = vmul.f32 %v8678_v10, %v3284_v31 }
 0x508   :  { %3599 = vmatmul.f32.gmra.mxu0 %v3487_v15  ;;  %3724 = vmatmul.f32.gmra.mxu1 %v3487_v15 }
 0x509   :  { %v3358_v62 = vadd.f32 %v8693_v39, %v3321_v54 }
 0x50a   :  { %v4187_v6 = vpop.eup %4186 }
 0x50b   :  { %v3025_v24 = vmul.f32 %v4187_v6, %v2871_v29  ;;  %v4189_v32 = vpop.eup %4188  ;;  %v3394_v18 = vadd.f32 %v3358_v62, %v9533_v4  ;;  %vm3031_vm11 = vweird.f32 %v4187_v6 }
 0x50c   :  { %v3015_v49 = vmul.f32 %v4189_v32, %v2870_v7  ;;  %vm3021_vm9 = vweird.f32 %v4189_v32  ;;  %vm3032_vm1 = vmor %vm3030_vm0, %vm3031_vm11 }
 0x50d   :  { %v3026_v34 = vmul.f32 %v4187_v6, %v3025_v24  ;;  %vm3430_vm8 = vcmp.gt.f32.partialorder %v3394_v18, 0.0  ;;  %v3470_v21 = vmul.f32 %v8708_v52, %v3394_v18  ;;  %vm3022_vm15 = vmor %vm3020_vm10, %vm3021_vm9  ;;  %v9537_v24 = vld [vmem:[#allocation36_spill] sm:$0xff] }
 0x50e   :  { %v3016_v57 = vmul.f32 %v4189_v32, %v3015_v49 }
 0x50f   :  { %v3027_v35 = vmul.f32 0.5, %v3026_v34  ;;  %v3506_v40 = vsel %vm3430_vm8, %v3394_v18, %v3470_v21  ;;  %v2815_v47 = vpop.xlane.xlu1 %2814 }
 0x510   :  { %v3017_v14 = vmul.f32 0.5, %v3016_v57  ;;  %3656 = vmatmul.f32.gmra.mxu2 %v3506_v40  ;;  %3781 = vmatmul.f32.gmra.mxu3 %v3506_v40  ;;  %v2854_v20 = vmul.f32 %v2815_v47, %v4543_v42 }
 0x511   :  { %v3028_v50 = vsub.f32 1.5, %v3027_v35 }
 0x512   :  { %v3018_v25 = vsub.f32 1.5, %v3017_v14  ;;  %v2890_v51 = vadd.f32 1e-08, %v2854_v20 }
 0x513   :  { %v3029_v63 = vmul.f32 %v4187_v6, %v3028_v50  ;;  %v3567_v17 = vpop.f32.mrf.mxu0  ;;  %v3692_v1 = vpop.f32.mrf.mxu1 }
 0x514   :  { %v3019_v16 = vmul.f32 %v4189_v32, %v3018_v25  ;;  %v3568_v37 = vadd.f32 %v3567_v17, %v8718_v8  ;;  %v3693_v23 = vadd.f32 %v3692_v1, %v8720_v44  ;;  %4190 = vrsqrt.f32 %v2890_v51 }
 0x515   :  { %v3033_v33 = vsel %vm3032_vm1, %v4187_v6, %v3029_v63  ;;  %vm3220_vm14 = vweird.f32 %v2890_v51 }
 0x516   :  { %v3023_v27 = vsel %vm3022_vm15, %v4189_v32, %v3019_v16  ;;  %3800 = vst [vmem:[%s9098_s8] sm:$0xff] %v3568_v37  ;;  %v3267_v60 = vmul.f32 %v3033_v33, %v9535_v45  ;;  %v9538_v16 = vld [vmem:[#allocation37_spill] sm:$0xff] }
 0x517   :  { %v3266_v61 = vmul.f32 %v3023_v27, %v9534_v46  ;;  %3801 = vst [vmem:[%s9098_s8 + $0x8] sm:$0xff] %v3693_v23 }
 0x518   :  { %v2813_v59 = vpop.xlane.xlu2 %2812  ;;  %v3304_v31 = vmul.f32 %v8678_v10, %v3267_v60 }
 0x519   :  { %v3303_v38 = vmul.f32 %v8678_v10, %v3266_v61  ;;  %v2853_v53 = vmul.f32 %v2813_v59, %v4543_v42 }
 0x51a   :  { %v4191_v2 = vpop.eup %4190  ;;  %v3341_v6 = vadd.f32 %v8693_v39, %v3304_v31 }
 0x51b   :  { %v3340_v22 = vadd.f32 %v8693_v39, %v3303_v38  ;;  %v2889_v43 = vadd.f32 1e-08, %v2853_v53  ;;  %v3215_v29 = vmul.f32 %v4191_v2, %v2890_v51  ;;  %v3570_v41 = vpop.f32.mrf.mxu0  ;;  %v3695_v55 = vpop.f32.mrf.mxu1  ;;  %vm3221_vm13 = vweird.f32 %v4191_v2 }
 0x51c   :  { %v3571_v28 = vadd.f32 %v3570_v41, %v8718_v8  ;;  %v3696_v30 = vadd.f32 %v3695_v55, %v8720_v44  ;;  %v3377_v62 = vadd.f32 %v3341_v6, %v9537_v24  ;;  %vm3222_vm4 = vmor %vm3220_vm14, %vm3221_vm13 }
 0x51d   :  { %v3376_v19 = vadd.f32 %v3340_v22, %v9536_v56  ;;  %4192 = vrsqrt.f32 %v2889_v43  ;;  %v3216_v7 = vmul.f32 %v4191_v2, %v3215_v29  ;;  %vm3210_vm5 = vweird.f32 %v2889_v43 }
 0x51e   :  { %3802 = vst [vmem:[%s9098_s8 + $0x10] sm:$0xff] %v3571_v28  ;;  %vm3413_vm2 = vcmp.gt.f32.partialorder %v3377_v62, 0.0  ;;  %v3453_v21 = vmul.f32 %v8708_v52, %v3377_v62 }
 0x51f   :  { %vm3412_vm12 = vcmp.gt.f32.partialorder %v3376_v19, 0.0  ;;  %v3452_v36 = vmul.f32 %v8708_v52, %v3376_v19  ;;  %v3217_v9 = vmul.f32 0.5, %v3216_v7  ;;  %3803 = vst [vmem:[%s9098_s8 + $0x18] sm:$0xff] %v3696_v30 }
 0x520   :  { %v3489_v20 = vsel %vm3413_vm2, %v3377_v62, %v3453_v21 }
 0x521   :  { %v3488_v15 = vsel %vm3412_vm12, %v3376_v19, %v3452_v36  ;;  %v3218_v54 = vsub.f32 1.5, %v3217_v9 }
 0x522   :  { %3602 = vmatmul.f32.gmra.mxu0 %v3488_v15  ;;  %3727 = vmatmul.f32.gmra.mxu1 %v3488_v15 }
 0x523   :  { %v4193_v32 = vpop.eup %4192  ;;  %v3621_v34 = vpop.f32.mrf.mxu2  ;;  %v3219_v4 = vmul.f32 %v4191_v2, %v3218_v54  ;;  %v9539_v54 = vld [vmem:[#allocation27_spill] sm:$0xff] }
 0x524   :  { %v3746_v49 = vpop.f32.mrf.mxu3  ;;  %v3205_v18 = vmul.f32 %v4193_v32, %v2889_v43  ;;  %v3622_v35 = vadd.f32 %v3621_v34, %v8718_v8  ;;  %vm3211_vm3 = vweird.f32 %v4193_v32 }
 0x525   :  { %v3747_v57 = vadd.f32 %v3746_v49, %v8720_v44  ;;  %v2817_v11 = vpop.xlane.xlu0 %2816  ;;  %v3223_v14 = vsel %vm3222_vm4, %v4191_v2, %v3219_v4  ;;  %vm3212_vm7 = vmor %vm3210_vm5, %vm3211_vm3 }
 0x526   :  { %v3206_v50 = vmul.f32 %v4193_v32, %v3205_v18  ;;  %3836 = vst [vmem:[%s9098_s8 + $0x120] sm:$0xff] %v3622_v35  ;;  %v2855_v40 = vmul.f32 %v2817_v11, %v4543_v42  ;;  %v3286_v63 = vmul.f32 %v3223_v14, %v9538_v16 }
 0x527   :  { %3837 = vst [vmem:[%s9098_s8 + $0x128] sm:$0xff] %v3747_v57 }
 0x528   :  { %v3207_v47 = vmul.f32 0.5, %v3206_v50  ;;  %v2891_v25 = vadd.f32 1e-08, %v2855_v40  ;;  %v3323_v43 = vmul.f32 %v8678_v10, %v3286_v63 }
 0x529   :  { %v3573_v51 = vpop.f32.mrf.mxu0  ;;  %v3698_v17 = vpop.f32.mrf.mxu1 }
 0x52a   :  { %3605 = vmatmul.f32.gmra.mxu0 %v3489_v20  ;;  %3730 = vmatmul.f32.gmra.mxu1 %v3489_v20  ;;  %v3208_v1 = vsub.f32 1.5, %v3207_v47  ;;  %v3574_v27 = vadd.f32 %v3573_v51, %v8718_v8  ;;  %v3699_v37 = vadd.f32 %v3698_v17, %v8720_v44  ;;  %4194 = vrsqrt.f32 %v2891_v25 }
 0x52b   :  { %v2781_v23 = vpop.xlane.xlu1 %2780  ;;  %v3360_v28 = vadd.f32 %v8693_v39, %v3323_v43  ;;  %vm3230_vm9 = vweird.f32 %v2891_v25 }
 0x52c   :  { %v2837_v46 = vmul.f32 %v2781_v23, %v4543_v42  ;;  %v3209_v61 = vmul.f32 %v4193_v32, %v3208_v1  ;;  %3804 = vst [vmem:[%s9098_s8 + $0x20] sm:$0xff] %v3574_v27  ;;  %v3624_v33 = vpop.f32.mrf.mxu2  ;;  %v3749_v59 = vpop.f32.mrf.mxu3 }
 0x52d   :  { %3805 = vst [vmem:[%s9098_s8 + $0x28] sm:$0xff] %v3699_v37  ;;  %v3625_v38 = vadd.f32 %v3624_v33, %v8718_v8  ;;  %v3750_v53 = vadd.f32 %v3749_v59, %v8720_v44 }
 0x52e   :  { %v2873_v45 = vadd.f32 1e-08, %v2837_v46  ;;  %v2779_v60 = vpop.xlane.xlu2 %2778  ;;  %v3213_v22 = vsel %vm3212_vm7, %v4193_v32, %v3209_v61  ;;  %v9540_v32 = vld [vmem:[#allocation28_spill] sm:$0xff] }
 0x52f   :  { %v2836_v2 = vmul.f32 %v2779_v60, %v4543_v42  ;;  %v3285_v29 = vmul.f32 %v3213_v22, %v8333_v0  ;;  %3838 = vst [vmem:[%s9098_s8 + $0x130] sm:$0xff] %v3625_v38  ;;  %v3396_v34 = vadd.f32 %v3360_v28, %v9540_v32  ;;  %v9541_v22 = vld [vmem:[#allocation29_spill] sm:$0xff] }
 0x530   :  { %4196 = vrsqrt.f32 %v2873_v45  ;;  %v4195_v41 = vpop.eup %4194  ;;  %3839 = vst [vmem:[%s9098_s8 + $0x138] sm:$0xff] %v3750_v53  ;;  %vm3050_vm15 = vweird.f32 %v2873_v45 }
 0x531   :  { %v8781_v55 = vadd.f32 1e-08, %v2836_v2  ;;  %v3225_v56 = vmul.f32 %v4195_v41, %v2891_v25  ;;  %v3322_v19 = vmul.f32 %v8678_v10, %v3285_v29  ;;  %vm3231_vm6 = vweird.f32 %v4195_v41 }
 0x532   :  { %vm3232_vm10 = vmor %vm3230_vm9, %vm3231_vm6  ;;  %v3472_v16 = vmul.f32 %v8708_v52, %v3396_v34  ;;  %vm3432_vm0 = vcmp.gt.f32.partialorder %v3396_v34, 0.0 }
 0x533   :  { %4198 = vrsqrt.f32 %v8781_v55  ;;  %v3226_v0 = vmul.f32 %v4195_v41, %v3225_v56  ;;  %v3359_v30 = vadd.f32 %v8693_v39, %v3322_v19  ;;  %vm3040_vm13 = vweird.f32 %v8781_v55 }
 0x534   :  { %v3627_v7 = vpop.f32.mrf.mxu2  ;;  %v3752_v36 = vpop.f32.mrf.mxu3 }
 0x535   :  { %v3227_v9 = vmul.f32 0.5, %v3226_v0  ;;  %v3628_v15 = vadd.f32 %v3627_v7, %v8718_v8  ;;  %v3753_v6 = vadd.f32 %v3752_v36, %v8720_v44  ;;  %v3395_v24 = vadd.f32 %v3359_v30, %v9539_v54  ;;  %v9542_v54 = vld [vmem:[#allocation30_spill] sm:$0xff] }
 0x536   :  { %v4197_v31 = vpop.eup %4196 }
 0x537   :  { %v3045_v62 = vmul.f32 %v4197_v31, %v2873_v45  ;;  %v3228_v49 = vsub.f32 1.5, %v3227_v9  ;;  %3840 = vst [vmem:[%s9098_s8 + $0x140] sm:$0xff] %v3628_v15  ;;  %vm3431_vm8 = vcmp.gt.f32.partialorder %v3395_v24, 0.0  ;;  %v3471_v4 = vmul.f32 %v8708_v52, %v3395_v24 }
 0x538   :  { %3841 = vst [vmem:[%s9098_s8 + $0x148] sm:$0xff] %v3753_v6  ;;  %vm3051_vm11 = vweird.f32 %v4197_v31  ;;  %v3508_v45 = vsel %vm3432_vm0, %v3396_v34, %v3472_v16 }
 0x539   :  { %v4199_v18 = vpop.eup %4198  ;;  %v3046_v35 = vmul.f32 %v4197_v31, %v3045_v62  ;;  %v3229_v57 = vmul.f32 %v4195_v41, %v3228_v49  ;;  %v3507_v21 = vsel %vm3431_vm8, %v3395_v24, %v3471_v4  ;;  %vm3052_vm1 = vmor %vm3050_vm15, %vm3051_vm11 }
 0x53a   :  { %v3035_v11 = vmul.f32 %v4199_v18, %v8781_v55  ;;  %3659 = vmatmul.f32.gmra.mxu2 %v3507_v21  ;;  %3784 = vmatmul.f32.gmra.mxu3 %v3507_v21  ;;  %vm3041_vm12 = vweird.f32 %v4199_v18 }
 0x53b   :  { %v3047_v14 = vmul.f32 0.5, %v3046_v35  ;;  %v3233_v50 = vsel %vm3232_vm10, %v4195_v41, %v3229_v57  ;;  %v3576_v47 = vpop.f32.mrf.mxu0  ;;  %v3701_v20 = vpop.f32.mrf.mxu1  ;;  %vm3042_vm14 = vmor %vm3040_vm13, %vm3041_vm12 }
 0x53c   :  { %v3036_v40 = vmul.f32 %v4199_v18, %v3035_v11  ;;  %v3287_v63 = vmul.f32 %v3233_v50, %v8417_v48  ;;  %v3630_v17 = vpop.f32.mrf.mxu2  ;;  %v3755_v1 = vpop.f32.mrf.mxu3  ;;  %v3577_v25 = vadd.f32 %v3576_v47, %v8718_v8  ;;  %v3702_v46 = vadd.f32 %v3701_v20, %v8720_v44 }
 0x53d   :  { %v3048_v51 = vsub.f32 1.5, %v3047_v14  ;;  %v3631_v37 = vadd.f32 %v3630_v17, %v8718_v8  ;;  %v3756_v23 = vadd.f32 %v3755_v1, %v8720_v44 }
 0x53e   :  { %v3037_v27 = vmul.f32 0.5, %v3036_v40  ;;  %3806 = vst [vmem:[%s9098_s8 + $0x30] sm:$0xff] %v3577_v25  ;;  %v3324_v48 = vmul.f32 %v8678_v10, %v3287_v63  ;;  %v9543_v40 = vld [vmem:[#allocation33_spill] sm:$0xff] }
 0x53f   :  { %v3049_v61 = vmul.f32 %v4197_v31, %v3048_v51  ;;  %3842 = vst [vmem:[%s9098_s8 + $0x150] sm:$0xff] %v3631_v37 }
 0x540   :  { %v3038_v33 = vsub.f32 1.5, %v3037_v27  ;;  %3843 = vst [vmem:[%s9098_s8 + $0x158] sm:$0xff] %v3756_v23  ;;  %v3361_v38 = vadd.f32 %v8693_v39, %v3324_v48 }
 0x541   :  { %v3053_v59 = vsel %vm3052_vm1, %v4197_v31, %v3049_v61  ;;  %3807 = vst [vmem:[%s9098_s8 + $0x38] sm:$0xff] %v3702_v46 }
 0x542   :  { %v3039_v53 = vmul.f32 %v4199_v18, %v3038_v33  ;;  %v3269_v60 = vmul.f32 %v3053_v59, %v8463_v26  ;;  %3662 = vmatmul.f32.gmra.mxu2 %v3508_v45  ;;  %3787 = vmatmul.f32.gmra.mxu3 %v3508_v45  ;;  %v3397_v2 = vadd.f32 %v3361_v38, %v9541_v22 }
 0x543   :  { %v3579_v29 = vpop.f32.mrf.mxu0  ;;  %v3704_v41 = vpop.f32.mrf.mxu1 }
 0x544   :  { %v3043_v43 = vsel %vm3042_vm14, %v4199_v18, %v3039_v53  ;;  %v3633_v19 = vpop.f32.mrf.mxu2  ;;  %v3758_v28 = vpop.f32.mrf.mxu3  ;;  %v3580_v55 = vadd.f32 %v3579_v29, %v8718_v8  ;;  %v3705_v26 = vadd.f32 %v3704_v41, %v8720_v44  ;;  %v3473_v7 = vmul.f32 %v8708_v52, %v3397_v2 }
 0x545   :  { %v3268_v56 = vmul.f32 %v3043_v43, %v8475_v13  ;;  %v3634_v0 = vadd.f32 %v3633_v19, %v8718_v8  ;;  %v3759_v30 = vadd.f32 %v3758_v28, %v8720_v44  ;;  %vm3433_vm4 = vcmp.gt.f32.partialorder %v3397_v2, 0.0 }
 0x546   :  { %3808 = vst [vmem:[%s9098_s8 + $0x40] sm:$0xff] %v3580_v55  ;;  %v3306_v13 = vmul.f32 %v8678_v10, %v3269_v60  ;;  %v3509_v6 = vsel %vm3433_vm4, %v3397_v2, %v3473_v7 }
 0x547   :  { %v3305_v36 = vmul.f32 %v8678_v10, %v3268_v56  ;;  %3844 = vst [vmem:[%s9098_s8 + $0x160] sm:$0xff] %v3634_v0 }
 0x548   :  { %3845 = vst [vmem:[%s9098_s8 + $0x168] sm:$0xff] %v3759_v30  ;;  %v2819_v31 = vpop.xlane.xlu2 %2818  ;;  %v3343_v62 = vadd.f32 %v8693_v39, %v3306_v13 }
 0x549   :  { %v3342_v9 = vadd.f32 %v8693_v39, %v3305_v36  ;;  %3809 = vst [vmem:[%s9098_s8 + $0x48] sm:$0xff] %v3705_v26  ;;  %v2856_v15 = vmul.f32 %v2819_v31, %v4543_v42 }
 0x54a   :  { %3665 = vmatmul.f32.gmra.mxu2 %v3509_v6  ;;  %3790 = vmatmul.f32.gmra.mxu3 %v3509_v6  ;;  %v3379_v47 = vadd.f32 %v3343_v62, %v9543_v40 }
 0x54b   :  { %v3378_v24 = vadd.f32 %v3342_v9, %v9542_v54  ;;  %v3582_v32 = vpop.f32.mrf.mxu0  ;;  %v3707_v34 = vpop.f32.mrf.mxu1  ;;  %v2892_v49 = vadd.f32 1e-08, %v2856_v15 }
 0x54c   :  { %v3583_v4 = vadd.f32 %v3582_v32, %v8718_v8  ;;  %v3708_v18 = vadd.f32 %v3707_v34, %v8720_v44  ;;  %v3636_v35 = vpop.f32.mrf.mxu2  ;;  %v3761_v57 = vpop.f32.mrf.mxu3  ;;  %v3455_v20 = vmul.f32 %v8708_v52, %v3379_v47  ;;  %vm3415_vm3 = vcmp.gt.f32.partialorder %v3379_v47, 0.0 }
 0x54d   :  { %vm3414_vm2 = vcmp.gt.f32.partialorder %v3378_v24, 0.0  ;;  %v3454_v11 = vmul.f32 %v8708_v52, %v3378_v24  ;;  %4200 = vrsqrt.f32 %v2892_v49  ;;  %v3637_v21 = vadd.f32 %v3636_v35, %v8718_v8 }
 0x54e   :  { %v3762_v14 = vadd.f32 %v3761_v57, %v8720_v44  ;;  %3810 = vst [vmem:[%s9098_s8 + $0x50] sm:$0xff] %v3583_v4  ;;  %v3491_v59 = vsel %vm3415_vm3, %v3379_v47, %v3455_v20  ;;  %vm3240_vm7 = vweird.f32 %v2892_v49  ;;  %v9544_v57 = vld [vmem:[#allocation32_spill] sm:$0xff] }
 0x54f   :  { %v3490_v50 = vsel %vm3414_vm2, %v3378_v24, %v3454_v11  ;;  %3811 = vst [vmem:[%s9098_s8 + $0x58] sm:$0xff] %v3708_v18 }
 0x550   :  { %3608 = vmatmul.f32.gmra.mxu0 %v3490_v50  ;;  %3733 = vmatmul.f32.gmra.mxu1 %v3490_v50  ;;  %3846 = vst [vmem:[%s9098_s8 + $0x170] sm:$0xff] %v3637_v21 }
 0x551   :  { %3847 = vst [vmem:[%s9098_s8 + $0x178] sm:$0xff] %v3762_v14 }
 0x552   :  { %v2783_v27 = vpop.xlane.xlu0 %2782 }
 0x553   :  { %v4201_v16 = vpop.eup %4200  ;;  %v3585_v63 = vpop.f32.mrf.mxu0  ;;  %v2838_v23 = vmul.f32 %v2783_v27, %v4543_v42 }
 0x554   :  { %v3710_v51 = vpop.f32.mrf.mxu1  ;;  %v3235_v17 = vmul.f32 %v4201_v16, %v2892_v49  ;;  %v3586_v1 = vadd.f32 %v3585_v63, %v8718_v8  ;;  %v3639_v37 = vpop.f32.mrf.mxu2  ;;  %vm3241_vm5 = vweird.f32 %v4201_v16 }
 0x555   :  { %v3711_v25 = vadd.f32 %v3710_v51, %v8720_v44  ;;  %v3640_v46 = vadd.f32 %v3639_v37, %v8718_v8  ;;  %v3764_v61 = vpop.f32.mrf.mxu3  ;;  %v2874_v38 = vadd.f32 1e-08, %v2838_v23  ;;  %vm3242_vm6 = vmor %vm3240_vm7, %vm3241_vm5 }
 0x556   :  { %v3236_v48 = vmul.f32 %v4201_v16, %v3235_v17  ;;  %3812 = vst [vmem:[%s9098_s8 + $0x60] sm:$0xff] %v3586_v1  ;;  %v3765_v33 = vadd.f32 %v3764_v61, %v8720_v44 }
 0x557   :  { %3813 = vst [vmem:[%s9098_s8 + $0x68] sm:$0xff] %v3711_v25  ;;  %4202 = vrsqrt.f32 %v2874_v38  ;;  %vm3060_vm10 = vweird.f32 %v2874_v38 }
 0x558   :  { %3611 = vmatmul.f32.gmra.mxu0 %v3491_v59  ;;  %3736 = vmatmul.f32.gmra.mxu1 %v3491_v59  ;;  %v3237_v53 = vmul.f32 0.5, %v3236_v48  ;;  %3848 = vst [vmem:[%s9098_s8 + $0x180] sm:$0xff] %v3640_v46  ;;  %v2821_v60 = vpop.xlane.xlu1 %2820 }
 0x559   :  { %3849 = vst [vmem:[%s9098_s8 + $0x188] sm:$0xff] %v3765_v33  ;;  %v2857_v43 = vmul.f32 %v2821_v60, %v4543_v42 }
 0x55a   :  { %v3238_v45 = vsub.f32 1.5, %v3237_v53 }
 0x55b   :  { %v3588_v22 = vpop.f32.mrf.mxu0  ;;  %v8885_v28 = vadd.f32 1e-08, %v2857_v43 }
 0x55c   :  { %v3713_v2 = vpop.f32.mrf.mxu1  ;;  %v3239_v29 = vmul.f32 %v4201_v16, %v3238_v45  ;;  %v3589_v41 = vadd.f32 %v3588_v22, %v8718_v8  ;;  %v3642_v19 = vpop.f32.mrf.mxu2 }
 0x55d   :  { %v3714_v56 = vadd.f32 %v3713_v2, %v8720_v44  ;;  %v3643_v55 = vadd.f32 %v3642_v19, %v8718_v8  ;;  %v3767_v0 = vpop.f32.mrf.mxu3  ;;  %v4203_v7 = vpop.eup %4202  ;;  %4204 = vrsqrt.f32 %v8885_v28  ;;  %vm3250_vm0 = vweird.f32 %v8885_v28 }
 0x55e   :  { %v3243_v30 = vsel %vm3242_vm6, %v4201_v16, %v3239_v29  ;;  %3814 = vst [vmem:[%s9098_s8 + $0x70] sm:$0xff] %v3589_v41  ;;  %v3768_v26 = vadd.f32 %v3767_v0, %v8720_v44  ;;  %v3055_v13 = vmul.f32 %v4203_v7, %v2874_v38  ;;  %vm3061_vm8 = vweird.f32 %v4203_v7  ;;  %v9545_v29 = vld [vmem:[#allocation5_spill] sm:$0xff] }
 0x55f   :  { %v3288_v36 = vmul.f32 %v3243_v30, %v8594_v12  ;;  %3815 = vst [vmem:[%s9098_s8 + $0x78] sm:$0xff] %v3714_v56  ;;  %vm3062_vm11 = vmor %vm3060_vm10, %vm3061_vm8 }
 0x560   :  { %3850 = vst [vmem:[%s9098_s8 + $0x190] sm:$0xff] %v3643_v55  ;;  %v2785_v31 = vpop.xlane.xlu2 %2784  ;;  %v3056_v15 = vmul.f32 %v4203_v7, %v3055_v13 }
 0x561   :  { %3851 = vst [vmem:[%s9098_s8 + $0x198] sm:$0xff] %v3768_v26  ;;  %v2839_v9 = vmul.f32 %v2785_v31, %v4543_v42  ;;  %v3325_v12 = vmul.f32 %v8678_v10, %v3288_v36 }
 0x562   :  { %v3057_v32 = vmul.f32 0.5, %v3056_v15 }
 0x563   :  { %v3591_v6 = vpop.f32.mrf.mxu0  ;;  %v8905_v24 = vadd.f32 1e-08, %v2839_v9  ;;  %v3362_v62 = vadd.f32 %v8693_v39, %v3325_v12  ;;  %v4205_v18 = vpop.eup %4204  ;;  %v9546_v12 = vld [vmem:[#allocation6_spill] sm:$0xff] }
 0x564   :  { %v3716_v54 = vpop.f32.mrf.mxu1  ;;  %v3592_v34 = vadd.f32 %v3591_v6, %v8718_v8  ;;  %v3645_v4 = vpop.f32.mrf.mxu2  ;;  %v3058_v21 = vsub.f32 1.5, %v3057_v32  ;;  %v3245_v14 = vmul.f32 %v4205_v18, %v8885_v28  ;;  %vm3251_vm15 = vweird.f32 %v4205_v18 }
 0x565   :  { %v3717_v49 = vadd.f32 %v3716_v54, %v8720_v44  ;;  %4206 = vrsqrt.f32 %v8905_v24  ;;  %v3646_v42 = vadd.f32 %v3645_v4, %v8718_v8  ;;  %v3770_v35 = vpop.f32.mrf.mxu3  ;;  %v3398_v11 = vadd.f32 %v3362_v62, %v9544_v57  ;;  %vm3252_vm1 = vmor %vm3250_vm0, %vm3251_vm15 }
 0x566   :  { %3816 = vst [vmem:[%s9098_s8 + $0x80] sm:$0xff] %v3592_v34  ;;  %v3771_v50 = vadd.f32 %v3770_v35, %v8720_v44  ;;  %v3059_v47 = vmul.f32 %v4203_v7, %v3058_v21  ;;  %v3246_v20 = vmul.f32 %v4205_v18, %v3245_v14  ;;  %vm3070_vm14 = vweird.f32 %v8905_v24 }
 0x567   :  { %3817 = vst [vmem:[%s9098_s8 + $0x88] sm:$0xff] %v3717_v49  ;;  %vm3434_vm9 = vcmp.gt.f32.partialorder %v3398_v11, 0.0  ;;  %v3474_v40 = vmul.f32 %v8708_v52, %v3398_v11  ;;  %v9547_v49 = vld [vmem:[#allocation2_spill] sm:$0xff] }
 0x568   :  { %3852 = vst [vmem:[%s9098_s8 + $0x1a0] sm:$0xff] %v3646_v42  ;;  %v3063_v63 = vsel %vm3062_vm11, %v4203_v7, %v3059_v47  ;;  %v3247_v51 = vmul.f32 0.5, %v3246_v20 }
 0x569   :  { %3853 = vst [vmem:[%s9098_s8 + $0x1a8] sm:$0xff] %v3771_v50  ;;  %v3510_v16 = vsel %vm3434_vm9, %v3398_v11, %v3474_v40  ;;  %v3270_v1 = vmul.f32 %v3063_v63, %v8627_v58 }
 0x56a   :  { %3668 = vmatmul.f32.gmra.mxu2 %v3510_v16  ;;  %3793 = vmatmul.f32.gmra.mxu3 %v3510_v16  ;;  %v3248_v37 = vsub.f32 1.5, %v3247_v51 }
 0x56b   :  { %v4207_v17 = vpop.eup %4206  ;;  %v3594_v25 = vpop.f32.mrf.mxu0  ;;  %v3307_v48 = vmul.f32 %v8678_v10, %v3270_v1 }
 0x56c   :  { %v3719_v27 = vpop.f32.mrf.mxu1  ;;  %v3065_v23 = vmul.f32 %v4207_v17, %v8905_v24  ;;  %v3595_v46 = vadd.f32 %v3594_v25, %v8718_v8  ;;  %v3249_v33 = vmul.f32 %v4205_v18, %v3248_v37  ;;  %v3648_v58 = vpop.f32.mrf.mxu2  ;;  %vm3071_vm12 = vweird.f32 %v4207_v17 }
 0x56d   :  { %v3720_v61 = vadd.f32 %v3719_v27, %v8720_v44  ;;  %v3773_v38 = vpop.f32.mrf.mxu3  ;;  %v3649_v53 = vadd.f32 %v3648_v58, %v8718_v8  ;;  %v3344_v60 = vadd.f32 %v8693_v39, %v3307_v48  ;;  %vm3072_vm4 = vmor %vm3070_vm14, %vm3071_vm12 }
 0x56e   :  { %v3066_v59 = vmul.f32 %v4207_v17, %v3065_v23  ;;  %3818 = vst [vmem:[%s9098_s8 + $0x90] sm:$0xff] %v3595_v46  ;;  %v3774_v45 = vadd.f32 %v3773_v38, %v8720_v44  ;;  %v3253_v22 = vsel %vm3252_vm1, %v4205_v18, %v3249_v33 }
 0x56f   :  { %3819 = vst [vmem:[%s9098_s8 + $0x98] sm:$0xff] %v3720_v61  ;;  %v3289_v43 = vmul.f32 %v3253_v22, %v8643_v5  ;;  %v3380_v41 = vadd.f32 %v3344_v60, %v9545_v29 }
 0x570   :  { %v3067_v2 = vmul.f32 0.5, %v3066_v59  ;;  %3854 = vst [vmem:[%s9098_s8 + $0x1b0] sm:$0xff] %v3649_v53 }
 0x571   :  { %3855 = vst [vmem:[%s9098_s8 + $0x1b8] sm:$0xff] %v3774_v45  ;;  %vm3416_vm13 = vcmp.gt.f32.partialorder %v3380_v41, 0.0  ;;  %v3456_v19 = vmul.f32 %v8708_v52, %v3380_v41  ;;  %v3326_v28 = vmul.f32 %v8678_v10, %v3289_v43 }
 0x572   :  { %v3068_v56 = vsub.f32 1.5, %v3067_v2 }
 0x573   :  { %v3492_v5 = vsel %vm3416_vm13, %v3380_v41, %v3456_v19  ;;  %v3363_v0 = vadd.f32 %v8693_v39, %v3326_v28 }
 0x574   :  { %v3069_v55 = vmul.f32 %v4207_v17, %v3068_v56  ;;  %3614 = vmatmul.f32.gmra.mxu0 %v3492_v5  ;;  %3739 = vmatmul.f32.gmra.mxu1 %v3492_v5 }
 0x575   :  { %v3597_v26 = vpop.f32.mrf.mxu0  ;;  %v3722_v7 = vpop.f32.mrf.mxu1  ;;  %v3399_v15 = vadd.f32 %v3363_v0, %v9546_v12 }
 0x576   :  { %v3073_v30 = vsel %vm3072_vm4, %v4207_v17, %v3069_v55  ;;  %v3598_v9 = vadd.f32 %v3597_v26, %v8718_v8  ;;  %v3723_v24 = vadd.f32 %v3722_v7, %v8720_v44 }
 0x577   :  { %v3271_v36 = vmul.f32 %v3073_v30, %v8663_v3  ;;  %v3651_v13 = vpop.f32.mrf.mxu2  ;;  %v3776_v31 = vpop.f32.mrf.mxu3  ;;  %vm3435_vm2 = vcmp.gt.f32.partialorder %v3399_v15, 0.0  ;;  %v3475_v62 = vmul.f32 %v8708_v52, %v3399_v15 }
 0x578   :  { %v3652_v6 = vadd.f32 %v3651_v13, %v8718_v8  ;;  %v3777_v54 = vadd.f32 %v3776_v31, %v8720_v44  ;;  %3820 = vst [vmem:[%s9098_s8 + $0xa0] sm:$0xff] %v3598_v9 }
 0x579   :  { %v3308_v3 = vmul.f32 %v8678_v10, %v3271_v36  ;;  %v3511_v32 = vsel %vm3435_vm2, %v3399_v15, %v3475_v62  ;;  %3821 = vst [vmem:[%s9098_s8 + $0xa8] sm:$0xff] %v3723_v24 }
 0x57a   :  { %3856 = vst [vmem:[%s9098_s8 + $0x1c0] sm:$0xff] %v3652_v6  ;;  %3671 = vmatmul.f32.gmra.mxu2 %v3511_v32  ;;  %3796 = vmatmul.f32.gmra.mxu3 %v3511_v32 }
 0x57b   :  { %3857 = vst [vmem:[%s9098_s8 + $0x1c8] sm:$0xff] %v3777_v54  ;;  %v3345_v34 = vadd.f32 %v8693_v39, %v3308_v3 }
 0x57d   :  { %v3381_v4 = vadd.f32 %v3345_v34, %v9547_v49 }
 0x57f   :  { %vm3417_vm3 = vcmp.gt.f32.partialorder %v3381_v4, 0.0  ;;  %v3457_v10 = vmul.f32 %v8708_v52, %v3381_v4 }
 0x581   :  { %v3493_v18 = vsel %vm3417_vm3, %v3381_v4, %v3457_v10 }
 0x582   :  { %3617 = vmatmul.f32.gmra.mxu0 %v3493_v18  ;;  %3742 = vmatmul.f32.gmra.mxu1 %v3493_v18 }
 0x583   :  { %v3654_v42 = vpop.f32.mrf.mxu2  ;;  %v3779_v35 = vpop.f32.mrf.mxu3 }
 0x584   :  { %v3655_v57 = vadd.f32 %v3654_v42, %v8718_v8  ;;  %v3780_v39 = vadd.f32 %v3779_v35, %v8720_v44 }
 0x585   :  { %v3600_v11 = vpop.f32.mrf.mxu0  ;;  %v3725_v21 = vpop.f32.mrf.mxu1 }
 0x586   :  { %v3601_v14 = vadd.f32 %v3600_v11, %v8718_v8  ;;  %v3726_v50 = vadd.f32 %v3725_v21, %v8720_v44  ;;  %3858 = vst [vmem:[%s9098_s8 + $0x1d0] sm:$0xff] %v3655_v57 }
 0x587   :  { %3859 = vst [vmem:[%s9098_s8 + $0x1d8] sm:$0xff] %v3780_v39 }
 0x588   :  { %3822 = vst [vmem:[%s9098_s8 + $0xb0] sm:$0xff] %v3601_v14 }
 0x589   :  { %3823 = vst [vmem:[%s9098_s8 + $0xb8] sm:$0xff] %v3726_v50 }
 0x593   :  { %v3657_v52 = vpop.f32.mrf.mxu2  ;;  %v3782_v40 = vpop.f32.mrf.mxu3 }
 0x594   :  { %v3658_v47 = vadd.f32 %v3657_v52, %v8718_v8  ;;  %v3783_v20 = vadd.f32 %v3782_v40, %v8720_v44 }
 0x596   :  { %3860 = vst [vmem:[%s9098_s8 + $0x1e0] sm:$0xff] %v3658_v47 }
 0x597   :  { %3861 = vst [vmem:[%s9098_s8 + $0x1e8] sm:$0xff] %v3783_v20 }
 0x59f   :  { %v3603_v16 = vpop.f32.mrf.mxu0  ;;  %v3728_v63 = vpop.f32.mrf.mxu1 }
 0x5a0   :  { %v3604_v51 = vadd.f32 %v3603_v16, %v8718_v8  ;;  %v3729_v17 = vadd.f32 %v3728_v63, %v8720_v44 }
 0x5a2   :  { %3824 = vst [vmem:[%s9098_s8 + $0xc0] sm:$0xff] %v3604_v51 }
 0x5a3   :  { %3825 = vst [vmem:[%s9098_s8 + $0xc8] sm:$0xff] %v3729_v17 }
 0x5a7   :  { %v3606_v1 = vpop.f32.mrf.mxu0  ;;  %v3731_v25 = vpop.f32.mrf.mxu1 }
 0x5a8   :  { %v3607_v27 = vadd.f32 %v3606_v1, %v8718_v8  ;;  %v3732_v37 = vadd.f32 %v3731_v25, %v8720_v44 }
 0x5aa   :  { %3826 = vst [vmem:[%s9098_s8 + $0xd0] sm:$0xff] %v3607_v27 }
 0x5ab   :  { %3827 = vst [vmem:[%s9098_s8 + $0xd8] sm:$0xff] %v3732_v37 }
 0x5bd   :  { %v3660_v23 = vpop.f32.mrf.mxu2  ;;  %v3785_v46 = vpop.f32.mrf.mxu3 }
 0x5be   :  { %v3661_v61 = vadd.f32 %v3660_v23, %v8718_v8  ;;  %v3786_v48 = vadd.f32 %v3785_v46, %v8720_v44 }
 0x5c0   :  { %3862 = vst [vmem:[%s9098_s8 + $0x1f0] sm:$0xff] %v3661_v61 }
 0x5c1   :  { %3863 = vst [vmem:[%s9098_s8 + $0x1f8] sm:$0xff] %v3786_v48 }
 0x5c5   :  { %v3663_v33 = vpop.f32.mrf.mxu2  ;;  %v3788_v59 = vpop.f32.mrf.mxu3 }
 0x5c6   :  { %v3664_v58 = vadd.f32 %v3663_v33, %v8718_v8  ;;  %v3789_v38 = vadd.f32 %v3788_v59, %v8720_v44 }
 0x5c8   :  { %3864 = vst [vmem:[%s9098_s8 + $0x200] sm:$0xff] %v3664_v58 }
 0x5c9   :  { %3865 = vst [vmem:[%s9098_s8 + $0x208] sm:$0xff] %v3789_v38 }
 0x5cd   :  { %v3609_v53 = vpop.f32.mrf.mxu0  ;;  %v3734_v45 = vpop.f32.mrf.mxu1 }
 0x5ce   :  { %v3666_v60 = vpop.f32.mrf.mxu2  ;;  %v3791_v22 = vpop.f32.mrf.mxu3  ;;  %v3610_v2 = vadd.f32 %v3609_v53, %v8718_v8  ;;  %v3735_v41 = vadd.f32 %v3734_v45, %v8720_v44 }
 0x5cf   :  { %v3667_v43 = vadd.f32 %v3666_v60, %v8718_v8  ;;  %v3792_v29 = vadd.f32 %v3791_v22, %v8720_v44 }
 0x5d0   :  { %3828 = vst [vmem:[%s9098_s8 + $0xe0] sm:$0xff] %v3610_v2 }
 0x5d1   :  { %3866 = vst [vmem:[%s9098_s8 + $0x210] sm:$0xff] %v3667_v43 }
 0x5d2   :  { %3867 = vst [vmem:[%s9098_s8 + $0x218] sm:$0xff] %v3792_v29 }
 0x5d3   :  { %3829 = vst [vmem:[%s9098_s8 + $0xe8] sm:$0xff] %v3735_v41 }
 0x5d5   :  { %v3612_v56 = vpop.f32.mrf.mxu0  ;;  %v3737_v19 = vpop.f32.mrf.mxu1 }
 0x5d6   :  { %v3613_v28 = vadd.f32 %v3612_v56, %v8718_v8  ;;  %v3738_v55 = vadd.f32 %v3737_v19, %v8720_v44 }
 0x5d8   :  { %3830 = vst [vmem:[%s9098_s8 + $0xf0] sm:$0xff] %v3613_v28 }
 0x5d9   :  { %3831 = vst [vmem:[%s9098_s8 + $0xf8] sm:$0xff] %v3738_v55 }
 0x5ed   :  { %v3669_v5 = vpop.f32.mrf.mxu2  ;;  %v3794_v0 = vpop.f32.mrf.mxu3 }
 0x5ee   :  { %v3670_v30 = vadd.f32 %v3669_v5, %v8718_v8  ;;  %v3795_v26 = vadd.f32 %v3794_v0, %v8720_v44 }
 0x5f0   :  { %3868 = vst [vmem:[%s9098_s8 + $0x220] sm:$0xff] %v3670_v30 }
 0x5f1   :  { %3869 = vst [vmem:[%s9098_s8 + $0x228] sm:$0xff] %v3795_v26  ;;  %v3615_v7 = vpop.f32.mrf.mxu0  ;;  %v3740_v36 = vpop.f32.mrf.mxu1 }
 0x5f2   :  { %v3616_v13 = vadd.f32 %v3615_v7, %v8718_v8  ;;  %v3741_v31 = vadd.f32 %v3740_v36, %v8720_v44 }
 0x5f4   :  { %3832 = vst [vmem:[%s9098_s8 + $0x100] sm:$0xff] %v3616_v13 }
 0x5f5   :  { %3833 = vst [vmem:[%s9098_s8 + $0x108] sm:$0xff] %v3741_v31 }
 0x5fd   :  { %v3672_v9 = vpop.f32.mrf.mxu2  ;;  %v3797_v12 = vpop.f32.mrf.mxu3 }
 0x5fe   :  { %v3673_v15 = vadd.f32 %v3672_v9, %v8718_v8  ;;  %v3798_v6 = vadd.f32 %v3797_v12, %v8720_v44 }
 0x5ff   :  { %v3618_v54 = vpop.f32.mrf.mxu0  ;;  %v3743_v24 = vpop.f32.mrf.mxu1 }
 0x600   :  { %v3619_v62 = vadd.f32 %v3618_v54, %v8718_v8  ;;  %v3744_v3 = vadd.f32 %v3743_v24, %v8720_v44  ;;  %3870 = vst [vmem:[%s9098_s8 + $0x230] sm:$0xff] %v3673_v15 }
 0x601   :  { %3871 = vst [vmem:[%s9098_s8 + $0x238] sm:$0xff] %v3798_v6 }
 0x602   :  { %3834 = vst [vmem:[%s9098_s8 + $0x110] sm:$0xff] %v3619_v62 }
 0x603   :  { %3835 = vst [vmem:[%s9098_s8 + $0x118] sm:$0xff] %v3744_v3 }

</bundles_post_ra>
